<compile_context>
chip_gen: v7x
topology: tpu7x:2x2x1
jax: 0.10.0
libtpu: 0.0.40
codegen_flags: <defaults>
</compile_context>

<pallas_src>
import functools
import math

import jax
import jax.numpy as jnp
from jax import lax
from jax.experimental import pallas as pl
from jax.experimental.pallas import tpu as pltpu

hidden_size = 128
input_size = 1
num_classes = 1
num_layers = 1

_TIME_CHUNK = 128   # default timesteps per pipelined grid step
_LANE = 128
_SUBLANE = 8


def _device_kind():
    try:
        return jax.devices()[0].device_kind.lower()
    except Exception:  # pragma: no cover - backend not initialised
        return ""


_KIND = _device_kind()
_IS_V5 = "v5" in _KIND          # v5e: no bf16 VPU/EUP -> keep gate math in f32
_TWO_TC = "v7" in _KIND         # v7x: 2 TensorCores per chip
_BF16_GATES = not _IS_V5


def _round_up(x, m):
    return ((x + m - 1) // m) * m


def _sigmoid_1eup(x):
    # sigmoid(x) == 0.5 * tanh(0.5 * x) + 0.5 : a single EUP op per gate.
    return 0.5 * jnp.tanh(0.5 * x) + 0.5


def _lstm_fc_kernel(x_ref, wih_ref, whh_ref, b_ref, fcw_ref, fcb_ref,
                    out_ref, h_scr, c_scr, *, chunk, valid_last, unroll,
                    bf16_gates):
    """Runs `chunk` LSTM steps for one batch slab; fc on the last time chunk.

    grid = (batch_slabs, time_chunks).  Batch axis is "parallel" (independent
    -> shardable across TensorCores), time axis is "arbitrary" (sequential
    recurrence; h/c scratch carries state across chunks).  Everything is
    feature-major: the hidden/gate axis sits on sublanes, batch on lanes.

    x_ref   : (Tc, Bb)    time-major input slab (lane-dense, pipelined)
    wih_ref : (4H, 1)     W_ih column (input_size == 1)
    whh_ref : (4H, H)     W_hh, bf16 (native MXU operand)
    b_ref   : (4H, 1)     b_ih + b_hh
    fcw_ref : (Cs, H)     fc.weight, class dim padded to 8 sublanes
    fcb_ref : (Cs, 1)     fc.bias padded
    out_ref : (Cs, Bb)    written only on the last time chunk
    h_scr   : (H, Bb)     persistent VMEM hidden state (f32)
    c_scr   : (H, Bb)     persistent VMEM cell state   (f32)
    """
    t_id = pl.program_id(1)
    n_t = pl.num_programs(1)
    H = h_scr.shape[0]

    @pl.when(t_id == 0)
    def _():
        h_scr[...] = jnp.zeros_like(h_scr)
        c_scr[...] = jnp.zeros_like(c_scr)

    is_last = t_id == n_t - 1
    need_mask = valid_last != chunk      # Python-level: only last chunk pads T

    # Hoisted loop invariants (weights / bias are identical every step; keep
    # the bf16 W_hh read out of the fori_loop so it stays resident).
    wih = wih_ref[...]                    # (4H, 1) f32
    bias = b_ref[...]                     # (4H, 1) f32
    whh = whh_ref[...]                    # (4H, H) bf16

    def step(t, carry):
        # Dynamic *sublane* slice: one timestep across the batch lanes.
        x_t = x_ref[pl.ds(t, 1), :]                         # (1, Bb)
        # Input projection (input_size == 1): rank-1 VPU broadcast product.
        # Depends only on x, so under unroll it overlaps neighbouring steps'
        # MXU latency instead of sitting on the h-dependency chain.
        xw = wih * x_t                                      # (4H, Bb)
        gates = xw + bias + jnp.dot(
            whh, h_scr[...].astype(jnp.bfloat16),
            preferred_element_type=jnp.float32)             # (4H, Bb) f32 acc
        if bf16_gates:
            gates = gates.astype(jnp.bfloat16)              # bf16 VPU/EUP path
        # PyTorch gate order along the 4H axis: i, f, g, o.
        i_g = _sigmoid_1eup(gates[0 * H:1 * H, :])
        f_g = _sigmoid_1eup(gates[1 * H:2 * H, :])
        g_g = jnp.tanh(gates[2 * H:3 * H, :])
        o_g = _sigmoid_1eup(gates[3 * H:4 * H, :])
        c_new = f_g * c_scr[...] + i_g * g_g                # f32 (c_scr f32)
        h_new = o_g * jnp.tanh(c_new)
        if need_mask:
            # Last chunk may contain zero-padded timesteps: freeze state.
            valid = jnp.logical_or(jnp.logical_not(is_last), t < valid_last)
            c_new = jnp.where(valid, c_new, c_scr[...])
            h_new = jnp.where(valid, h_new, h_scr[...])
        c_scr[...] = c_new
        h_scr[...] = h_new
        return carry

    lax.fori_loop(0, chunk, step, 0, unroll=unroll)

    @pl.when(is_last)
    def _():
        out_ref[...] = (jnp.dot(fcw_ref[...], h_scr[...],
                                preferred_element_type=jnp.float32)
                        + fcb_ref[...])


@functools.partial(jax.jit, static_argnames=("time_chunk",))
def lstm_forward(x, params, *, time_chunk=_TIME_CHUNK):
    """x: (B, T, input_size) float32 (batch_first). Returns (B, num_classes)."""
    w_ih, w_hh, b_ih, b_hh, fc_w, fc_b = params
    B, T, I = x.shape
    assert I == input_size == 1, "kernel is specialised for input_size == 1"
    H = hidden_size
    Cs = _SUBLANE                               # fc class dim padded to 8 rows

    # ---- batch slab (the "parallel" grid axis) ----
    if B <= _LANE:
        Bb = max(_SUBLANE, _round_up(B, _SUBLANE))
    elif _TWO_TC:
        Bb = _LANE       # keep >= 2 slabs so both v7x TensorCores get work
    else:
        # v5e/v6e: single TC -> fewer, fatter slabs (when padding waste is low)
        Bb = 2 * _LANE if (B % (2 * _LANE) == 0 or B >= 4 * _LANE) else _LANE
    n_b = (B + Bb - 1) // Bb
    Bp = n_b * Bb

    # ---- time chunking (the "arbitrary" grid axis); bounds VMEM for any T ----
    if T <= time_chunk:
        Tc, n_t = T, 1
    else:
        Tc = max(_SUBLANE, _round_up(time_chunk, _SUBLANE))  # sublane-aligned
        n_t = (T + Tc - 1) // Tc
    T_pad = n_t * Tc
    valid_last = T - (n_t - 1) * Tc

    # Time-major, lane-dense x: (T_pad, Bp); the size-1 feature dim is dropped.
    x_tm = jnp.pad(jnp.transpose(x[:, :, 0].astype(jnp.float32)),
                   ((0, T_pad - T), (0, Bp - B)))

    # Weight prep (cheap reshapes/pads; wrapper is jitted so it all fuses).
    wih_col = w_ih.astype(jnp.float32).reshape(4 * H, 1)      # (4H, 1)
    whh_bf = w_hh.astype(jnp.bfloat16)                        # (4H, H) bf16
    bias_col = (b_ih + b_hh).astype(jnp.float32).reshape(4 * H, 1)
    fcw_p = jnp.pad(fc_w.astype(jnp.float32),
                    ((0, Cs - num_classes), (0, 0)))          # (Cs, H)
    fcb_p = jnp.pad(fc_b.astype(jnp.float32).reshape(-1, 1),
                    ((0, Cs - num_classes), (0, 0)))          # (Cs, 1)

    kernel = functools.partial(_lstm_fc_kernel, chunk=Tc,
                               valid_last=valid_last,
                               unroll=min(Tc, 8),
                               bf16_gates=_BF16_GATES)

    out_padded = pl.pallas_call(
        kernel,
        out_shape=jax.ShapeDtypeStruct((Cs, Bp), jnp.float32),
        grid=(n_b, n_t),
        in_specs=[
            pl.BlockSpec((Tc, Bb), lambda b, t: (t, b)),       # x: pipelined
            pl.BlockSpec((4 * H, 1), lambda b, t: (0, 0)),     # W_ih column
            pl.BlockSpec((4 * H, H), lambda b, t: (0, 0)),     # W_hh (bf16)
            pl.BlockSpec((4 * H, 1), lambda b, t: (0, 0)),     # bias column
            pl.BlockSpec((Cs, H), lambda b, t: (0, 0)),        # fc weight
            pl.BlockSpec((Cs, 1), lambda b, t: (0, 0)),        # fc bias
        ],
        out_specs=pl.BlockSpec((Cs, Bb), lambda b, t: (0, b)),
        scratch_shapes=[pltpu.VMEM((H, Bb), jnp.float32),      # h state
                        pltpu.VMEM((H, Bb), jnp.float32)],     # c state
        compiler_params=pltpu.CompilerParams(
            dimension_semantics=("parallel", "arbitrary")),
    )(x_tm, wih_col, whh_bf, bias_col, fcw_p, fcb_p)

    # (Cs, Bp) feature-major -> (B, num_classes)
    return jnp.transpose(out_padded[:num_classes, :B])


def init_params(key):
    """Deterministic init mirroring PyTorch's uniform(-1/sqrt(H), 1/sqrt(H))."""
    k = 1.0 / math.sqrt(hidden_size)
    keys = jax.random.split(key, 6)
    w_ih = jax.random.uniform(keys[0], (4 * hidden_size, input_size),
                              minval=-k, maxval=k, dtype=jnp.float32)
    w_hh = jax.random.uniform(keys[1], (4 * hidden_size, hidden_size),
                              minval=-k, maxval=k, dtype=jnp.float32)
    b_ih = jax.random.uniform(keys[2], (4 * hidden_size,),
                              minval=-k, maxval=k, dtype=jnp.float32)
    b_hh = jax.random.uniform(keys[3], (4 * hidden_size,),
                              minval=-k, maxval=k, dtype=jnp.float32)
    fc_w = jax.random.uniform(keys[4], (num_classes, hidden_size),
                              minval=-k, maxval=k, dtype=jnp.float32)
    fc_b = jax.random.uniform(keys[5], (num_classes,),
                              minval=-k, maxval=k, dtype=jnp.float32)
    return (w_ih, w_hh, b_ih, b_hh, fc_w, fc_b)


def lstm_forward_ref(x, params):
    """Pure-JAX reference (same math as torch.nn.LSTM forward + fc)."""
    w_ih, w_hh, b_ih, b_hh, fc_w, fc_b = params
    B = x.shape[0]
    H = hidden_size

    def step(carry, x_t):
        h, c = carry
        gates = x_t @ w_ih.T + h @ w_hh.T + b_ih + b_hh
        i_g = jax.nn.sigmoid(gates[:, 0 * H:1 * H])
        f_g = jax.nn.sigmoid(gates[:, 1 * H:2 * H])
        g_g = jnp.tanh(gates[:, 2 * H:3 * H])
        o_g = jax.nn.sigmoid(gates[:, 3 * H:4 * H])
        c = f_g * c + i_g * g_g
        h = o_g * jnp.tanh(c)
        return (h, c), None

    h0 = jnp.zeros((B, H), jnp.float32)
    c0 = jnp.zeros((B, H), jnp.float32)
    (h_out, _), _ = lax.scan(step, (h0, c0), jnp.transpose(x, (1, 0, 2)))
    return h_out @ fc_w.T + fc_b


if __name__ == "__main__":
    key = jax.random.PRNGKey(0)
    pkey, xkey1, xkey2 = jax.random.split(key, 3)
    params = init_params(pkey)

    # bf16 recurrent matmul (and bf16 gate math on v6e/v7x) -> slightly looser
    # tolerance than pure-f32; error stays small at these sequence lengths.
    TOL = 2e-2

    # Test 1: small batch-first input, single time chunk, fully unrolled.
    B, T = 2, 8
    x = jax.random.normal(xkey1, (B, T, input_size), dtype=jnp.float32)
    out = jax.block_until_ready(lstm_forward(x, params))
    out_ref = lstm_forward_ref(x, params)
    assert out.shape == (B, num_classes)
    assert jnp.allclose(out, out_ref, rtol=TOL, atol=TOL), (out, out_ref)

    # Test 2: exercises time pipelining across chunks + tail masking + padding.
    B2, T2 = 5, 20
    x2 = jax.random.normal(xkey2, (B2, T2, input_size), dtype=jnp.float32)
    out2 = jax.block_until_ready(lstm_forward(x2, params, time_chunk=8))
    out2_ref = lstm_forward_ref(x2, params)
    assert out2.shape == (B2, num_classes)
    assert jnp.allclose(out2, out2_ref, rtol=TOL, atol=TOL), (out2, out2_ref)

    print("KERNEL_OK")
</pallas_src>

<mosaic_0001>
module attributes {stable_mosaic.version = 11 : i64} {
  func.func @_lstm_fc_kernel(%arg0: i32, %arg1: i32, %arg2: memref<8x8xf32, #tpu.memory_space<vmem>>, %arg3: memref<512x1xf32, #tpu.memory_space<vmem>>, %arg4: memref<512x128xbf16, #tpu.memory_space<vmem>>, %arg5: memref<512x1xf32, #tpu.memory_space<vmem>>, %arg6: memref<8x128xf32, #tpu.memory_space<vmem>>, %arg7: memref<8x1xf32, #tpu.memory_space<vmem>>, %arg8: memref<8x8xf32, #tpu.memory_space<vmem>>, %arg9: memref<128x8xf32, #tpu.memory_space<vmem>>, %arg10: memref<128x8xf32, #tpu.memory_space<vmem>>) attributes {dimension_semantics = [#tpu.dimension_semantics<parallel>, #tpu.dimension_semantics<arbitrary>], iteration_bounds = array<i64: 1, 1>, scalar_prefetch = 0 : i64, scratch_operands = 2 : i64, tpu.core_type = #tpu.core_type<tc>, window_params = [{transform_indices = @transform_0, window_bounds = array<i64: 8, 8>}, {pipeline_mode = #tpu.pipeline_mode<synchronous>, transform_indices = @transform_1, window_bounds = array<i64: 512, 1>}, {pipeline_mode = #tpu.pipeline_mode<synchronous>, transform_indices = @transform_2, window_bounds = array<i64: 512, 128>}, {pipeline_mode = #tpu.pipeline_mode<synchronous>, transform_indices = @transform_3, window_bounds = array<i64: 512, 1>}, {pipeline_mode = #tpu.pipeline_mode<synchronous>, transform_indices = @transform_4, window_bounds = array<i64: 8, 128>}, {pipeline_mode = #tpu.pipeline_mode<synchronous>, transform_indices = @transform_5, window_bounds = array<i64: 8, 1>}, {transform_indices = @transform_6, window_bounds = array<i64: 8, 8>}]} {
    %c0_i32 = arith.constant 0 : i32
    %0 = arith.cmpi eq, %arg1, %c0_i32 : i32
    %1 = arith.extui %0 : i1 to i32
    %c0_i32_0 = arith.constant 0 : i32
    %2 = arith.cmpi ne, %1, %c0_i32_0 : i32
    scf.if %2 {
      %cst_160 = arith.constant 0.000000e+00 : f32
      %401 = vector.broadcast %cst_160 : f32 to vector<128x8xf32>
      %c0_161 = arith.constant 0 : index
      %c0_162 = arith.constant 0 : index
      %402 = vector.load %arg9[%c0_161, %c0_162] : memref<128x8xf32, #tpu.memory_space<vmem>>, vector<128x8xf32>
      tpu.vector_store %arg9[%c0_161, %c0_162], %401 {strides = array<i32>} : memref<128x8xf32, #tpu.memory_space<vmem>>, vector<128x8xf32>,
      %cst_163 = arith.constant 0.000000e+00 : f32
      %403 = vector.broadcast %cst_163 : f32 to vector<128x8xf32>
      %c0_164 = arith.constant 0 : index
      %c0_165 = arith.constant 0 : index
      %404 = vector.load %arg10[%c0_164, %c0_165] : memref<128x8xf32, #tpu.memory_space<vmem>>, vector<128x8xf32>
      tpu.vector_store %arg10[%c0_164, %c0_165], %403 {strides = array<i32>} : memref<128x8xf32, #tpu.memory_space<vmem>>, vector<128x8xf32>,
    } else {
    }
    %c0_i32_1 = arith.constant 0 : i32
    %3 = arith.cmpi eq, %arg1, %c0_i32_1 : i32
    %c0 = arith.constant 0 : index
    %c0_2 = arith.constant 0 : index
    %4 = vector.load %arg3[%c0, %c0_2] : memref<512x1xf32, #tpu.memory_space<vmem>>, vector<512x1xf32>
    %c0_3 = arith.constant 0 : index
    %c0_4 = arith.constant 0 : index
    %5 = vector.load %arg5[%c0_3, %c0_4] : memref<512x1xf32, #tpu.memory_space<vmem>>, vector<512x1xf32>
    %c0_5 = arith.constant 0 : index
    %c0_6 = arith.constant 0 : index
    %6 = vector.load %arg4[%c0_5, %c0_6] : memref<512x128xbf16, #tpu.memory_space<vmem>>, vector<512x128xbf16>
    %c0_i32_7 = arith.constant 0 : i32
    %7 = arith.index_cast %c0_i32_7 : i32 to index
    %c0_8 = arith.constant 0 : index
    %8 = vector.load %arg2[%7, %c0_8] : memref<8x8xf32, #tpu.memory_space<vmem>>, vector<1x8xf32>
    %9 = vector.broadcast %4 : vector<512x1xf32> to vector<512x8xf32>
    %10 = vector.broadcast %8 : vector<1x8xf32> to vector<512x8xf32>
    %11 = arith.mulf %9, %10 : vector<512x8xf32>
    %12 = vector.broadcast %5 : vector<512x1xf32> to vector<512x8xf32>
    %13 = arith.addf %11, %12 : vector<512x8xf32>
    %c0_9 = arith.constant 0 : index
    %c0_10 = arith.constant 0 : index
    %14 = vector.load %arg9[%c0_9, %c0_10] : memref<128x8xf32, #tpu.memory_space<vmem>>, vector<128x8xf32>
    %15 = arith.truncf %14 : vector<128x8xf32> to vector<128x8xbf16>
    %cst = arith.constant dense<0.000000e+00> : vector<512x8xf32>
    %16 = tpu.matmul %6, %15, %cst {dimension_numbers = #tpu.dot_dimension_numbers<[1], [0], [0], [1], [0, 0, 1, 1], [], []>} : vector<512x128xbf16>, vector<128x8xbf16>, vector<512x8xf32> -> vector<512x8xf32>
    %17 = arith.addf %13, %16 : vector<512x8xf32>
    %18 = arith.truncf %17 : vector<512x8xf32> to vector<512x8xbf16>
    %19 = vector.extract_strided_slice %18 {offsets = [0, 0], sizes = [128, 8], strides = [1, 1]} : vector<512x8xbf16> to vector<128x8xbf16>
    %cst_11 = arith.constant 5.000000e-01 : bf16
    %20 = vector.broadcast %cst_11 : bf16 to vector<128x8xbf16>
    %21 = arith.mulf %20, %19 : vector<128x8xbf16>
    %22 = math.tanh %21 : vector<128x8xbf16>
    %cst_12 = arith.constant 5.000000e-01 : bf16
    %23 = vector.broadcast %cst_12 : bf16 to vector<128x8xbf16>
    %24 = arith.mulf %23, %22 : vector<128x8xbf16>
    %cst_13 = arith.constant 5.000000e-01 : bf16
    %25 = vector.broadcast %cst_13 : bf16 to vector<128x8xbf16>
    %26 = arith.addf %24, %25 : vector<128x8xbf16>
    %27 = vector.extract_strided_slice %18 {offsets = [128, 0], sizes = [128, 8], strides = [1, 1]} : vector<512x8xbf16> to vector<128x8xbf16>
    %cst_14 = arith.constant 5.000000e-01 : bf16
    %28 = vector.broadcast %cst_14 : bf16 to vector<128x8xbf16>
    %29 = arith.mulf %28, %27 : vector<128x8xbf16>
    %30 = math.tanh %29 : vector<128x8xbf16>
    %cst_15 = arith.constant 5.000000e-01 : bf16
    %31 = vector.broadcast %cst_15 : bf16 to vector<128x8xbf16>
    %32 = arith.mulf %31, %30 : vector<128x8xbf16>
    %cst_16 = arith.constant 5.000000e-01 : bf16
    %33 = vector.broadcast %cst_16 : bf16 to vector<128x8xbf16>
    %34 = arith.addf %32, %33 : vector<128x8xbf16>
    %35 = vector.extract_strided_slice %18 {offsets = [256, 0], sizes = [128, 8], strides = [1, 1]} : vector<512x8xbf16> to vector<128x8xbf16>
    %36 = math.tanh %35 : vector<128x8xbf16>
    %37 = vector.extract_strided_slice %18 {offsets = [384, 0], sizes = [128, 8], strides = [1, 1]} : vector<512x8xbf16> to vector<128x8xbf16>
    %cst_17 = arith.constant 5.000000e-01 : bf16
    %38 = vector.broadcast %cst_17 : bf16 to vector<128x8xbf16>
    %39 = arith.mulf %38, %37 : vector<128x8xbf16>
    %40 = math.tanh %39 : vector<128x8xbf16>
    %cst_18 = arith.constant 5.000000e-01 : bf16
    %41 = vector.broadcast %cst_18 : bf16 to vector<128x8xbf16>
    %42 = arith.mulf %41, %40 : vector<128x8xbf16>
    %cst_19 = arith.constant 5.000000e-01 : bf16
    %43 = vector.broadcast %cst_19 : bf16 to vector<128x8xbf16>
    %44 = arith.addf %42, %43 : vector<128x8xbf16>
    %c0_20 = arith.constant 0 : index
    %c0_21 = arith.constant 0 : index
    %45 = vector.load %arg10[%c0_20, %c0_21] : memref<128x8xf32, #tpu.memory_space<vmem>>, vector<128x8xf32>
    %46 = arith.extf %34 : vector<128x8xbf16> to vector<128x8xf32>
    %47 = arith.mulf %46, %45 : vector<128x8xf32>
    %48 = arith.mulf %26, %36 : vector<128x8xbf16>
    %49 = arith.extf %48 : vector<128x8xbf16> to vector<128x8xf32>
    %50 = arith.addf %47, %49 : vector<128x8xf32>
    %51 = math.tanh %50 : vector<128x8xf32>
    %52 = arith.extf %44 : vector<128x8xbf16> to vector<128x8xf32>
    %53 = arith.mulf %52, %51 : vector<128x8xf32>
    %c0_22 = arith.constant 0 : index
    %c0_23 = arith.constant 0 : index
    %54 = vector.load %arg10[%c0_22, %c0_23] : memref<128x8xf32, #tpu.memory_space<vmem>>, vector<128x8xf32>
    tpu.vector_store %arg10[%c0_22, %c0_23], %50 {strides = array<i32>} : memref<128x8xf32, #tpu.memory_space<vmem>>, vector<128x8xf32>,
    %c0_24 = arith.constant 0 : index
    %c0_25 = arith.constant 0 : index
    %55 = vector.load %arg9[%c0_24, %c0_25] : memref<128x8xf32, #tpu.memory_space<vmem>>, vector<128x8xf32>
    tpu.vector_store %arg9[%c0_24, %c0_25], %53 {strides = array<i32>} : memref<128x8xf32, #tpu.memory_space<vmem>>, vector<128x8xf32>,
    %c1_i32 = arith.constant 1 : i32
    %56 = arith.index_cast %c1_i32 : i32 to index
    %c0_26 = arith.constant 0 : index
    %57 = vector.load %arg2[%56, %c0_26] : memref<8x8xf32, #tpu.memory_space<vmem>>, vector<1x8xf32>
    %58 = vector.broadcast %4 : vector<512x1xf32> to vector<512x8xf32>
    %59 = vector.broadcast %57 : vector<1x8xf32> to vector<512x8xf32>
    %60 = arith.mulf %58, %59 : vector<512x8xf32>
    %61 = vector.broadcast %5 : vector<512x1xf32> to vector<512x8xf32>
    %62 = arith.addf %60, %61 : vector<512x8xf32>
    %c0_27 = arith.constant 0 : index
    %c0_28 = arith.constant 0 : index
    %63 = vector.load %arg9[%c0_27, %c0_28] : memref<128x8xf32, #tpu.memory_space<vmem>>, vector<128x8xf32>
    %64 = arith.truncf %63 : vector<128x8xf32> to vector<128x8xbf16>
    %cst_29 = arith.constant dense<0.000000e+00> : vector<512x8xf32>
    %65 = tpu.matmul %6, %64, %cst_29 {dimension_numbers = #tpu.dot_dimension_numbers<[1], [0], [0], [1], [0, 0, 1, 1], [], []>} : vector<512x128xbf16>, vector<128x8xbf16>, vector<512x8xf32> -> vector<512x8xf32>
    %66 = arith.addf %62, %65 : vector<512x8xf32>
    %67 = arith.truncf %66 : vector<512x8xf32> to vector<512x8xbf16>
    %68 = vector.extract_strided_slice %67 {offsets = [0, 0], sizes = [128, 8], strides = [1, 1]} : vector<512x8xbf16> to vector<128x8xbf16>
    %cst_30 = arith.constant 5.000000e-01 : bf16
    %69 = vector.broadcast %cst_30 : bf16 to vector<128x8xbf16>
    %70 = arith.mulf %69, %68 : vector<128x8xbf16>
    %71 = math.tanh %70 : vector<128x8xbf16>
    %cst_31 = arith.constant 5.000000e-01 : bf16
    %72 = vector.broadcast %cst_31 : bf16 to vector<128x8xbf16>
    %73 = arith.mulf %72, %71 : vector<128x8xbf16>
    %cst_32 = arith.constant 5.000000e-01 : bf16
    %74 = vector.broadcast %cst_32 : bf16 to vector<128x8xbf16>
    %75 = arith.addf %73, %74 : vector<128x8xbf16>
    %76 = vector.extract_strided_slice %67 {offsets = [128, 0], sizes = [128, 8], strides = [1, 1]} : vector<512x8xbf16> to vector<128x8xbf16>
    %cst_33 = arith.constant 5.000000e-01 : bf16
    %77 = vector.broadcast %cst_33 : bf16 to vector<128x8xbf16>
    %78 = arith.mulf %77, %76 : vector<128x8xbf16>
    %79 = math.tanh %78 : vector<128x8xbf16>
    %cst_34 = arith.constant 5.000000e-01 : bf16
    %80 = vector.broadcast %cst_34 : bf16 to vector<128x8xbf16>
    %81 = arith.mulf %80, %79 : vector<128x8xbf16>
    %cst_35 = arith.constant 5.000000e-01 : bf16
    %82 = vector.broadcast %cst_35 : bf16 to vector<128x8xbf16>
    %83 = arith.addf %81, %82 : vector<128x8xbf16>
    %84 = vector.extract_strided_slice %67 {offsets = [256, 0], sizes = [128, 8], strides = [1, 1]} : vector<512x8xbf16> to vector<128x8xbf16>
    %85 = math.tanh %84 : vector<128x8xbf16>
    %86 = vector.extract_strided_slice %67 {offsets = [384, 0], sizes = [128, 8], strides = [1, 1]} : vector<512x8xbf16> to vector<128x8xbf16>
    %cst_36 = arith.constant 5.000000e-01 : bf16
    %87 = vector.broadcast %cst_36 : bf16 to vector<128x8xbf16>
    %88 = arith.mulf %87, %86 : vector<128x8xbf16>
    %89 = math.tanh %88 : vector<128x8xbf16>
    %cst_37 = arith.constant 5.000000e-01 : bf16
    %90 = vector.broadcast %cst_37 : bf16 to vector<128x8xbf16>
    %91 = arith.mulf %90, %89 : vector<128x8xbf16>
    %cst_38 = arith.constant 5.000000e-01 : bf16
    %92 = vector.broadcast %cst_38 : bf16 to vector<128x8xbf16>
    %93 = arith.addf %91, %92 : vector<128x8xbf16>
    %c0_39 = arith.constant 0 : index
    %c0_40 = arith.constant 0 : index
    %94 = vector.load %arg10[%c0_39, %c0_40] : memref<128x8xf32, #tpu.memory_space<vmem>>, vector<128x8xf32>
    %95 = arith.extf %83 : vector<128x8xbf16> to vector<128x8xf32>
    %96 = arith.mulf %95, %94 : vector<128x8xf32>
    %97 = arith.mulf %75, %85 : vector<128x8xbf16>
    %98 = arith.extf %97 : vector<128x8xbf16> to vector<128x8xf32>
    %99 = arith.addf %96, %98 : vector<128x8xf32>
    %100 = math.tanh %99 : vector<128x8xf32>
    %101 = arith.extf %93 : vector<128x8xbf16> to vector<128x8xf32>
    %102 = arith.mulf %101, %100 : vector<128x8xf32>
    %c0_41 = arith.constant 0 : index
    %c0_42 = arith.constant 0 : index
    %103 = vector.load %arg10[%c0_41, %c0_42] : memref<128x8xf32, #tpu.memory_space<vmem>>, vector<128x8xf32>
    tpu.vector_store %arg10[%c0_41, %c0_42], %99 {strides = array<i32>} : memref<128x8xf32, #tpu.memory_space<vmem>>, vector<128x8xf32>,
    %c0_43 = arith.constant 0 : index
    %c0_44 = arith.constant 0 : index
    %104 = vector.load %arg9[%c0_43, %c0_44] : memref<128x8xf32, #tpu.memory_space<vmem>>, vector<128x8xf32>
    tpu.vector_store %arg9[%c0_43, %c0_44], %102 {strides = array<i32>} : memref<128x8xf32, #tpu.memory_space<vmem>>, vector<128x8xf32>,
    %c2_i32 = arith.constant 2 : i32
    %105 = arith.index_cast %c2_i32 : i32 to index
    %c0_45 = arith.constant 0 : index
    %106 = vector.load %arg2[%105, %c0_45] : memref<8x8xf32, #tpu.memory_space<vmem>>, vector<1x8xf32>
    %107 = vector.broadcast %4 : vector<512x1xf32> to vector<512x8xf32>
    %108 = vector.broadcast %106 : vector<1x8xf32> to vector<512x8xf32>
    %109 = arith.mulf %107, %108 : vector<512x8xf32>
    %110 = vector.broadcast %5 : vector<512x1xf32> to vector<512x8xf32>
    %111 = arith.addf %109, %110 : vector<512x8xf32>
    %c0_46 = arith.constant 0 : index
    %c0_47 = arith.constant 0 : index
    %112 = vector.load %arg9[%c0_46, %c0_47] : memref<128x8xf32, #tpu.memory_space<vmem>>, vector<128x8xf32>
    %113 = arith.truncf %112 : vector<128x8xf32> to vector<128x8xbf16>
    %cst_48 = arith.constant dense<0.000000e+00> : vector<512x8xf32>
    %114 = tpu.matmul %6, %113, %cst_48 {dimension_numbers = #tpu.dot_dimension_numbers<[1], [0], [0], [1], [0, 0, 1, 1], [], []>} : vector<512x128xbf16>, vector<128x8xbf16>, vector<512x8xf32> -> vector<512x8xf32>
    %115 = arith.addf %111, %114 : vector<512x8xf32>
    %116 = arith.truncf %115 : vector<512x8xf32> to vector<512x8xbf16>
    %117 = vector.extract_strided_slice %116 {offsets = [0, 0], sizes = [128, 8], strides = [1, 1]} : vector<512x8xbf16> to vector<128x8xbf16>
    %cst_49 = arith.constant 5.000000e-01 : bf16
    %118 = vector.broadcast %cst_49 : bf16 to vector<128x8xbf16>
    %119 = arith.mulf %118, %117 : vector<128x8xbf16>
    %120 = math.tanh %119 : vector<128x8xbf16>
    %cst_50 = arith.constant 5.000000e-01 : bf16
    %121 = vector.broadcast %cst_50 : bf16 to vector<128x8xbf16>
    %122 = arith.mulf %121, %120 : vector<128x8xbf16>
    %cst_51 = arith.constant 5.000000e-01 : bf16
    %123 = vector.broadcast %cst_51 : bf16 to vector<128x8xbf16>
    %124 = arith.addf %122, %123 : vector<128x8xbf16>
    %125 = vector.extract_strided_slice %116 {offsets = [128, 0], sizes = [128, 8], strides = [1, 1]} : vector<512x8xbf16> to vector<128x8xbf16>
    %cst_52 = arith.constant 5.000000e-01 : bf16
    %126 = vector.broadcast %cst_52 : bf16 to vector<128x8xbf16>
    %127 = arith.mulf %126, %125 : vector<128x8xbf16>
    %128 = math.tanh %127 : vector<128x8xbf16>
    %cst_53 = arith.constant 5.000000e-01 : bf16
    %129 = vector.broadcast %cst_53 : bf16 to vector<128x8xbf16>
    %130 = arith.mulf %129, %128 : vector<128x8xbf16>
    %cst_54 = arith.constant 5.000000e-01 : bf16
    %131 = vector.broadcast %cst_54 : bf16 to vector<128x8xbf16>
    %132 = arith.addf %130, %131 : vector<128x8xbf16>
    %133 = vector.extract_strided_slice %116 {offsets = [256, 0], sizes = [128, 8], strides = [1, 1]} : vector<512x8xbf16> to vector<128x8xbf16>
    %134 = math.tanh %133 : vector<128x8xbf16>
    %135 = vector.extract_strided_slice %116 {offsets = [384, 0], sizes = [128, 8], strides = [1, 1]} : vector<512x8xbf16> to vector<128x8xbf16>
    %cst_55 = arith.constant 5.000000e-01 : bf16
    %136 = vector.broadcast %cst_55 : bf16 to vector<128x8xbf16>
    %137 = arith.mulf %136, %135 : vector<128x8xbf16>
    %138 = math.tanh %137 : vector<128x8xbf16>
    %cst_56 = arith.constant 5.000000e-01 : bf16
    %139 = vector.broadcast %cst_56 : bf16 to vector<128x8xbf16>
    %140 = arith.mulf %139, %138 : vector<128x8xbf16>
    %cst_57 = arith.constant 5.000000e-01 : bf16
    %141 = vector.broadcast %cst_57 : bf16 to vector<128x8xbf16>
    %142 = arith.addf %140, %141 : vector<128x8xbf16>
    %c0_58 = arith.constant 0 : index
    %c0_59 = arith.constant 0 : index
    %143 = vector.load %arg10[%c0_58, %c0_59] : memref<128x8xf32, #tpu.memory_space<vmem>>, vector<128x8xf32>
    %144 = arith.extf %132 : vector<128x8xbf16> to vector<128x8xf32>
    %145 = arith.mulf %144, %143 : vector<128x8xf32>
    %146 = arith.mulf %124, %134 : vector<128x8xbf16>
    %147 = arith.extf %146 : vector<128x8xbf16> to vector<128x8xf32>
    %148 = arith.addf %145, %147 : vector<128x8xf32>
    %149 = math.tanh %148 : vector<128x8xf32>
    %150 = arith.extf %142 : vector<128x8xbf16> to vector<128x8xf32>
    %151 = arith.mulf %150, %149 : vector<128x8xf32>
    %c0_60 = arith.constant 0 : index
    %c0_61 = arith.constant 0 : index
    %152 = vector.load %arg10[%c0_60, %c0_61] : memref<128x8xf32, #tpu.memory_space<vmem>>, vector<128x8xf32>
    tpu.vector_store %arg10[%c0_60, %c0_61], %148 {strides = array<i32>} : memref<128x8xf32, #tpu.memory_space<vmem>>, vector<128x8xf32>,
    %c0_62 = arith.constant 0 : index
    %c0_63 = arith.constant 0 : index
    %153 = vector.load %arg9[%c0_62, %c0_63] : memref<128x8xf32, #tpu.memory_space<vmem>>, vector<128x8xf32>
    tpu.vector_store %arg9[%c0_62, %c0_63], %151 {strides = array<i32>} : memref<128x8xf32, #tpu.memory_space<vmem>>, vector<128x8xf32>,
    %c3_i32 = arith.constant 3 : i32
    %154 = arith.index_cast %c3_i32 : i32 to index
    %c0_64 = arith.constant 0 : index
    %155 = vector.load %arg2[%154, %c0_64] : memref<8x8xf32, #tpu.memory_space<vmem>>, vector<1x8xf32>
    %156 = vector.broadcast %4 : vector<512x1xf32> to vector<512x8xf32>
    %157 = vector.broadcast %155 : vector<1x8xf32> to vector<512x8xf32>
    %158 = arith.mulf %156, %157 : vector<512x8xf32>
    %159 = vector.broadcast %5 : vector<512x1xf32> to vector<512x8xf32>
    %160 = arith.addf %158, %159 : vector<512x8xf32>
    %c0_65 = arith.constant 0 : index
    %c0_66 = arith.constant 0 : index
    %161 = vector.load %arg9[%c0_65, %c0_66] : memref<128x8xf32, #tpu.memory_space<vmem>>, vector<128x8xf32>
    %162 = arith.truncf %161 : vector<128x8xf32> to vector<128x8xbf16>
    %cst_67 = arith.constant dense<0.000000e+00> : vector<512x8xf32>
    %163 = tpu.matmul %6, %162, %cst_67 {dimension_numbers = #tpu.dot_dimension_numbers<[1], [0], [0], [1], [0, 0, 1, 1], [], []>} : vector<512x128xbf16>, vector<128x8xbf16>, vector<512x8xf32> -> vector<512x8xf32>
    %164 = arith.addf %160, %163 : vector<512x8xf32>
    %165 = arith.truncf %164 : vector<512x8xf32> to vector<512x8xbf16>
    %166 = vector.extract_strided_slice %165 {offsets = [0, 0], sizes = [128, 8], strides = [1, 1]} : vector<512x8xbf16> to vector<128x8xbf16>
    %cst_68 = arith.constant 5.000000e-01 : bf16
    %167 = vector.broadcast %cst_68 : bf16 to vector<128x8xbf16>
    %168 = arith.mulf %167, %166 : vector<128x8xbf16>
    %169 = math.tanh %168 : vector<128x8xbf16>
    %cst_69 = arith.constant 5.000000e-01 : bf16
    %170 = vector.broadcast %cst_69 : bf16 to vector<128x8xbf16>
    %171 = arith.mulf %170, %169 : vector<128x8xbf16>
    %cst_70 = arith.constant 5.000000e-01 : bf16
    %172 = vector.broadcast %cst_70 : bf16 to vector<128x8xbf16>
    %173 = arith.addf %171, %172 : vector<128x8xbf16>
    %174 = vector.extract_strided_slice %165 {offsets = [128, 0], sizes = [128, 8], strides = [1, 1]} : vector<512x8xbf16> to vector<128x8xbf16>
    %cst_71 = arith.constant 5.000000e-01 : bf16
    %175 = vector.broadcast %cst_71 : bf16 to vector<128x8xbf16>
    %176 = arith.mulf %175, %174 : vector<128x8xbf16>
    %177 = math.tanh %176 : vector<128x8xbf16>
    %cst_72 = arith.constant 5.000000e-01 : bf16
    %178 = vector.broadcast %cst_72 : bf16 to vector<128x8xbf16>
    %179 = arith.mulf %178, %177 : vector<128x8xbf16>
    %cst_73 = arith.constant 5.000000e-01 : bf16
    %180 = vector.broadcast %cst_73 : bf16 to vector<128x8xbf16>
    %181 = arith.addf %179, %180 : vector<128x8xbf16>
    %182 = vector.extract_strided_slice %165 {offsets = [256, 0], sizes = [128, 8], strides = [1, 1]} : vector<512x8xbf16> to vector<128x8xbf16>
    %183 = math.tanh %182 : vector<128x8xbf16>
    %184 = vector.extract_strided_slice %165 {offsets = [384, 0], sizes = [128, 8], strides = [1, 1]} : vector<512x8xbf16> to vector<128x8xbf16>
    %cst_74 = arith.constant 5.000000e-01 : bf16
    %185 = vector.broadcast %cst_74 : bf16 to vector<128x8xbf16>
    %186 = arith.mulf %185, %184 : vector<128x8xbf16>
    %187 = math.tanh %186 : vector<128x8xbf16>
    %cst_75 = arith.constant 5.000000e-01 : bf16
    %188 = vector.broadcast %cst_75 : bf16 to vector<128x8xbf16>
    %189 = arith.mulf %188, %187 : vector<128x8xbf16>
    %cst_76 = arith.constant 5.000000e-01 : bf16
    %190 = vector.broadcast %cst_76 : bf16 to vector<128x8xbf16>
    %191 = arith.addf %189, %190 : vector<128x8xbf16>
    %c0_77 = arith.constant 0 : index
    %c0_78 = arith.constant 0 : index
    %192 = vector.load %arg10[%c0_77, %c0_78] : memref<128x8xf32, #tpu.memory_space<vmem>>, vector<128x8xf32>
    %193 = arith.extf %181 : vector<128x8xbf16> to vector<128x8xf32>
    %194 = arith.mulf %193, %192 : vector<128x8xf32>
    %195 = arith.mulf %173, %183 : vector<128x8xbf16>
    %196 = arith.extf %195 : vector<128x8xbf16> to vector<128x8xf32>
    %197 = arith.addf %194, %196 : vector<128x8xf32>
    %198 = math.tanh %197 : vector<128x8xf32>
    %199 = arith.extf %191 : vector<128x8xbf16> to vector<128x8xf32>
    %200 = arith.mulf %199, %198 : vector<128x8xf32>
    %c0_79 = arith.constant 0 : index
    %c0_80 = arith.constant 0 : index
    %201 = vector.load %arg10[%c0_79, %c0_80] : memref<128x8xf32, #tpu.memory_space<vmem>>, vector<128x8xf32>
    tpu.vector_store %arg10[%c0_79, %c0_80], %197 {strides = array<i32>} : memref<128x8xf32, #tpu.memory_space<vmem>>, vector<128x8xf32>,
    %c0_81 = arith.constant 0 : index
    %c0_82 = arith.constant 0 : index
    %202 = vector.load %arg9[%c0_81, %c0_82] : memref<128x8xf32, #tpu.memory_space<vmem>>, vector<128x8xf32>
    tpu.vector_store %arg9[%c0_81, %c0_82], %200 {strides = array<i32>} : memref<128x8xf32, #tpu.memory_space<vmem>>, vector<128x8xf32>,
    %c4_i32 = arith.constant 4 : i32
    %203 = arith.index_cast %c4_i32 : i32 to index
    %c0_83 = arith.constant 0 : index
    %204 = vector.load %arg2[%203, %c0_83] : memref<8x8xf32, #tpu.memory_space<vmem>>, vector<1x8xf32>
    %205 = vector.broadcast %4 : vector<512x1xf32> to vector<512x8xf32>
    %206 = vector.broadcast %204 : vector<1x8xf32> to vector<512x8xf32>
    %207 = arith.mulf %205, %206 : vector<512x8xf32>
    %208 = vector.broadcast %5 : vector<512x1xf32> to vector<512x8xf32>
    %209 = arith.addf %207, %208 : vector<512x8xf32>
    %c0_84 = arith.constant 0 : index
    %c0_85 = arith.constant 0 : index
    %210 = vector.load %arg9[%c0_84, %c0_85] : memref<128x8xf32, #tpu.memory_space<vmem>>, vector<128x8xf32>
    %211 = arith.truncf %210 : vector<128x8xf32> to vector<128x8xbf16>
    %cst_86 = arith.constant dense<0.000000e+00> : vector<512x8xf32>
    %212 = tpu.matmul %6, %211, %cst_86 {dimension_numbers = #tpu.dot_dimension_numbers<[1], [0], [0], [1], [0, 0, 1, 1], [], []>} : vector<512x128xbf16>, vector<128x8xbf16>, vector<512x8xf32> -> vector<512x8xf32>
    %213 = arith.addf %209, %212 : vector<512x8xf32>
    %214 = arith.truncf %213 : vector<512x8xf32> to vector<512x8xbf16>
    %215 = vector.extract_strided_slice %214 {offsets = [0, 0], sizes = [128, 8], strides = [1, 1]} : vector<512x8xbf16> to vector<128x8xbf16>
    %cst_87 = arith.constant 5.000000e-01 : bf16
    %216 = vector.broadcast %cst_87 : bf16 to vector<128x8xbf16>
    %217 = arith.mulf %216, %215 : vector<128x8xbf16>
    %218 = math.tanh %217 : vector<128x8xbf16>
    %cst_88 = arith.constant 5.000000e-01 : bf16
    %219 = vector.broadcast %cst_88 : bf16 to vector<128x8xbf16>
    %220 = arith.mulf %219, %218 : vector<128x8xbf16>
    %cst_89 = arith.constant 5.000000e-01 : bf16
    %221 = vector.broadcast %cst_89 : bf16 to vector<128x8xbf16>
    %222 = arith.addf %220, %221 : vector<128x8xbf16>
    %223 = vector.extract_strided_slice %214 {offsets = [128, 0], sizes = [128, 8], strides = [1, 1]} : vector<512x8xbf16> to vector<128x8xbf16>
    %cst_90 = arith.constant 5.000000e-01 : bf16
    %224 = vector.broadcast %cst_90 : bf16 to vector<128x8xbf16>
    %225 = arith.mulf %224, %223 : vector<128x8xbf16>
    %226 = math.tanh %225 : vector<128x8xbf16>
    %cst_91 = arith.constant 5.000000e-01 : bf16
    %227 = vector.broadcast %cst_91 : bf16 to vector<128x8xbf16>
    %228 = arith.mulf %227, %226 : vector<128x8xbf16>
    %cst_92 = arith.constant 5.000000e-01 : bf16
    %229 = vector.broadcast %cst_92 : bf16 to vector<128x8xbf16>
    %230 = arith.addf %228, %229 : vector<128x8xbf16>
    %231 = vector.extract_strided_slice %214 {offsets = [256, 0], sizes = [128, 8], strides = [1, 1]} : vector<512x8xbf16> to vector<128x8xbf16>
    %232 = math.tanh %231 : vector<128x8xbf16>
    %233 = vector.extract_strided_slice %214 {offsets = [384, 0], sizes = [128, 8], strides = [1, 1]} : vector<512x8xbf16> to vector<128x8xbf16>
    %cst_93 = arith.constant 5.000000e-01 : bf16
    %234 = vector.broadcast %cst_93 : bf16 to vector<128x8xbf16>
    %235 = arith.mulf %234, %233 : vector<128x8xbf16>
    %236 = math.tanh %235 : vector<128x8xbf16>
    %cst_94 = arith.constant 5.000000e-01 : bf16
    %237 = vector.broadcast %cst_94 : bf16 to vector<128x8xbf16>
    %238 = arith.mulf %237, %236 : vector<128x8xbf16>
    %cst_95 = arith.constant 5.000000e-01 : bf16
    %239 = vector.broadcast %cst_95 : bf16 to vector<128x8xbf16>
    %240 = arith.addf %238, %239 : vector<128x8xbf16>
    %c0_96 = arith.constant 0 : index
    %c0_97 = arith.constant 0 : index
    %241 = vector.load %arg10[%c0_96, %c0_97] : memref<128x8xf32, #tpu.memory_space<vmem>>, vector<128x8xf32>
    %242 = arith.extf %230 : vector<128x8xbf16> to vector<128x8xf32>
    %243 = arith.mulf %242, %241 : vector<128x8xf32>
    %244 = arith.mulf %222, %232 : vector<128x8xbf16>
    %245 = arith.extf %244 : vector<128x8xbf16> to vector<128x8xf32>
    %246 = arith.addf %243, %245 : vector<128x8xf32>
    %247 = math.tanh %246 : vector<128x8xf32>
    %248 = arith.extf %240 : vector<128x8xbf16> to vector<128x8xf32>
    %249 = arith.mulf %248, %247 : vector<128x8xf32>
    %c0_98 = arith.constant 0 : index
    %c0_99 = arith.constant 0 : index
    %250 = vector.load %arg10[%c0_98, %c0_99] : memref<128x8xf32, #tpu.memory_space<vmem>>, vector<128x8xf32>
    tpu.vector_store %arg10[%c0_98, %c0_99], %246 {strides = array<i32>} : memref<128x8xf32, #tpu.memory_space<vmem>>, vector<128x8xf32>,
    %c0_100 = arith.constant 0 : index
    %c0_101 = arith.constant 0 : index
    %251 = vector.load %arg9[%c0_100, %c0_101] : memref<128x8xf32, #tpu.memory_space<vmem>>, vector<128x8xf32>
    tpu.vector_store %arg9[%c0_100, %c0_101], %249 {strides = array<i32>} : memref<128x8xf32, #tpu.memory_space<vmem>>, vector<128x8xf32>,
    %c5_i32 = arith.constant 5 : i32
    %252 = arith.index_cast %c5_i32 : i32 to index
    %c0_102 = arith.constant 0 : index
    %253 = vector.load %arg2[%252, %c0_102] : memref<8x8xf32, #tpu.memory_space<vmem>>, vector<1x8xf32>
    %254 = vector.broadcast %4 : vector<512x1xf32> to vector<512x8xf32>
    %255 = vector.broadcast %253 : vector<1x8xf32> to vector<512x8xf32>
    %256 = arith.mulf %254, %255 : vector<512x8xf32>
    %257 = vector.broadcast %5 : vector<512x1xf32> to vector<512x8xf32>
    %258 = arith.addf %256, %257 : vector<512x8xf32>
    %c0_103 = arith.constant 0 : index
    %c0_104 = arith.constant 0 : index
    %259 = vector.load %arg9[%c0_103, %c0_104] : memref<128x8xf32, #tpu.memory_space<vmem>>, vector<128x8xf32>
    %260 = arith.truncf %259 : vector<128x8xf32> to vector<128x8xbf16>
    %cst_105 = arith.constant dense<0.000000e+00> : vector<512x8xf32>
    %261 = tpu.matmul %6, %260, %cst_105 {dimension_numbers = #tpu.dot_dimension_numbers<[1], [0], [0], [1], [0, 0, 1, 1], [], []>} : vector<512x128xbf16>, vector<128x8xbf16>, vector<512x8xf32> -> vector<512x8xf32>
    %262 = arith.addf %258, %261 : vector<512x8xf32>
    %263 = arith.truncf %262 : vector<512x8xf32> to vector<512x8xbf16>
    %264 = vector.extract_strided_slice %263 {offsets = [0, 0], sizes = [128, 8], strides = [1, 1]} : vector<512x8xbf16> to vector<128x8xbf16>
    %cst_106 = arith.constant 5.000000e-01 : bf16
    %265 = vector.broadcast %cst_106 : bf16 to vector<128x8xbf16>
    %266 = arith.mulf %265, %264 : vector<128x8xbf16>
    %267 = math.tanh %266 : vector<128x8xbf16>
    %cst_107 = arith.constant 5.000000e-01 : bf16
    %268 = vector.broadcast %cst_107 : bf16 to vector<128x8xbf16>
    %269 = arith.mulf %268, %267 : vector<128x8xbf16>
    %cst_108 = arith.constant 5.000000e-01 : bf16
    %270 = vector.broadcast %cst_108 : bf16 to vector<128x8xbf16>
    %271 = arith.addf %269, %270 : vector<128x8xbf16>
    %272 = vector.extract_strided_slice %263 {offsets = [128, 0], sizes = [128, 8], strides = [1, 1]} : vector<512x8xbf16> to vector<128x8xbf16>
    %cst_109 = arith.constant 5.000000e-01 : bf16
    %273 = vector.broadcast %cst_109 : bf16 to vector<128x8xbf16>
    %274 = arith.mulf %273, %272 : vector<128x8xbf16>
    %275 = math.tanh %274 : vector<128x8xbf16>
    %cst_110 = arith.constant 5.000000e-01 : bf16
    %276 = vector.broadcast %cst_110 : bf16 to vector<128x8xbf16>
    %277 = arith.mulf %276, %275 : vector<128x8xbf16>
    %cst_111 = arith.constant 5.000000e-01 : bf16
    %278 = vector.broadcast %cst_111 : bf16 to vector<128x8xbf16>
    %279 = arith.addf %277, %278 : vector<128x8xbf16>
    %280 = vector.extract_strided_slice %263 {offsets = [256, 0], sizes = [128, 8], strides = [1, 1]} : vector<512x8xbf16> to vector<128x8xbf16>
    %281 = math.tanh %280 : vector<128x8xbf16>
    %282 = vector.extract_strided_slice %263 {offsets = [384, 0], sizes = [128, 8], strides = [1, 1]} : vector<512x8xbf16> to vector<128x8xbf16>
    %cst_112 = arith.constant 5.000000e-01 : bf16
    %283 = vector.broadcast %cst_112 : bf16 to vector<128x8xbf16>
    %284 = arith.mulf %283, %282 : vector<128x8xbf16>
    %285 = math.tanh %284 : vector<128x8xbf16>
    %cst_113 = arith.constant 5.000000e-01 : bf16
    %286 = vector.broadcast %cst_113 : bf16 to vector<128x8xbf16>
    %287 = arith.mulf %286, %285 : vector<128x8xbf16>
    %cst_114 = arith.constant 5.000000e-01 : bf16
    %288 = vector.broadcast %cst_114 : bf16 to vector<128x8xbf16>
    %289 = arith.addf %287, %288 : vector<128x8xbf16>
    %c0_115 = arith.constant 0 : index
    %c0_116 = arith.constant 0 : index
    %290 = vector.load %arg10[%c0_115, %c0_116] : memref<128x8xf32, #tpu.memory_space<vmem>>, vector<128x8xf32>
    %291 = arith.extf %279 : vector<128x8xbf16> to vector<128x8xf32>
    %292 = arith.mulf %291, %290 : vector<128x8xf32>
    %293 = arith.mulf %271, %281 : vector<128x8xbf16>
    %294 = arith.extf %293 : vector<128x8xbf16> to vector<128x8xf32>
    %295 = arith.addf %292, %294 : vector<128x8xf32>
    %296 = math.tanh %295 : vector<128x8xf32>
    %297 = arith.extf %289 : vector<128x8xbf16> to vector<128x8xf32>
    %298 = arith.mulf %297, %296 : vector<128x8xf32>
    %c0_117 = arith.constant 0 : index
    %c0_118 = arith.constant 0 : index
    %299 = vector.load %arg10[%c0_117, %c0_118] : memref<128x8xf32, #tpu.memory_space<vmem>>, vector<128x8xf32>
    tpu.vector_store %arg10[%c0_117, %c0_118], %295 {strides = array<i32>} : memref<128x8xf32, #tpu.memory_space<vmem>>, vector<128x8xf32>,
    %c0_119 = arith.constant 0 : index
    %c0_120 = arith.constant 0 : index
    %300 = vector.load %arg9[%c0_119, %c0_120] : memref<128x8xf32, #tpu.memory_space<vmem>>, vector<128x8xf32>
    tpu.vector_store %arg9[%c0_119, %c0_120], %298 {strides = array<i32>} : memref<128x8xf32, #tpu.memory_space<vmem>>, vector<128x8xf32>,
    %c6_i32 = arith.constant 6 : i32
    %301 = arith.index_cast %c6_i32 : i32 to index
    %c0_121 = arith.constant 0 : index
    %302 = vector.load %arg2[%301, %c0_121] : memref<8x8xf32, #tpu.memory_space<vmem>>, vector<1x8xf32>
    %303 = vector.broadcast %4 : vector<512x1xf32> to vector<512x8xf32>
    %304 = vector.broadcast %302 : vector<1x8xf32> to vector<512x8xf32>
    %305 = arith.mulf %303, %304 : vector<512x8xf32>
    %306 = vector.broadcast %5 : vector<512x1xf32> to vector<512x8xf32>
    %307 = arith.addf %305, %306 : vector<512x8xf32>
    %c0_122 = arith.constant 0 : index
    %c0_123 = arith.constant 0 : index
    %308 = vector.load %arg9[%c0_122, %c0_123] : memref<128x8xf32, #tpu.memory_space<vmem>>, vector<128x8xf32>
    %309 = arith.truncf %308 : vector<128x8xf32> to vector<128x8xbf16>
    %cst_124 = arith.constant dense<0.000000e+00> : vector<512x8xf32>
    %310 = tpu.matmul %6, %309, %cst_124 {dimension_numbers = #tpu.dot_dimension_numbers<[1], [0], [0], [1], [0, 0, 1, 1], [], []>} : vector<512x128xbf16>, vector<128x8xbf16>, vector<512x8xf32> -> vector<512x8xf32>
    %311 = arith.addf %307, %310 : vector<512x8xf32>
    %312 = arith.truncf %311 : vector<512x8xf32> to vector<512x8xbf16>
    %313 = vector.extract_strided_slice %312 {offsets = [0, 0], sizes = [128, 8], strides = [1, 1]} : vector<512x8xbf16> to vector<128x8xbf16>
    %cst_125 = arith.constant 5.000000e-01 : bf16
    %314 = vector.broadcast %cst_125 : bf16 to vector<128x8xbf16>
    %315 = arith.mulf %314, %313 : vector<128x8xbf16>
    %316 = math.tanh %315 : vector<128x8xbf16>
    %cst_126 = arith.constant 5.000000e-01 : bf16
    %317 = vector.broadcast %cst_126 : bf16 to vector<128x8xbf16>
    %318 = arith.mulf %317, %316 : vector<128x8xbf16>
    %cst_127 = arith.constant 5.000000e-01 : bf16
    %319 = vector.broadcast %cst_127 : bf16 to vector<128x8xbf16>
    %320 = arith.addf %318, %319 : vector<128x8xbf16>
    %321 = vector.extract_strided_slice %312 {offsets = [128, 0], sizes = [128, 8], strides = [1, 1]} : vector<512x8xbf16> to vector<128x8xbf16>
    %cst_128 = arith.constant 5.000000e-01 : bf16
    %322 = vector.broadcast %cst_128 : bf16 to vector<128x8xbf16>
    %323 = arith.mulf %322, %321 : vector<128x8xbf16>
    %324 = math.tanh %323 : vector<128x8xbf16>
    %cst_129 = arith.constant 5.000000e-01 : bf16
    %325 = vector.broadcast %cst_129 : bf16 to vector<128x8xbf16>
    %326 = arith.mulf %325, %324 : vector<128x8xbf16>
    %cst_130 = arith.constant 5.000000e-01 : bf16
    %327 = vector.broadcast %cst_130 : bf16 to vector<128x8xbf16>
    %328 = arith.addf %326, %327 : vector<128x8xbf16>
    %329 = vector.extract_strided_slice %312 {offsets = [256, 0], sizes = [128, 8], strides = [1, 1]} : vector<512x8xbf16> to vector<128x8xbf16>
    %330 = math.tanh %329 : vector<128x8xbf16>
    %331 = vector.extract_strided_slice %312 {offsets = [384, 0], sizes = [128, 8], strides = [1, 1]} : vector<512x8xbf16> to vector<128x8xbf16>
    %cst_131 = arith.constant 5.000000e-01 : bf16
    %332 = vector.broadcast %cst_131 : bf16 to vector<128x8xbf16>
    %333 = arith.mulf %332, %331 : vector<128x8xbf16>
    %334 = math.tanh %333 : vector<128x8xbf16>
    %cst_132 = arith.constant 5.000000e-01 : bf16
    %335 = vector.broadcast %cst_132 : bf16 to vector<128x8xbf16>
    %336 = arith.mulf %335, %334 : vector<128x8xbf16>
    %cst_133 = arith.constant 5.000000e-01 : bf16
    %337 = vector.broadcast %cst_133 : bf16 to vector<128x8xbf16>
    %338 = arith.addf %336, %337 : vector<128x8xbf16>
    %c0_134 = arith.constant 0 : index
    %c0_135 = arith.constant 0 : index
    %339 = vector.load %arg10[%c0_134, %c0_135] : memref<128x8xf32, #tpu.memory_space<vmem>>, vector<128x8xf32>
    %340 = arith.extf %328 : vector<128x8xbf16> to vector<128x8xf32>
    %341 = arith.mulf %340, %339 : vector<128x8xf32>
    %342 = arith.mulf %320, %330 : vector<128x8xbf16>
    %343 = arith.extf %342 : vector<128x8xbf16> to vector<128x8xf32>
    %344 = arith.addf %341, %343 : vector<128x8xf32>
    %345 = math.tanh %344 : vector<128x8xf32>
    %346 = arith.extf %338 : vector<128x8xbf16> to vector<128x8xf32>
    %347 = arith.mulf %346, %345 : vector<128x8xf32>
    %c0_136 = arith.constant 0 : index
    %c0_137 = arith.constant 0 : index
    %348 = vector.load %arg10[%c0_136, %c0_137] : memref<128x8xf32, #tpu.memory_space<vmem>>, vector<128x8xf32>
    tpu.vector_store %arg10[%c0_136, %c0_137], %344 {strides = array<i32>} : memref<128x8xf32, #tpu.memory_space<vmem>>, vector<128x8xf32>,
    %c0_138 = arith.constant 0 : index
    %c0_139 = arith.constant 0 : index
    %349 = vector.load %arg9[%c0_138, %c0_139] : memref<128x8xf32, #tpu.memory_space<vmem>>, vector<128x8xf32>
    tpu.vector_store %arg9[%c0_138, %c0_139], %347 {strides = array<i32>} : memref<128x8xf32, #tpu.memory_space<vmem>>, vector<128x8xf32>,
    %c7_i32 = arith.constant 7 : i32
    %350 = arith.index_cast %c7_i32 : i32 to index
    %c0_140 = arith.constant 0 : index
    %351 = vector.load %arg2[%350, %c0_140] : memref<8x8xf32, #tpu.memory_space<vmem>>, vector<1x8xf32>
    %352 = vector.broadcast %4 : vector<512x1xf32> to vector<512x8xf32>
    %353 = vector.broadcast %351 : vector<1x8xf32> to vector<512x8xf32>
    %354 = arith.mulf %352, %353 : vector<512x8xf32>
    %355 = vector.broadcast %5 : vector<512x1xf32> to vector<512x8xf32>
    %356 = arith.addf %354, %355 : vector<512x8xf32>
    %c0_141 = arith.constant 0 : index
    %c0_142 = arith.constant 0 : index
    %357 = vector.load %arg9[%c0_141, %c0_142] : memref<128x8xf32, #tpu.memory_space<vmem>>, vector<128x8xf32>
    %358 = arith.truncf %357 : vector<128x8xf32> to vector<128x8xbf16>
    %cst_143 = arith.constant dense<0.000000e+00> : vector<512x8xf32>
    %359 = tpu.matmul %6, %358, %cst_143 {dimension_numbers = #tpu.dot_dimension_numbers<[1], [0], [0], [1], [0, 0, 1, 1], [], []>} : vector<512x128xbf16>, vector<128x8xbf16>, vector<512x8xf32> -> vector<512x8xf32>
    %360 = arith.addf %356, %359 : vector<512x8xf32>
    %361 = arith.truncf %360 : vector<512x8xf32> to vector<512x8xbf16>
    %362 = vector.extract_strided_slice %361 {offsets = [0, 0], sizes = [128, 8], strides = [1, 1]} : vector<512x8xbf16> to vector<128x8xbf16>
    %cst_144 = arith.constant 5.000000e-01 : bf16
    %363 = vector.broadcast %cst_144 : bf16 to vector<128x8xbf16>
    %364 = arith.mulf %363, %362 : vector<128x8xbf16>
    %365 = math.tanh %364 : vector<128x8xbf16>
    %cst_145 = arith.constant 5.000000e-01 : bf16
    %366 = vector.broadcast %cst_145 : bf16 to vector<128x8xbf16>
    %367 = arith.mulf %366, %365 : vector<128x8xbf16>
    %cst_146 = arith.constant 5.000000e-01 : bf16
    %368 = vector.broadcast %cst_146 : bf16 to vector<128x8xbf16>
    %369 = arith.addf %367, %368 : vector<128x8xbf16>
    %370 = vector.extract_strided_slice %361 {offsets = [128, 0], sizes = [128, 8], strides = [1, 1]} : vector<512x8xbf16> to vector<128x8xbf16>
    %cst_147 = arith.constant 5.000000e-01 : bf16
    %371 = vector.broadcast %cst_147 : bf16 to vector<128x8xbf16>
    %372 = arith.mulf %371, %370 : vector<128x8xbf16>
    %373 = math.tanh %372 : vector<128x8xbf16>
    %cst_148 = arith.constant 5.000000e-01 : bf16
    %374 = vector.broadcast %cst_148 : bf16 to vector<128x8xbf16>
    %375 = arith.mulf %374, %373 : vector<128x8xbf16>
    %cst_149 = arith.constant 5.000000e-01 : bf16
    %376 = vector.broadcast %cst_149 : bf16 to vector<128x8xbf16>
    %377 = arith.addf %375, %376 : vector<128x8xbf16>
    %378 = vector.extract_strided_slice %361 {offsets = [256, 0], sizes = [128, 8], strides = [1, 1]} : vector<512x8xbf16> to vector<128x8xbf16>
    %379 = math.tanh %378 : vector<128x8xbf16>
    %380 = vector.extract_strided_slice %361 {offsets = [384, 0], sizes = [128, 8], strides = [1, 1]} : vector<512x8xbf16> to vector<128x8xbf16>
    %cst_150 = arith.constant 5.000000e-01 : bf16
    %381 = vector.broadcast %cst_150 : bf16 to vector<128x8xbf16>
    %382 = arith.mulf %381, %380 : vector<128x8xbf16>
    %383 = math.tanh %382 : vector<128x8xbf16>
    %cst_151 = arith.constant 5.000000e-01 : bf16
    %384 = vector.broadcast %cst_151 : bf16 to vector<128x8xbf16>
    %385 = arith.mulf %384, %383 : vector<128x8xbf16>
    %cst_152 = arith.constant 5.000000e-01 : bf16
    %386 = vector.broadcast %cst_152 : bf16 to vector<128x8xbf16>
    %387 = arith.addf %385, %386 : vector<128x8xbf16>
    %c0_153 = arith.constant 0 : index
    %c0_154 = arith.constant 0 : index
    %388 = vector.load %arg10[%c0_153, %c0_154] : memref<128x8xf32, #tpu.memory_space<vmem>>, vector<128x8xf32>
    %389 = arith.extf %377 : vector<128x8xbf16> to vector<128x8xf32>
    %390 = arith.mulf %389, %388 : vector<128x8xf32>
    %391 = arith.mulf %369, %379 : vector<128x8xbf16>
    %392 = arith.extf %391 : vector<128x8xbf16> to vector<128x8xf32>
    %393 = arith.addf %390, %392 : vector<128x8xf32>
    %394 = math.tanh %393 : vector<128x8xf32>
    %395 = arith.extf %387 : vector<128x8xbf16> to vector<128x8xf32>
    %396 = arith.mulf %395, %394 : vector<128x8xf32>
    %c0_155 = arith.constant 0 : index
    %c0_156 = arith.constant 0 : index
    %397 = vector.load %arg10[%c0_155, %c0_156] : memref<128x8xf32, #tpu.memory_space<vmem>>, vector<128x8xf32>
    tpu.vector_store %arg10[%c0_155, %c0_156], %393 {strides = array<i32>} : memref<128x8xf32, #tpu.memory_space<vmem>>, vector<128x8xf32>,
    %c0_157 = arith.constant 0 : index
    %c0_158 = arith.constant 0 : index
    %398 = vector.load %arg9[%c0_157, %c0_158] : memref<128x8xf32, #tpu.memory_space<vmem>>, vector<128x8xf32>
    tpu.vector_store %arg9[%c0_157, %c0_158], %396 {strides = array<i32>} : memref<128x8xf32, #tpu.memory_space<vmem>>, vector<128x8xf32>,
    %c8_i32 = arith.constant 8 : i32
    %399 = arith.extui %3 : i1 to i32
    %c0_i32_159 = arith.constant 0 : i32
    %400 = arith.cmpi ne, %399, %c0_i32_159 : i32
    scf.if %400 {
      %c0_160 = arith.constant 0 : index
      %c0_161 = arith.constant 0 : index
      %401 = vector.load %arg6[%c0_160, %c0_161] : memref<8x128xf32, #tpu.memory_space<vmem>>, vector<8x128xf32>
      %c0_162 = arith.constant 0 : index
      %c0_163 = arith.constant 0 : index
      %402 = vector.load %arg9[%c0_162, %c0_163] : memref<128x8xf32, #tpu.memory_space<vmem>>, vector<128x8xf32>
      %cst_164 = arith.constant dense<0.000000e+00> : vector<8x8xf32>
      %403 = tpu.matmul %401, %402, %cst_164 {dimension_numbers = #tpu.dot_dimension_numbers<[1], [0], [0], [1], [0, 0, 1, 1], [], []>} : vector<8x128xf32>, vector<128x8xf32>, vector<8x8xf32> -> vector<8x8xf32>
      %c0_165 = arith.constant 0 : index
      %c0_166 = arith.constant 0 : index
      %404 = vector.load %arg7[%c0_165, %c0_166] : memref<8x1xf32, #tpu.memory_space<vmem>>, vector<8x1xf32>
      %405 = vector.broadcast %404 : vector<8x1xf32> to vector<8x8xf32>
      %406 = arith.addf %403, %405 : vector<8x8xf32>
      %c0_167 = arith.constant 0 : index
      %c0_168 = arith.constant 0 : index
      %407 = vector.load %arg8[%c0_167, %c0_168] : memref<8x8xf32, #tpu.memory_space<vmem>>, vector<8x8xf32>
      tpu.vector_store %arg8[%c0_167, %c0_168], %406 {strides = array<i32>} : memref<8x8xf32, #tpu.memory_space<vmem>>, vector<8x8xf32>,
    } else {
    }
    return
  }
  func.func @transform_0(%arg0: i32, %arg1: i32) -> (i32, i32) {
    %c0_i32 = arith.constant 0 : i32
    return %arg1, %arg0 : i32, i32
  }
  func.func @transform_1(%arg0: i32, %arg1: i32) -> (i32, i32) {
    %c0_i32 = arith.constant 0 : i32
    %c0_i32_0 = arith.constant 0 : i32
    %c0_i32_1 = arith.constant 0 : i32
    return %c0_i32, %c0_i32_0 : i32, i32
  }
  func.func @transform_2(%arg0: i32, %arg1: i32) -> (i32, i32) {
    %c0_i32 = arith.constant 0 : i32
    %c0_i32_0 = arith.constant 0 : i32
    %c0_i32_1 = arith.constant 0 : i32
    return %c0_i32, %c0_i32_0 : i32, i32
  }
  func.func @transform_3(%arg0: i32, %arg1: i32) -> (i32, i32) {
    %c0_i32 = arith.constant 0 : i32
    %c0_i32_0 = arith.constant 0 : i32
    %c0_i32_1 = arith.constant 0 : i32
    return %c0_i32, %c0_i32_0 : i32, i32
  }
  func.func @transform_4(%arg0: i32, %arg1: i32) -> (i32, i32) {
    %c0_i32 = arith.constant 0 : i32
    %c0_i32_0 = arith.constant 0 : i32
    %c0_i32_1 = arith.constant 0 : i32
    return %c0_i32, %c0_i32_0 : i32, i32
  }
  func.func @transform_5(%arg0: i32, %arg1: i32) -> (i32, i32) {
    %c0_i32 = arith.constant 0 : i32
    %c0_i32_0 = arith.constant 0 : i32
    %c0_i32_1 = arith.constant 0 : i32
    return %c0_i32, %c0_i32_0 : i32, i32
  }
  func.func @transform_6(%arg0: i32, %arg1: i32) -> (i32, i32) {
    %c0_i32 = arith.constant 0 : i32
    %c0_i32_0 = arith.constant 0 : i32
    return %c0_i32, %arg0 : i32, i32
  }
}

</mosaic_0001>

<bundles_post_ra>
// kernel: lstm_forward.1
= control target key start
LH: loop header
LB: loop body
LE: loop exit
PB: predicated region body
PF: predicated region fallthrough
CT: control target
= control target key end

     0   :  { %vm29_vm0 = vcmask 64512   ;;  %v9805_v0 = vmov 0   ;;  %v15328_v3 = vmov 0.0   ;;  %vm9808_vm1 = vmmov 0   ;;  %s15321_s1 = inlined_call_operand.vmem [shape: f32[512,1], index: 1, kind: input, shape index: {}]   ;;  %s15322_s3 = inlined_call_operand.vmem [shape: f32[512,1], index: 3, kind: input, shape index: {}]   ;;  %s15323_s2 = inlined_call_operand.vmem [shape: bf16[512,128], index: 2, kind: input, shape index: {}]   ;;  %s15324_s0 = inlined_call_operand.vmem [shape: f32[8,8], index: 0, kind: input, shape index: {}]   ;;  %s15325_s5 = inlined_call_operand.vmem [shape: f32[8,1], index: 5, kind: input, shape index: {}]   ;;  %s15326_s4 = inlined_call_operand.vmem [shape: f32[8,128], index: 4, kind: input, shape index: {}]   ;;  %s15327_s6 = inlined_call_operand.vmem [shape: f32[8,8], index: 6, kind: output, shape index: {}]  }
   0x1   :  { %8781 = vset.pattern.permute.xlu1 %v9805_v0  ;;  %8780 = vset.pattern.permute.xlu0 %v9805_v0  ;;  %v78_v1 = vld [vmem:[%s15321_s1 + $0x80] sm:$0xff]  ;;  %30 = vst.msk [vmem:[#allocation2] sm:$0xff] %vm29_vm0, %v15328_v3  ;;  %31 = vst.msk [vmem:[#allocation2 + $0x8] sm:$0xff] %vm29_vm0, %v15328_v3  ;;  %v79_v4 = vld [vmem:[%s15321_s1 + $0x88] sm:$0xff] }
   0x2   :  { %v62_v2 = vld [vmem:[%s15321_s1] sm:$0xff]  ;;  %32 = vst.msk [vmem:[#allocation2 + $0x10] sm:$0xff] %vm29_vm0, %v15328_v3  ;;  %33 = vst.msk [vmem:[#allocation2 + $0x18] sm:$0xff] %vm29_vm0, %v15328_v3  ;;  %337 = vperm.xlu1 %8781, %v78_v1   ;;  %v63_v5 = vld [vmem:[%s15321_s1 + $0x8] sm:$0xff] }
   0x3   :  { %34 = vst.msk [vmem:[#allocation2 + $0x20] sm:$0xff] %vm29_vm0, %v15328_v3  ;;  %35 = vst.msk [vmem:[#allocation2 + $0x28] sm:$0xff] %vm29_vm0, %v15328_v3  ;;  %257 = vperm.xlu0 %8780, %v62_v2   ;;  %v127_v6 = vld [vmem:[%s15322_s3 + $0x8] sm:$0xff]  ;;  %v126_v7 = vld [vmem:[%s15322_s3] sm:$0xff] }
   0x4   :  { %36 = vst.msk [vmem:[#allocation2 + $0x30] sm:$0xff] %vm29_vm0, %v15328_v3  ;;  %37 = vst.msk [vmem:[#allocation2 + $0x38] sm:$0xff] %vm29_vm0, %v15328_v3  ;;  %v143_v16 = vld [vmem:[%s15322_s3 + $0x88] sm:$0xff]  ;;  %v142_v17 = vld [vmem:[%s15322_s3 + $0x80] sm:$0xff] }
   0x5   :  { %38 = vst.msk [vmem:[#allocation2 + $0x40] sm:$0xff] %vm29_vm0, %v15328_v3  ;;  %39 = vst.msk [vmem:[#allocation2 + $0x48] sm:$0xff] %vm29_vm0, %v15328_v3  ;;  %v9935_v19 = vld [vmem:[%s15323_s2] sm:$0xff]   ;;  %v65_v22 = vld [vmem:[%s15321_s1 + $0x18] sm:$0xff] }
   0x6   :  { %40 = vst.msk [vmem:[#allocation2 + $0x50] sm:$0xff] %vm29_vm0, %v15328_v3  ;;  %41 = vst.msk [vmem:[#allocation2 + $0x58] sm:$0xff] %vm29_vm0, %v15328_v3  ;;  %342 = vperm.xlu1 %8781, %v79_v4   ;;  %v64_v23 = vld [vmem:[%s15321_s1 + $0x10] sm:$0xff]  ;;  %8093 = vmatprep.mubr.bf16.mxu0 %v9935_v19  ;;  %v81_v27 = vld [vmem:[%s15321_s1 + $0x98] sm:$0xff] }
   0x7   :  { %42 = vst.msk [vmem:[#allocation2 + $0x60] sm:$0xff] %vm29_vm0, %v15328_v3  ;;  %43 = vst.msk [vmem:[#allocation2 + $0x68] sm:$0xff] %vm29_vm0, %v15328_v3  ;;  %262 = vperm.xlu0 %8780, %v63_v5   ;;  %8173 = vmatprep.mubr.bf16.mxu1 %v9935_v19  ;;  %v80_v28 = vld [vmem:[%s15321_s1 + $0x90] sm:$0xff]  ;;  %v95_v30 = vld [vmem:[%s15321_s1 + $0x108] sm:$0xff] }
   0x8   :  { %44 = vst.msk [vmem:[#allocation2 + $0x70] sm:$0xff] %vm29_vm0, %v15328_v3  ;;  %45 = vst.msk [vmem:[#allocation2 + $0x78] sm:$0xff] %vm29_vm0, %v15328_v3  ;;  %v1027_v8 = vld [vmem:[#allocation2] sm:$0xff]  ;;  %v1028_v9 = vld [vmem:[#allocation2 + $0x8] sm:$0xff] }
   0x9   :  { %46 = vst.msk [vmem:[#allocation3] sm:$0xff] %vm29_vm0, %v15328_v3  ;;  %47 = vst.msk [vmem:[#allocation3 + $0x8] sm:$0xff] %vm29_vm0, %v15328_v3  ;;  %v1029_v10 = vld [vmem:[#allocation2 + $0x10] sm:$0xff]  ;;  %v1043_v11 = vpack.c.bf16 %v1028_v9, %v1027_v8  ;;  %v1030_v12 = vld [vmem:[#allocation2 + $0x18] sm:$0xff] }
   0xa   :  { %48 = vst.msk [vmem:[#allocation3 + $0x10] sm:$0xff] %vm29_vm0, %v15328_v3  ;;  %49 = vst.msk [vmem:[#allocation3 + $0x18] sm:$0xff] %vm29_vm0, %v15328_v3  ;;  %650 = vperm.xlu1 %8781, %v127_v6   ;;  %v1044_v13 = vpack.c.bf16 %v1030_v12, %v1029_v10  ;;  %v1031_v14 = vld [vmem:[#allocation2 + $0x20] sm:$0xff]  ;;  %v1032_v15 = vld [vmem:[#allocation2 + $0x28] sm:$0xff] }
   0xb   :  { %50 = vst.msk [vmem:[#allocation3 + $0x20] sm:$0xff] %vm29_vm0, %v15328_v3  ;;  %51 = vst.msk [vmem:[#allocation3 + $0x28] sm:$0xff] %vm29_vm0, %v15328_v3  ;;  %645 = vperm.xlu0 %8780, %v126_v7   ;;  %8077 = vmatprep.subr.bf16.mxu0 %v1043_v11  ;;  %v1045_v18 = vpack.c.bf16 %v1032_v15, %v1031_v14  ;;  %v1033_v20 = vld [vmem:[#allocation2 + $0x30] sm:$0xff]  ;;  %v1034_v21 = vld [vmem:[#allocation2 + $0x38] sm:$0xff] }
   0xc   :  { %52 = vst.msk [vmem:[#allocation3 + $0x30] sm:$0xff] %vm29_vm0, %v15328_v3  ;;  %53 = vst.msk [vmem:[#allocation3 + $0x38] sm:$0xff] %vm29_vm0, %v15328_v3  ;;  %8078 = vmatpush3.bf16.msra.mxu0 %v1043_v11  ;;  %v1046_v24 = vpack.c.bf16 %v1034_v21, %v1033_v20  ;;  %v1035_v25 = vld [vmem:[#allocation2 + $0x40] sm:$0xff]  ;;  %v1036_v26 = vld [vmem:[#allocation2 + $0x48] sm:$0xff] }
   0xd   :  { %54 = vst.msk [vmem:[#allocation3 + $0x40] sm:$0xff] %vm29_vm0, %v15328_v3  ;;  %55 = vst.msk [vmem:[#allocation3 + $0x48] sm:$0xff] %vm29_vm0, %v15328_v3  ;;  %8079 = vmatprep.subr.bf16.mxu0 %v1044_v13  ;;  %v1047_v29 = vpack.c.bf16 %v1036_v26, %v1035_v25  ;;  %v1037_v31 = vld [vmem:[#allocation2 + $0x50] sm:$0xff]  ;;  %v1038_v32 = vld [vmem:[#allocation2 + $0x58] sm:$0xff] }
   0xe   :  { %56 = vst.msk [vmem:[#allocation3 + $0x50] sm:$0xff] %vm29_vm0, %v15328_v3  ;;  %57 = vst.msk [vmem:[#allocation3 + $0x58] sm:$0xff] %vm29_vm0, %v15328_v3  ;;  %730 = vperm.xlu1 %8781, %v143_v16   ;;  %v94_v33 = vld [vmem:[%s15321_s1 + $0x100] sm:$0xff]  ;;  %v1048_v34 = vpack.c.bf16 %v1038_v32, %v1037_v31  ;;  %v1040_v36 = vld [vmem:[#allocation2 + $0x68] sm:$0xff] }
   0xf   :  { %58 = vst.msk [vmem:[#allocation3 + $0x60] sm:$0xff] %vm29_vm0, %v15328_v3  ;;  %59 = vst.msk [vmem:[#allocation3 + $0x68] sm:$0xff] %vm29_vm0, %v15328_v3  ;;  %725 = vperm.xlu0 %8780, %v142_v17   ;;  %v1039_v35 = vld [vmem:[#allocation2 + $0x60] sm:$0xff]  ;;  %v129_v37 = vld [vmem:[%s15322_s3 + $0x18] sm:$0xff] }
  0x10   :  { %60 = vst.msk [vmem:[#allocation3 + $0x70] sm:$0xff] %vm29_vm0, %v15328_v3  ;;  %61 = vst.msk [vmem:[#allocation3 + $0x78] sm:$0xff] %vm29_vm0, %v15328_v3  ;;  %8080 = vmatpush3.bf16.msra.mxu0 %v1044_v13  ;;  %v128_v38 = vld [vmem:[%s15322_s3 + $0x10] sm:$0xff]  ;;  %v145_v39 = vld [vmem:[%s15322_s3 + $0x98] sm:$0xff]  ;;  %v1049_v40 = vpack.c.bf16 %v1040_v36, %v1039_v35 }
  0x11   :  { %8081 = vmatprep.subr.bf16.mxu0 %v1045_v18  ;;  %v1041_v41 = vld [vmem:[#allocation2 + $0x70] sm:$0xff]  ;;  %v1042_v42 = vld [vmem:[#allocation2 + $0x78] sm:$0xff]  ;;  %v67_v45 = vld [vmem:[%s15321_s1 + $0x28] sm:$0xff] }
  0x12   :  { %272 = vperm.xlu1 %8781, %v65_v22   ;;  %v144_v43 = vld [vmem:[%s15322_s3 + $0x90] sm:$0xff]  ;;  %v1050_v44 = vpack.c.bf16 %v1042_v42, %v1041_v41  ;;  %v66_v46 = vld [vmem:[%s15321_s1 + $0x20] sm:$0xff]  ;;  %v83_v47 = vld [vmem:[%s15321_s1 + $0xa8] sm:$0xff] }
  0x13   :  { %267 = vperm.xlu0 %8780, %v64_v23   ;;  %v82_v48 = vld [vmem:[%s15321_s1 + $0xa0] sm:$0xff]  ;;  %v8783_v49 = vld [vmem:[%s15323_s2 + $0x8] sm:$0xff]   ;;  %v8784_v50 = vld [vmem:[%s15323_s2 + $0x10] sm:$0xff]  }
  0x14   :  { %8082 = vmatpush3.bf16.msra.mxu0 %v1045_v18  ;;  %v159_v51 = vld [vmem:[%s15322_s3 + $0x108] sm:$0xff]  ;;  %v158_v52 = vld [vmem:[%s15322_s3 + $0x100] sm:$0xff]  ;;  %v97_v53 = vld [vmem:[%s15321_s1 + $0x118] sm:$0xff] }
  0x15   :  { %8083 = vmatprep.subr.bf16.mxu0 %v1046_v24  ;;  %v96_v54 = vld [vmem:[%s15321_s1 + $0x110] sm:$0xff]  ;;  %v8785_v55 = vld [vmem:[%s15323_s2 + $0x18] sm:$0xff]   ;;  %v8786_v56 = vld [vmem:[%s15323_s2 + $0x20] sm:$0xff]  }
  0x16   :  { %352 = vperm.xlu1 %8781, %v81_v27   ;;  %v131_v57 = vld [vmem:[%s15322_s3 + $0x28] sm:$0xff]  ;;  %v130_v58 = vld [vmem:[%s15322_s3 + $0x20] sm:$0xff]  ;;  %v8788_v62 = vld [vmem:[%s15323_s2 + $0x30] sm:$0xff]  }
  0x17   :  { %347 = vperm.xlu0 %8780, %v80_v28   ;;  %v147_v59 = vld [vmem:[%s15322_s3 + $0xa8] sm:$0xff]  ;;  %v146_v60 = vld [vmem:[%s15322_s3 + $0xa0] sm:$0xff]  ;;  %v69_v63 = vld [vmem:[%s15321_s1 + $0x38] sm:$0xff] }
  0x18   :  { %8084 = vmatpush3.bf16.msra.mxu0 %v1046_v24  ;;  %v8787_v61 = vld [vmem:[%s15323_s2 + $0x28] sm:$0xff]   ;;  %v68_v0 = vld [vmem:[%s15321_s1 + $0x30] sm:$0xff]  ;;  %v85_v1 = vld [vmem:[%s15321_s1 + $0xb8] sm:$0xff] }
  0x19   :  { %8085 = vmatprep.subr.bf16.mxu0 %v1047_v29  ;;  %v84_v2 = vld [vmem:[%s15321_s1 + $0xb0] sm:$0xff]  ;;  %v8789_v4 = vld [vmem:[%s15323_s2 + $0x38] sm:$0xff]   ;;  %v8790_v5 = vld [vmem:[%s15323_s2 + $0x40] sm:$0xff]  }
  0x1a   :  { %422 = vperm.xlu1 %8781, %v95_v30   ;;  %v161_v6 = vld [vmem:[%s15322_s3 + $0x118] sm:$0xff]  ;;  %v160_v7 = vld [vmem:[%s15322_s3 + $0x110] sm:$0xff]  ;;  %v99_v8 = vld [vmem:[%s15321_s1 + $0x128] sm:$0xff] }
  0x1b   :  { %417 = vperm.xlu0 %8780, %v94_v33   ;;  %v98_v9 = vld [vmem:[%s15321_s1 + $0x120] sm:$0xff]  ;;  %v8791_v10 = vld [vmem:[%s15323_s2 + $0x48] sm:$0xff]   ;;  %v8792_v11 = vld [vmem:[%s15323_s2 + $0x50] sm:$0xff]  }
  0x1c   :  { %8086 = vmatpush3.bf16.msra.mxu0 %v1047_v29  ;;  %v133_v12 = vld [vmem:[%s15322_s3 + $0x38] sm:$0xff]  ;;  %v132_v13 = vld [vmem:[%s15322_s3 + $0x30] sm:$0xff]  ;;  %v8794_v17 = vld [vmem:[%s15323_s2 + $0x60] sm:$0xff]  }
  0x1d   :  { %8087 = vmatprep.subr.bf16.mxu0 %v1048_v34  ;;  %v149_v14 = vld [vmem:[%s15322_s3 + $0xb8] sm:$0xff]  ;;  %v148_v15 = vld [vmem:[%s15322_s3 + $0xb0] sm:$0xff]  ;;  %v111_v18 = vld [vmem:[%s15321_s1 + $0x188] sm:$0xff] }
  0x1e   :  { %660 = vperm.xlu1 %8781, %v129_v37   ;;  %v8793_v16 = vld [vmem:[%s15323_s2 + $0x58] sm:$0xff]   ;;  %v110_v20 = vld [vmem:[%s15321_s1 + $0x180] sm:$0xff]  ;;  %v71_v21 = vld [vmem:[%s15321_s1 + $0x48] sm:$0xff] }
  0x1f   :  { %655 = vperm.xlu0 %8780, %v128_v38   ;;  %v70_v22 = vld [vmem:[%s15321_s1 + $0x40] sm:$0xff]  ;;  %v8795_v23 = vld [vmem:[%s15323_s2 + $0x68] sm:$0xff]   ;;  %v8796_v24 = vld [vmem:[%s15323_s2 + $0x70] sm:$0xff]  }
  0x20   :  { %8088 = vmatpush3.bf16.msra.mxu0 %v1048_v34  ;;  %v87_v25 = vld [vmem:[%s15321_s1 + $0xc8] sm:$0xff]  ;;  %v86_v26 = vld [vmem:[%s15321_s1 + $0xc0] sm:$0xff]  ;;  %v8797_v29 = vld [vmem:[%s15323_s2 + $0x78] sm:$0xff]  }
  0x21   :  { %8089 = vmatprep.subr.bf16.mxu0 %v1049_v40  ;;  %v163_v27 = vld [vmem:[%s15322_s3 + $0x128] sm:$0xff]  ;;  %v162_v28 = vld [vmem:[%s15322_s3 + $0x120] sm:$0xff]  ;;  %v101_v33 = vld [vmem:[%s15321_s1 + $0x138] sm:$0xff] }
  0x22   :  { %740 = vperm.xlu1 %8781, %v145_v39   ;;  %v8798_v30 = vld [vmem:[%s15323_s2 + $0x80] sm:$0xff]   ;;  %v175_v31 = vld [vmem:[%s15322_s3 + $0x188] sm:$0xff]  ;;  %v100_v34 = vld [vmem:[%s15321_s1 + $0x130] sm:$0xff] }
  0x23   :  { %735 = vperm.xlu0 %8780, %v144_v43   ;;  %v174_v32 = vld [vmem:[%s15322_s3 + $0x180] sm:$0xff]  ;;  %v8799_v35 = vld [vmem:[%s15323_s2 + $0x88] sm:$0xff]   ;;  %v8800_v36 = vld [vmem:[%s15323_s2 + $0x90] sm:$0xff]  }
  0x24   :  { %8090 = vmatpush3.bf16.msra.mxu0 %v1049_v40  ;;  %v135_v37 = vld [vmem:[%s15322_s3 + $0x48] sm:$0xff]  ;;  %v134_v38 = vld [vmem:[%s15322_s3 + $0x40] sm:$0xff]  ;;  %v8801_v41 = vld [vmem:[%s15323_s2 + $0x98] sm:$0xff]  }
  0x25   :  { %8091 = vmatprep.subr.bf16.mxu0 %v1050_v44  ;;  %v151_v39 = vld [vmem:[%s15322_s3 + $0xc8] sm:$0xff]  ;;  %v150_v40 = vld [vmem:[%s15322_s3 + $0xc0] sm:$0xff]  ;;  %v113_v43 = vld [vmem:[%s15321_s1 + $0x198] sm:$0xff] }
  0x26   :  { %282 = vperm.xlu1 %8781, %v67_v45   ;;  %v8802_v42 = vld [vmem:[%s15323_s2 + $0xa0] sm:$0xff]   ;;  %v73_v45 = vld [vmem:[%s15321_s1 + $0x58] sm:$0xff] }
  0x27   :  { %277 = vperm.xlu0 %8780, %v66_v46   ;;  %v72_v46 = vld [vmem:[%s15321_s1 + $0x50] sm:$0xff] }
  0x28   :  { %8092 = vmatpush3.bf16.msra.mxu0 %v1050_v44  ;;  %v112_v44 = vld [vmem:[%s15321_s1 + $0x190] sm:$0xff] }
  0x2a   :  { %362 = vperm.xlu1 %8781, %v83_v47   ;;  %v8803_v47 = vld [vmem:[%s15323_s2 + $0xa8] sm:$0xff]  }
  0x2b   :  { %357 = vperm.xlu0 %8780, %v82_v48   ;;  %8094 = vmatmul.mubr.bf16.vlgmr.msra.gmra.mrb[0].mxu0 %v8783_v49  ;;  %v8804_v48 = vld [vmem:[%s15323_s2 + $0xb0] sm:$0xff]   ;;  %v89_v49 = vld [vmem:[%s15321_s1 + $0xd8] sm:$0xff] }
  0x2c   :  { %8097 = vmatprep.mubr.bf16.mxu0 %v8784_v50  ;;  %v88_v50 = vld [vmem:[%s15321_s1 + $0xd0] sm:$0xff] }
  0x2e   :  { %810 = vperm.xlu1 %8781, %v159_v51   ;;  %v165_v51 = vld [vmem:[%s15322_s3 + $0x138] sm:$0xff] }
  0x2f   :  { %805 = vperm.xlu0 %8780, %v158_v52   ;;  %v164_v52 = vld [vmem:[%s15322_s3 + $0x130] sm:$0xff] }
  0x32   :  { %432 = vperm.xlu1 %8781, %v97_v53   ;;  %v8805_v53 = vld [vmem:[%s15323_s2 + $0xb8] sm:$0xff]  }
  0x33   :  { %427 = vperm.xlu0 %8780, %v96_v54   ;;  %8098 = vmatmul.mubr.bf16.gmra.mrb[4].mxu0 %v8785_v55  ;;  %v8806_v54 = vld [vmem:[%s15323_s2 + $0xc0] sm:$0xff]  }
  0x34   :  { %8101 = vmatprep.mubr.bf16.mxu0 %v8786_v56 }
  0x36   :  { %670 = vperm.xlu1 %8781, %v131_v57   ;;  %v177_v57 = vld [vmem:[%s15322_s3 + $0x198] sm:$0xff] }
  0x37   :  { %665 = vperm.xlu0 %8780, %v130_v58   ;;  %v176_v58 = vld [vmem:[%s15322_s3 + $0x190] sm:$0xff] }
  0x3a   :  { %750 = vperm.xlu1 %8781, %v147_v59  }
  0x3b   :  { %745 = vperm.xlu0 %8780, %v146_v60   ;;  %8102 = vmatmul.mubr.bf16.gmra.mrb[8].mxu0 %v8787_v61  ;;  %v103_v61 = vld [vmem:[%s15321_s1 + $0x148] sm:$0xff] }
  0x3c   :  { %8105 = vmatprep.mubr.bf16.mxu0 %v8788_v62  ;;  %v102_v62 = vld [vmem:[%s15321_s1 + $0x140] sm:$0xff] }
  0x3e   :  { %292 = vperm.xlu1 %8781, %v69_v63   ;;  %v8807_v63 = vld [vmem:[%s15323_s2 + $0xc8] sm:$0xff]  }
  0x3f   :  { %287 = vperm.xlu0 %8780, %v68_v0   ;;  %v8808_v0 = vld [vmem:[%s15323_s2 + $0xd0] sm:$0xff]  }
  0x42   :  { %372 = vperm.xlu1 %8781, %v85_v1  }
  0x43   :  { %367 = vperm.xlu0 %8780, %v84_v2   ;;  %8106 = vmatmul.mubr.bf16.gmra.mrb[12].mxu0 %v8789_v4  ;;  %v137_v4 = vld [vmem:[%s15322_s3 + $0x58] sm:$0xff] }
  0x44   :  { %8109 = vmatprep.mubr.bf16.mxu0 %v8790_v5  ;;  %v136_v5 = vld [vmem:[%s15322_s3 + $0x50] sm:$0xff] }
  0x46   :  { %820 = vperm.xlu1 %8781, %v161_v6  }
  0x47   :  { %815 = vperm.xlu0 %8780, %v160_v7  }
  0x4a   :  { %442 = vperm.xlu1 %8781, %v99_v8   ;;  %v153_v8 = vld [vmem:[%s15322_s3 + $0xd8] sm:$0xff] }
  0x4b   :  { %437 = vperm.xlu0 %8780, %v98_v9   ;;  %8110 = vmatmul.mubr.bf16.gmra.mrb[16].mxu0 %v8791_v10  ;;  %v152_v9 = vld [vmem:[%s15322_s3 + $0xd0] sm:$0xff]  ;;  %v8809_v10 = vld [vmem:[%s15323_s2 + $0xd8] sm:$0xff]  }
  0x4c   :  { %8113 = vmatprep.mubr.bf16.mxu0 %v8792_v11  ;;  %v8810_v11 = vld [vmem:[%s15323_s2 + $0xe0] sm:$0xff]  }
  0x4e   :  { %680 = vperm.xlu1 %8781, %v133_v12  }
  0x4f   :  { %675 = vperm.xlu0 %8780, %v132_v13  }
  0x52   :  { %760 = vperm.xlu1 %8781, %v149_v14   ;;  %v115_v14 = vld [vmem:[%s15321_s1 + $0x1a8] sm:$0xff] }
  0x53   :  { %755 = vperm.xlu0 %8780, %v148_v15   ;;  %8114 = vmatmul.mubr.bf16.gmra.mrb[20].mxu0 %v8793_v16  ;;  %v114_v15 = vld [vmem:[%s15321_s1 + $0x1a0] sm:$0xff] }
  0x54   :  { %8117 = vmatprep.mubr.bf16.mxu0 %v8794_v17 }
  0x56   :  { %502 = vperm.xlu1 %8781, %v111_v18   ;;  %v75_v18 = vld [vmem:[%s15321_s1 + $0x68] sm:$0xff] }
  0x57   :  { %497 = vperm.xlu0 %8780, %v110_v20   ;;  %v74_v20 = vld [vmem:[%s15321_s1 + $0x60] sm:$0xff] }
  0x5a   :  { %302 = vperm.xlu1 %8781, %v71_v21   ;;  %v8811_v21 = vld [vmem:[%s15323_s2 + $0xe8] sm:$0xff]  }
  0x5b   :  { %297 = vperm.xlu0 %8780, %v70_v22   ;;  %8118 = vmatmul.mubr.bf16.gmra.mrb[24].mxu0 %v8795_v23  ;;  %v8812_v22 = vld [vmem:[%s15323_s2 + $0xf0] sm:$0xff]  }
  0x5c   :  { %8121 = vmatprep.mubr.bf16.mxu0 %v8796_v24 }
  0x5e   :  { %382 = vperm.xlu1 %8781, %v87_v25   ;;  %v91_v25 = vld [vmem:[%s15321_s1 + $0xe8] sm:$0xff] }
  0x5f   :  { %377 = vperm.xlu0 %8780, %v86_v26   ;;  %v90_v26 = vld [vmem:[%s15321_s1 + $0xe0] sm:$0xff] }
  0x62   :  { %830 = vperm.xlu1 %8781, %v163_v27  }
  0x63   :  { %825 = vperm.xlu0 %8780, %v162_v28   ;;  %8122 = vmatmul.mubr.bf16.gmra.mrb[28].mxu0 %v8797_v29  ;;  %v167_v29 = vld [vmem:[%s15322_s3 + $0x148] sm:$0xff] }
  0x64   :  { %8125 = vmatprep.mubr.bf16.mxu0 %v8798_v30  ;;  %v166_v30 = vld [vmem:[%s15322_s3 + $0x140] sm:$0xff] }
  0x66   :  { %890 = vperm.xlu1 %8781, %v175_v31   ;;  %v8813_v31 = vld [vmem:[%s15323_s2 + $0xf8] sm:$0xff]  }
  0x67   :  { %885 = vperm.xlu0 %8780, %v174_v32  }
  0x6a   :  { %452 = vperm.xlu1 %8781, %v101_v33  }
  0x6b   :  { %447 = vperm.xlu0 %8780, %v100_v34   ;;  %8126 = vmatmul.mubr.bf16.gmra.mrb[32].mxu0 %v8799_v35  ;;  %v179_v34 = vld [vmem:[%s15322_s3 + $0x1a8] sm:$0xff]  ;;  %v178_v35 = vld [vmem:[%s15322_s3 + $0x1a0] sm:$0xff] }
  0x6c   :  { %8129 = vmatprep.mubr.bf16.mxu0 %v8800_v36 }
  0x6e   :  { %690 = vperm.xlu1 %8781, %v135_v37  }
  0x6f   :  { %685 = vperm.xlu0 %8780, %v134_v38   ;;  %v105_v38 = vld [vmem:[%s15321_s1 + $0x158] sm:$0xff] }
  0x72   :  { %770 = vperm.xlu1 %8781, %v151_v39   ;;  %v104_v39 = vld [vmem:[%s15321_s1 + $0x150] sm:$0xff] }
  0x73   :  { %765 = vperm.xlu0 %8780, %v150_v40   ;;  %8130 = vmatmul.mubr.bf16.gmra.mrb[36].mxu0 %v8801_v41 }
  0x74   :  { %8133 = vmatprep.mubr.bf16.mxu0 %v8802_v42  ;;  %v138_v42 = vld [vmem:[%s15322_s3 + $0x60] sm:$0xff] }
  0x76   :  { %512 = vperm.xlu1 %8781, %v113_v43  }
  0x77   :  { %507 = vperm.xlu0 %8780, %v112_v44  }
  0x7a   :  { %312 = vperm.xlu1 %8781, %v73_v45   ;;  %v155_v45 = vld [vmem:[%s15322_s3 + $0xe8] sm:$0xff] }
  0x7b   :  { %307 = vperm.xlu0 %8780, %v72_v46   ;;  %8134 = vmatmul.mubr.bf16.gmra.mrb[40].mxu0 %v8803_v47  ;;  %v154_v46 = vld [vmem:[%s15322_s3 + $0xe0] sm:$0xff] }
  0x7c   :  { %8137 = vmatprep.mubr.bf16.mxu0 %v8804_v48 }
  0x7e   :  { %392 = vperm.xlu1 %8781, %v89_v49   ;;  %v117_v49 = vld [vmem:[%s15321_s1 + $0x1b8] sm:$0xff] }
  0x7f   :  { %387 = vperm.xlu0 %8780, %v88_v50   ;;  %v116_v50 = vld [vmem:[%s15321_s1 + $0x1b0] sm:$0xff] }
  0x81   :  { %v10185_v55 = vpop.permute.xlu1 %337 }
  0x82   :  { %15558 = vst [vmem:[#allocation4_spill] sm:$0xff] %v10185_v55  ;;  %v10187_v56 = vpop.permute.xlu0 %257  ;;  %840 = vperm.xlu1 %8781, %v165_v51  }
  0x83   :  { %15559 = vst [vmem:[#allocation5_spill] sm:$0xff] %v10187_v56  ;;  %835 = vperm.xlu0 %8780, %v164_v52   ;;  %8138 = vmatmul.mubr.bf16.gmra.mrb[44].mxu0 %v8805_v53  ;;  %v77_v53 = vld [vmem:[%s15321_s1 + $0x78] sm:$0xff] }
  0x84   :  { %8141 = vmatprep.mubr.bf16.mxu0 %v8806_v54  ;;  %v76_v54 = vld [vmem:[%s15321_s1 + $0x70] sm:$0xff] }
  0x85   :  { %v10195_v59 = vpop.permute.xlu1 %342 }
  0x86   :  { %15560 = vst [vmem:[#allocation6_spill] sm:$0xff] %v10195_v59  ;;  %v10197_v60 = vpop.permute.xlu0 %262  ;;  %900 = vperm.xlu1 %8781, %v177_v57  }
  0x87   :  { %15561 = vst [vmem:[#allocation7_spill] sm:$0xff] %v10197_v60  ;;  %895 = vperm.xlu0 %8780, %v176_v58  }
  0x89   :  { %v10211_v1 = vpop.permute.xlu1 %650 }
  0x8a   :  { %15562 = vst [vmem:[#allocation8_spill] sm:$0xff] %v10211_v1  ;;  %v10213_v2 = vpop.permute.xlu0 %645  ;;  %462 = vperm.xlu1 %8781, %v103_v61   ;;  %v93_v61 = vld [vmem:[%s15321_s1 + $0xf8] sm:$0xff] }
  0x8b   :  { %15563 = vst [vmem:[#allocation9_spill] sm:$0xff] %v10213_v2  ;;  %457 = vperm.xlu0 %8780, %v102_v62   ;;  %8142 = vmatmul.mubr.bf16.gmra.mrb[48].mxu0 %v8807_v63  ;;  %v92_v62 = vld [vmem:[%s15321_s1 + $0xf0] sm:$0xff] }
  0x8c   :  { %8145 = vmatprep.mubr.bf16.mxu0 %v8808_v0 }
  0x8d   :  { %v10221_v6 = vpop.permute.xlu1 %730 }
  0x8e   :  { %15564 = vst [vmem:[#allocation10_spill] sm:$0xff] %v10221_v6  ;;  %v10223_v7 = vpop.permute.xlu0 %725  ;;  %700 = vperm.xlu1 %8781, %v137_v4   ;;  %v169_v4 = vld [vmem:[%s15322_s3 + $0x158] sm:$0xff] }
  0x8f   :  { %15565 = vst [vmem:[#allocation11_spill] sm:$0xff] %v10223_v7  ;;  %695 = vperm.xlu0 %8780, %v136_v5   ;;  %v168_v5 = vld [vmem:[%s15322_s3 + $0x150] sm:$0xff] }
  0x91   :  { %v10237_v12 = vpop.permute.xlu1 %272 }
  0x92   :  { %15566 = vst [vmem:[#allocation12_spill] sm:$0xff] %v10237_v12  ;;  %v10239_v13 = vpop.permute.xlu0 %267  ;;  %780 = vperm.xlu1 %8781, %v153_v8  }
  0x93   :  { %15567 = vst [vmem:[#allocation13_spill] sm:$0xff] %v10239_v13  ;;  %775 = vperm.xlu0 %8780, %v152_v9   ;;  %8146 = vmatmul.mubr.bf16.gmra.mrb[52].mxu0 %v8809_v10  ;;  %v181_v10 = vld [vmem:[%s15322_s3 + $0x1b8] sm:$0xff] }
  0x94   :  { %8149 = vmatprep.mubr.bf16.mxu0 %v8810_v11  ;;  %v180_v11 = vld [vmem:[%s15322_s3 + $0x1b0] sm:$0xff] }
  0x95   :  { %v10247_v16 = vpop.permute.xlu1 %352 }
  0x96   :  { %15568 = vst [vmem:[#allocation14_spill] sm:$0xff] %v10247_v16  ;;  %v10249_v17 = vpop.permute.xlu0 %347  ;;  %522 = vperm.xlu1 %8781, %v115_v14  }
  0x97   :  { %15569 = vst [vmem:[#allocation15_spill] sm:$0xff] %v10249_v17  ;;  %517 = vperm.xlu0 %8780, %v114_v15  }
  0x99   :  { %v10263_v23 = vpop.permute.xlu1 %422 }
  0x9a   :  { %15570 = vst [vmem:[#allocation16_spill] sm:$0xff] %v10263_v23  ;;  %v10265_v24 = vpop.permute.xlu0 %417  ;;  %322 = vperm.xlu1 %8781, %v75_v18   ;;  %v107_v18 = vld [vmem:[%s15321_s1 + $0x168] sm:$0xff] }
  0x9b   :  { %15571 = vst [vmem:[#allocation17_spill] sm:$0xff] %v10265_v24  ;;  %317 = vperm.xlu0 %8780, %v74_v20   ;;  %8150 = vmatmul.mubr.bf16.gmra.mrb[56].mxu0 %v8811_v21  ;;  %v106_v20 = vld [vmem:[%s15321_s1 + $0x160] sm:$0xff] }
  0x9c   :  { %8153 = vmatprep.mubr.bf16.mxu0 %v8812_v22 }
  0x9d   :  { %v10273_v27 = vpop.permute.xlu1 %660 }
  0x9e   :  { %15572 = vst [vmem:[#allocation18_spill] sm:$0xff] %v10273_v27  ;;  %v10275_v28 = vpop.permute.xlu0 %655  ;;  %402 = vperm.xlu1 %8781, %v91_v25   ;;  %v141_v25 = vld [vmem:[%s15322_s3 + $0x78] sm:$0xff] }
  0x9f   :  { %15573 = vst [vmem:[#allocation19_spill] sm:$0xff] %v10275_v28  ;;  %397 = vperm.xlu0 %8780, %v90_v26   ;;  %v140_v26 = vld [vmem:[%s15322_s3 + $0x70] sm:$0xff] }
  0xa1   :  { %v10286_v32 = vpop.permute.xlu1 %740 }
  0xa2   :  { %15574 = vst [vmem:[#allocation20_spill] sm:$0xff] %v10286_v32  ;;  %v10288_v33 = vpop.permute.xlu0 %735  ;;  %850 = vperm.xlu1 %8781, %v167_v29  }
  0xa3   :  { %15575 = vst [vmem:[#allocation21_spill] sm:$0xff] %v10288_v33  ;;  %845 = vperm.xlu0 %8780, %v166_v30   ;;  %8154 = vmatmul.mubr.bf16.gmra.mrb[60].mxu0 %v8813_v31  ;;  %v157_v31 = vld [vmem:[%s15322_s3 + $0xf8] sm:$0xff] }
  0xa4   :  { %8253 = vmatprep.mubr.bf16.mxu0 %v9935_v19  ;;  %v139_v19 = vld [vmem:[%s15322_s3 + $0x68] sm:$0xff] }
  0xa5   :  { %v10297_v36 = vpop.permute.xlu1 %282 }
  0xa6   :  { %15576 = vst [vmem:[#allocation22_spill] sm:$0xff] %v10297_v36  ;;  %v10299_v37 = vpop.permute.xlu0 %277  ;;  %910 = vperm.xlu1 %8781, %v179_v34   ;;  %v156_v34 = vld [vmem:[%s15322_s3 + $0xf0] sm:$0xff] }
  0xa7   :  { %15577 = vst [vmem:[#allocation23_spill] sm:$0xff] %v10299_v37  ;;  %905 = vperm.xlu0 %8780, %v178_v35  }
  0xa9   :  { %v10307_v40 = vpop.permute.xlu1 %362 }
  0xaa   :  { %15578 = vst [vmem:[#allocation24_spill] sm:$0xff] %v10307_v40  ;;  %v10309_v41 = vpop.permute.xlu0 %357  ;;  %472 = vperm.xlu1 %8781, %v105_v38  }
  0xab   :  { %15579 = vst [vmem:[#allocation25_spill] sm:$0xff] %v10309_v41  ;;  %467 = vperm.xlu0 %8780, %v104_v39   ;;  %v119_v39 = vld [vmem:[%s15321_s1 + $0x1c8] sm:$0xff] }
  0xad   :  { %v10317_v43 = vpop.permute.xlu1 %810 }
  0xae   :  { %15580 = vst [vmem:[#allocation26_spill] sm:$0xff] %v10317_v43  ;;  %v10319_v44 = vpop.permute.xlu0 %805  ;;  %710 = vperm.xlu1 %8781, %v139_v19   ;;  %v118_v19 = vld [vmem:[%s15321_s1 + $0x1c0] sm:$0xff] }
  0xaf   :  { %15581 = vst [vmem:[#allocation27_spill] sm:$0xff] %v10319_v44  ;;  %705 = vperm.xlu0 %8780, %v138_v42  }
  0xb1   :  { %v10327_v47 = vpop.permute.xlu1 %432 }
  0xb2   :  { %15582 = vst [vmem:[#allocation28_spill] sm:$0xff] %v10327_v47  ;;  %v10329_v48 = vpop.permute.xlu0 %427  ;;  %790 = vperm.xlu1 %8781, %v155_v45  }
  0xb3   :  { %15583 = vst [vmem:[#allocation29_spill] sm:$0xff] %v10329_v48  ;;  %785 = vperm.xlu0 %8780, %v154_v46   ;;  %v171_v46 = vld [vmem:[%s15322_s3 + $0x168] sm:$0xff] }
  0xb5   :  { %v10337_v51 = vpop.permute.xlu1 %670 }
  0xb6   :  { %15584 = vst [vmem:[#allocation30_spill] sm:$0xff] %v10337_v51  ;;  %v10339_v52 = vpop.permute.xlu0 %665  ;;  %532 = vperm.xlu1 %8781, %v117_v49   ;;  %v170_v49 = vld [vmem:[%s15322_s3 + $0x160] sm:$0xff] }
  0xb7   :  { %15585 = vst [vmem:[#allocation31_spill] sm:$0xff] %v10339_v52  ;;  %527 = vperm.xlu0 %8780, %v116_v50  }
  0xb9   :  { %v10347_v57 = vpop.permute.xlu1 %750 }
  0xba   :  { %15586 = vst [vmem:[#allocation32_spill] sm:$0xff] %v10347_v57  ;;  %v10349_v58 = vpop.permute.xlu0 %745  ;;  %332 = vperm.xlu1 %8781, %v77_v53  }
  0xbb   :  { %15587 = vst [vmem:[#allocation33_spill] sm:$0xff] %v10349_v58  ;;  %327 = vperm.xlu0 %8780, %v76_v54   ;;  %v183_v54 = vld [vmem:[%s15322_s3 + $0x1c8] sm:$0xff] }
  0xbd   :  { %v10357_v63 = vpop.permute.xlu1 %292 }
  0xbe   :  { %15588 = vst [vmem:[#allocation34_spill] sm:$0xff] %v10357_v63  ;;  %v10359_v0 = vpop.permute.xlu0 %287  ;;  %412 = vperm.xlu1 %8781, %v93_v61   ;;  %v182_v61 = vld [vmem:[%s15322_s3 + $0x1c0] sm:$0xff] }
  0xbf   :  { %15589 = vst [vmem:[#allocation35_spill] sm:$0xff] %v10359_v0  ;;  %407 = vperm.xlu0 %8780, %v92_v62  }
  0xc1   :  { %v10367_v8 = vpop.permute.xlu1 %372 }
  0xc2   :  { %15590 = vst [vmem:[#allocation36_spill] sm:$0xff] %v10367_v8  ;;  %v10369_v9 = vpop.permute.xlu0 %367  ;;  %860 = vperm.xlu1 %8781, %v169_v4  }
  0xc3   :  { %15591 = vst [vmem:[#allocation37_spill] sm:$0xff] %v10369_v9  ;;  %855 = vperm.xlu0 %8780, %v168_v5   ;;  %v109_v5 = vld [vmem:[%s15321_s1 + $0x178] sm:$0xff] }
  0xc5   :  { %v10377_v14 = vpop.permute.xlu1 %820 }
  0xc6   :  { %15592 = vst [vmem:[#allocation38_spill] sm:$0xff] %v10377_v14  ;;  %v10379_v15 = vpop.permute.xlu0 %815  ;;  %920 = vperm.xlu1 %8781, %v181_v10   ;;  %v108_v10 = vld [vmem:[%s15321_s1 + $0x170] sm:$0xff] }
  0xc7   :  { %15593 = vst [vmem:[#allocation39_spill] sm:$0xff] %v10379_v15  ;;  %915 = vperm.xlu0 %8780, %v180_v11  }
  0xc9   :  { %v10387_v21 = vpop.permute.xlu1 %442 }
  0xca   :  { %15594 = vst [vmem:[#allocation40_spill] sm:$0xff] %v10387_v21  ;;  %v10389_v22 = vpop.permute.xlu0 %437  ;;  %482 = vperm.xlu1 %8781, %v107_v18  }
  0xcb   :  { %15595 = vst [vmem:[#allocation41_spill] sm:$0xff] %v10389_v22  ;;  %477 = vperm.xlu0 %8780, %v106_v20   ;;  %v121_v20 = vld [vmem:[%s15321_s1 + $0x1d8] sm:$0xff] }
  0xcd   :  { %v10397_v29 = vpop.permute.xlu1 %680 }
  0xce   :  { %15596 = vst [vmem:[#allocation42_spill] sm:$0xff] %v10397_v29  ;;  %v10399_v30 = vpop.permute.xlu0 %675  ;;  %720 = vperm.xlu1 %8781, %v141_v25   ;;  %v120_v25 = vld [vmem:[%s15321_s1 + $0x1d0] sm:$0xff] }
  0xcf   :  { %15597 = vst [vmem:[#allocation43_spill] sm:$0xff] %v10399_v30  ;;  %715 = vperm.xlu0 %8780, %v140_v26  }
  0xd1   :  { %v10407_v35 = vpop.permute.xlu1 %760 }
  0xd2   :  { %15598 = vst [vmem:[#allocation44_spill] sm:$0xff] %v10407_v35  ;;  %v10409_v38 = vpop.permute.xlu0 %755  ;;  %800 = vperm.xlu1 %8781, %v157_v31  }
  0xd3   :  { %15599 = vst [vmem:[#allocation45_spill] sm:$0xff] %v10409_v38  ;;  %795 = vperm.xlu0 %8780, %v156_v34   ;;  %v173_v34 = vld [vmem:[%s15322_s3 + $0x178] sm:$0xff] }
  0xd5   :  { %v10417_v42 = vpop.permute.xlu1 %502 }
  0xd6   :  { %15600 = vst [vmem:[#allocation46_spill] sm:$0xff] %v10417_v42  ;;  %v10419_v45 = vpop.permute.xlu0 %497  ;;  %542 = vperm.xlu1 %8781, %v119_v39   ;;  %v172_v39 = vld [vmem:[%s15322_s3 + $0x170] sm:$0xff] }
  0xd7   :  { %15601 = vst [vmem:[#allocation47_spill] sm:$0xff] %v10419_v45  ;;  %537 = vperm.xlu0 %8780, %v118_v19  }
  0xd9   :  { %v10427_v50 = vpop.permute.xlu1 %302 }
  0xda   :  { %15602 = vst [vmem:[#allocation48_spill] sm:$0xff] %v10427_v50  ;;  %v10429_v53 = vpop.permute.xlu0 %297  ;;  %870 = vperm.xlu1 %8781, %v171_v46  }
  0xdb   :  { %15603 = vst [vmem:[#allocation49_spill] sm:$0xff] %v10429_v53  ;;  %865 = vperm.xlu0 %8780, %v170_v49   ;;  %v185_v49 = vld [vmem:[%s15322_s3 + $0x1d8] sm:$0xff] }
  0xdd   :  { %v10437_v62 = vpop.permute.xlu1 %382 }
  0xde   :  { %15604 = vst [vmem:[#allocation50_spill] sm:$0xff] %v10437_v62  ;;  %v10439_v4 = vpop.permute.xlu0 %377  ;;  %930 = vperm.xlu1 %8781, %v183_v54   ;;  %v184_v54 = vld [vmem:[%s15322_s3 + $0x1d0] sm:$0xff] }
  0xdf   :  { %15605 = vst [vmem:[#allocation51_spill] sm:$0xff] %v10439_v4  ;;  %925 = vperm.xlu0 %8780, %v182_v61  }
  0xe1   :  { %v10447_v11 = vpop.permute.xlu1 %830 }
  0xe2   :  { %15606 = vst [vmem:[#allocation52_spill] sm:$0xff] %v10447_v11  ;;  %v10449_v18 = vpop.permute.xlu0 %825  ;;  %492 = vperm.xlu1 %8781, %v109_v5  }
  0xe3   :  { %15607 = vst [vmem:[#allocation53_spill] sm:$0xff] %v10449_v18  ;;  %487 = vperm.xlu0 %8780, %v108_v10   ;;  %v123_v10 = vld [vmem:[%s15321_s1 + $0x1e8] sm:$0xff] }
  0xe5   :  { %v10457_v26 = vpop.permute.xlu1 %890 }
  0xe6   :  { %15608 = vst [vmem:[#allocation54_spill] sm:$0xff] %v10457_v26  ;;  %v10459_v31 = vpop.permute.xlu0 %885  ;;  %552 = vperm.xlu1 %8781, %v121_v20   ;;  %v122_v20 = vld [vmem:[%s15321_s1 + $0x1e0] sm:$0xff]  ;;  %v125_v26 = vld [vmem:[%s15321_s1 + $0x1f8] sm:$0xff] }
  0xe7   :  { %15609 = vst [vmem:[#allocation55_spill] sm:$0xff] %v10459_v31  ;;  %547 = vperm.xlu0 %8780, %v120_v25  }
  0xe9   :  { %v10467_v19 = vpop.permute.xlu1 %452 }
  0xea   :  { %15610 = vst [vmem:[#allocation56_spill] sm:$0xff] %v10467_v19  ;;  %v10469_v46 = vpop.permute.xlu0 %447  ;;  %880 = vperm.xlu1 %8781, %v173_v34  }
  0xeb   :  { %15611 = vst [vmem:[#allocation57_spill] sm:$0xff] %v10469_v46  ;;  %875 = vperm.xlu0 %8780, %v172_v39   ;;  %v187_v39 = vld [vmem:[%s15322_s3 + $0x1e8] sm:$0xff] }
  0xed   :  { %v10477_v61 = vpop.permute.xlu1 %690 }
  0xee   :  { %15612 = vst [vmem:[#allocation58_spill] sm:$0xff] %v10477_v61  ;;  %v10479_v5 = vpop.permute.xlu0 %685  ;;  %940 = vperm.xlu1 %8781, %v185_v49   ;;  %v186_v49 = vld [vmem:[%s15322_s3 + $0x1e0] sm:$0xff] }
  0xef   :  { %15613 = vst [vmem:[#allocation59_spill] sm:$0xff] %v10479_v5  ;;  %935 = vperm.xlu0 %8780, %v184_v54  }
  0xf1   :  { %v10487_v25 = vpop.permute.xlu1 %770 }
  0xf2   :  { %15614 = vst [vmem:[#allocation60_spill] sm:$0xff] %v10487_v25  ;;  %v10489_v34 = vpop.permute.xlu0 %765  ;;  %562 = vperm.xlu1 %8781, %v123_v10   ;;  %v124_v10 = vld [vmem:[%s15321_s1 + $0x1f0] sm:$0xff] }
  0xf3   :  { %15615 = vst [vmem:[#allocation61_spill] sm:$0xff] %v10489_v34  ;;  %557 = vperm.xlu0 %8780, %v122_v20  }
  0xf5   :  { %v10497_v54 = vpop.permute.xlu1 %512 }
  0xf6   :  { %15616 = vst [vmem:[#allocation62_spill] sm:$0xff] %v10497_v54  ;;  %v10499_v3 = vpop.permute.xlu0 %507  ;;  %950 = vperm.xlu1 %8781, %v187_v39   ;;  %v189_v39 = vld [vmem:[%s15322_s3 + $0x1f8] sm:$0xff] }
  0xf7   :  { %15617 = vst [vmem:[#allocation63_spill] sm:$0xff] %v10499_v3  ;;  %945 = vperm.xlu0 %8780, %v186_v49   ;;  %v10514_v3 = vld [vmem:[%s15324_s0] ss:$0 sm:$0xff]  ;;  %v188_v49 = vld [vmem:[%s15322_s3 + $0x1f0] sm:$0xff] }
  0xf8   :  { %v579_v19 = vmul.f32 %v10514_v3, %v10187_v56  ;;  %v580_v18 = vmul.f32 %v10514_v3, %v10197_v60 }
  0xf9   :  { %v10507_v20 = vpop.permute.xlu1 %312 }
  0xfa   :  { %15618 = vst [vmem:[#allocation64_spill] sm:$0xff] %v10507_v20  ;;  %v10509_v46 = vpop.permute.xlu0 %307  ;;  %572 = vperm.xlu1 %8781, %v125_v26   ;;  %v581_v26 = vmul.f32 %v10514_v3, %v10239_v13  ;;  %v7619_v13 = vld [vmem:[%s15325_s5] sm:$0xff] }
  0xfb   :  { %15619 = vst [vmem:[#allocation65_spill] sm:$0xff] %v10509_v46  ;;  %567 = vperm.xlu0 %8780, %v124_v10   ;;  %v582_v10 = vmul.f32 %v10514_v3, %v10237_v12  ;;  %v963_v12 = vadd.f32 %v10213_v2, %v579_v19 }
  0xfc   :  { %v965_v42 = vadd.f32 %v10275_v28, %v581_v26 }
  0xfd   :  { %v10522_v54 = vpop.permute.xlu1 %392  ;;  %v966_v21 = vadd.f32 %v10273_v27, %v582_v10 }
  0xfe   :  { %15620 = vst [vmem:[#allocation66_spill] sm:$0xff] %v10522_v54  ;;  %v10524_v31 = vpop.permute.xlu0 %387  ;;  %v8095_v11 = vpop.f32.mrb[0].mxu0  ;;  %960 = vperm.xlu1 %8781, %v189_v39   ;;  %v964_v39 = vadd.f32 %v10211_v1, %v580_v18 }
  0xff   :  { %15621 = vst [vmem:[#allocation67_spill] sm:$0xff] %v10524_v31  ;;  %955 = vperm.xlu0 %8780, %v188_v49   ;;  %v1277_v45 = vpop.f32.mrb[1].mxu0  ;;  %v10541_v49 = vadd.f32 %v8095_v11, %v965_v42 }
 0x100   :  { %v8096_v22 = vpop.f32.mrb[2].mxu0  ;;  %v10547_v26 = vadd.f32 %v1277_v45, %v963_v12  ;;  %v586_v12 = vmul.f32 %v10514_v3, %v10357_v63  ;;  %v584_v45 = vmul.f32 %v10514_v3, %v10297_v36 }
 0x101   :  { %v10543_v56 = vadd.f32 %v8096_v22, %v966_v21  ;;  %v1280_v14 = vpop.f32.mrb[3].mxu0  ;;  %v10545_v60 = vpop.permute.xlu1 %840  ;;  %v585_v21 = vmul.f32 %v10514_v3, %v10359_v0 }
 0x102   :  { %15622 = vst [vmem:[#allocation68_spill] sm:$0xff] %v10545_v60  ;;  %v10549_v28 = vadd.f32 %v1280_v14, %v964_v39  ;;  %v10551_v10 = vpop.permute.xlu0 %835  ;;  %v970_v18 = vadd.f32 %v10397_v29, %v586_v12  ;;  %v968_v1 = vadd.f32 %v10337_v51, %v584_v45 }
 0x103   :  { %15623 = vst [vmem:[#allocation69_spill] sm:$0xff] %v10551_v10  ;;  %7622 = vperm.xlu0 %8780, %v7619_v13   ;;  %v583_v13 = vmul.f32 %v10514_v3, %v10299_v37  ;;  %v969_v11 = vadd.f32 %v10399_v30, %v585_v21 }
 0x105   :  { %v10557_v42 = vpop.permute.xlu1 %900  ;;  %v967_v19 = vadd.f32 %v10339_v52, %v583_v13 }
 0x106   :  { %15624 = vst [vmem:[#allocation70_spill] sm:$0xff] %v10557_v42  ;;  %v10563_v22 = vpop.permute.xlu0 %895  ;;  %v8099_v14 = vpop.f32.mrb[4].mxu0 }
 0x107   :  { %15625 = vst [vmem:[#allocation71_spill] sm:$0xff] %v10563_v22  ;;  %v1293_v39 = vpop.f32.mrb[5].mxu0  ;;  %v10573_v63 = vadd.f32 %v8099_v14, %v969_v11  ;;  %v590_v14 = vmul.f32 %v10514_v3, %v10507_v20  ;;  %v588_v11 = vmul.f32 %v10514_v3, %v10427_v50  ;;  %v596_v50 = vmul.f32 %v10514_v3, %v10195_v59 }
 0x108   :  { %v8100_v0 = vpop.f32.mrb[6].mxu0  ;;  %v10579_v37 = vadd.f32 %v1293_v39, %v967_v19 }
 0x109   :  { %v10575_v2 = vadd.f32 %v8100_v0, %v970_v18  ;;  %v1296_v27 = vpop.f32.mrb[7].mxu0  ;;  %v10577_v22 = vpop.permute.xlu1 %462  ;;  %v589_v18 = vmul.f32 %v10514_v3, %v10509_v46  ;;  %v972_v51 = vadd.f32 %v10477_v61, %v588_v11 }
 0x10a   :  { %15626 = vst [vmem:[#allocation72_spill] sm:$0xff] %v10577_v22  ;;  %v10581_v36 = vadd.f32 %v1296_v27, %v968_v1  ;;  %v10583_v21 = vpop.permute.xlu0 %457  ;;  %v587_v27 = vmul.f32 %v10514_v3, %v10429_v53 }
 0x10b   :  { %15627 = vst [vmem:[#allocation73_spill] sm:$0xff] %v10583_v21  ;;  %v980_v21 = vadd.f32 %v10221_v6, %v596_v50 }
 0x10c   :  { %v971_v12 = vadd.f32 %v10479_v5, %v587_v27  ;;  %v597_v27 = vmul.f32 %v10514_v3, %v10249_v17 }
 0x10d   :  { %v10591_v0 = vpop.permute.xlu1 %700 }
 0x10e   :  { %15628 = vst [vmem:[#allocation74_spill] sm:$0xff] %v10591_v0  ;;  %v10595_v19 = vpop.permute.xlu0 %695  ;;  %v8103_v1 = vpop.f32.mrb[8].mxu0  ;;  %v974_v45 = vadd.f32 %v10591_v0, %v590_v14 }
 0x10f   :  { %15629 = vst [vmem:[#allocation75_spill] sm:$0xff] %v10595_v19  ;;  %v973_v39 = vadd.f32 %v10595_v19, %v589_v18  ;;  %v1309_v13 = vpop.f32.mrb[9].mxu0  ;;  %v598_v18 = vmul.f32 %v10514_v3, %v10247_v16  ;;  %v595_v19 = vmul.f32 %v10514_v3, %v10185_v55 }
 0x110   :  { %v8104_v20 = vpop.f32.mrb[10].mxu0  ;;  %v10611_v53 = vadd.f32 %v1309_v13, %v971_v12 }
 0x111   :  { %v10605_v46 = vadd.f32 %v8103_v1, %v973_v39  ;;  %v10607_v52 = vadd.f32 %v8104_v20, %v974_v45  ;;  %v1312_v29 = vpop.f32.mrb[11].mxu0  ;;  %v10609_v30 = vpop.permute.xlu1 %780 }
 0x112   :  { %15630 = vst [vmem:[#allocation76_spill] sm:$0xff] %v10609_v30  ;;  %v10613_v14 = vadd.f32 %v1312_v29, %v972_v51  ;;  %v10615_v0 = vpop.permute.xlu0 %775 }
 0x113   :  { %15631 = vst [vmem:[#allocation77_spill] sm:$0xff] %v10615_v0 }
 0x115   :  { %v10621_v11 = vpop.permute.xlu1 %522 }
 0x116   :  { %15632 = vst [vmem:[#allocation78_spill] sm:$0xff] %v10621_v11  ;;  %v10623_v1 = vpop.permute.xlu0 %517  ;;  %v10625_v20 = vpop.f32.mrb[12].mxu0  ;;  %v979_v11 = vadd.f32 %v10223_v7, %v595_v19  ;;  %v602_v19 = vmul.f32 %v10514_v3, %v10367_v8 }
 0x117   :  { %15633 = vst [vmem:[#allocation79_spill] sm:$0xff] %v10623_v1  ;;  %15634 = vst [vmem:[#allocation80_spill] sm:$0xff] %v10625_v20  ;;  %v10627_v45 = vpop.f32.mrb[13].mxu0  ;;  %v981_v20 = vadd.f32 %v10288_v33, %v597_v27  ;;  %v982_v1 = vadd.f32 %v10286_v32, %v598_v18  ;;  %v601_v18 = vmul.f32 %v10514_v3, %v10369_v9 }
 0x118   :  { %v10629_v12 = vpop.f32.mrb[14].mxu0 }
 0x119   :  { %15635 = vst [vmem:[#allocation81_spill] sm:$0xff] %v10629_v12  ;;  %v10631_v51 = vpop.f32.mrb[15].mxu0  ;;  %v10633_v29 = vpop.permute.xlu1 %322 }
 0x11a   :  { %15636 = vst [vmem:[#allocation82_spill] sm:$0xff] %v10633_v29  ;;  %v10635_v13 = vpop.permute.xlu0 %317 }
 0x11b   :  { %15637 = vst [vmem:[#allocation83_spill] sm:$0xff] %v10635_v13 }
 0x11d   :  { %v10637_v39 = vpop.permute.xlu1 %402 }
 0x11e   :  { %15638 = vst [vmem:[#allocation84_spill] sm:$0xff] %v10637_v39  ;;  %v10643_v61 = vpop.permute.xlu0 %397  ;;  %v8111_v5 = vpop.f32.mrb[16].mxu0 }
 0x11f   :  { %15639 = vst [vmem:[#allocation85_spill] sm:$0xff] %v10643_v61  ;;  %v1341_v12 = vpop.f32.mrb[17].mxu0  ;;  %v1550_v16 = vadd.f32 %v8111_v5, %v981_v20  ;;  %v599_v5 = vmul.f32 %v10514_v3, %v10309_v41 }
 0x120   :  { %v8112_v17 = vpop.f32.mrb[18].mxu0  ;;  %v1548_v60 = vadd.f32 %v1341_v12, %v979_v11  ;;  %v15645_v11 = vpack.c.bf16 %v10549_v28, %v10547_v26  ;;  %v603_v26 = vmul.f32 %v10514_v3, %v10439_v4 }
 0x121   :  { %v1551_v22 = vadd.f32 %v8112_v17, %v982_v1  ;;  %v1344_v42 = vpop.f32.mrb[19].mxu0  ;;  %v10653_v10 = vpop.permute.xlu1 %850  ;;  %v983_v20 = vadd.f32 %v10349_v58, %v599_v5  ;;  %v592_v5 = vmul.f32 %v10514_v3, %v10633_v29 }
 0x122   :  { %15640 = vst [vmem:[#allocation86_spill] sm:$0xff] %v10653_v10  ;;  %v1549_v55 = vadd.f32 %v1344_v42, %v980_v21  ;;  %v10655_v43 = vpop.permute.xlu0 %845  ;;  %v600_v42 = vmul.f32 %v10514_v3, %v10307_v40  ;;  %v986_v21 = vadd.f32 %v10407_v35, %v602_v19  ;;  %v1628_v1 = vmul.bf16 1056980736, %v15645_v11  ;;  %v15682_v35 = vld [vmem:[#allocation73_spill] sm:$0xff] }
 0x123   :  { %15641 = vst [vmem:[#allocation87_spill] sm:$0xff] %v10655_v43  ;;  %v1605_v59 = vpack.c.bf16 %v1551_v22, %v1550_v16  ;;  %v985_v16 = vadd.f32 %v10409_v38, %v601_v18  ;;  %v15652_v11 = vpack.c.bf16 %v10607_v52, %v10605_v46 }
 0x124   :  { %v1604_v44 = vpack.c.bf16 %v1549_v55, %v1548_v60  ;;  %v15644_v55 = vpack.c.bf16 %v10543_v56, %v10541_v49  ;;  %v984_v41 = vadd.f32 %v10347_v57, %v600_v42  ;;  %v15647_v56 = vpack.c.bf16 %v10575_v2, %v10573_v63 }
 0x125   :  { %v10657_v27 = vpop.permute.xlu1 %910  ;;  %v1661_v42 = vmul.bf16 1056980736, %v1605_v59  ;;  %v591_v2 = vmul.f32 %v10514_v3, %v10635_v13 }
 0x126   :  { %15642 = vst [vmem:[#allocation88_spill] sm:$0xff] %v10657_v27  ;;  %v10663_v50 = vpop.permute.xlu0 %905  ;;  %v8115_v17 = vpop.f32.mrb[20].mxu0  ;;  %v1629_v60 = vmul.bf16 1056980736, %v15644_v55  ;;  %v1631_v49 = vmul.bf16 1056980736, %v15647_v56 }
 0x127   :  { %15643 = vst [vmem:[#allocation89_spill] sm:$0xff] %v10663_v50  ;;  %v1357_v22 = vpop.f32.mrb[21].mxu0  ;;  %v1554_v8 = vadd.f32 %v8115_v17, %v985_v16  ;;  %v604_v17 = vmul.f32 %v10514_v3, %v10437_v62 }
 0x128   :  { %v8116_v12 = vpop.f32.mrb[22].mxu0  ;;  %v1552_v18 = vadd.f32 %v1357_v22, %v983_v20  ;;  %8814 = vtanh.bf16 %v1629_v60 }
 0x129   :  { %v1555_v40 = vadd.f32 %v8116_v12, %v986_v21  ;;  %v1360_v9 = vpop.f32.mrb[23].mxu0  ;;  %v10679_v6 = vpop.permute.xlu1 %472  ;;  %8816 = vtanh.bf16 %v1628_v1  ;;  %v1633_v1 = vmul.bf16 1056980736, %v15652_v11 }
 0x12a   :  { %15646 = vst [vmem:[#allocation90_spill] sm:$0xff] %v10679_v6  ;;  %v1553_v19 = vadd.f32 %v1360_v9, %v984_v41  ;;  %v10684_v55 = vpop.permute.xlu0 %467  ;;  %v1660_v41 = vmul.bf16 1056980736, %v1604_v44  ;;  %8818 = vtanh.bf16 %v1631_v49  ;;  %v15650_v9 = vpack.c.bf16 %v10581_v36, %v10579_v37 }
 0x12b   :  { %15648 = vst [vmem:[#allocation91_spill] sm:$0xff] %v10684_v55  ;;  %v1607_v28 = vpack.c.bf16 %v1555_v40, %v1554_v8  ;;  %v605_v40 = vmul.f32 %v10514_v3, %v10524_v31  ;;  %v606_v8 = vmul.f32 %v10514_v3, %v10522_v54  ;;  %v987_v44 = vadd.f32 %v10489_v34, %v603_v26  ;;  %v15679_v54 = vld [vmem:[#allocation70_spill] sm:$0xff] }
 0x12c   :  { %v1606_v16 = vpack.c.bf16 %v1553_v19, %v1552_v18  ;;  %v1630_v60 = vmul.bf16 1056980736, %v15650_v9  ;;  %v15653_v36 = vpack.c.bf16 %v10613_v14, %v10611_v53  ;;  %8820 = vtanh.bf16 %v1661_v42  ;;  %v15661_v42 = vld [vmem:[#allocation41_spill] sm:$0xff] }
 0x12d   :  { %v10694_v63 = vpop.permute.xlu1 %710  ;;  %v989_v12 = vadd.f32 %v10615_v0, %v605_v40  ;;  %v990_v49 = vadd.f32 %v10609_v30, %v606_v8  ;;  %v988_v26 = vadd.f32 %v10487_v25, %v604_v17  ;;  %8822 = vtanh.bf16 %v1660_v41 }
 0x12e   :  { %15649 = vst [vmem:[#allocation92_spill] sm:$0xff] %v10694_v63  ;;  %v976_v59 = vadd.f32 %v10694_v63, %v592_v5  ;;  %v10704_v22 = vpop.permute.xlu0 %705  ;;  %v8119_v21 = vpop.f32.mrb[24].mxu0  ;;  %v1632_v37 = vmul.bf16 1056980736, %v15653_v36  ;;  %8824 = vtanh.bf16 %v1630_v60  ;;  %v613_v9 = vmul.f32 %v10514_v3, %v10329_v48  ;;  %v15668_v48 = vld [vmem:[#allocation56_spill] sm:$0xff]  ;;  %v1738_v63 = vld [vmem:[#allocation3 + $0x30] sm:$0xff] }
 0x12f   :  { %15651 = vst [vmem:[#allocation93_spill] sm:$0xff] %v10704_v22  ;;  %v975_v20 = vadd.f32 %v10704_v22, %v591_v2  ;;  %v1373_v56 = vpop.f32.mrb[25].mxu0  ;;  %v1558_v46 = vadd.f32 %v8119_v21, %v989_v12  ;;  %8826 = vtanh.bf16 %v1633_v1  ;;  %v611_v60 = vmul.f32 %v10514_v3, %v10265_v24 }
 0x130   :  { %v10717_v18 = vadd.f32 %v10631_v51, %v976_v59  ;;  %v8120_v19 = vpop.f32.mrb[26].mxu0  ;;  %v1556_v8 = vadd.f32 %v1373_v56, %v987_v44  ;;  %v1663_v51 = vmul.bf16 1056980736, %v1607_v28  ;;  %8828 = vtanh.bf16 %v1632_v37  ;;  %v15658_v37 = vld [vmem:[#allocation27_spill] sm:$0xff] }
 0x131   :  { %v10721_v52 = vadd.f32 %v10627_v45, %v975_v20  ;;  %v1559_v5 = vadd.f32 %v8120_v19, %v990_v49  ;;  %v1376_v2 = vpop.f32.mrb[27].mxu0  ;;  %v10723_v40 = vpop.permute.xlu1 %790  ;;  %v612_v59 = vmul.f32 %v10514_v3, %v10263_v23  ;;  %v1662_v44 = vmul.bf16 1056980736, %v1606_v16  ;;  %v15659_v19 = vld [vmem:[#allocation26_spill] sm:$0xff] }
 0x132   :  { %15654 = vst [vmem:[#allocation94_spill] sm:$0xff] %v10723_v40  ;;  %v1557_v53 = vadd.f32 %v1376_v2, %v988_v26  ;;  %v10725_v14 = vpop.permute.xlu0 %785  ;;  %v607_v1 = vmul.f32 %v10514_v3, %v10643_v61  ;;  %v608_v20 = vmul.f32 %v10514_v3, %v10637_v39  ;;  %v614_v12 = vmul.f32 %v10514_v3, %v10327_v47 }
 0x133   :  { %15655 = vst [vmem:[#allocation95_spill] sm:$0xff] %v10725_v14  ;;  %v1609_v17 = vpack.c.bf16 %v1559_v5, %v1558_v46  ;;  %v8815_v21 = vpop.eup %8814  ;;  %8830 = vtanh.bf16 %v1663_v51  ;;  %v997_v36 = vadd.f32 %v10379_v15, %v613_v9  ;;  %v995_v16 = vadd.f32 %v15658_v37, %v611_v60  ;;  %v15663_v9 = vld [vmem:[#allocation40_spill] sm:$0xff] }
 0x134   :  { %v1608_v41 = vpack.c.bf16 %v1557_v53, %v1556_v8  ;;  %v8817_v56 = vpop.eup %8816  ;;  %v996_v26 = vadd.f32 %v15659_v19, %v612_v59  ;;  %v991_v46 = vadd.f32 %v10725_v14, %v607_v1  ;;  %v992_v2 = vadd.f32 %v10723_v40, %v608_v20  ;;  %v15660_v8 = vld [vmem:[#allocation38_spill] sm:$0xff]  ;;  %v15664_v59 = vld [vmem:[#allocation47_spill] sm:$0xff] }
 0x135   :  { %v10729_v45 = vpop.permute.xlu1 %532  ;;  %v998_v53 = vadd.f32 %v15660_v8, %v614_v12  ;;  %v615_v39 = vmul.f32 %v10514_v3, %v15661_v42  ;;  %v8819_v61 = vpop.eup %8818  ;;  %v1645_v51 = vmul.bf16 1056980736, %v8815_v21  ;;  %v616_v60 = vmul.f32 %v10514_v3, %v15663_v9  ;;  %v15665_v14 = vld [vmem:[#allocation46_spill] sm:$0xff]  ;;  %v15667_v21 = vld [vmem:[#allocation53_spill] sm:$0xff]  ;;  %v15669_v9 = vld [vmem:[#allocation52_spill] sm:$0xff] }
 0x136   :  { %15656 = vst [vmem:[#allocation96_spill] sm:$0xff] %v10729_v45  ;;  %v10737_v28 = vpop.permute.xlu0 %527  ;;  %v10739_v11 = vpop.f32.mrb[28].mxu0  ;;  %v627_v1 = vmul.f32 %v10514_v3, %v15664_v59  ;;  %v628_v15 = vmul.f32 %v10514_v3, %v15665_v14  ;;  %v1644_v20 = vmul.bf16 1056980736, %v8817_v56  ;;  %8832 = vtanh.bf16 %v1662_v44  ;;  %v15670_v59 = vld [vmem:[#allocation55_spill] sm:$0xff] }
 0x137   :  { %15657 = vst [vmem:[#allocation97_spill] sm:$0xff] %v10737_v28  ;;  %v1389_v49 = vpop.f32.mrb[29].mxu0  ;;  %v8821_v42 = vpop.eup %8820  ;;  %v10768_v34 = vadd.f32 %v15667_v21, %v615_v39  ;;  %v618_v30 = vmul.f32 %v10514_v3, %v15668_v48  ;;  %v10773_v0 = vadd.f32 %v15669_v9, %v616_v60  ;;  %v1665_v56 = vmul.bf16 1056980736, %v1609_v17  ;;  %v15674_v48 = vld [vmem:[#allocation68_spill] sm:$0xff]  ;;  %v15675_v9 = vld [vmem:[#allocation63_spill] sm:$0xff] }
 0x138   :  { %v10751_v5 = vpop.f32.mrb[30].mxu0  ;;  %v1560_v12 = vadd.f32 %v1389_v49, %v991_v46  ;;  %v10776_v19 = vadd.f32 %v15670_v59, %v627_v1  ;;  %v8823_v14 = vpop.eup %8822  ;;  %v15671_v49 = vld [vmem:[#allocation57_spill] sm:$0xff]  ;;  %v15672_v46 = vld [vmem:[#allocation62_spill] sm:$0xff]  ;;  %v10782_v21 = vadd.bf16 1056980736, %v1645_v51  ;;  %v629_v1 = vmul.f32 %v10514_v3, %v15675_v9  ;;  %v15680_v9 = vld [vmem:[#allocation72_spill] sm:$0xff] }
 0x139   :  { %v1392_v47 = vpop.f32.mrb[31].mxu0  ;;  %v10757_v25 = vpop.permute.xlu1 %332  ;;  %v10787_v60 = vadd.f32 %v15674_v48, %v618_v30  ;;  %v15676_v59 = vld [vmem:[#allocation54_spill] sm:$0xff]  ;;  %v15678_v51 = vld [vmem:[#allocation69_spill] sm:$0xff]  ;;  %v1677_v48 = vmul.bf16 1056980736, %v8821_v42  ;;  %8834 = vtanh.bf16 %v1665_v56 }
 0x13a   :  { %15662 = vst [vmem:[#allocation98_spill] sm:$0xff] %v10757_v25  ;;  %v1561_v40 = vadd.f32 %v1392_v47, %v992_v2  ;;  %v10765_v8 = vpop.permute.xlu0 %327  ;;  %v617_v47 = vmul.f32 %v10514_v3, %v15671_v49  ;;  %v630_v2 = vmul.f32 %v10514_v3, %v15672_v46  ;;  %v8825_v39 = vpop.eup %8824  ;;  %v10792_v17 = vadd.f32 %v15676_v59, %v628_v15  ;;  %v15681_v59 = vld [vmem:[#allocation71_spill] sm:$0xff] }
 0x13b   :  { %15666 = vst [vmem:[#allocation99_spill] sm:$0xff] %v10765_v8  ;;  %v1664_v49 = vmul.bf16 1056980736, %v1608_v41  ;;  %v1676_v23 = vmul.bf16 1056980736, %v8823_v14  ;;  %v620_v15 = vmul.f32 %v10514_v3, %v15680_v9  ;;  %v10805_v57 = vadd.f32 %v15681_v59, %v629_v1  ;;  %v15684_v14 = vld [vmem:[#allocation78_spill] sm:$0xff] }
 0x13c   :  { %v1610_v44 = vpack.c.bf16 %v1561_v40, %v1560_v12  ;;  %v8827_v40 = vpop.eup %8826  ;;  %v10794_v12 = vadd.bf16 1056980736, %v1644_v20  ;;  %v1001_v4 = vadd.f32 %v15678_v51, %v617_v47  ;;  %v10800_v31 = vadd.f32 %v15679_v54, %v630_v2 }
 0x13d   :  { %v10784_v37 = vpop.permute.xlu1 %412  ;;  %v8829_v30 = vpop.eup %8828  ;;  %v1647_v20 = vmul.bf16 1056980736, %v8819_v61  ;;  %v1646_v41 = vmul.bf16 1056980736, %v8825_v39  ;;  %v619_v47 = vmul.f32 %v10514_v3, %v15682_v35  ;;  %v1649_v51 = vmul.bf16 1056980736, %v8827_v40 }
 0x13e   :  { %15673 = vst [vmem:[#allocation100_spill] sm:$0xff] %v10784_v37  ;;  %v10796_v62 = vpop.permute.xlu0 %407  ;;  %v8127_v46 = vpop.f32.mrb[32].mxu0  ;;  %v632_v7 = vmul.f32 %v10514_v3, %v15684_v14  ;;  %v1648_v32 = vmul.bf16 1056980736, %v8829_v30  ;;  %8836 = vtanh.bf16 %v1664_v49  ;;  %v1685_v56 = vadd.bf16 1056980736, %v1677_v48 }
 0x13f   :  { %15677 = vst [vmem:[#allocation101_spill] sm:$0xff] %v10796_v62  ;;  %v1405_v24 = vpop.f32.mrb[33].mxu0  ;;  %v1566_v2 = vadd.f32 %v8127_v46, %v997_v36  ;;  %v8831_v9 = vpop.eup %8830  ;;  %v1684_v59 = vadd.bf16 1056980736, %v1676_v23  ;;  %v15686_v35 = vld [vmem:[#allocation79_spill] sm:$0xff]  ;;  %v10822_v40 = vadd.f32 %v10653_v10, %v620_v15  ;;  %v10836_v15 = vadd.f32 %v10655_v43, %v619_v47  ;;  %v1733_v47 = vld [vmem:[#allocation3 + $0x8] sm:$0xff] }
 0x140   :  { %v8128_v58 = vpop.f32.mrb[34].mxu0  ;;  %v1564_v1 = vadd.f32 %v1405_v24, %v995_v16  ;;  %v631_v36 = vmul.f32 %v10514_v3, %v15686_v35  ;;  %v10824_v49 = vadd.bf16 1056980736, %v1649_v51  ;;  %v1679_v24 = vmul.bf16 1056980736, %v8831_v9 }
 0x141   :  { %v1567_v54 = vadd.f32 %v8128_v58, %v998_v53  ;;  %v1408_v38 = vpop.f32.mrb[35].mxu0  ;;  %v10809_v42 = vpop.permute.xlu1 %860  ;;  %v10817_v58 = vadd.bf16 1056980736, %v1647_v20  ;;  %v10819_v53 = vadd.bf16 1056980736, %v1646_v41  ;;  %v1750_v51 = vunpack.c.l.bf16 %v1685_v56 }
 0x142   :  { %15683 = vst [vmem:[#allocation102_spill] sm:$0xff] %v10809_v42  ;;  %v1565_v61 = vadd.f32 %v1408_v38, %v996_v26  ;;  %v10813_v39 = vpop.permute.xlu0 %855  ;;  %v8833_v30 = vpop.eup %8832  ;;  %v1666_v38 = vmul.bf16 1056980736, %v1610_v44  ;;  %v10828_v23 = vadd.bf16 1056980736, %v1648_v32  ;;  %v1751_v41 = vunpack.c.h.bf16 %v1685_v56  ;;  %v1734_v32 = vld [vmem:[#allocation3 + $0x10] sm:$0xff] }
 0x143   :  { %15685 = vst [vmem:[#allocation103_spill] sm:$0xff] %v10813_v39  ;;  %v1613_v33 = vpack.c.bf16 %v1567_v54, %v1566_v2  ;;  %v15688_v54 = vpack.c.bf16 %v10717_v18, %v10721_v52  ;;  %v1748_v9 = vunpack.c.l.bf16 %v1684_v59  ;;  %v1735_v2 = vld [vmem:[#allocation3 + $0x18] sm:$0xff]  ;;  %v1678_v18 = vmul.bf16 1056980736, %v8833_v30 }
 0x144   :  { %v1612_v46 = vpack.c.bf16 %v1565_v61, %v1564_v1  ;;  %v1732_v1 = vld [vmem:[#allocation3] sm:$0xff]  ;;  %v1749_v61 = vunpack.c.h.bf16 %v1684_v59  ;;  %v10846_v43 = vadd.bf16 1056980736, %v1679_v24  ;;  %v1766_v24 = vmul.f32 %v1750_v51, %v1734_v32 }
 0x145   :  { %8838 = vtanh.bf16 %v1613_v33  ;;  %v10826_v48 = vpop.permute.xlu1 %920  ;;  %v1634_v16 = vmul.bf16 1056980736, %v15688_v54  ;;  %v10839_v33 = vadd.f32 %v10657_v27, %v632_v7  ;;  %v10844_v54 = vadd.f32 %v10663_v50, %v631_v36  ;;  %v8835_v50 = vpop.eup %8834 }
 0x146   :  { %15687 = vst [vmem:[#allocation104_spill] sm:$0xff] %v10826_v48  ;;  %8840 = vtanh.bf16 %v1612_v46  ;;  %v10833_v26 = vpop.permute.xlu0 %915  ;;  %v8131_v20 = vpop.f32.mrb[36].mxu0  ;;  %v622_v46 = vmul.f32 %v10514_v3, %v10679_v6  ;;  %v621_v36 = vmul.f32 %v10514_v3, %v10684_v55  ;;  %v1767_v6 = vmul.f32 %v1751_v41, %v1735_v2 }
 0x147   :  { %v1421_v44 = vpop.f32.mrb[37].mxu0  ;;  %8842 = vtanh.bf16 %v1666_v38  ;;  %v1570_v56 = vadd.f32 %v8131_v20, %v1001_v4  ;;  %v1764_v38 = vmul.f32 %v1748_v9, %v1732_v1  ;;  %v1765_v20 = vmul.f32 %v1749_v61, %v1733_v47 }
 0x148   :  { %v8132_v52 = vpop.f32.mrb[38].mxu0  ;;  %8844 = vtanh.bf16 %v1634_v16  ;;  %v1568_v59 = vadd.f32 %v1421_v44, %v10768_v34  ;;  %v594_v16 = vmul.f32 %v10514_v3, %v10757_v25  ;;  %v610_v44 = vmul.f32 %v10514_v3, %v10784_v37  ;;  %v15694_v37 = vld [vmem:[#allocation80_spill] sm:$0xff] }
 0x149   :  { %v1571_v7 = vadd.f32 %v8132_v52, %v10787_v60  ;;  %v1424_v27 = vpop.f32.mrb[39].mxu0  ;;  %v10849_v35 = vpop.permute.xlu1 %482  ;;  %v10857_v60 = vadd.bf16 1056980736, %v1678_v18  ;;  %v1755_v41 = vunpack.c.h.bf16 %v10846_v43  ;;  %v1681_v9 = vmul.bf16 1056980736, %v8835_v50 }
 0x14a   :  { %15689 = vst [vmem:[#allocation105_spill] sm:$0xff] %v10849_v35  ;;  %v1569_v30 = vadd.f32 %v1424_v27, %v10773_v0  ;;  %v10853_v10 = vpop.permute.xlu0 %477  ;;  %v8837_v34 = vpop.eup %8836  ;;  %v1754_v0 = vunpack.c.l.bf16 %v10846_v43  ;;  %v593_v27 = vmul.f32 %v10514_v3, %v10765_v8  ;;  %v609_v61 = vmul.f32 %v10514_v3, %v10796_v62 }
 0x14b   :  { %15690 = vst [vmem:[#allocation106_spill] sm:$0xff] %v10853_v10  ;;  %v1615_v4 = vpack.c.bf16 %v1571_v7, %v1570_v56  ;;  %v1005_v47 = vadd.f32 %v10813_v39, %v621_v36  ;;  %v1006_v7 = vadd.f32 %v10809_v42, %v622_v46  ;;  %v1752_v43 = vunpack.c.l.bf16 %v10857_v60 }
 0x14c   :  { %v1614_v52 = vpack.c.bf16 %v1569_v30, %v1568_v59  ;;  %v1753_v50 = vunpack.c.h.bf16 %v10857_v60  ;;  %v1680_v30 = vmul.bf16 1056980736, %v8837_v34  ;;  %v10888_v42 = vadd.bf16 1056980736, %v1681_v9 }
 0x14d   :  { %8846 = vtanh.bf16 %v1615_v4  ;;  %v10866_v51 = vpop.permute.xlu1 %720  ;;  %v15693_v4 = vld [vmem:[#allocation81_spill] sm:$0xff] }
 0x14e   :  { %15691 = vst [vmem:[#allocation107_spill] sm:$0xff] %v10866_v51  ;;  %8848 = vtanh.bf16 %v1614_v52  ;;  %v978_v32 = vadd.f32 %v10866_v51, %v594_v16  ;;  %v10870_v2 = vpop.permute.xlu0 %715  ;;  %v8135_v1 = vpop.f32.mrb[40].mxu0 }
 0x14f   :  { %15692 = vst [vmem:[#allocation108_spill] sm:$0xff] %v10870_v2  ;;  %v977_v18 = vadd.f32 %v10870_v2, %v593_v27  ;;  %v1437_v56 = vpop.f32.mrb[41].mxu0  ;;  %v1574_v36 = vadd.f32 %v8135_v1, %v1005_v47  ;;  %v1739_v47 = vld [vmem:[#allocation3 + $0x38] sm:$0xff] }
 0x150   :  { %v8839_v59 = vpop.eup %8838  ;;  %v10880_v16 = vadd.f32 %v15693_v4, %v978_v32  ;;  %v8136_v52 = vpop.f32.mrb[42].mxu0  ;;  %v1572_v34 = vadd.f32 %v1437_v56, %v10836_v15  ;;  %v1736_v15 = vld [vmem:[#allocation3 + $0x20] sm:$0xff] }
 0x151   :  { %v8841_v55 = vpop.eup %8840  ;;  %v1781_v14 = vmul.bf16 %v8839_v59, %v10782_v21  ;;  %v10884_v27 = vadd.f32 %v15694_v37, %v977_v18  ;;  %v1575_v39 = vadd.f32 %v8136_v52, %v1006_v7  ;;  %v1440_v62 = vpop.f32.mrb[43].mxu0 }
 0x152   :  { %v10886_v46 = vpop.permute.xlu1 %800  ;;  %v1780_v60 = vmul.bf16 %v8841_v55, %v10794_v12  ;;  %v1573_v32 = vadd.f32 %v1440_v62, %v10822_v40  ;;  %v10893_v4 = vpop.permute.xlu0 %795  ;;  %v1737_v62 = vld [vmem:[#allocation3 + $0x28] sm:$0xff]  ;;  %v10900_v40 = vadd.bf16 1056980736, %v1680_v30 }
 0x153   :  { %15695 = vst [vmem:[#allocation81_spill] sm:$0xff] %v10886_v46  ;;  %15696 = vst [vmem:[#allocation80_spill] sm:$0xff] %v10893_v4  ;;  %v1790_v21 = vunpack.c.l.bf16 %v1781_v14  ;;  %v1791_v59 = vunpack.c.h.bf16 %v1781_v14  ;;  %v1617_v1 = vpack.c.bf16 %v1575_v39, %v1574_v36  ;;  %v8843_v18 = vpop.eup %8842  ;;  %v994_v55 = vadd.f32 %v10886_v46, %v610_v44 }
 0x154   :  { %v1788_v7 = vunpack.c.l.bf16 %v1780_v60  ;;  %v1789_v9 = vunpack.c.h.bf16 %v1780_v60  ;;  %v1616_v52 = vpack.c.bf16 %v1573_v32, %v1572_v34  ;;  %v10898_v12 = vpop.eup %8844  ;;  %v1770_v39 = vmul.f32 %v1754_v0, %v1738_v63 }
 0x155   :  { %v10902_v56 = vadd.f32 %v1790_v21, %v1766_v24  ;;  %v10904_v14 = vadd.f32 %v1791_v59, %v1767_v6  ;;  %8850 = vtanh.bf16 %v1617_v1  ;;  %v1771_v32 = vmul.f32 %v1755_v41, %v1739_v47 }
 0x156   :  { %v10906_v37 = vpop.permute.xlu1 %542  ;;  %v10908_v36 = vadd.f32 %v1788_v7, %v1764_v38  ;;  %v10910_v60 = vadd.f32 %v1789_v9, %v1765_v20  ;;  %8852 = vtanh.bf16 %v1616_v52  ;;  %v10912_v44 = vpop.permute.xlu0 %537  ;;  %v1682_v30 = vmul.bf16 1056980736, %v8843_v18 }
 0x157   :  { %v10914_v34 = vpop.f32.mrb[44].mxu0  ;;  %1871 = vst.msk [vmem:[#allocation3 + $0x10] sm:$0xff] %vm29_vm0, %v10902_v56  ;;  %1872 = vst.msk [vmem:[#allocation3 + $0x18] sm:$0xff] %vm29_vm0, %v10904_v14  ;;  %v1563_v6 = vadd.f32 %v10751_v5, %v994_v55  ;;  %v993_v63 = vadd.f32 %v10893_v4, %v609_v61  ;;  %v1768_v20 = vmul.f32 %v1752_v43, %v1736_v15  ;;  %v1758_v21 = vunpack.c.l.bf16 %v10888_v42 }
 0x158   :  { %v1453_v24 = vpop.f32.mrb[45].mxu0  ;;  %v8847_v38 = vpop.eup %8846  ;;  %v1769_v0 = vmul.f32 %v1753_v50, %v1737_v62  ;;  %1869 = vst.msk [vmem:[#allocation3] sm:$0xff] %vm29_vm0, %v10908_v36  ;;  %1870 = vst.msk [vmem:[#allocation3 + $0x8] sm:$0xff] %vm29_vm0, %v10910_v60  ;;  %v624_v41 = vmul.f32 %v10514_v3, %v10849_v35  ;;  %v1759_v61 = vunpack.c.h.bf16 %v10888_v42  ;;  %v1756_v1 = vunpack.c.l.bf16 %v10900_v40  ;;  %v1740_v35 = vld [vmem:[#allocation3 + $0x40] sm:$0xff] }
 0x159   :  { %v10929_v59 = vpop.f32.mrb[46].mxu0  ;;  %v8849_v5 = vpop.eup %8848  ;;  %v1783_v43 = vmul.bf16 %v8847_v38, %v10817_v58  ;;  %v1562_v50 = vadd.f32 %v10739_v11, %v993_v63  ;;  %v1757_v7 = vunpack.c.h.bf16 %v10900_v40  ;;  %v623_v52 = vmul.f32 %v10514_v3, %v10853_v10  ;;  %v1742_v11 = vld [vmem:[#allocation3 + $0x50] sm:$0xff]  ;;  %v1743_v63 = vld [vmem:[#allocation3 + $0x58] sm:$0xff] }
 0x15a   :  { %v1456_v18 = vpop.f32.mrb[47].mxu0  ;;  %v10935_v47 = vpop.permute.xlu1 %870  ;;  %v1782_v9 = vmul.bf16 %v8849_v5, %v10819_v53  ;;  %v10944_v42 = vadd.bf16 1056980736, %v1682_v30  ;;  %v1741_v5 = vld [vmem:[#allocation3 + $0x48] sm:$0xff]  ;;  %v633_v30 = vmul.f32 %v10514_v3, %v10737_v28  ;;  %8854 = vtanh.f32 %v10902_v56 }
 0x15b   :  { %15697 = vst [vmem:[#allocation109_spill] sm:$0xff] %v10935_v47  ;;  %v1008_v55 = vadd.f32 %v10935_v47, %v624_v41  ;;  %v10942_v15 = vpop.permute.xlu0 %865  ;;  %v1794_v62 = vunpack.c.l.bf16 %v1783_v43  ;;  %v1795_v58 = vunpack.c.h.bf16 %v1783_v43  ;;  %v1611_v38 = vpack.c.bf16 %v1563_v6, %v1562_v50  ;;  %v1745_v56 = vld [vmem:[#allocation3 + $0x68] sm:$0xff] }
 0x15c   :  { %15698 = vst [vmem:[#allocation110_spill] sm:$0xff] %v10942_v15  ;;  %v1792_v46 = vunpack.c.l.bf16 %v1782_v9  ;;  %v1793_v4 = vunpack.c.h.bf16 %v1782_v9  ;;  %v1007_v53 = vadd.f32 %v10942_v15, %v623_v52  ;;  %v634_v6 = vmul.f32 %v10514_v3, %v10729_v45 }
 0x15d   :  { %v1577_v40 = vadd.f32 %v1456_v18, %v1008_v55  ;;  %v10947_v22 = vadd.f32 %v1794_v62, %v1770_v39  ;;  %v10949_v10 = vadd.f32 %v1795_v58, %v1771_v32  ;;  %v1650_v43 = vmul.bf16 1056980736, %v10898_v12 }
 0x15e   :  { %v10951_v41 = vpop.permute.xlu1 %930  ;;  %v10958_v50 = vadd.f32 %v1792_v46, %v1768_v20  ;;  %v10960_v18 = vadd.f32 %v1793_v4, %v1769_v0  ;;  %v1576_v9 = vadd.f32 %v1453_v24, %v1007_v53  ;;  %v8143_v39 = vpop.f32.mrb[48].mxu0  ;;  %v1774_v32 = vmul.f32 %v1758_v21, %v1742_v11 }
 0x15f   :  { %15699 = vst [vmem:[#allocation111_spill] sm:$0xff] %v10951_v41  ;;  %v10962_v52 = vpop.permute.xlu0 %925  ;;  %v1775_v55 = vmul.f32 %v1759_v61, %v1743_v63  ;;  %v1772_v62 = vmul.f32 %v1756_v1, %v1740_v35  ;;  %1875 = vst.msk [vmem:[#allocation3 + $0x30] sm:$0xff] %vm29_vm0, %v10947_v22  ;;  %v1667_v58 = vmul.bf16 1056980736, %v1611_v38  ;;  %v1469_v28 = vpop.f32.mrb[49].mxu0  ;;  %v1773_v46 = vmul.f32 %v1757_v7, %v1741_v5 }
 0x160   :  { %1876 = vst.msk [vmem:[#allocation3 + $0x38] sm:$0xff] %vm29_vm0, %v10949_v10  ;;  %v8851_v12 = vpop.eup %8850  ;;  %v1760_v4 = vunpack.c.l.bf16 %v10944_v42  ;;  %v1761_v24 = vunpack.c.h.bf16 %v10944_v42  ;;  %1873 = vst.msk [vmem:[#allocation3 + $0x20] sm:$0xff] %vm29_vm0, %v10958_v50  ;;  %v1618_v35 = vpack.c.bf16 %v1577_v40, %v1576_v9  ;;  %v8144_v20 = vpop.f32.mrb[50].mxu0  ;;  %v15700_v21 = vpack.c.bf16 %v10880_v16, %v10884_v27 }
 0x161   :  { %1874 = vst.msk [vmem:[#allocation3 + $0x28] sm:$0xff] %vm29_vm0, %v10960_v18  ;;  %v8853_v0 = vpop.eup %8852  ;;  %v1785_v1 = vmul.bf16 %v8851_v12, %v10824_v49  ;;  %v1582_v7 = vadd.f32 %v8143_v39, %v10805_v57  ;;  %v1583_v38 = vadd.f32 %v8144_v20, %v10800_v31  ;;  %v1472_v42 = vpop.f32.mrb[51].mxu0  ;;  %v1580_v40 = vadd.f32 %v1469_v28, %v10776_v19  ;;  %v1744_v57 = vld [vmem:[#allocation3 + $0x60] sm:$0xff] }
 0x162   :  { %v1635_v61 = vmul.bf16 1056980736, %v15700_v21  ;;  %v10980_v11 = vpop.permute.xlu1 %492  ;;  %v1784_v63 = vmul.bf16 %v8853_v0, %v10828_v23  ;;  %v1581_v53 = vadd.f32 %v1472_v42, %v10792_v17  ;;  %8856 = vtanh.bf16 %v1667_v58 }
 0x163   :  { %15701 = vst [vmem:[#allocation112_spill] sm:$0xff] %v10980_v11  ;;  %v10986_v5 = vpop.permute.xlu0 %487  ;;  %v1798_v16 = vunpack.c.l.bf16 %v1785_v1  ;;  %v1799_v27 = vunpack.c.h.bf16 %v1785_v1  ;;  %v1621_v49 = vpack.c.bf16 %v1583_v38, %v1582_v7  ;;  %8858 = vtanh.bf16 %v1618_v35 }
 0x164   :  { %15702 = vst [vmem:[#allocation113_spill] sm:$0xff] %v10986_v5  ;;  %v1796_v9 = vunpack.c.l.bf16 %v1784_v63  ;;  %v1797_v31 = vunpack.c.h.bf16 %v1784_v63  ;;  %v1620_v39 = vpack.c.bf16 %v1581_v53, %v1580_v40  ;;  %v10988_v12 = vadd.bf16 1056980736, %v1650_v43  ;;  %v11035_v40 = vpop.eup %8854 }
 0x165   :  { %8860 = vtanh.bf16 %v1635_v61  ;;  %v10990_v23 = vadd.f32 %v1798_v16, %v1774_v32  ;;  %v10992_v28 = vadd.f32 %v1799_v27, %v1775_v55  ;;  %v1018_v43 = vadd.f32 %v10826_v48, %v634_v6 }
 0x166   :  { %v10994_v19 = vpop.permute.xlu1 %552  ;;  %8862 = vtanh.f32 %v10904_v14  ;;  %v10997_v17 = vadd.f32 %v1796_v9, %v1772_v62  ;;  %v10999_v58 = vadd.f32 %v1797_v31, %v1773_v46  ;;  %v8147_v35 = vpop.f32.mrb[52].mxu0  ;;  %v11004_v0 = vmul.f32 %v1760_v4, %v1744_v57 }
 0x167   :  { %v11001_v20 = vpop.permute.xlu0 %547  ;;  %8864 = vtanh.f32 %v10908_v36  ;;  %1879 = vst.msk [vmem:[#allocation3 + $0x50] sm:$0xff] %vm29_vm0, %v10990_v23  ;;  %1880 = vst.msk [vmem:[#allocation3 + $0x58] sm:$0xff] %vm29_vm0, %v10992_v28  ;;  %v1701_v14 = vmul.bf16 1056980736, %v1621_v49  ;;  %v1017_v32 = vadd.f32 %v10833_v26, %v633_v30  ;;  %v1485_v55 = vpop.f32.mrb[53].mxu0  ;;  %v11012_v62 = vmul.f32 %v1761_v24, %v1745_v56 }
 0x168   :  { %8866 = vtanh.f32 %v10910_v60  ;;  %1877 = vst.msk [vmem:[#allocation3 + $0x40] sm:$0xff] %vm29_vm0, %v10997_v17  ;;  %1878 = vst.msk [vmem:[#allocation3 + $0x48] sm:$0xff] %vm29_vm0, %v10999_v58  ;;  %v1700_v36 = vmul.bf16 1056980736, %v1620_v39  ;;  %v626_v6 = vmul.f32 %v10514_v3, %v10980_v11  ;;  %v8148_v46 = vpop.f32.mrb[54].mxu0  ;;  %v625_v30 = vmul.f32 %v10514_v3, %v10986_v5 }
 0x169   :  { %8868 = vtanh.f32 %v10947_v22  ;;  %v1586_v4 = vadd.f32 %v8147_v35, %v1017_v32  ;;  %v1587_v24 = vadd.f32 %v8148_v46, %v1018_v43  ;;  %v1488_v21 = vpop.f32.mrb[55].mxu0  ;;  %v1584_v61 = vadd.f32 %v1485_v55, %v10844_v54 }
 0x16a   :  { %v11024_v60 = vpop.permute.xlu1 %880  ;;  %8870 = vtanh.f32 %v10949_v10  ;;  %v1585_v1 = vadd.f32 %v1488_v21, %v10839_v33  ;;  %v635_v63 = vmul.f32 %v10514_v3, %v10912_v44  ;;  %v638_v33 = vmul.f32 %v10514_v3, %v10994_v19 }
 0x16b   :  { %15703 = vst [vmem:[#allocation114_spill] sm:$0xff] %v11024_v60  ;;  %v1010_v7 = vadd.f32 %v11024_v60, %v626_v6  ;;  %v11030_v38 = vpop.permute.xlu0 %875  ;;  %8872 = vtanh.bf16 %v1701_v14  ;;  %v1623_v22 = vpack.c.bf16 %v1587_v24, %v1586_v4  ;;  %v637_v49 = vmul.f32 %v10514_v3, %v11001_v20 }
 0x16c   :  { %15704 = vst [vmem:[#allocation115_spill] sm:$0xff] %v11030_v38  ;;  %v1009_v42 = vadd.f32 %v11030_v38, %v625_v30  ;;  %8874 = vtanh.bf16 %v1700_v36  ;;  %v1622_v53 = vpack.c.bf16 %v1585_v1, %v1584_v61 }
 0x16d   :  { %v1579_v10 = vadd.f32 %v10929_v59, %v1010_v7  ;;  %8876 = vtanh.f32 %v10958_v50  ;;  %v1703_v54 = vmul.bf16 1056980736, %v1623_v22  ;;  %v8857_v57 = vpop.eup %8856  ;;  %v636_v50 = vmul.f32 %v10514_v3, %v10906_v37 }
 0x16e   :  { %v1578_v16 = vadd.f32 %v10914_v34, %v1009_v42  ;;  %v11042_v27 = vpop.permute.xlu1 %940  ;;  %8878 = vtanh.f32 %v10960_v18  ;;  %v1702_v9 = vmul.bf16 1056980736, %v1622_v53  ;;  %v8151_v59 = vpop.f32.mrb[56].mxu0  ;;  %v1683_v35 = vmul.bf16 1056980736, %v8857_v57 }
 0x16f   :  { %v11047_v31 = vpop.permute.xlu0 %935  ;;  %v1022_v39 = vadd.f32 %v11042_v27, %v638_v33  ;;  %v8859_v56 = vpop.eup %8858  ;;  %8880 = vtanh.bf16 %v1703_v54  ;;  %v1019_v18 = vadd.f32 %v10962_v52, %v635_v63  ;;  %v1020_v6 = vadd.f32 %v10951_v41, %v636_v50 }
 0x170   :  { %v1619_v34 = vpack.c.bf16 %v1579_v10, %v1578_v16  ;;  %v1021_v43 = vadd.f32 %v11047_v31, %v637_v49  ;;  %v1501_v14 = vpop.f32.mrb[57].mxu0  ;;  %v8861_v32 = vpop.eup %8860  ;;  %8882 = vtanh.bf16 %v1702_v9  ;;  %v1786_v46 = vmul.bf16 %v8859_v56, %v10988_v12 }
 0x171   :  { %v11053_v55 = vpop.eup %8862  ;;  %v8152_v36 = vpop.f32.mrb[58].mxu0  ;;  %v1691_v3 = vadd.bf16 1056980736, %v1683_v35  ;;  %v1588_v7 = vadd.f32 %v1501_v14, %v1019_v18  ;;  %v1651_v12 = vmul.bf16 1056980736, %v8861_v32 }
 0x172   :  { %v11058_v30 = vpop.eup %8864  ;;  %8884 = vtanh.bf16 %v1619_v34  ;;  %v1590_v4 = vadd.f32 %v8151_v59, %v1021_v43  ;;  %v1591_v24 = vadd.f32 %v8152_v36, %v1022_v39  ;;  %v1504_v21 = vpop.f32.mrb[59].mxu0  ;;  %v1800_v63 = vunpack.c.l.bf16 %v1786_v46 }
 0x173   :  { %v11060_v61 = vpop.permute.xlu1 %562  ;;  %v11062_v1 = vpop.eup %8866  ;;  %v1589_v22 = vadd.f32 %v1504_v21, %v1020_v6  ;;  %v1801_v53 = vunpack.c.h.bf16 %v1786_v46  ;;  %8886 = vtanh.f32 %v10990_v23  ;;  %v1762_v9 = vunpack.c.l.bf16 %v1691_v3  ;;  %v9582_v23 = vld [vmem:[%s15324_s0] ss:$0 sm:$0xff] }
 0x174   :  { %15705 = vst [vmem:[#allocation116_spill] sm:$0xff] %v11060_v61  ;;  %v11064_v42 = vpop.permute.xlu0 %557  ;;  %v11066_v10 = vpop.eup %8868  ;;  %v1625_v33 = vpack.c.bf16 %v1591_v24, %v1590_v4  ;;  %8888 = vtanh.f32 %v10992_v28  ;;  %v11073_v49 = vadd.f32 %v1800_v63, %v11004_v0  ;;  %v1763_v59 = vunpack.c.h.bf16 %v1691_v3  ;;  %v1746_v28 = vld [vmem:[#allocation3 + $0x70] sm:$0xff]  ;;  %v1747_v0 = vld [vmem:[#allocation3 + $0x78] sm:$0xff] }
 0x175   :  { %15706 = vst [vmem:[#allocation117_spill] sm:$0xff] %v11064_v42  ;;  %v11069_v54 = vpop.eup %8870  ;;  %v1624_v16 = vpack.c.bf16 %v1589_v22, %v1588_v7  ;;  %v11076_v57 = vadd.f32 %v1801_v53, %v11012_v62  ;;  %v639_v56 = vmul.f32 %v9582_v23, %v11064_v42  ;;  %8890 = vtanh.f32 %v10997_v17 }
 0x176   :  { %v1705_v39 = vmul.bf16 1056980736, %v1625_v33  ;;  %v8873_v35 = vpop.eup %8872  ;;  %v11087_v62 = vpop.f32.mrb[60].mxu0  ;;  %v640_v14 = vmul.f32 %v9582_v23, %v11060_v61  ;;  %1881 = vst.msk [vmem:[#allocation3 + $0x60] sm:$0xff] %vm29_vm0, %v11073_v49  ;;  %v1659_v3 = vadd.bf16 1056980736, %v1651_v12  ;;  %v1778_v7 = vmul.f32 %v1762_v9, %v1746_v28 }
 0x177   :  { %v11078_v50 = vpop.permute.xlu1 %950  ;;  %v1704_v34 = vmul.bf16 1056980736, %v1624_v16  ;;  %1882 = vst.msk [vmem:[#allocation3 + $0x68] sm:$0xff] %vm29_vm0, %v11076_v57  ;;  %v8875_v32 = vpop.eup %8874  ;;  %v1717_v36 = vmul.bf16 1056980736, %v8873_v35  ;;  %v1779_v22 = vmul.f32 %v1763_v59, %v1747_v0 }
 0x178   :  { %15707 = vst [vmem:[#allocation118_spill] sm:$0xff] %v11078_v50  ;;  %v11085_v43 = vpop.permute.xlu0 %945  ;;  %v11094_v18 = vpop.eup %8876  ;;  %8892 = vtanh.bf16 %v1705_v39  ;;  %v1716_v4 = vmul.bf16 1056980736, %v8875_v32  ;;  %v1024_v21 = vadd.f32 %v11078_v50, %v640_v14 }
 0x179   :  { %15708 = vst [vmem:[#allocation119_spill] sm:$0xff] %v11085_v43  ;;  %v1023_v17 = vadd.f32 %v11085_v43, %v639_v56  ;;  %v1517_v6 = vpop.f32.mrb[61].mxu0  ;;  %v8879_v46 = vpop.eup %8878  ;;  %8894 = vtanh.bf16 %v1704_v34  ;;  %v1725_v63 = vadd.bf16 1056980736, %v1717_v36 }
 0x17a   :  { %v8156_v24 = vpop.f32.mrb[62].mxu0  ;;  %8896 = vtanh.f32 %v10999_v58  ;;  %v8881_v16 = vpop.eup %8880  ;;  %v1724_v39 = vadd.bf16 1056980736, %v1716_v4 }
 0x17b   :  { %v1520_v53 = vpop.f32.mrb[63].mxu0  ;;  %v11099_v33 = vpop.permute.xlu1 %572  ;;  %v1592_v35 = vadd.f32 %v1517_v6, %v1023_v17  ;;  %v1838_v32 = vunpack.c.l.bf16 %v1725_v63  ;;  %v1839_v61 = vunpack.c.h.bf16 %v1725_v63  ;;  %v1719_v14 = vmul.bf16 1056980736, %v8881_v16 }
 0x17c   :  { %15709 = vst [vmem:[#allocation120_spill] sm:$0xff] %v11099_v33  ;;  %v1593_v56 = vadd.f32 %v1520_v53, %v1024_v21  ;;  %v11101_v43 = vpop.permute.xlu0 %567  ;;  %v642_v12 = vmul.f32 %v9582_v23, %v11099_v33  ;;  %v8883_v34 = vpop.eup %8882  ;;  %v1836_v59 = vunpack.c.l.bf16 %v1724_v39  ;;  %v1837_v28 = vunpack.c.h.bf16 %v1724_v39 }
 0x17d   :  { %15710 = vst [vmem:[#allocation121_spill] sm:$0xff] %v11101_v43  ;;  %v641_v58 = vmul.f32 %v9582_v23, %v11101_v43  ;;  %v8885_v9 = vpop.eup %8884  ;;  %v1718_v0 = vmul.bf16 1056980736, %v8883_v34  ;;  %v1854_v4 = vmul.f32 %v11035_v40, %v1838_v32  ;;  %v1855_v17 = vmul.f32 %v11053_v55, %v1839_v61  ;;  %v15788_v43 = vld [vmem:[#allocation94_spill] sm:$0xff] }
 0x17e   :  { %v1626_v36 = vpack.c.bf16 %v1593_v56, %v1592_v35  ;;  %v8887_v50 = vpop.eup %8886  ;;  %v1727_v6 = vadd.bf16 1056980736, %v1719_v14  ;;  %v1787_v21 = vmul.bf16 %v8885_v9, %v1659_v3  ;;  %v1852_v63 = vmul.f32 %v11058_v30, %v1836_v59 }
 0x17f   :  { %v11107_v53 = vpop.permute.xlu1 %960  ;;  %v8889_v42 = vpop.eup %8888  ;;  %v1853_v16 = vmul.f32 %v11062_v1, %v1837_v28  ;;  %v1726_v23 = vadd.bf16 1056980736, %v1718_v0  ;;  %1887 = vst.msk [vmem:[#allocation2 + $0x10] sm:$0xff] %vm29_vm0, %v1854_v4  ;;  %1888 = vst.msk [vmem:[#allocation2 + $0x18] sm:$0xff] %vm29_vm0, %v1855_v17 }
 0x180   :  { %15711 = vst [vmem:[#allocation122_spill] sm:$0xff] %v11107_v53  ;;  %v1706_v33 = vmul.bf16 1056980736, %v1626_v36  ;;  %v1842_v39 = vunpack.c.l.bf16 %v1727_v6  ;;  %v1843_v35 = vunpack.c.h.bf16 %v1727_v6  ;;  %v1802_v40 = vunpack.c.l.bf16 %v1787_v21  ;;  %v11113_v55 = vpop.permute.xlu0 %955  ;;  %v8891_v61 = vpop.eup %8890  ;;  %1885 = vst.msk [vmem:[#allocation2] sm:$0xff] %vm29_vm0, %v1852_v63 }
 0x181   :  { %v1803_v56 = vunpack.c.h.bf16 %v1787_v21  ;;  %15712 = vst [vmem:[#allocation123_spill] sm:$0xff] %v11113_v55  ;;  %1886 = vst.msk [vmem:[#allocation2 + $0x8] sm:$0xff] %vm29_vm0, %v1853_v16  ;;  %v1840_v30 = vunpack.c.l.bf16 %v1726_v23  ;;  %v1841_v3 = vunpack.c.h.bf16 %v1726_v23  ;;  %v1026_v1 = vadd.f32 %v11107_v53, %v642_v12 }
 0x182   :  { %8898 = vtanh.bf16 %v1706_v33  ;;  %v1858_v34 = vmul.f32 %v11066_v10, %v1842_v39  ;;  %v1859_v32 = vmul.f32 %v11069_v54, %v1843_v35  ;;  %v1818_v14 = vadd.f32 %v1802_v40, %v1778_v7 }
 0x183   :  { %v1819_v9 = vadd.f32 %v1803_v56, %v1779_v22  ;;  %v8893_v59 = vpop.eup %8892  ;;  %v1856_v28 = vmul.f32 %v11094_v18, %v1840_v30  ;;  %v1857_v0 = vmul.f32 %v8879_v46, %v1841_v3  ;;  %v1595_v36 = vadd.f32 %v8156_v24, %v1026_v1 }
 0x184   :  { %v1025_v4 = vadd.f32 %v11113_v55, %v641_v58  ;;  %v8895_v17 = vpop.eup %8894  ;;  %1891 = vst.msk [vmem:[#allocation2 + $0x30] sm:$0xff] %vm29_vm0, %v1858_v34  ;;  %1892 = vst.msk [vmem:[#allocation2 + $0x38] sm:$0xff] %vm29_vm0, %v1859_v32  ;;  %v1721_v10 = vmul.bf16 1056980736, %v8893_v59  ;;  %8900 = vtanh.f32 %v11073_v49 }
 0x185   :  { %v8897_v6 = vpop.eup %8896  ;;  %1883 = vst.msk [vmem:[#allocation3 + $0x70] sm:$0xff] %vm29_vm0, %v1818_v14  ;;  %1884 = vst.msk [vmem:[#allocation3 + $0x78] sm:$0xff] %vm29_vm0, %v1819_v9  ;;  %v1720_v54 = vmul.bf16 1056980736, %v8895_v17  ;;  %8902 = vtanh.f32 %v11076_v57 }
 0x186   :  { %1889 = vst.msk [vmem:[#allocation2 + $0x20] sm:$0xff] %vm29_vm0, %v1856_v28  ;;  %1890 = vst.msk [vmem:[#allocation2 + $0x28] sm:$0xff] %vm29_vm0, %v1857_v0  ;;  %v1594_v18 = vadd.f32 %v11087_v62, %v1025_v4  ;;  %v1729_v46 = vadd.bf16 1056980736, %v1721_v10  ;;  %v2036_v22 = vld [vmem:[#allocation2 + $0x10] sm:$0xff]  ;;  %v2037_v63 = vld [vmem:[#allocation2 + $0x18] sm:$0xff] }
 0x187   :  { %v1728_v24 = vadd.bf16 1056980736, %v1720_v54  ;;  %v2034_v58 = vld [vmem:[#allocation2] sm:$0xff]  ;;  %v2051_v49 = vpack.c.bf16 %v2037_v63, %v2036_v22 }
 0x188   :  { %v1627_v7 = vpack.c.bf16 %v1595_v36, %v1594_v18  ;;  %v1846_v33 = vunpack.c.l.bf16 %v1729_v46  ;;  %v1847_v12 = vunpack.c.h.bf16 %v1729_v46  ;;  %v2035_v21 = vld [vmem:[#allocation2 + $0x8] sm:$0xff] }
 0x189   :  { %v1844_v16 = vunpack.c.l.bf16 %v1728_v24  ;;  %v1845_v23 = vunpack.c.h.bf16 %v1728_v24  ;;  %v2050_v35 = vpack.c.bf16 %v2035_v21, %v2034_v58 }
 0x18a   :  { %v1707_v39 = vmul.bf16 1056980736, %v1627_v7  ;;  %v1862_v40 = vmul.f32 %v8887_v50, %v1846_v33  ;;  %v1863_v56 = vmul.f32 %v8889_v42, %v1847_v12 }
 0x18b   :  { %v1860_v62 = vmul.f32 %v8891_v61, %v1844_v16  ;;  %v1861_v30 = vmul.f32 %v8897_v6, %v1845_v23  ;;  %8157 = vmatprep.subr.bf16.mxu1 %v2050_v35  ;;  %v2040_v61 = vld [vmem:[#allocation2 + $0x30] sm:$0xff]  ;;  %v2041_v32 = vld [vmem:[#allocation2 + $0x38] sm:$0xff] }
 0x18c   :  { %8904 = vtanh.bf16 %v1707_v39  ;;  %1895 = vst.msk [vmem:[#allocation2 + $0x50] sm:$0xff] %vm29_vm0, %v1862_v40  ;;  %1896 = vst.msk [vmem:[#allocation2 + $0x58] sm:$0xff] %vm29_vm0, %v1863_v56  ;;  %8158 = vmatpush3.bf16.msra.mxu1 %v2050_v35  ;;  %v2053_v6 = vpack.c.bf16 %v2041_v32, %v2040_v61  ;;  %v9591_v61 = vld [vmem:[%s15323_s2 + $0x48] sm:$0xff]   ;;  %v9592_v32 = vld [vmem:[%s15323_s2 + $0x50] sm:$0xff]  }
 0x18d   :  { %v8899_v3 = vpop.eup %8898  ;;  %v2038_v57 = vld [vmem:[#allocation2 + $0x20] sm:$0xff]  ;;  %v2039_v1 = vld [vmem:[#allocation2 + $0x28] sm:$0xff]  ;;  %1893 = vst.msk [vmem:[#allocation2 + $0x40] sm:$0xff] %vm29_vm0, %v1860_v62  ;;  %1894 = vst.msk [vmem:[#allocation2 + $0x48] sm:$0xff] %vm29_vm0, %v1861_v30  ;;  %8159 = vmatprep.subr.bf16.mxu1 %v2051_v49  ;;  %8906 = vtanh.f32 %v1818_v14 }
 0x18e   :  { %v1722_v34 = vmul.bf16 1056980736, %v8899_v3  ;;  %v2052_v42 = vpack.c.bf16 %v2039_v1, %v2038_v57  ;;  %v8901_v59 = vpop.eup %8900  ;;  %8908 = vtanh.f32 %v1819_v9  ;;  %v9583_v30 = vld [vmem:[%s15323_s2 + $0x8] sm:$0xff]   ;;  %v9585_v3 = vld [vmem:[%s15323_s2 + $0x18] sm:$0xff]   ;;  %v9586_v57 = vld [vmem:[%s15323_s2 + $0x20] sm:$0xff]  }
 0x18f   :  { %v8903_v36 = vpop.eup %8902  ;;  %v9587_v1 = vld [vmem:[%s15323_s2 + $0x28] sm:$0xff]  }
 0x190   :  { %v1730_v50 = vadd.bf16 1056980736, %v1722_v34  ;;  %8160 = vmatpush3.bf16.msra.mxu1 %v2051_v49  ;;  %v9584_v49 = vld [vmem:[%s15323_s2 + $0x10] sm:$0xff]  }
 0x191   :  { %8161 = vmatprep.subr.bf16.mxu1 %v2052_v42  ;;  %v9588_v34 = vld [vmem:[%s15323_s2 + $0x30] sm:$0xff]  }
 0x192   :  { %v1848_v28 = vunpack.c.l.bf16 %v1730_v50  ;;  %v1849_v0 = vunpack.c.h.bf16 %v1730_v50  ;;  %v9590_v50 = vld [vmem:[%s15323_s2 + $0x40] sm:$0xff]  }
 0x193   :  { %v2044_v14 = vld [vmem:[#allocation2 + $0x50] sm:$0xff]  ;;  %v2045_v7 = vld [vmem:[#allocation2 + $0x58] sm:$0xff] }
 0x194   :  { %v1864_v4 = vmul.f32 %v8901_v59, %v1848_v28  ;;  %v1865_v17 = vmul.f32 %v8903_v36, %v1849_v0  ;;  %8162 = vmatpush3.bf16.msra.mxu1 %v2052_v42  ;;  %v2042_v10 = vld [vmem:[#allocation2 + $0x40] sm:$0xff]  ;;  %v2043_v54 = vld [vmem:[#allocation2 + $0x48] sm:$0xff]  ;;  %v2055_v58 = vpack.c.bf16 %v2045_v7, %v2044_v14  ;;  %v9589_v42 = vld [vmem:[%s15323_s2 + $0x38] sm:$0xff]  }
 0x195   :  { %8163 = vmatprep.subr.bf16.mxu1 %v2053_v6  ;;  %v2054_v18 = vpack.c.bf16 %v2043_v54, %v2042_v10  ;;  %v9593_v59 = vld [vmem:[%s15323_s2 + $0x58] sm:$0xff]   ;;  %v9594_v28 = vld [vmem:[%s15323_s2 + $0x60] sm:$0xff]   ;;  %v9595_v0 = vld [vmem:[%s15323_s2 + $0x68] sm:$0xff]  }
 0x196   :  { %1897 = vst.msk [vmem:[#allocation2 + $0x60] sm:$0xff] %vm29_vm0, %v1864_v4  ;;  %1898 = vst.msk [vmem:[#allocation2 + $0x68] sm:$0xff] %vm29_vm0, %v1865_v17  ;;  %v9596_v36 = vld [vmem:[%s15323_s2 + $0x70] sm:$0xff]   ;;  %v9597_v4 = vld [vmem:[%s15323_s2 + $0x78] sm:$0xff]  }
 0x197   :  { %v8905_v46 = vpop.eup %8904  ;;  %v9598_v17 = vld [vmem:[%s15323_s2 + $0x80] sm:$0xff]   ;;  %v9600_v10 = vld [vmem:[%s15323_s2 + $0x90] sm:$0xff]   ;;  %v9601_v54 = vld [vmem:[%s15323_s2 + $0x98] sm:$0xff]  }
 0x198   :  { %v1723_v24 = vmul.bf16 1056980736, %v8905_v46  ;;  %8164 = vmatpush3.bf16.msra.mxu1 %v2053_v6  ;;  %v8907_v9 = vpop.eup %8906  ;;  %v9599_v6 = vld [vmem:[%s15323_s2 + $0x88] sm:$0xff]   ;;  %v9605_v14 = vld [vmem:[%s15323_s2 + $0xb8] sm:$0xff]   ;;  %v9606_v7 = vld [vmem:[%s15323_s2 + $0xc0] sm:$0xff]  }
 0x199   :  { %8165 = vmatprep.subr.bf16.mxu1 %v2054_v18  ;;  %v8909_v21 = vpop.eup %8908  ;;  %v9603_v46 = vld [vmem:[%s15323_s2 + $0xa8] sm:$0xff]  }
 0x19a   :  { %v1731_v22 = vadd.bf16 1056980736, %v1723_v24  ;;  %v9604_v24 = vld [vmem:[%s15323_s2 + $0xb0] sm:$0xff]  }
 0x19c   :  { %v1850_v33 = vunpack.c.l.bf16 %v1731_v22  ;;  %v1851_v12 = vunpack.c.h.bf16 %v1731_v22  ;;  %8166 = vmatpush3.bf16.msra.mxu1 %v2054_v18  ;;  %v9602_v18 = vld [vmem:[%s15323_s2 + $0xa0] sm:$0xff]   ;;  %v9607_v22 = vld [vmem:[%s15323_s2 + $0xc8] sm:$0xff]  }
 0x19d   :  { %v2046_v63 = vld [vmem:[#allocation2 + $0x60] sm:$0xff]  ;;  %v2047_v16 = vld [vmem:[#allocation2 + $0x68] sm:$0xff]  ;;  %8167 = vmatprep.subr.bf16.mxu1 %v2055_v58 }
 0x19e   :  { %v1866_v23 = vmul.f32 %v8907_v9, %v1850_v33  ;;  %v1867_v39 = vmul.f32 %v8909_v21, %v1851_v12  ;;  %v2056_v35 = vpack.c.bf16 %v2047_v16, %v2046_v63  ;;  %v9608_v9 = vld [vmem:[%s15323_s2 + $0xd0] sm:$0xff]   ;;  %v9609_v33 = vld [vmem:[%s15323_s2 + $0xd8] sm:$0xff]   ;;  %v9610_v12 = vld [vmem:[%s15323_s2 + $0xe0] sm:$0xff]  }
 0x19f   :  { %v9612_v21 = vld [vmem:[%s15323_s2 + $0xf0] sm:$0xff]   ;;  %v9613_v63 = vld [vmem:[%s15323_s2 + $0xf8] sm:$0xff]   ;;  %v9614_v16 = vld [vmem:[%s15323_s2] sm:$0xff]  }
 0x1a0   :  { %1899 = vst.msk [vmem:[#allocation2 + $0x70] sm:$0xff] %vm29_vm0, %v1866_v23  ;;  %1900 = vst.msk [vmem:[#allocation2 + $0x78] sm:$0xff] %vm29_vm0, %v1867_v39  ;;  %8168 = vmatpush3.bf16.msra.mxu1 %v2055_v58  ;;  %v9611_v58 = vld [vmem:[%s15323_s2 + $0xe8] sm:$0xff]   ;;  %v11238_v23 = vld [vmem:[%s15324_s0 + $0x1] ss:$0 sm:$0xff] }
 0x1a1   :  { %8169 = vmatprep.subr.bf16.mxu1 %v2056_v35  ;;  %v15713_v39 = vld [vmem:[#allocation13_spill] sm:$0xff] }
 0x1a4   :  { %8170 = vmatpush3.bf16.msra.mxu1 %v2056_v35  ;;  %v1908_v35 = vmul.f32 %v11238_v23, %v15713_v39  ;;  %v15756_v39 = vld [vmem:[#allocation16_spill] sm:$0xff] }
 0x1a7   :  { %v2048_v40 = vld [vmem:[#allocation2 + $0x70] sm:$0xff]  ;;  %v2049_v56 = vld [vmem:[#allocation2 + $0x78] sm:$0xff] }
 0x1a8   :  { %v2057_v62 = vpack.c.bf16 %v2049_v56, %v2048_v40  ;;  %v15714_v40 = vld [vmem:[#allocation12_spill] sm:$0xff] }
 0x1a9   :  { %v1909_v56 = vmul.f32 %v11238_v23, %v15714_v40  ;;  %v15755_v40 = vld [vmem:[#allocation17_spill] sm:$0xff] }
 0x1aa   :  { %8171 = vmatprep.subr.bf16.mxu1 %v2057_v62 }
 0x1ab   :  { %8172 = vmatpush3.bf16.msra.mxu1 %v2057_v62 }
 0x1ae   :  { %8174 = vmatmul.mubr.bf16.vlgmr.msra.gmra.mrb[0].mxu1 %v9583_v30  ;;  %v15715_v30 = vld [vmem:[#allocation5_spill] sm:$0xff] }
 0x1af   :  { %8177 = vmatprep.mubr.bf16.mxu1 %v9584_v49  ;;  %v1906_v49 = vmul.f32 %v11238_v23, %v15715_v30  ;;  %v15748_v30 = vld [vmem:[#allocation36_spill] sm:$0xff] }
 0x1b6   :  { %8178 = vmatmul.mubr.bf16.gmra.mrb[4].mxu1 %v9585_v3  ;;  %v15716_v3 = vld [vmem:[#allocation7_spill] sm:$0xff] }
 0x1b7   :  { %8181 = vmatprep.mubr.bf16.mxu1 %v9586_v57  ;;  %v1907_v57 = vmul.f32 %v11238_v23, %v15716_v3  ;;  %v15747_v3 = vld [vmem:[#allocation37_spill] sm:$0xff] }
 0x1be   :  { %8182 = vmatmul.mubr.bf16.gmra.mrb[8].mxu1 %v9587_v1  ;;  %v15717_v1 = vld [vmem:[#allocation19_spill] sm:$0xff] }
 0x1bf   :  { %8185 = vmatprep.mubr.bf16.mxu1 %v9588_v34  ;;  %v1972_v34 = vadd.f32 %v1908_v35, %v15717_v1 }
 0x1c6   :  { %8186 = vmatmul.mubr.bf16.gmra.mrb[12].mxu1 %v9589_v42 }
 0x1c7   :  { %8189 = vmatprep.mubr.bf16.mxu1 %v9590_v50  ;;  %v15718_v50 = vld [vmem:[#allocation18_spill] sm:$0xff] }
 0x1ce   :  { %8190 = vmatmul.mubr.bf16.gmra.mrb[16].mxu1 %v9591_v61  ;;  %v1973_v61 = vadd.f32 %v1909_v56, %v15718_v50  ;;  %v15726_v56 = vld [vmem:[#allocation42_spill] sm:$0xff] }
 0x1cf   :  { %8193 = vmatprep.mubr.bf16.mxu1 %v9592_v32  ;;  %v15719_v32 = vld [vmem:[#allocation9_spill] sm:$0xff] }
 0x1d6   :  { %8194 = vmatmul.mubr.bf16.gmra.mrb[20].mxu1 %v9593_v59  ;;  %v1970_v59 = vadd.f32 %v1906_v49, %v15719_v32  ;;  %v15727_v49 = vld [vmem:[#allocation31_spill] sm:$0xff] }
 0x1d7   :  { %8197 = vmatprep.mubr.bf16.mxu1 %v9594_v28 }
 0x1de   :  { %8198 = vmatmul.mubr.bf16.gmra.mrb[24].mxu1 %v9595_v0  ;;  %v15720_v0 = vld [vmem:[#allocation8_spill] sm:$0xff] }
 0x1df   :  { %8201 = vmatprep.mubr.bf16.mxu1 %v9596_v36  ;;  %v1971_v36 = vadd.f32 %v1907_v57, %v15720_v0 }
 0x1e6   :  { %8202 = vmatmul.mubr.bf16.gmra.mrb[28].mxu1 %v9597_v4 }
 0x1e7   :  { %8205 = vmatprep.mubr.bf16.mxu1 %v9598_v17 }
 0x1ee   :  { %8206 = vmatmul.mubr.bf16.gmra.mrb[32].mxu1 %v9599_v6 }
 0x1ef   :  { %8209 = vmatprep.mubr.bf16.mxu1 %v9600_v10 }
 0x1f6   :  { %8210 = vmatmul.mubr.bf16.gmra.mrb[36].mxu1 %v9601_v54 }
 0x1f7   :  { %8213 = vmatprep.mubr.bf16.mxu1 %v9602_v18  ;;  %v15729_v18 = vld [vmem:[#allocation65_spill] sm:$0xff] }
 0x1fe   :  { %8214 = vmatmul.mubr.bf16.gmra.mrb[40].mxu1 %v9603_v46 }
 0x1ff   :  { %8217 = vmatprep.mubr.bf16.mxu1 %v9604_v24  ;;  %v15721_v24 = vld [vmem:[#allocation35_spill] sm:$0xff] }
 0x206   :  { %8218 = vmatmul.mubr.bf16.gmra.mrb[44].mxu1 %v9605_v14  ;;  %v1912_v14 = vmul.f32 %v11238_v23, %v15721_v24 }
 0x207   :  { %8221 = vmatprep.mubr.bf16.mxu1 %v9606_v7  ;;  %v15722_v7 = vld [vmem:[#allocation34_spill] sm:$0xff] }
 0x20e   :  { %8222 = vmatmul.mubr.bf16.gmra.mrb[48].mxu1 %v9607_v22  ;;  %v1913_v22 = vmul.f32 %v11238_v23, %v15722_v7 }
 0x20f   :  { %8225 = vmatprep.mubr.bf16.mxu1 %v9608_v9 }
 0x216   :  { %8226 = vmatmul.mubr.bf16.gmra.mrb[52].mxu1 %v9609_v33  ;;  %v15723_v33 = vld [vmem:[#allocation23_spill] sm:$0xff] }
 0x217   :  { %8229 = vmatprep.mubr.bf16.mxu1 %v9610_v12  ;;  %v1910_v12 = vmul.f32 %v11238_v23, %v15723_v33 }
 0x219   :  { %v1974_v57 = vadd.f32 %v1910_v12, %v15727_v49  ;;  %v1916_v12 = vmul.f32 %v11238_v23, %v15729_v18  ;;  %v15730_v49 = vld [vmem:[#allocation64_spill] sm:$0xff] }
 0x21e   :  { %8230 = vmatmul.mubr.bf16.gmra.mrb[56].mxu1 %v9611_v58  ;;  %v15724_v58 = vld [vmem:[#allocation22_spill] sm:$0xff] }
 0x21f   :  { %8233 = vmatprep.mubr.bf16.mxu1 %v9612_v21  ;;  %v1911_v21 = vmul.f32 %v11238_v23, %v15724_v58  ;;  %v15736_v58 = vld [vmem:[#allocation58_spill] sm:$0xff] }
 0x226   :  { %8234 = vmatmul.mubr.bf16.gmra.mrb[60].mxu1 %v9613_v63  ;;  %v15725_v63 = vld [vmem:[#allocation43_spill] sm:$0xff] }
 0x227   :  { %8333 = vmatprep.mubr.bf16.mxu1 %v9614_v16  ;;  %v1976_v16 = vadd.f32 %v1912_v14, %v15725_v63  ;;  %v15734_v14 = vld [vmem:[#allocation74_spill] sm:$0xff] }
 0x281   :  { %v8175_v62 = vpop.f32.mrb[0].mxu1 }
 0x282   :  { %v2092_v42 = vpop.f32.mrb[1].mxu1  ;;  %v11252_v4 = vadd.f32 %v8175_v62, %v1972_v34  ;;  %v1977_v62 = vadd.f32 %v1913_v22, %v15726_v56  ;;  %v15735_v56 = vld [vmem:[#allocation59_spill] sm:$0xff] }
 0x283   :  { %v8176_v28 = vpop.f32.mrb[2].mxu1  ;;  %v11256_v10 = vadd.f32 %v2092_v42, %v1970_v59  ;;  %v15728_v42 = vld [vmem:[#allocation30_spill] sm:$0xff] }
 0x284   :  { %v11254_v17 = vadd.f32 %v8176_v28, %v1973_v61  ;;  %v2095_v6 = vpop.f32.mrb[3].mxu1  ;;  %v1975_v61 = vadd.f32 %v1911_v21, %v15728_v42 }
 0x285   :  { %v11258_v54 = vadd.f32 %v2095_v6, %v1971_v36 }
 0x289   :  { %v8179_v9 = vpop.f32.mrb[4].mxu1 }
 0x28a   :  { %v2108_v35 = vpop.f32.mrb[5].mxu1  ;;  %v11276_v59 = vadd.f32 %v8179_v9, %v1976_v16  ;;  %v1917_v9 = vmul.f32 %v11238_v23, %v15730_v49  ;;  %v15731_v16 = vld [vmem:[#allocation49_spill] sm:$0xff] }
 0x28b   :  { %v8180_v34 = vpop.f32.mrb[6].mxu1  ;;  %v11280_v6 = vadd.f32 %v2108_v35, %v1974_v57  ;;  %v15732_v35 = vld [vmem:[#allocation48_spill] sm:$0xff] }
 0x28c   :  { %v11278_v28 = vadd.f32 %v8180_v34, %v1977_v62  ;;  %v2111_v36 = vpop.f32.mrb[7].mxu1  ;;  %v1914_v62 = vmul.f32 %v11238_v23, %v15731_v16  ;;  %v1915_v57 = vmul.f32 %v11238_v23, %v15732_v35  ;;  %v15733_v34 = vld [vmem:[#allocation75_spill] sm:$0xff]  ;;  %v1981_v42 = vadd.f32 %v1917_v9, %v15734_v14 }
 0x28d   :  { %v11282_v46 = vadd.f32 %v2111_v36, %v1975_v61  ;;  %v1980_v61 = vadd.f32 %v1916_v12, %v15733_v34  ;;  %v15738_v12 = vld [vmem:[#allocation92_spill] sm:$0xff]  ;;  %v15746_v34 = vld [vmem:[#allocation10_spill] sm:$0xff] }
 0x28e   :  { %v1978_v22 = vadd.f32 %v1914_v62, %v15735_v56  ;;  %v1979_v18 = vadd.f32 %v1915_v57, %v15736_v58  ;;  %v1920_v62 = vmul.f32 %v11238_v23, %v10765_v8 }
 0x291   :  { %v8183_v21 = vpop.f32.mrb[8].mxu1 }
 0x292   :  { %v2124_v36 = vpop.f32.mrb[9].mxu1  ;;  %v11300_v33 = vadd.f32 %v8183_v21, %v1980_v61  ;;  %v1921_v21 = vmul.f32 %v11238_v23, %v10757_v25  ;;  %v15737_v61 = vld [vmem:[#allocation93_spill] sm:$0xff] }
 0x293   :  { %v8184_v63 = vpop.f32.mrb[10].mxu1  ;;  %v11304_v24 = vadd.f32 %v2124_v36, %v1978_v22 }
 0x294   :  { %v11302_v49 = vadd.f32 %v8184_v63, %v1981_v42  ;;  %v2127_v7 = vpop.f32.mrb[11].mxu1  ;;  %v1918_v63 = vmul.f32 %v11238_v23, %v10635_v13  ;;  %v1985_v22 = vadd.f32 %v1921_v21, %v10866_v51  ;;  %v15739_v51 = vld [vmem:[#allocation15_spill] sm:$0xff] }
 0x295   :  { %v11306_v16 = vadd.f32 %v2127_v7, %v1979_v18  ;;  %v1919_v18 = vmul.f32 %v11238_v23, %v10633_v29  ;;  %v1984_v7 = vadd.f32 %v1920_v62, %v10870_v2  ;;  %v15744_v62 = vld [vmem:[#allocation20_spill] sm:$0xff]  ;;  %v15745_v2 = vld [vmem:[#allocation11_spill] sm:$0xff] }
 0x296   :  { %v1982_v36 = vadd.f32 %v1918_v63, %v15737_v61  ;;  %v1924_v63 = vmul.f32 %v11238_v23, %v15739_v51  ;;  %v15740_v61 = vld [vmem:[#allocation14_spill] sm:$0xff] }
 0x297   :  { %v1983_v8 = vadd.f32 %v1919_v18, %v15738_v12 }
 0x299   :  { %v8187_v57 = vpop.f32.mrb[12].mxu1 }
 0x29a   :  { %v2140_v42 = vpop.f32.mrb[13].mxu1  ;;  %v11324_v58 = vadd.f32 %v8187_v57, %v1984_v7  ;;  %v1925_v57 = vmul.f32 %v11238_v23, %v15740_v61 }
 0x29b   :  { %v8188_v9 = vpop.f32.mrb[14].mxu1  ;;  %v11328_v14 = vadd.f32 %v2140_v42, %v1982_v36  ;;  %v15742_v42 = vld [vmem:[#allocation6_spill] sm:$0xff] }
 0x29c   :  { %v11326_v25 = vadd.f32 %v8188_v9, %v1985_v22  ;;  %v2143_v56 = vpop.f32.mrb[15].mxu1  ;;  %v15741_v9 = vld [vmem:[#allocation4_spill] sm:$0xff]  ;;  %v1989_v12 = vadd.f32 %v1925_v57, %v15744_v62  ;;  %v15749_v57 = vld [vmem:[#allocation25_spill] sm:$0xff] }
 0x29d   :  { %v11330_v13 = vadd.f32 %v2143_v56, %v1983_v8  ;;  %v1922_v7 = vmul.f32 %v11238_v23, %v15741_v9  ;;  %v1923_v8 = vmul.f32 %v11238_v23, %v15742_v42  ;;  %v15743_v56 = vld [vmem:[#allocation21_spill] sm:$0xff]  ;;  %v1928_v42 = vmul.f32 %v11238_v23, %v15747_v3 }
 0x29e   :  { %v1988_v22 = vadd.f32 %v1924_v63, %v15743_v56  ;;  %v1929_v63 = vmul.f32 %v11238_v23, %v15748_v30 }
 0x29f   :  { %v1986_v21 = vadd.f32 %v1922_v7, %v15745_v2  ;;  %v1987_v51 = vadd.f32 %v1923_v8, %v15746_v34  ;;  %v1926_v7 = vmul.f32 %v11238_v23, %v15749_v57  ;;  %v15750_v2 = vld [vmem:[#allocation24_spill] sm:$0xff] }
 0x2a0   :  { %v1927_v8 = vmul.f32 %v11238_v23, %v15750_v2  ;;  %v1938_v2 = vmul.f32 %v11238_v23, %v15755_v40  ;;  %v15766_v40 = vld [vmem:[#allocation29_spill] sm:$0xff] }
 0x2a1   :  { %v8191_v18 = vpop.f32.mrb[16].mxu1 }
 0x2a2   :  { %v2156_v36 = vpop.f32.mrb[17].mxu1  ;;  %v2365_v35 = vadd.f32 %v8191_v18, %v1988_v22  ;;  %v15751_v18 = vld [vmem:[#allocation45_spill] sm:$0xff] }
 0x2a3   :  { %v8192_v29 = vpop.f32.mrb[18].mxu1  ;;  %v2363_v32 = vadd.f32 %v2156_v36, %v1986_v21  ;;  %v15752_v21 = vld [vmem:[#allocation44_spill] sm:$0xff] }
 0x2a4   :  { %v2366_v0 = vadd.f32 %v8192_v29, %v1989_v12  ;;  %v2159_v61 = vpop.f32.mrb[19].mxu1  ;;  %v1992_v29 = vadd.f32 %v1928_v42, %v15751_v18  ;;  %v1939_v42 = vmul.f32 %v11238_v23, %v15756_v39  ;;  %v15757_v18 = vld [vmem:[#allocation67_spill] sm:$0xff] }
 0x2a5   :  { %v2364_v50 = vadd.f32 %v2159_v61, %v1987_v51  ;;  %v1993_v51 = vadd.f32 %v1929_v63, %v15752_v21  ;;  %v1932_v63 = vmul.f32 %v11238_v23, %v15757_v18  ;;  %v15765_v18 = vld [vmem:[#allocation76_spill] sm:$0xff] }
 0x2a6   :  { %v2420_v1 = vpack.c.bf16 %v2366_v0, %v2365_v35  ;;  %v15753_v0 = vld [vmem:[#allocation33_spill] sm:$0xff]  ;;  %v15754_v35 = vld [vmem:[#allocation32_spill] sm:$0xff] }
 0x2a7   :  { %v2419_v9 = vpack.c.bf16 %v2364_v50, %v2363_v32  ;;  %v1990_v50 = vadd.f32 %v1926_v7, %v15753_v0  ;;  %v1991_v61 = vadd.f32 %v1927_v8, %v15754_v35  ;;  %v15758_v7 = vld [vmem:[#allocation66_spill] sm:$0xff] }
 0x2a8   :  { %v1933_v0 = vmul.f32 %v11238_v23, %v15758_v7  ;;  %v2476_v35 = vmul.bf16 1056980736, %v2420_v1 }
 0x2a9   :  { %v8195_v56 = vpop.f32.mrb[20].mxu1  ;;  %v2475_v55 = vmul.bf16 1056980736, %v2419_v9 }
 0x2aa   :  { %v2172_v12 = vpop.f32.mrb[21].mxu1  ;;  %v2369_v22 = vadd.f32 %v8195_v56, %v1992_v29  ;;  %v15759_v56 = vld [vmem:[#allocation51_spill] sm:$0xff]  ;;  %v1997_v39 = vadd.f32 %v1933_v0, %v15765_v18 }
 0x2ab   :  { %v8196_v32 = vpop.f32.mrb[22].mxu1  ;;  %v2367_v3 = vadd.f32 %v2172_v12, %v1990_v50  ;;  %v1930_v29 = vmul.f32 %v11238_v23, %v15759_v56  ;;  %v15760_v12 = vld [vmem:[#allocation50_spill] sm:$0xff]  ;;  %v1940_v56 = vmul.f32 %v11238_v23, %v15766_v40  ;;  %v15787_v40 = vld [vmem:[#allocation95_spill] sm:$0xff] }
 0x2ac   :  { %v2370_v36 = vadd.f32 %v8196_v32, %v1993_v51  ;;  %v2175_v30 = vpop.f32.mrb[23].mxu1  ;;  %v15762_v51 = vld [vmem:[#allocation26_spill] sm:$0xff]  ;;  %v15763_v32 = vpack.c.bf16 %v11254_v17, %v11252_v4 }
 0x2ad   :  { %v2368_v34 = vadd.f32 %v2175_v30, %v1991_v61  ;;  %v1931_v30 = vmul.f32 %v11238_v23, %v15760_v12  ;;  %v11376_v50 = vadd.f32 %v1939_v42, %v15762_v51  ;;  %v15767_v12 = vld [vmem:[#allocation61_spill] sm:$0xff]  ;;  %v15769_v42 = vld [vmem:[#allocation28_spill] sm:$0xff] }
 0x2ae   :  { %v2422_v62 = vpack.c.bf16 %v2370_v36, %v2369_v22  ;;  %v2444_v61 = vmul.bf16 1056980736, %v15763_v32  ;;  %v15764_v22 = vld [vmem:[#allocation77_spill] sm:$0xff]  ;;  %v1994_v21 = vadd.f32 %v1930_v29, %v15767_v12  ;;  %v1941_v51 = vmul.f32 %v11238_v23, %v15769_v42  ;;  %v15770_v32 = vld [vmem:[#allocation39_spill] sm:$0xff]  ;;  %v15771_v29 = vld [vmem:[#allocation38_spill] sm:$0xff] }
 0x2af   :  { %v2421_v57 = vpack.c.bf16 %v2368_v34, %v2367_v3  ;;  %v15761_v3 = vld [vmem:[#allocation27_spill] sm:$0xff]  ;;  %v1996_v36 = vadd.f32 %v1932_v63, %v15764_v22  ;;  %v11394_v0 = vadd.f32 %v1940_v56, %v15770_v32 }
 0x2b0   :  { %v11373_v34 = vadd.f32 %v1938_v2, %v15761_v3  ;;  %v15768_v3 = vld [vmem:[#allocation60_spill] sm:$0xff]  ;;  %v11401_v12 = vadd.f32 %v1941_v51, %v15771_v29  ;;  %8910 = vtanh.bf16 %v2444_v61  ;;  %v15776_v51 = vld [vmem:[#allocation46_spill] sm:$0xff] }
 0x2b1   :  { %v8199_v8 = vpop.f32.mrb[24].mxu1  ;;  %v1995_v53 = vadd.f32 %v1931_v30, %v15768_v3  ;;  %v15772_v30 = vld [vmem:[#allocation41_spill] sm:$0xff]  ;;  %8912 = vtanh.bf16 %v2476_v35  ;;  %v1955_v61 = vmul.f32 %v11238_v23, %v15776_v51  ;;  %v15784_v29 = vld [vmem:[#allocation80_spill] sm:$0xff] }
 0x2b2   :  { %v2188_v7 = vpop.f32.mrb[25].mxu1  ;;  %v11389_v4 = vadd.f32 %v8199_v8, %v1996_v36  ;;  %v1942_v3 = vmul.f32 %v11238_v23, %v15772_v30  ;;  %v15774_v36 = vld [vmem:[#allocation47_spill] sm:$0xff]  ;;  %8914 = vtanh.bf16 %v2475_v55  ;;  %v2478_v30 = vmul.bf16 1056980736, %v2422_v62 }
 0x2b3   :  { %v8200_v2 = vpop.f32.mrb[26].mxu1  ;;  %v11396_v18 = vadd.f32 %v2188_v7, %v1994_v21  ;;  %v1954_v56 = vmul.f32 %v11238_v23, %v15774_v36  ;;  %v15783_v55 = vpack.c.bf16 %v11278_v28, %v11276_v59  ;;  %v15786_v62 = vld [vmem:[#allocation55_spill] sm:$0xff]  ;;  %v15789_v28 = vld [vmem:[#allocation57_spill] sm:$0xff] }
 0x2b4   :  { %v11391_v17 = vadd.f32 %v8200_v2, %v1997_v39  ;;  %v2191_v63 = vpop.f32.mrb[27].mxu1  ;;  %v15773_v39 = vld [vmem:[#allocation40_spill] sm:$0xff]  ;;  %v15777_v2 = vld [vmem:[#allocation101_spill] sm:$0xff] }
 0x2b5   :  { %v11398_v1 = vadd.f32 %v2191_v63, %v1995_v53  ;;  %v1943_v8 = vmul.f32 %v11238_v23, %v15773_v39  ;;  %v15775_v53 = vpack.c.bf16 %v11258_v54, %v11256_v10  ;;  %v15779_v39 = vld [vmem:[#allocation53_spill] sm:$0xff]  ;;  %v11438_v42 = vadd.f32 %v1954_v56, %v15786_v62 }
 0x2b6   :  { %v2424_v9 = vpack.c.bf16 %v11391_v17, %v11389_v4  ;;  %v1936_v4 = vmul.f32 %v11238_v23, %v15777_v2  ;;  %v15778_v17 = vld [vmem:[#allocation100_spill] sm:$0xff]  ;;  %v11423_v36 = vadd.f32 %v1942_v3, %v15779_v39  ;;  %v15780_v54 = vld [vmem:[#allocation85_spill] sm:$0xff]  ;;  %v2446_v2 = vmul.bf16 1056980736, %v15783_v55  ;;  %v15790_v55 = vld [vmem:[#allocation54_spill] sm:$0xff] }
 0x2b7   :  { %v2443_v21 = vmul.bf16 1056980736, %v15775_v53  ;;  %v2423_v7 = vpack.c.bf16 %v11398_v1, %v11396_v18  ;;  %v1937_v63 = vmul.f32 %v11238_v23, %v15778_v17  ;;  %v1934_v35 = vmul.f32 %v11238_v23, %v15780_v54  ;;  %v15781_v53 = vld [vmem:[#allocation84_spill] sm:$0xff]  ;;  %v15785_v3 = vld [vmem:[#allocation81_spill] sm:$0xff] }
 0x2b8   :  { %v1935_v18 = vmul.f32 %v11238_v23, %v15781_v53  ;;  %v15782_v1 = vld [vmem:[#allocation52_spill] sm:$0xff]  ;;  %v2000_v17 = vadd.f32 %v1936_v4, %v15784_v29  ;;  %v2477_v54 = vmul.bf16 1056980736, %v2421_v57  ;;  %v1944_v4 = vmul.f32 %v11238_v23, %v15789_v28  ;;  %v15805_v28 = vld [vmem:[#allocation79_spill] sm:$0xff] }
 0x2b9   :  { %v8203_v10 = vpop.f32.mrb[28].mxu1  ;;  %v11430_v51 = vadd.f32 %v1943_v8, %v15782_v1  ;;  %v2001_v39 = vadd.f32 %v1937_v63, %v15785_v3  ;;  %8916 = vtanh.bf16 %v2443_v21  ;;  %v1998_v22 = vadd.f32 %v1934_v35, %v15787_v40  ;;  %v15791_v21 = vld [vmem:[#allocation56_spill] sm:$0xff]  ;;  %v15809_v3 = vld [vmem:[#allocation103_spill] sm:$0xff] }
 0x2ba   :  { %v2204_v32 = vpop.f32.mrb[29].mxu1  ;;  %v1999_v8 = vadd.f32 %v1935_v18, %v15788_v43  ;;  %v11442_v1 = vadd.f32 %v8203_v10, %v2000_v17  ;;  %v11449_v63 = vadd.f32 %v1955_v61, %v15790_v55  ;;  %8918 = vtanh.bf16 %v2478_v30  ;;  %v15795_v18 = vld [vmem:[#allocation62_spill] sm:$0xff] }
 0x2bb   :  { %v8204_v53 = vpop.f32.mrb[30].mxu1  ;;  %v11451_v56 = vadd.f32 %v2204_v32, %v1998_v22  ;;  %v1945_v35 = vmul.f32 %v11238_v23, %v15791_v21  ;;  %8920 = vtanh.bf16 %v2446_v2  ;;  %v15794_v22 = vpack.c.bf16 %v11302_v49, %v11300_v33  ;;  %v8911_v49 = vpop.eup %8910  ;;  %v15801_v21 = vld [vmem:[#allocation71_spill] sm:$0xff]  ;;  %v15802_v55 = vld [vmem:[#allocation70_spill] sm:$0xff] }
 0x2bc   :  { %v11444_v41 = vadd.f32 %v8204_v53, %v2001_v39  ;;  %v2207_v59 = vpop.f32.mrb[31].mxu1  ;;  %v15792_v39 = vpack.c.bf16 %v11282_v46, %v11280_v6  ;;  %v15793_v53 = vld [vmem:[#allocation63_spill] sm:$0xff]  ;;  %8922 = vtanh.bf16 %v2477_v54  ;;  %v1957_v2 = vmul.f32 %v11238_v23, %v15795_v18 }
 0x2bd   :  { %v11453_v57 = vadd.f32 %v2207_v59, %v1999_v8  ;;  %v1956_v61 = vmul.f32 %v11238_v23, %v15793_v53  ;;  %v2448_v32 = vmul.bf16 1056980736, %v15794_v22  ;;  %v15796_v46 = vpack.c.bf16 %v11306_v16, %v11304_v24  ;;  %v15797_v8 = vld [vmem:[#allocation69_spill] sm:$0xff]  ;;  %v15799_v53 = vld [vmem:[#allocation72_spill] sm:$0xff]  ;;  %v15803_v16 = vld [vmem:[#allocation78_spill] sm:$0xff] }
 0x2be   :  { %v2445_v17 = vmul.bf16 1056980736, %v15792_v39  ;;  %v11475_v59 = vadd.f32 %v1944_v4, %v15797_v8  ;;  %v15798_v39 = vld [vmem:[#allocation68_spill] sm:$0xff]  ;;  %v1947_v33 = vmul.f32 %v11238_v23, %v15799_v53  ;;  %v15800_v22 = vld [vmem:[#allocation73_spill] sm:$0xff]  ;;  %v11488_v24 = vadd.f32 %v1957_v2, %v15802_v55  ;;  %v15804_v53 = vld [vmem:[#allocation86_spill] sm:$0xff] }
 0x2bf   :  { %v2447_v6 = vmul.bf16 1056980736, %v15796_v46  ;;  %v11478_v10 = vadd.f32 %v1945_v35, %v15798_v39  ;;  %v1946_v30 = vmul.f32 %v11238_v23, %v15800_v22  ;;  %v11485_v18 = vadd.f32 %v1956_v61, %v15801_v21  ;;  %v8913_v35 = vpop.eup %8912  ;;  %v15806_v55 = vld [vmem:[#allocation91_spill] sm:$0xff] }
 0x2c0   :  { %v11492_v4 = vmul.f32 %v11238_v23, %v15803_v16  ;;  %8924 = vtanh.bf16 %v2445_v17  ;;  %v2480_v46 = vmul.bf16 1056980736, %v2424_v9  ;;  %v11495_v8 = vadd.f32 %v1947_v33, %v15804_v53  ;;  %v8915_v61 = vpop.eup %8914  ;;  %v15807_v16 = vld [vmem:[#allocation87_spill] sm:$0xff]  ;;  %v15808_v53 = vld [vmem:[#allocation90_spill] sm:$0xff] }
 0x2c1   :  { %v8207_v54 = vpop.f32.mrb[32].mxu1  ;;  %v11499_v22 = vmul.f32 %v11238_v23, %v15805_v28  ;;  %8926 = vtanh.bf16 %v2448_v32  ;;  %v2479_v21 = vmul.bf16 1056980736, %v2423_v7  ;;  %v1948_v43 = vmul.f32 %v11238_v23, %v15806_v55 }
 0x2c2   :  { %v2220_v39 = vpop.f32.mrb[33].mxu1  ;;  %v11504_v40 = vadd.f32 %v1946_v30, %v15807_v16  ;;  %8928 = vtanh.bf16 %v2447_v6  ;;  %v2381_v9 = vadd.f32 %v8207_v54, %v11394_v0  ;;  %v1949_v28 = vmul.f32 %v11238_v23, %v15808_v53 }
 0x2c3   :  { %v8208_v2 = vpop.f32.mrb[34].mxu1  ;;  %v2492_v62 = vmul.bf16 1056980736, %v8913_v35  ;;  %v2379_v32 = vadd.f32 %v2220_v39, %v11373_v34  ;;  %v11513_v29 = vadd.f32 %v1948_v43, %v15809_v3  ;;  %v2460_v30 = vmul.bf16 1056980736, %v8911_v49  ;;  %v15813_v39 = vld [vmem:[#allocation102_spill] sm:$0xff] }
 0x2c4   :  { %v2382_v17 = vadd.f32 %v8208_v2, %v11401_v12  ;;  %v2223_v33 = vpop.f32.mrb[35].mxu1  ;;  %v8917_v55 = vpop.eup %8916  ;;  %v2491_v16 = vmul.bf16 1056980736, %v8915_v61  ;;  %8930 = vtanh.bf16 %v2480_v46  ;;  %v15810_v12 = vpack.c.bf16 %v11326_v25, %v11324_v58  ;;  %v15811_v2 = vld [vmem:[#allocation105_spill] sm:$0xff]  ;;  %v15814_v46 = vld [vmem:[#allocation106_spill] sm:$0xff] }
 0x2c5   :  { %v2380_v7 = vadd.f32 %v2223_v33, %v11376_v50  ;;  %8932 = vtanh.bf16 %v2479_v21  ;;  %v1951_v35 = vmul.f32 %v11238_v23, %v15811_v2  ;;  %v8919_v34 = vpop.eup %8918  ;;  %v15812_v50 = vpack.c.bf16 %v11330_v13, %v11328_v14 }
 0x2c6   :  { %v2428_v6 = vpack.c.bf16 %v2382_v17, %v2381_v9  ;;  %v2450_v0 = vmul.bf16 1056980736, %v15810_v12  ;;  %v11524_v49 = vadd.f32 %v1949_v28, %v15813_v39  ;;  %v1950_v61 = vmul.f32 %v11238_v23, %v15814_v46  ;;  %v8921_v9 = vpop.eup %8920 }
 0x2c7   :  { %v2427_v54 = vpack.c.bf16 %v2380_v7, %v2379_v32  ;;  %v2449_v43 = vmul.bf16 1056980736, %v15812_v50  ;;  %v2459_v25 = vmul.bf16 1056980736, %v8917_v55  ;;  %v2500_v58 = vadd.bf16 1056980736, %v2492_v62  ;;  %v8923_v33 = vpop.eup %8922 }
 0x2c8   :  { %8934 = vtanh.bf16 %v2428_v6  ;;  %v11529_v17 = vadd.f32 %v1951_v35, %v10935_v47  ;;  %v2468_v32 = vadd.bf16 1056980736, %v2460_v30  ;;  %v2499_v7 = vadd.bf16 1056980736, %v2491_v16 }
 0x2c9   :  { %8936 = vtanh.bf16 %v2427_v54  ;;  %v8211_v21 = vpop.f32.mrb[36].mxu1  ;;  %v11533_v14 = vmul.f32 %v11238_v23, %v10986_v5  ;;  %v11536_v28 = vadd.f32 %v1950_v61, %v10942_v15  ;;  %v2494_v6 = vmul.bf16 1056980736, %v8919_v34 }
 0x2ca   :  { %v2236_v13 = vpop.f32.mrb[37].mxu1  ;;  %8938 = vtanh.bf16 %v2450_v0  ;;  %v15815_v62 = vpack.c.bf16 %v11444_v41, %v11442_v1  ;;  %v1953_v54 = vmul.f32 %v11238_v23, %v10980_v11  ;;  %v2462_v30 = vmul.bf16 1056980736, %v8921_v9 }
 0x2cb   :  { %v8212_v12 = vpop.f32.mrb[38].mxu1  ;;  %8940 = vtanh.bf16 %v2449_v43  ;;  %v2385_v16 = vadd.f32 %v8211_v21, %v11475_v59  ;;  %v11545_v47 = vpop.eup %8924  ;;  %v2565_v61 = vunpack.c.l.bf16 %v2500_v58  ;;  %v2493_v0 = vmul.bf16 1056980736, %v8923_v33 }
 0x2cc   :  { %v2482_v55 = vmul.bf16 1056980736, %v15815_v62  ;;  %v2386_v35 = vadd.f32 %v8212_v12, %v11478_v10  ;;  %v2239_v50 = vpop.f32.mrb[39].mxu1  ;;  %v2383_v34 = vadd.f32 %v2236_v13, %v11423_v36  ;;  %v11549_v1 = vpop.eup %8926  ;;  %v2566_v62 = vunpack.c.h.bf16 %v2500_v58  ;;  %v2549_v10 = vld [vmem:[#allocation3 + $0x10] sm:$0xff] }
 0x2cd   :  { %v2384_v41 = vadd.f32 %v2239_v50, %v11430_v51  ;;  %v2563_v15 = vunpack.c.l.bf16 %v2499_v7  ;;  %v15816_v43 = vpack.c.bf16 %v11453_v57, %v11451_v56  ;;  %v11554_v21 = vpop.eup %8928  ;;  %v2564_v12 = vunpack.c.h.bf16 %v2499_v7  ;;  %v2550_v56 = vld [vmem:[#allocation3 + $0x18] sm:$0xff] }
 0x2ce   :  { %v2430_v59 = vpack.c.bf16 %v2386_v35, %v2385_v16  ;;  %v11556_v11 = vadd.bf16 1056980736, %v2494_v6  ;;  %8942 = vtanh.bf16 %v2482_v55  ;;  %v2467_v36 = vadd.bf16 1056980736, %v2459_v25  ;;  %v2547_v35 = vld [vmem:[#allocation3] sm:$0xff] }
 0x2cf   :  { %v2481_v9 = vmul.bf16 1056980736, %v15816_v43  ;;  %v2429_v33 = vpack.c.bf16 %v2384_v41, %v2383_v34  ;;  %v11558_v13 = vadd.bf16 1056980736, %v2462_v30  ;;  %v2461_v51 = vmul.bf16 1056980736, %v11545_v47  ;;  %v8931_v58 = vpop.eup %8930 }
 0x2d0   :  { %8944 = vtanh.bf16 %v2430_v59  ;;  %v2464_v50 = vmul.bf16 1056980736, %v11549_v1  ;;  %v11562_v57 = vadd.bf16 1056980736, %v2493_v0  ;;  %v11565_v7 = vadd.f32 %v1953_v54, %v11024_v60  ;;  %v8933_v6 = vpop.eup %8932  ;;  %v2548_v34 = vld [vmem:[#allocation3 + $0x8] sm:$0xff] }
 0x2d1   :  { %8946 = vtanh.bf16 %v2429_v33  ;;  %v8215_v16 = vpop.f32.mrb[40].mxu1  ;;  %v2463_v55 = vmul.bf16 1056980736, %v11554_v21  ;;  %v2581_v25 = vmul.f32 %v2565_v61, %v2549_v10  ;;  %v2582_v30 = vmul.f32 %v2566_v62, %v2550_v56 }
 0x2d2   :  { %8948 = vtanh.bf16 %v2481_v9  ;;  %v2252_v47 = vpop.f32.mrb[41].mxu1  ;;  %v2579_v43 = vmul.f32 %v2563_v15, %v2547_v35  ;;  %v2580_v1 = vmul.f32 %v2564_v12, %v2548_v34  ;;  %v2569_v0 = vunpack.c.l.bf16 %v11556_v11 }
 0x2d3   :  { %v8935_v41 = vpop.eup %8934  ;;  %v2570_v59 = vunpack.c.h.bf16 %v11556_v11  ;;  %v8216_v33 = vpop.f32.mrb[42].mxu1  ;;  %v2496_v54 = vmul.bf16 1056980736, %v8931_v58  ;;  %v2389_v46 = vadd.f32 %v8215_v16, %v11513_v29  ;;  %v2567_v21 = vunpack.c.l.bf16 %v11562_v57 }
 0x2d4   :  { %v8937_v2 = vpop.eup %8936  ;;  %v2596_v60 = vmul.bf16 %v8935_v41, %v2468_v32  ;;  %v2390_v61 = vadd.f32 %v8216_v33, %v11524_v49  ;;  %v2255_v62 = vpop.f32.mrb[43].mxu1  ;;  %v2387_v10 = vadd.f32 %v2252_v47, %v11504_v40  ;;  %v2568_v11 = vunpack.c.h.bf16 %v11562_v57  ;;  %v2554_v47 = vld [vmem:[#allocation3 + $0x38] sm:$0xff]  ;;  %v2551_v57 = vld [vmem:[#allocation3 + $0x20] sm:$0xff] }
 0x2d5   :  { %v2595_v9 = vmul.bf16 %v8937_v2, %v2467_v36  ;;  %v2388_v15 = vadd.f32 %v2255_v62, %v11495_v8  ;;  %v11575_v12 = vpop.eup %8938  ;;  %v2495_v29 = vmul.bf16 1056980736, %v8933_v6  ;;  %v11580_v41 = vadd.bf16 1056980736, %v2496_v54  ;;  %v2553_v36 = vld [vmem:[#allocation3 + $0x30] sm:$0xff]  ;;  %v2552_v62 = vld [vmem:[#allocation3 + $0x28] sm:$0xff] }
 0x2d6   :  { %v2605_v56 = vunpack.c.l.bf16 %v2596_v60  ;;  %v2606_v35 = vunpack.c.h.bf16 %v2596_v60  ;;  %v2432_v58 = vpack.c.bf16 %v2390_v61, %v2389_v46  ;;  %v11578_v32 = vpop.eup %8940  ;;  %v2469_v8 = vadd.bf16 1056980736, %v2461_v51 }
 0x2d7   :  { %v2603_v16 = vunpack.c.l.bf16 %v2595_v9  ;;  %v2604_v49 = vunpack.c.h.bf16 %v2595_v9  ;;  %v2431_v34 = vpack.c.bf16 %v2388_v15, %v2387_v10  ;;  %v11590_v61 = vadd.bf16 1056980736, %v2464_v50 }
 0x2d8   :  { %v11582_v2 = vadd.f32 %v2605_v56, %v2581_v25  ;;  %v11584_v40 = vadd.f32 %v2606_v35, %v2582_v30  ;;  %8950 = vtanh.bf16 %v2432_v58  ;;  %v11592_v54 = vadd.bf16 1056980736, %v2463_v55 }
 0x2d9   :  { %v11586_v33 = vadd.f32 %v2603_v16, %v2579_v43  ;;  %v11588_v60 = vadd.f32 %v2604_v49, %v2580_v1  ;;  %8952 = vtanh.bf16 %v2431_v34  ;;  %v8219_v46 = vpop.f32.mrb[44].mxu1  ;;  %v8943_v6 = vpop.eup %8942  ;;  %v2585_v25 = vmul.f32 %v2569_v0, %v2553_v36 }
 0x2da   :  { %2685 = vst.msk [vmem:[#allocation3 + $0x10] sm:$0xff] %vm29_vm0, %v11582_v2  ;;  %2686 = vst.msk [vmem:[#allocation3 + $0x18] sm:$0xff] %vm29_vm0, %v11584_v40  ;;  %v2016_v51 = vadd.f32 %v11533_v14, %v11030_v38  ;;  %v2268_v30 = vpop.f32.mrb[45].mxu1  ;;  %v2586_v1 = vmul.f32 %v2570_v59, %v2554_v47  ;;  %v2583_v9 = vmul.f32 %v2567_v21, %v2551_v57  ;;  %v2503_v50 = vadd.bf16 1056980736, %v2495_v29 }
 0x2db   :  { %v8945_v43 = vpop.eup %8944  ;;  %v2584_v10 = vmul.f32 %v2568_v11, %v2552_v62  ;;  %2683 = vst.msk [vmem:[#allocation3] sm:$0xff] %vm29_vm0, %v11586_v33  ;;  %2684 = vst.msk [vmem:[#allocation3 + $0x8] sm:$0xff] %vm29_vm0, %v11588_v60  ;;  %v8220_v55 = vpop.f32.mrb[46].mxu1  ;;  %v2573_v15 = vunpack.c.l.bf16 %v11580_v41  ;;  %v2574_v21 = vunpack.c.h.bf16 %v11580_v41  ;;  %v2391_v29 = vadd.f32 %v2268_v30, %v11536_v28  ;;  %v2557_v41 = vld [vmem:[#allocation3 + $0x50] sm:$0xff] }
 0x2dc   :  { %v8947_v0 = vpop.eup %8946  ;;  %v2598_v56 = vmul.bf16 %v8945_v43, %v11558_v13  ;;  %v2393_v35 = vadd.f32 %v8219_v46, %v2016_v51  ;;  %v2394_v14 = vadd.f32 %v8220_v55, %v11565_v7  ;;  %v2271_v58 = vpop.f32.mrb[47].mxu1  ;;  %v2498_v49 = vmul.bf16 1056980736, %v8943_v6  ;;  %v2555_v55 = vld [vmem:[#allocation3 + $0x40] sm:$0xff] }
 0x2dd   :  { %v8949_v59 = vpop.eup %8948  ;;  %v2597_v11 = vmul.bf16 %v8947_v0, %v2469_v8  ;;  %v2392_v16 = vadd.f32 %v2271_v58, %v11529_v17  ;;  %v2571_v57 = vunpack.c.l.bf16 %v2503_v50  ;;  %v2558_v8 = vld [vmem:[#allocation3 + $0x58] sm:$0xff]  ;;  %v2572_v43 = vunpack.c.h.bf16 %v2503_v50 }
 0x2de   :  { %v2609_v34 = vunpack.c.l.bf16 %v2598_v56  ;;  %v2610_v36 = vunpack.c.h.bf16 %v2598_v56  ;;  %v2434_v47 = vpack.c.bf16 %v2394_v14, %v2393_v35  ;;  %v2497_v46 = vmul.bf16 1056980736, %v8949_v59  ;;  %v2556_v59 = vld [vmem:[#allocation3 + $0x48] sm:$0xff] }
 0x2df   :  { %v2607_v62 = vunpack.c.l.bf16 %v2597_v11  ;;  %v2608_v38 = vunpack.c.h.bf16 %v2597_v11  ;;  %v2433_v13 = vpack.c.bf16 %v2392_v16, %v2391_v29  ;;  %v2466_v30 = vmul.bf16 1056980736, %v11575_v12 }
 0x2e0   :  { %v11610_v51 = vadd.f32 %v2609_v34, %v2585_v25  ;;  %v11612_v7 = vadd.f32 %v2610_v36, %v2586_v1  ;;  %8954 = vtanh.bf16 %v2434_v47  ;;  %v2506_v0 = vadd.bf16 1056980736, %v2498_v49 }
 0x2e1   :  { %v11614_v28 = vadd.f32 %v2607_v62, %v2583_v9  ;;  %v11616_v17 = vadd.f32 %v2608_v38, %v2584_v10  ;;  %8956 = vtanh.bf16 %v2433_v13  ;;  %v8223_v6 = vpop.f32.mrb[48].mxu1  ;;  %v1961_v1 = vmul.f32 %v11238_v23, %v10729_v45  ;;  %v15817_v9 = vld [vmem:[#allocation88_spill] sm:$0xff] }
 0x2e2   :  { %2689 = vst.msk [vmem:[#allocation3 + $0x30] sm:$0xff] %vm29_vm0, %v11610_v51  ;;  %2690 = vst.msk [vmem:[#allocation3 + $0x38] sm:$0xff] %vm29_vm0, %v11612_v7  ;;  %v2284_v25 = vpop.f32.mrb[49].mxu1  ;;  %v11627_v38 = vadd.f32 %v11492_v4, %v15817_v9  ;;  %v2465_v50 = vmul.bf16 1056980736, %v11578_v32  ;;  %v2589_v12 = vmul.f32 %v2573_v15, %v2557_v41  ;;  %v2590_v56 = vmul.f32 %v2574_v21, %v2558_v8 }
 0x2e3   :  { %v8951_v10 = vpop.eup %8950  ;;  %v2587_v35 = vmul.f32 %v2571_v57, %v2555_v55  ;;  %2687 = vst.msk [vmem:[#allocation3 + $0x20] sm:$0xff] %vm29_vm0, %v11614_v28  ;;  %2688 = vst.msk [vmem:[#allocation3 + $0x28] sm:$0xff] %vm29_vm0, %v11616_v17  ;;  %v8224_v14 = vpop.f32.mrb[50].mxu1  ;;  %v2505_v11 = vadd.bf16 1056980736, %v2497_v46  ;;  %v2397_v4 = vadd.f32 %v8223_v6, %v11485_v18  ;;  %v2588_v15 = vmul.f32 %v2572_v43, %v2556_v59  ;;  %v15818_v43 = vld [vmem:[#allocation97_spill] sm:$0xff] }
 0x2e4   :  { %v8953_v58 = vpop.eup %8952  ;;  %v2600_v29 = vmul.bf16 %v8951_v10, %v11590_v61  ;;  %v2398_v16 = vadd.f32 %v8224_v14, %v11488_v24  ;;  %v2287_v32 = vpop.f32.mrb[51].mxu1  ;;  %v2395_v49 = vadd.f32 %v2284_v25, %v11438_v42  ;;  %v2577_v36 = vunpack.c.l.bf16 %v2506_v0  ;;  %v2561_v6 = vld [vmem:[#allocation3 + $0x70] sm:$0xff]  ;;  %v15819_v10 = vld [vmem:[#allocation89_spill] sm:$0xff] }
 0x2e5   :  { %v2599_v21 = vmul.bf16 %v8953_v58, %v11592_v54  ;;  %v2396_v34 = vadd.f32 %v2287_v32, %v11449_v63  ;;  %v2578_v13 = vunpack.c.h.bf16 %v2506_v0  ;;  %v2575_v8 = vunpack.c.l.bf16 %v2505_v11  ;;  %v2562_v58 = vld [vmem:[#allocation3 + $0x78] sm:$0xff]  ;;  %v2559_v32 = vld [vmem:[#allocation3 + $0x60] sm:$0xff] }
 0x2e6   :  { %v2613_v47 = vunpack.c.l.bf16 %v2600_v29  ;;  %v2614_v57 = vunpack.c.h.bf16 %v2600_v29  ;;  %v2436_v62 = vpack.c.bf16 %v2398_v16, %v2397_v4  ;;  %v1960_v54 = vmul.f32 %v11238_v23, %v15818_v43 }
 0x2e7   :  { %v2611_v46 = vunpack.c.l.bf16 %v2599_v21  ;;  %v2612_v41 = vunpack.c.h.bf16 %v2599_v21  ;;  %v2435_v61 = vpack.c.bf16 %v2396_v34, %v2395_v49  ;;  %v2576_v42 = vunpack.c.h.bf16 %v2505_v11  ;;  %v2560_v21 = vld [vmem:[#allocation3 + $0x68] sm:$0xff] }
 0x2e8   :  { %v11640_v18 = vadd.f32 %v2613_v47, %v2589_v12  ;;  %v11642_v24 = vadd.f32 %v2614_v57, %v2590_v56  ;;  %v2022_v0 = vadd.f32 %v11499_v22, %v15819_v10  ;;  %v2474_v14 = vadd.bf16 1056980736, %v2466_v30 }
 0x2e9   :  { %v11646_v55 = vadd.f32 %v2611_v46, %v2587_v35  ;;  %v11648_v63 = vadd.f32 %v2612_v41, %v2588_v15  ;;  %v8227_v25 = vpop.f32.mrb[52].mxu1  ;;  %v2516_v12 = vmul.bf16 1056980736, %v2436_v62  ;;  %v2024_v56 = vadd.f32 %v1960_v54, %v10833_v26 }
 0x2ea   :  { %2693 = vst.msk [vmem:[#allocation3 + $0x50] sm:$0xff] %vm29_vm0, %v11640_v18  ;;  %2694 = vst.msk [vmem:[#allocation3 + $0x58] sm:$0xff] %vm29_vm0, %v11642_v24  ;;  %v2300_v59 = vpop.f32.mrb[53].mxu1  ;;  %v2025_v35 = vadd.f32 %v1961_v1, %v10826_v48  ;;  %v2473_v29 = vadd.bf16 1056980736, %v2465_v50  ;;  %v2593_v4 = vmul.f32 %v2577_v36, %v2561_v6  ;;  %v2594_v16 = vmul.f32 %v2578_v13, %v2562_v58 }
 0x2eb   :  { %v8955_v11 = vpop.eup %8954  ;;  %2691 = vst.msk [vmem:[#allocation3 + $0x40] sm:$0xff] %vm29_vm0, %v11646_v55  ;;  %2692 = vst.msk [vmem:[#allocation3 + $0x48] sm:$0xff] %vm29_vm0, %v11648_v63  ;;  %v2515_v22 = vmul.bf16 1056980736, %v2435_v61  ;;  %v8228_v30 = vpop.f32.mrb[54].mxu1  ;;  %v2591_v49 = vmul.f32 %v2575_v8, %v2559_v32  ;;  %v2401_v47 = vadd.f32 %v8227_v25, %v2024_v56  ;;  %v2592_v62 = vmul.f32 %v2576_v42, %v2560_v21  ;;  %v15820_v32 = vld [vmem:[#allocation111_spill] sm:$0xff] }
 0x2ec   :  { %v8957_v15 = vpop.eup %8956  ;;  %v2602_v34 = vmul.bf16 %v8955_v11, %v2474_v14  ;;  %v2402_v57 = vadd.f32 %v8228_v30, %v2025_v35  ;;  %v2303_v1 = vpop.f32.mrb[55].mxu1  ;;  %v2399_v36 = vadd.f32 %v2300_v59, %v2022_v0  ;;  %8958 = vtanh.bf16 %v2516_v12 }
 0x2ed   :  { %v2601_v50 = vmul.bf16 %v8957_v15, %v2473_v29  ;;  %v2400_v13 = vadd.f32 %v2303_v1, %v11627_v38  ;;  %8960 = vtanh.bf16 %v2515_v22  ;;  %v1964_v25 = vmul.f32 %v11238_v23, %v11001_v20  ;;  %v15821_v1 = vld [vmem:[#allocation121_spill] sm:$0xff] }
 0x2ee   :  { %v2617_v46 = vunpack.c.l.bf16 %v2602_v34  ;;  %v2618_v41 = vunpack.c.h.bf16 %v2602_v34  ;;  %v2438_v54 = vpack.c.bf16 %v2402_v57, %v2401_v47  ;;  %v1965_v42 = vmul.f32 %v11238_v23, %v10994_v19 }
 0x2ef   :  { %v2615_v6 = vunpack.c.l.bf16 %v2601_v50  ;;  %v2616_v58 = vunpack.c.h.bf16 %v2601_v50  ;;  %v2437_v61 = vpack.c.bf16 %v2400_v13, %v2399_v36  ;;  %v1962_v12 = vmul.f32 %v11238_v23, %v10912_v44  ;;  %v15822_v50 = vld [vmem:[#allocation120_spill] sm:$0xff] }
 0x2f0   :  { %v11663_v48 = vadd.f32 %v2617_v46, %v2593_v4  ;;  %v11665_v8 = vadd.f32 %v2618_v41, %v2594_v16  ;;  %v1963_v56 = vmul.f32 %v11238_v23, %v10906_v37  ;;  %8962 = vtanh.f32 %v11582_v2  ;;  %v15823_v46 = vld [vmem:[#allocation117_spill] sm:$0xff] }
 0x2f1   :  { %v11671_v0 = vadd.f32 %v2615_v6, %v2591_v49  ;;  %v11673_v38 = vadd.f32 %v2616_v58, %v2592_v62  ;;  %v8231_v14 = vpop.f32.mrb[56].mxu1  ;;  %v2518_v59 = vmul.bf16 1056980736, %v2438_v54  ;;  %v2028_v35 = vadd.f32 %v1964_v25, %v11047_v31  ;;  %v15824_v54 = vld [vmem:[#allocation116_spill] sm:$0xff] }
 0x2f2   :  { %2697 = vst.msk [vmem:[#allocation3 + $0x70] sm:$0xff] %vm29_vm0, %v11663_v48  ;;  %2698 = vst.msk [vmem:[#allocation3 + $0x78] sm:$0xff] %vm29_vm0, %v11665_v8  ;;  %v2316_v11 = vpop.f32.mrb[57].mxu1  ;;  %v2029_v29 = vadd.f32 %v1965_v42, %v11042_v27  ;;  %8964 = vtanh.f32 %v11584_v40  ;;  %v2517_v2 = vmul.bf16 1056980736, %v2437_v61  ;;  %v2026_v4 = vadd.f32 %v1962_v12, %v10962_v52  ;;  %v15825_v61 = vld [vmem:[#allocation123_spill] sm:$0xff] }
 0x2f3   :  { %2695 = vst.msk [vmem:[#allocation3 + $0x60] sm:$0xff] %vm29_vm0, %v11671_v0  ;;  %2696 = vst.msk [vmem:[#allocation3 + $0x68] sm:$0xff] %vm29_vm0, %v11673_v38  ;;  %v8232_v16 = vpop.f32.mrb[58].mxu1  ;;  %v2027_v22 = vadd.f32 %v1963_v56, %v15820_v32  ;;  %8966 = vtanh.f32 %v11586_v33  ;;  %v2405_v30 = vadd.f32 %v8231_v14, %v2028_v35  ;;  %v1968_v62 = vmul.f32 %v11238_v23, %v15821_v1  ;;  %v15826_v14 = vld [vmem:[#allocation122_spill] sm:$0xff] }
 0x2f4   :  { %v2406_v15 = vadd.f32 %v8232_v16, %v2029_v29  ;;  %v2319_v21 = vpop.f32.mrb[59].mxu1  ;;  %8968 = vtanh.f32 %v11588_v60  ;;  %v2403_v40 = vadd.f32 %v2316_v11, %v2026_v4  ;;  %v1969_v33 = vmul.f32 %v11238_v23, %v15822_v50  ;;  %v15828_v11 = vld [vmem:[#allocation118_spill] sm:$0xff] }
 0x2f5   :  { %v2404_v49 = vadd.f32 %v2319_v21, %v2027_v22  ;;  %8970 = vtanh.bf16 %v2518_v59  ;;  %v1966_v41 = vmul.f32 %v11238_v23, %v15823_v46  ;;  %v1967_v6 = vmul.f32 %v11238_v23, %v15824_v54  ;;  %v15827_v59 = vld [vmem:[#allocation119_spill] sm:$0xff]  ;;  %v15878_v54 = vld [vmem:[#allocation16_spill] sm:$0xff]  ;;  %v15910_v1 = vld [vmem:[#allocation94_spill] sm:$0xff] }
 0x2f6   :  { %v2440_v34 = vpack.c.bf16 %v2406_v15, %v2405_v30  ;;  %8972 = vtanh.bf16 %v2517_v2  ;;  %v2032_v25 = vadd.f32 %v1968_v62, %v15825_v61  ;;  %v2033_v12 = vadd.f32 %v1969_v33, %v15826_v14  ;;  %v15870_v14 = vld [vmem:[#allocation36_spill] sm:$0xff]  ;;  %v15877_v61 = vld [vmem:[#allocation17_spill] sm:$0xff] }
 0x2f7   :  { %v2439_v47 = vpack.c.bf16 %v2404_v49, %v2403_v40  ;;  %8974 = vtanh.f32 %v11610_v51  ;;  %v8959_v36 = vpop.eup %8958  ;;  %v2031_v29 = vadd.f32 %v1967_v6, %v15828_v11 }
 0x2f8   :  { %v2520_v57 = vmul.bf16 1056980736, %v2440_v34  ;;  %8976 = vtanh.f32 %v11612_v7  ;;  %v8961_v58 = vpop.eup %8960  ;;  %v2532_v51 = vmul.bf16 1056980736, %v8959_v36  ;;  %v2030_v7 = vadd.f32 %v1966_v41, %v15827_v59  ;;  %v15869_v59 = vld [vmem:[#allocation37_spill] sm:$0xff] }
 0x2f9   :  { %v2519_v13 = vmul.bf16 1056980736, %v2439_v47  ;;  %v8235_v60 = vpop.f32.mrb[60].mxu1  ;;  %v2531_v56 = vmul.bf16 1056980736, %v8961_v58 }
 0x2fa   :  { %8978 = vtanh.bf16 %v2520_v57  ;;  %v2332_v42 = vpop.f32.mrb[61].mxu1  ;;  %v8963_v2 = vpop.eup %8962  ;;  %v2540_v4 = vadd.bf16 1056980736, %v2532_v51  ;;  %v2409_v23 = vadd.f32 %v8235_v60, %v2032_v25 }
 0x2fb   :  { %8980 = vtanh.bf16 %v2519_v13  ;;  %v8236_v35 = vpop.f32.mrb[62].mxu1  ;;  %v2539_v15 = vadd.bf16 1056980736, %v2531_v56  ;;  %v2407_v21 = vadd.f32 %v2332_v42, %v2030_v7 }
 0x2fc   :  { %8982 = vtanh.f32 %v11614_v28  ;;  %v2410_v16 = vadd.f32 %v8236_v35, %v2033_v12  ;;  %v2335_v22 = vpop.f32.mrb[63].mxu1  ;;  %v8965_v30 = vpop.eup %8964  ;;  %v2653_v34 = vunpack.c.l.bf16 %v2540_v4  ;;  %v2654_v47 = vunpack.c.h.bf16 %v2540_v4 }
 0x2fd   :  { %8984 = vtanh.f32 %v11616_v17  ;;  %v2408_v40 = vadd.f32 %v2335_v22, %v2031_v29  ;;  %v8967_v49 = vpop.eup %8966  ;;  %v2651_v28 = vunpack.c.l.bf16 %v2539_v15  ;;  %v2652_v33 = vunpack.c.h.bf16 %v2539_v15 }
 0x2fe   :  { %8986 = vtanh.f32 %v11640_v18  ;;  %v2442_v57 = vpack.c.bf16 %v2410_v16, %v2409_v23  ;;  %v8969_v62 = vpop.eup %8968  ;;  %v2669_v13 = vmul.f32 %v8963_v2, %v2653_v34  ;;  %v2670_v60 = vmul.f32 %v8965_v30, %v2654_v47 }
 0x2ff   :  { %8988 = vtanh.f32 %v11642_v24  ;;  %v2441_v36 = vpack.c.bf16 %v2408_v40, %v2407_v21  ;;  %v2667_v6 = vmul.f32 %v8967_v49, %v2651_v28  ;;  %v2668_v58 = vmul.f32 %v8969_v62, %v2652_v33 }
 0x300   :  { %8990 = vtanh.f32 %v11646_v55  ;;  %v2522_v17 = vmul.bf16 1056980736, %v2442_v57  ;;  %v8971_v41 = vpop.eup %8970  ;;  %2701 = vst.msk [vmem:[#allocation2 + $0x10] sm:$0xff] %vm29_vm0, %v2669_v13  ;;  %2702 = vst.msk [vmem:[#allocation2 + $0x18] sm:$0xff] %vm29_vm0, %v2670_v60 }
 0x301   :  { %8992 = vtanh.f32 %v11648_v63  ;;  %v2521_v18 = vmul.bf16 1056980736, %v2441_v36  ;;  %v8973_v51 = vpop.eup %8972  ;;  %v2534_v24 = vmul.bf16 1056980736, %v8971_v41  ;;  %2699 = vst.msk [vmem:[#allocation2] sm:$0xff] %vm29_vm0, %v2667_v6  ;;  %2700 = vst.msk [vmem:[#allocation2 + $0x8] sm:$0xff] %vm29_vm0, %v2668_v58 }
 0x302   :  { %v8975_v25 = vpop.eup %8974  ;;  %8994 = vtanh.bf16 %v2522_v17  ;;  %v2533_v55 = vmul.bf16 1056980736, %v8973_v51 }
 0x303   :  { %v8977_v42 = vpop.eup %8976  ;;  %8996 = vtanh.bf16 %v2521_v18  ;;  %v2542_v12 = vadd.bf16 1056980736, %v2534_v24 }
 0x304   :  { %v2541_v56 = vadd.bf16 1056980736, %v2533_v55  ;;  %8998 = vtanh.f32 %v11663_v48 }
 0x305   :  { %v8979_v63 = vpop.eup %8978  ;;  %v2657_v29 = vunpack.c.l.bf16 %v2542_v12  ;;  %v2658_v2 = vunpack.c.h.bf16 %v2542_v12  ;;  %9000 = vtanh.f32 %v11665_v8 }
 0x306   :  { %v8981_v7 = vpop.eup %8980  ;;  %v2536_v4 = vmul.bf16 1056980736, %v8979_v63  ;;  %v2655_v16 = vunpack.c.l.bf16 %v2541_v56  ;;  %v2656_v22 = vunpack.c.h.bf16 %v2541_v56  ;;  %9002 = vtanh.f32 %v11671_v0 }
 0x307   :  { %v8983_v35 = vpop.eup %8982  ;;  %v2535_v30 = vmul.bf16 1056980736, %v8981_v7  ;;  %v2673_v21 = vmul.f32 %v8975_v25, %v2657_v29  ;;  %v2674_v40 = vmul.f32 %v8977_v42, %v2658_v2  ;;  %v2850_v28 = vld [vmem:[#allocation2 + $0x10] sm:$0xff]  ;;  %9004 = vtanh.f32 %v11673_v38  ;;  %v2851_v60 = vld [vmem:[#allocation2 + $0x18] sm:$0xff] }
 0x308   :  { %v8985_v23 = vpop.eup %8984  ;;  %v2544_v49 = vadd.bf16 1056980736, %v2536_v4  ;;  %v2671_v47 = vmul.f32 %v8983_v35, %v2655_v16  ;;  %v2848_v8 = vld [vmem:[#allocation2] sm:$0xff]  ;;  %v2849_v13 = vld [vmem:[#allocation2 + $0x8] sm:$0xff]  ;;  %v2865_v24 = vpack.c.bf16 %v2851_v60, %v2850_v28 }
 0x309   :  { %v8987_v15 = vpop.eup %8986  ;;  %v2672_v57 = vmul.f32 %v8985_v23, %v2656_v22  ;;  %v2543_v62 = vadd.bf16 1056980736, %v2535_v30  ;;  %2705 = vst.msk [vmem:[#allocation2 + $0x30] sm:$0xff] %vm29_vm0, %v2673_v21  ;;  %2706 = vst.msk [vmem:[#allocation2 + $0x38] sm:$0xff] %vm29_vm0, %v2674_v40  ;;  %v2864_v6 = vpack.c.bf16 %v2849_v13, %v2848_v8 }
 0x30a   :  { %v8989_v34 = vpop.eup %8988  ;;  %v2661_v48 = vunpack.c.l.bf16 %v2544_v49  ;;  %v2662_v36 = vunpack.c.h.bf16 %v2544_v49  ;;  %2703 = vst.msk [vmem:[#allocation2 + $0x20] sm:$0xff] %vm29_vm0, %v2671_v47 }
 0x30b   :  { %v8991_v33 = vpop.eup %8990  ;;  %2704 = vst.msk [vmem:[#allocation2 + $0x28] sm:$0xff] %vm29_vm0, %v2672_v57  ;;  %v2659_v0 = vunpack.c.l.bf16 %v2543_v62  ;;  %v2660_v41 = vunpack.c.h.bf16 %v2543_v62  ;;  %8237 = vmatprep.subr.bf16.mxu0 %v2864_v6 }
 0x30c   :  { %v8993_v17 = vpop.eup %8992  ;;  %v2677_v58 = vmul.f32 %v8987_v15, %v2661_v48  ;;  %v2678_v18 = vmul.f32 %v8989_v34, %v2662_v36  ;;  %8238 = vmatpush3.bf16.msra.mxu0 %v2864_v6 }
 0x30d   :  { %v8995_v38 = vpop.eup %8994  ;;  %v2675_v51 = vmul.f32 %v8991_v33, %v2659_v0  ;;  %v2676_v25 = vmul.f32 %v8993_v17, %v2660_v41  ;;  %8239 = vmatprep.subr.bf16.mxu0 %v2865_v24 }
 0x30e   :  { %v8997_v42 = vpop.eup %8996  ;;  %2709 = vst.msk [vmem:[#allocation2 + $0x50] sm:$0xff] %vm29_vm0, %v2677_v58  ;;  %2710 = vst.msk [vmem:[#allocation2 + $0x58] sm:$0xff] %vm29_vm0, %v2678_v18  ;;  %v2538_v55 = vmul.bf16 1056980736, %v8995_v38  ;;  %v9615_v38 = vld [vmem:[%s15323_s2 + $0x8] sm:$0xff]  }
 0x30f   :  { %2707 = vst.msk [vmem:[#allocation2 + $0x40] sm:$0xff] %vm29_vm0, %v2675_v51  ;;  %2708 = vst.msk [vmem:[#allocation2 + $0x48] sm:$0xff] %vm29_vm0, %v2676_v25  ;;  %v2537_v12 = vmul.bf16 1056980736, %v8997_v42  ;;  %v8999_v56 = vpop.eup %8998  ;;  %v9616_v51 = vld [vmem:[%s15323_s2 + $0x10] sm:$0xff]   ;;  %v9617_v25 = vld [vmem:[%s15323_s2 + $0x18] sm:$0xff]  }
 0x310   :  { %v2546_v63 = vadd.bf16 1056980736, %v2538_v55  ;;  %v2854_v35 = vld [vmem:[#allocation2 + $0x30] sm:$0xff]  ;;  %v9001_v29 = vpop.eup %9000  ;;  %8240 = vmatpush3.bf16.msra.mxu0 %v2865_v24  ;;  %v2855_v22 = vld [vmem:[#allocation2 + $0x38] sm:$0xff]  ;;  %v9618_v24 = vld [vmem:[%s15323_s2 + $0x20] sm:$0xff]  }
 0x311   :  { %v2545_v7 = vadd.bf16 1056980736, %v2537_v12  ;;  %v2852_v23 = vld [vmem:[#allocation2 + $0x20] sm:$0xff]  ;;  %v9003_v30 = vpop.eup %9002  ;;  %v2867_v28 = vpack.c.bf16 %v2855_v22, %v2854_v35  ;;  %v9619_v42 = vld [vmem:[%s15323_s2 + $0x28] sm:$0xff]   ;;  %v9620_v55 = vld [vmem:[%s15323_s2 + $0x30] sm:$0xff]  }
 0x312   :  { %v2665_v2 = vunpack.c.l.bf16 %v2546_v63  ;;  %v2666_v4 = vunpack.c.h.bf16 %v2546_v63  ;;  %v2853_v16 = vld [vmem:[#allocation2 + $0x28] sm:$0xff]  ;;  %v9005_v49 = vpop.eup %9004  ;;  %v9621_v12 = vld [vmem:[%s15323_s2 + $0x38] sm:$0xff]   ;;  %v9622_v63 = vld [vmem:[%s15323_s2 + $0x40] sm:$0xff]  }
 0x313   :  { %v2663_v15 = vunpack.c.l.bf16 %v2545_v7  ;;  %v2664_v21 = vunpack.c.h.bf16 %v2545_v7  ;;  %v2866_v40 = vpack.c.bf16 %v2853_v16, %v2852_v23  ;;  %v9624_v7 = vld [vmem:[%s15323_s2 + $0x50] sm:$0xff]   ;;  %v9625_v35 = vld [vmem:[%s15323_s2 + $0x58] sm:$0xff]   ;;  %v9630_v16 = vld [vmem:[%s15323_s2 + $0x80] sm:$0xff]  }
 0x314   :  { %v2681_v34 = vmul.f32 %v8999_v56, %v2665_v2  ;;  %v2682_v47 = vmul.f32 %v9001_v29, %v2666_v4  ;;  %v9623_v56 = vld [vmem:[%s15323_s2 + $0x48] sm:$0xff]   ;;  %v9626_v29 = vld [vmem:[%s15323_s2 + $0x60] sm:$0xff]   ;;  %v9628_v4 = vld [vmem:[%s15323_s2 + $0x70] sm:$0xff]  }
 0x315   :  { %v2679_v57 = vmul.f32 %v9003_v30, %v2663_v15  ;;  %v2680_v62 = vmul.f32 %v9005_v49, %v2664_v21  ;;  %8241 = vmatprep.subr.bf16.mxu0 %v2866_v40  ;;  %v2858_v8 = vld [vmem:[#allocation2 + $0x50] sm:$0xff]  ;;  %v2859_v13 = vld [vmem:[#allocation2 + $0x58] sm:$0xff]  ;;  %v9627_v2 = vld [vmem:[%s15323_s2 + $0x68] sm:$0xff]  }
 0x316   :  { %2713 = vst.msk [vmem:[#allocation2 + $0x70] sm:$0xff] %vm29_vm0, %v2681_v34  ;;  %2714 = vst.msk [vmem:[#allocation2 + $0x78] sm:$0xff] %vm29_vm0, %v2682_v47  ;;  %8242 = vmatpush3.bf16.msra.mxu0 %v2866_v40  ;;  %v2856_v33 = vld [vmem:[#allocation2 + $0x40] sm:$0xff]  ;;  %v2857_v48 = vld [vmem:[#allocation2 + $0x48] sm:$0xff]  ;;  %v2869_v60 = vpack.c.bf16 %v2859_v13, %v2858_v8 }
 0x317   :  { %2711 = vst.msk [vmem:[#allocation2 + $0x60] sm:$0xff] %vm29_vm0, %v2679_v57  ;;  %2712 = vst.msk [vmem:[#allocation2 + $0x68] sm:$0xff] %vm29_vm0, %v2680_v62  ;;  %8243 = vmatprep.subr.bf16.mxu0 %v2867_v28  ;;  %v2868_v36 = vpack.c.bf16 %v2857_v48, %v2856_v33  ;;  %v9629_v23 = vld [vmem:[%s15323_s2 + $0x78] sm:$0xff]   ;;  %v9631_v22 = vld [vmem:[%s15323_s2 + $0x88] sm:$0xff]  }
 0x318   :  { %v9632_v30 = vld [vmem:[%s15323_s2 + $0x90] sm:$0xff]   ;;  %v9633_v15 = vld [vmem:[%s15323_s2 + $0x98] sm:$0xff]   ;;  %v9634_v21 = vld [vmem:[%s15323_s2 + $0xa0] sm:$0xff]  }
 0x319   :  { %v9635_v40 = vld [vmem:[%s15323_s2 + $0xa8] sm:$0xff]   ;;  %v9636_v49 = vld [vmem:[%s15323_s2 + $0xb0] sm:$0xff]   ;;  %v9637_v34 = vld [vmem:[%s15323_s2 + $0xb8] sm:$0xff]  }
 0x31a   :  { %8244 = vmatpush3.bf16.msra.mxu0 %v2867_v28  ;;  %v9638_v47 = vld [vmem:[%s15323_s2 + $0xc0] sm:$0xff]   ;;  %v9639_v57 = vld [vmem:[%s15323_s2 + $0xc8] sm:$0xff]   ;;  %v9640_v62 = vld [vmem:[%s15323_s2 + $0xd0] sm:$0xff]  }
 0x31b   :  { %8245 = vmatprep.subr.bf16.mxu0 %v2868_v36  ;;  %v9641_v28 = vld [vmem:[%s15323_s2 + $0xd8] sm:$0xff]   ;;  %v9642_v33 = vld [vmem:[%s15323_s2 + $0xe0] sm:$0xff]   ;;  %v9643_v48 = vld [vmem:[%s15323_s2 + $0xe8] sm:$0xff]  }
 0x31c   :  { %v9645_v8 = vld [vmem:[%s15323_s2 + $0xf8] sm:$0xff]   ;;  %v9646_v13 = vld [vmem:[%s15323_s2] sm:$0xff]  }
 0x31d   :  { %v2862_v6 = vld [vmem:[#allocation2 + $0x70] sm:$0xff]  ;;  %v2863_v58 = vld [vmem:[#allocation2 + $0x78] sm:$0xff] }
 0x31e   :  { %8246 = vmatpush3.bf16.msra.mxu0 %v2868_v36  ;;  %v2860_v17 = vld [vmem:[#allocation2 + $0x60] sm:$0xff]  ;;  %v2861_v0 = vld [vmem:[#allocation2 + $0x68] sm:$0xff]  ;;  %v2871_v18 = vpack.c.bf16 %v2863_v58, %v2862_v6  ;;  %v9644_v36 = vld [vmem:[%s15323_s2 + $0xf0] sm:$0xff]  }
 0x31f   :  { %8247 = vmatprep.subr.bf16.mxu0 %v2869_v60  ;;  %v2870_v41 = vpack.c.bf16 %v2861_v0, %v2860_v17  ;;  %v15829_v17 = vld [vmem:[#allocation13_spill] sm:$0xff] }
 0x322   :  { %8248 = vmatpush3.bf16.msra.mxu0 %v2869_v60  ;;  %v11834_v60 = vld [vmem:[%s15324_s0 + $0x2] ss:$0 sm:$0xff] }
 0x323   :  { %8249 = vmatprep.subr.bf16.mxu0 %v2870_v41  ;;  %v2722_v0 = vmul.f32 %v11834_v60, %v15829_v17 }
 0x326   :  { %8250 = vmatpush3.bf16.msra.mxu0 %v2870_v41  ;;  %v15830_v41 = vld [vmem:[#allocation12_spill] sm:$0xff] }
 0x327   :  { %8251 = vmatprep.subr.bf16.mxu0 %v2871_v18  ;;  %v2723_v6 = vmul.f32 %v11834_v60, %v15830_v41 }
 0x32a   :  { %8252 = vmatpush3.bf16.msra.mxu0 %v2871_v18  ;;  %v15831_v18 = vld [vmem:[#allocation5_spill] sm:$0xff] }
 0x32d   :  { %8254 = vmatmul.mubr.bf16.vlgmr.msra.gmra.mrb[64].mxu0 %v9615_v38  ;;  %v2720_v38 = vmul.f32 %v11834_v60, %v15831_v18 }
 0x32e   :  { %8257 = vmatprep.mubr.bf16.mxu0 %v9616_v51  ;;  %v15832_v51 = vld [vmem:[#allocation7_spill] sm:$0xff] }
 0x335   :  { %8258 = vmatmul.mubr.bf16.gmra.mrb[68].mxu0 %v9617_v25  ;;  %v2721_v25 = vmul.f32 %v11834_v60, %v15832_v51 }
 0x336   :  { %8261 = vmatprep.mubr.bf16.mxu0 %v9618_v24  ;;  %v15833_v24 = vld [vmem:[#allocation19_spill] sm:$0xff] }
 0x33d   :  { %8262 = vmatmul.mubr.bf16.gmra.mrb[72].mxu0 %v9619_v42  ;;  %v2786_v42 = vadd.f32 %v2722_v0, %v15833_v24  ;;  %v15842_v0 = vld [vmem:[#allocation42_spill] sm:$0xff] }
 0x33e   :  { %8265 = vmatprep.mubr.bf16.mxu0 %v9620_v55  ;;  %v15868_v24 = vld [vmem:[#allocation10_spill] sm:$0xff] }
 0x345   :  { %8266 = vmatmul.mubr.bf16.gmra.mrb[76].mxu0 %v9621_v12  ;;  %v15834_v12 = vld [vmem:[#allocation18_spill] sm:$0xff] }
 0x346   :  { %8269 = vmatprep.mubr.bf16.mxu0 %v9622_v63  ;;  %v2787_v63 = vadd.f32 %v2723_v6, %v15834_v12 }
 0x34d   :  { %8270 = vmatmul.mubr.bf16.gmra.mrb[80].mxu0 %v9623_v56  ;;  %v15835_v56 = vld [vmem:[#allocation9_spill] sm:$0xff] }
 0x34e   :  { %8273 = vmatprep.mubr.bf16.mxu0 %v9624_v7  ;;  %v2784_v7 = vadd.f32 %v2720_v38, %v15835_v56 }
 0x355   :  { %8274 = vmatmul.mubr.bf16.gmra.mrb[84].mxu0 %v9625_v35 }
 0x356   :  { %8277 = vmatprep.mubr.bf16.mxu0 %v9626_v29  ;;  %v15836_v29 = vld [vmem:[#allocation8_spill] sm:$0xff] }
 0x35d   :  { %8278 = vmatmul.mubr.bf16.gmra.mrb[88].mxu0 %v9627_v2  ;;  %v2785_v2 = vadd.f32 %v2721_v25, %v15836_v29 }
 0x35e   :  { %8281 = vmatprep.mubr.bf16.mxu0 %v9628_v4 }
 0x365   :  { %8282 = vmatmul.mubr.bf16.gmra.mrb[92].mxu0 %v9629_v23 }
 0x366   :  { %8285 = vmatprep.mubr.bf16.mxu0 %v9630_v16 }
 0x36d   :  { %8286 = vmatmul.mubr.bf16.gmra.mrb[96].mxu0 %v9631_v22 }
 0x36e   :  { %8289 = vmatprep.mubr.bf16.mxu0 %v9632_v30 }
 0x375   :  { %8290 = vmatmul.mubr.bf16.gmra.mrb[100].mxu0 %v9633_v15  ;;  %v15846_v15 = vld [vmem:[#allocation64_spill] sm:$0xff] }
 0x376   :  { %8293 = vmatprep.mubr.bf16.mxu0 %v9634_v21  ;;  %v15845_v21 = vld [vmem:[#allocation65_spill] sm:$0xff] }
 0x37d   :  { %8294 = vmatmul.mubr.bf16.gmra.mrb[104].mxu0 %v9635_v40  ;;  %v15837_v40 = vld [vmem:[#allocation35_spill] sm:$0xff] }
 0x37e   :  { %8297 = vmatprep.mubr.bf16.mxu0 %v9636_v49  ;;  %v2726_v49 = vmul.f32 %v11834_v60, %v15837_v40  ;;  %v15860_v40 = vld [vmem:[#allocation92_spill] sm:$0xff] }
 0x385   :  { %8298 = vmatmul.mubr.bf16.gmra.mrb[108].mxu0 %v9637_v34  ;;  %v15838_v34 = vld [vmem:[#allocation34_spill] sm:$0xff] }
 0x386   :  { %8301 = vmatprep.mubr.bf16.mxu0 %v9638_v47  ;;  %v2727_v47 = vmul.f32 %v11834_v60, %v15838_v34 }
 0x388   :  { %v2791_v6 = vadd.f32 %v2727_v47, %v15842_v0 }
 0x38d   :  { %8302 = vmatmul.mubr.bf16.gmra.mrb[112].mxu0 %v9639_v57 }
 0x38e   :  { %8305 = vmatprep.mubr.bf16.mxu0 %v9640_v62  ;;  %v15839_v62 = vld [vmem:[#allocation23_spill] sm:$0xff] }
 0x395   :  { %8306 = vmatmul.mubr.bf16.gmra.mrb[116].mxu0 %v9641_v28  ;;  %v2724_v28 = vmul.f32 %v11834_v60, %v15839_v62 }
 0x396   :  { %8309 = vmatprep.mubr.bf16.mxu0 %v9642_v33  ;;  %v15840_v33 = vld [vmem:[#allocation22_spill] sm:$0xff] }
 0x39d   :  { %8310 = vmatmul.mubr.bf16.gmra.mrb[120].mxu0 %v9643_v48  ;;  %v2725_v48 = vmul.f32 %v11834_v60, %v15840_v33 }
 0x39e   :  { %8313 = vmatprep.mubr.bf16.mxu0 %v9644_v36  ;;  %v15841_v36 = vld [vmem:[#allocation43_spill] sm:$0xff] }
 0x3a5   :  { %8314 = vmatmul.mubr.bf16.gmra.mrb[124].mxu0 %v9645_v8  ;;  %v2790_v8 = vadd.f32 %v2726_v49, %v15841_v36  ;;  %v15850_v49 = vld [vmem:[#allocation74_spill] sm:$0xff] }
 0x3a6   :  { %8413 = vmatprep.mubr.bf16.mxu0 %v9646_v13  ;;  %v15852_v36 = vld [vmem:[#allocation58_spill] sm:$0xff] }
 0x400   :  { %v8255_v58 = vpop.f32.mrb[64].mxu0 }
 0x401   :  { %v2906_v55 = vpop.f32.mrb[65].mxu0  ;;  %v11848_v4 = vadd.f32 %v8255_v58, %v2786_v42  ;;  %v15843_v58 = vld [vmem:[#allocation31_spill] sm:$0xff]  ;;  %v15844_v42 = vld [vmem:[#allocation30_spill] sm:$0xff] }
 0x402   :  { %v8256_v35 = vpop.f32.mrb[66].mxu0  ;;  %v11852_v22 = vadd.f32 %v2906_v55, %v2784_v7  ;;  %v2788_v38 = vadd.f32 %v2724_v28, %v15843_v58  ;;  %v2789_v55 = vadd.f32 %v2725_v48, %v15844_v42  ;;  %v2730_v28 = vmul.f32 %v11834_v60, %v15845_v21  ;;  %v15851_v58 = vld [vmem:[#allocation59_spill] sm:$0xff] }
 0x403   :  { %v11850_v23 = vadd.f32 %v8256_v35, %v2787_v63  ;;  %v2909_v16 = vpop.f32.mrb[67].mxu0 }
 0x404   :  { %v11854_v30 = vadd.f32 %v2909_v16, %v2785_v2 }
 0x408   :  { %v8259_v57 = vpop.f32.mrb[68].mxu0 }
 0x409   :  { %v2922_v13 = vpop.f32.mrb[69].mxu0  ;;  %v11872_v63 = vadd.f32 %v8259_v57, %v2790_v8  ;;  %v2731_v57 = vmul.f32 %v11834_v60, %v15846_v15  ;;  %v15847_v8 = vld [vmem:[#allocation49_spill] sm:$0xff] }
 0x40a   :  { %v8260_v25 = vpop.f32.mrb[70].mxu0  ;;  %v11876_v2 = vadd.f32 %v2922_v13, %v2788_v38  ;;  %v15848_v13 = vld [vmem:[#allocation48_spill] sm:$0xff] }
 0x40b   :  { %v11874_v7 = vadd.f32 %v8260_v25, %v2791_v6  ;;  %v2925_v35 = vpop.f32.mrb[71].mxu0  ;;  %v2728_v6 = vmul.f32 %v11834_v60, %v15847_v8  ;;  %v2729_v38 = vmul.f32 %v11834_v60, %v15848_v13  ;;  %v15849_v25 = vld [vmem:[#allocation75_spill] sm:$0xff]  ;;  %v2795_v42 = vadd.f32 %v2731_v57, %v15850_v49 }
 0x40c   :  { %v11878_v16 = vadd.f32 %v2925_v35, %v2789_v55  ;;  %v2794_v55 = vadd.f32 %v2730_v28, %v15849_v25  ;;  %v15853_v49 = vld [vmem:[#allocation99_spill] sm:$0xff]  ;;  %v15859_v25 = vld [vmem:[#allocation93_spill] sm:$0xff] }
 0x40d   :  { %v2792_v47 = vadd.f32 %v2728_v6, %v15851_v58  ;;  %v2793_v21 = vadd.f32 %v2729_v38, %v15852_v36  ;;  %v2734_v6 = vmul.f32 %v11834_v60, %v15853_v49  ;;  %v15854_v58 = vld [vmem:[#allocation98_spill] sm:$0xff]  ;;  %v15858_v28 = vld [vmem:[#allocation107_spill] sm:$0xff] }
 0x410   :  { %v8263_v48 = vpop.f32.mrb[72].mxu0 }
 0x411   :  { %v2938_v35 = vpop.f32.mrb[73].mxu0  ;;  %v11896_v33 = vadd.f32 %v8263_v48, %v2794_v55  ;;  %v2735_v48 = vmul.f32 %v11834_v60, %v15854_v58 }
 0x412   :  { %v8264_v0 = vpop.f32.mrb[74].mxu0  ;;  %v11900_v34 = vadd.f32 %v2938_v35, %v2792_v47  ;;  %v15856_v47 = vld [vmem:[#allocation82_spill] sm:$0xff] }
 0x413   :  { %v11898_v15 = vadd.f32 %v8264_v0, %v2795_v42  ;;  %v2941_v62 = vpop.f32.mrb[75].mxu0  ;;  %v15855_v0 = vld [vmem:[#allocation83_spill] sm:$0xff]  ;;  %v2799_v36 = vadd.f32 %v2735_v48, %v15858_v28 }
 0x414   :  { %v11902_v8 = vadd.f32 %v2941_v62, %v2793_v21  ;;  %v2732_v42 = vmul.f32 %v11834_v60, %v15855_v0  ;;  %v2733_v21 = vmul.f32 %v11834_v60, %v15856_v47  ;;  %v15857_v62 = vld [vmem:[#allocation108_spill] sm:$0xff]  ;;  %v15861_v28 = vld [vmem:[#allocation15_spill] sm:$0xff] }
 0x415   :  { %v2798_v55 = vadd.f32 %v2734_v6, %v15857_v62  ;;  %v15866_v6 = vld [vmem:[#allocation20_spill] sm:$0xff]  ;;  %v15867_v62 = vld [vmem:[#allocation11_spill] sm:$0xff] }
 0x416   :  { %v2796_v57 = vadd.f32 %v2732_v42, %v15859_v25  ;;  %v2797_v49 = vadd.f32 %v2733_v21, %v15860_v40  ;;  %v2738_v42 = vmul.f32 %v11834_v60, %v15861_v28  ;;  %v15862_v25 = vld [vmem:[#allocation14_spill] sm:$0xff] }
 0x418   :  { %v8267_v38 = vpop.f32.mrb[76].mxu0 }
 0x419   :  { %v2954_v35 = vpop.f32.mrb[77].mxu0  ;;  %v11920_v29 = vadd.f32 %v8267_v38, %v2798_v55  ;;  %v2739_v38 = vmul.f32 %v11834_v60, %v15862_v25 }
 0x41a   :  { %v8268_v13 = vpop.f32.mrb[78].mxu0  ;;  %v11924_v12 = vadd.f32 %v2954_v35, %v2796_v57  ;;  %v15864_v57 = vld [vmem:[#allocation6_spill] sm:$0xff] }
 0x41b   :  { %v11922_v58 = vadd.f32 %v8268_v13, %v2799_v36  ;;  %v2957_v56 = vpop.f32.mrb[79].mxu0  ;;  %v15863_v36 = vld [vmem:[#allocation4_spill] sm:$0xff]  ;;  %v2803_v40 = vadd.f32 %v2739_v38, %v15866_v6  ;;  %v15871_v38 = vld [vmem:[#allocation25_spill] sm:$0xff] }
 0x41c   :  { %v11926_v0 = vadd.f32 %v2957_v56, %v2797_v49  ;;  %v2736_v13 = vmul.f32 %v11834_v60, %v15863_v36  ;;  %v2737_v56 = vmul.f32 %v11834_v60, %v15864_v57  ;;  %v15865_v49 = vld [vmem:[#allocation21_spill] sm:$0xff]  ;;  %v2742_v57 = vmul.f32 %v11834_v60, %v15869_v59 }
 0x41d   :  { %v2802_v55 = vadd.f32 %v2738_v42, %v15865_v49  ;;  %v2743_v42 = vmul.f32 %v11834_v60, %v15870_v14 }
 0x41e   :  { %v2800_v48 = vadd.f32 %v2736_v13, %v15867_v62  ;;  %v2801_v28 = vadd.f32 %v2737_v56, %v15868_v24  ;;  %v2740_v13 = vmul.f32 %v11834_v60, %v15871_v38  ;;  %v15872_v62 = vld [vmem:[#allocation24_spill] sm:$0xff] }
 0x41f   :  { %v2741_v56 = vmul.f32 %v11834_v60, %v15872_v62  ;;  %v2752_v62 = vmul.f32 %v11834_v60, %v15877_v61  ;;  %v15888_v61 = vld [vmem:[#allocation29_spill] sm:$0xff] }
 0x420   :  { %v8271_v21 = vpop.f32.mrb[80].mxu0 }
 0x421   :  { %v2970_v35 = vpop.f32.mrb[81].mxu0  ;;  %v3179_v51 = vadd.f32 %v8271_v21, %v2802_v55  ;;  %v15873_v21 = vld [vmem:[#allocation45_spill] sm:$0xff] }
 0x422   :  { %v8272_v47 = vpop.f32.mrb[82].mxu0  ;;  %v3177_v41 = vadd.f32 %v2970_v35, %v2800_v48  ;;  %v15874_v48 = vld [vmem:[#allocation44_spill] sm:$0xff] }
 0x423   :  { %v3180_v18 = vadd.f32 %v8272_v47, %v2803_v40  ;;  %v2973_v25 = vpop.f32.mrb[83].mxu0  ;;  %v2806_v40 = vadd.f32 %v2742_v57, %v15873_v21  ;;  %v2753_v57 = vmul.f32 %v11834_v60, %v15878_v54  ;;  %v15879_v21 = vld [vmem:[#allocation67_spill] sm:$0xff] }
 0x424   :  { %v3178_v17 = vadd.f32 %v2973_v25, %v2801_v28  ;;  %v2807_v25 = vadd.f32 %v2743_v42, %v15874_v48  ;;  %v2746_v42 = vmul.f32 %v11834_v60, %v15879_v21  ;;  %v15887_v21 = vld [vmem:[#allocation76_spill] sm:$0xff] }
 0x425   :  { %v3234_v11 = vpack.c.bf16 %v3180_v18, %v3179_v51  ;;  %v15875_v18 = vld [vmem:[#allocation33_spill] sm:$0xff]  ;;  %v15876_v51 = vld [vmem:[#allocation32_spill] sm:$0xff] }
 0x426   :  { %v3233_v36 = vpack.c.bf16 %v3178_v17, %v3177_v41  ;;  %v2804_v17 = vadd.f32 %v2740_v13, %v15875_v18  ;;  %v2805_v28 = vadd.f32 %v2741_v56, %v15876_v51  ;;  %v15880_v13 = vld [vmem:[#allocation66_spill] sm:$0xff] }
 0x427   :  { %v2747_v18 = vmul.f32 %v11834_v60, %v15880_v13  ;;  %v3290_v51 = vmul.bf16 1056980736, %v3234_v11 }
 0x428   :  { %v8275_v49 = vpop.f32.mrb[84].mxu0  ;;  %v3289_v50 = vmul.bf16 1056980736, %v3233_v36 }
 0x429   :  { %v2986_v47 = vpop.f32.mrb[85].mxu0  ;;  %v3183_v55 = vadd.f32 %v8275_v49, %v2806_v40  ;;  %v15881_v49 = vld [vmem:[#allocation51_spill] sm:$0xff]  ;;  %v2811_v54 = vadd.f32 %v2747_v18, %v15887_v21 }
 0x42a   :  { %v8276_v41 = vpop.f32.mrb[86].mxu0  ;;  %v3181_v59 = vadd.f32 %v2986_v47, %v2804_v17  ;;  %v2744_v40 = vmul.f32 %v11834_v60, %v15881_v49  ;;  %v15882_v47 = vld [vmem:[#allocation50_spill] sm:$0xff]  ;;  %v2754_v49 = vmul.f32 %v11834_v60, %v15888_v61  ;;  %v15909_v61 = vld [vmem:[#allocation95_spill] sm:$0xff] }
 0x42b   :  { %v3184_v35 = vadd.f32 %v8276_v41, %v2807_v25  ;;  %v2989_v14 = vpop.f32.mrb[87].mxu0  ;;  %v15884_v25 = vld [vmem:[#allocation26_spill] sm:$0xff]  ;;  %v15885_v41 = vpack.c.bf16 %v11850_v23, %v11848_v4 }
 0x42c   :  { %v3182_v24 = vadd.f32 %v2989_v14, %v2805_v28  ;;  %v2745_v14 = vmul.f32 %v11834_v60, %v15882_v47  ;;  %v11972_v17 = vadd.f32 %v2753_v57, %v15884_v25  ;;  %v15889_v47 = vld [vmem:[#allocation61_spill] sm:$0xff]  ;;  %v15891_v57 = vld [vmem:[#allocation28_spill] sm:$0xff] }
 0x42d   :  { %v3236_v6 = vpack.c.bf16 %v3184_v35, %v3183_v55  ;;  %v3258_v28 = vmul.bf16 1056980736, %v15885_v41  ;;  %v15886_v55 = vld [vmem:[#allocation77_spill] sm:$0xff]  ;;  %v2808_v48 = vadd.f32 %v2744_v40, %v15889_v47  ;;  %v2755_v25 = vmul.f32 %v11834_v60, %v15891_v57  ;;  %v15892_v41 = vld [vmem:[#allocation39_spill] sm:$0xff]  ;;  %v15893_v40 = vld [vmem:[#allocation38_spill] sm:$0xff] }
 0x42e   :  { %v3235_v38 = vpack.c.bf16 %v3182_v24, %v3181_v59  ;;  %v15883_v59 = vld [vmem:[#allocation27_spill] sm:$0xff]  ;;  %v2810_v35 = vadd.f32 %v2746_v42, %v15886_v55  ;;  %v11990_v18 = vadd.f32 %v2754_v49, %v15892_v41 }
 0x42f   :  { %v11969_v24 = vadd.f32 %v2752_v62, %v15883_v59  ;;  %v15890_v59 = vld [vmem:[#allocation60_spill] sm:$0xff]  ;;  %v11997_v47 = vadd.f32 %v2755_v25, %v15893_v40  ;;  %9006 = vtanh.bf16 %v3258_v28  ;;  %v15898_v25 = vld [vmem:[#allocation46_spill] sm:$0xff] }
 0x430   :  { %v8279_v56 = vpop.f32.mrb[88].mxu0  ;;  %v2809_v46 = vadd.f32 %v2745_v14, %v15890_v59  ;;  %v15894_v14 = vld [vmem:[#allocation41_spill] sm:$0xff]  ;;  %9008 = vtanh.bf16 %v3290_v51  ;;  %v2769_v28 = vmul.f32 %v11834_v60, %v15898_v25  ;;  %v15906_v40 = vld [vmem:[#allocation80_spill] sm:$0xff] }
 0x431   :  { %v3002_v13 = vpop.f32.mrb[89].mxu0  ;;  %v11985_v4 = vadd.f32 %v8279_v56, %v2810_v35  ;;  %v2756_v59 = vmul.f32 %v11834_v60, %v15894_v14  ;;  %v15896_v35 = vld [vmem:[#allocation47_spill] sm:$0xff]  ;;  %9010 = vtanh.bf16 %v3289_v50  ;;  %v3292_v14 = vmul.bf16 1056980736, %v3236_v6 }
 0x432   :  { %v8280_v62 = vpop.f32.mrb[90].mxu0  ;;  %v11992_v21 = vadd.f32 %v3002_v13, %v2808_v48  ;;  %v2768_v49 = vmul.f32 %v11834_v60, %v15896_v35  ;;  %v15905_v50 = vpack.c.bf16 %v11874_v7, %v11872_v63  ;;  %v15908_v6 = vld [vmem:[#allocation55_spill] sm:$0xff]  ;;  %v15911_v7 = vld [vmem:[#allocation57_spill] sm:$0xff] }
 0x433   :  { %v11987_v23 = vadd.f32 %v8280_v62, %v2811_v54  ;;  %v3005_v42 = vpop.f32.mrb[91].mxu0  ;;  %v15895_v54 = vld [vmem:[#allocation40_spill] sm:$0xff]  ;;  %v15899_v62 = vld [vmem:[#allocation101_spill] sm:$0xff] }
 0x434   :  { %v11994_v11 = vadd.f32 %v3005_v42, %v2809_v46  ;;  %v2757_v56 = vmul.f32 %v11834_v60, %v15895_v54  ;;  %v15897_v46 = vpack.c.bf16 %v11854_v30, %v11852_v22  ;;  %v15901_v54 = vld [vmem:[#allocation53_spill] sm:$0xff]  ;;  %v12034_v57 = vadd.f32 %v2768_v49, %v15908_v6 }
 0x435   :  { %v3238_v36 = vpack.c.bf16 %v11987_v23, %v11985_v4  ;;  %v2750_v4 = vmul.f32 %v11834_v60, %v15899_v62  ;;  %v15900_v23 = vld [vmem:[#allocation100_spill] sm:$0xff]  ;;  %v12019_v35 = vadd.f32 %v2756_v59, %v15901_v54  ;;  %v15902_v30 = vld [vmem:[#allocation85_spill] sm:$0xff]  ;;  %v3260_v62 = vmul.bf16 1056980736, %v15905_v50  ;;  %v15912_v50 = vld [vmem:[#allocation54_spill] sm:$0xff] }
 0x436   :  { %v3257_v48 = vmul.bf16 1056980736, %v15897_v46  ;;  %v3237_v13 = vpack.c.bf16 %v11994_v11, %v11992_v21  ;;  %v2751_v42 = vmul.f32 %v11834_v60, %v15900_v23  ;;  %v2748_v51 = vmul.f32 %v11834_v60, %v15902_v30  ;;  %v15903_v46 = vld [vmem:[#allocation84_spill] sm:$0xff]  ;;  %v15907_v59 = vld [vmem:[#allocation81_spill] sm:$0xff] }
 0x437   :  { %v2749_v21 = vmul.f32 %v11834_v60, %v15903_v46  ;;  %v15904_v11 = vld [vmem:[#allocation52_spill] sm:$0xff]  ;;  %v2814_v23 = vadd.f32 %v2750_v4, %v15906_v40  ;;  %v3291_v30 = vmul.bf16 1056980736, %v3235_v38  ;;  %v2758_v4 = vmul.f32 %v11834_v60, %v15911_v7  ;;  %v15927_v7 = vld [vmem:[#allocation78_spill] sm:$0xff] }
 0x438   :  { %v8283_v22 = vpop.f32.mrb[92].mxu0  ;;  %v12026_v25 = vadd.f32 %v2757_v56, %v15904_v11  ;;  %v2815_v54 = vadd.f32 %v2751_v42, %v15907_v59  ;;  %9012 = vtanh.bf16 %v3257_v48  ;;  %v2812_v55 = vadd.f32 %v2748_v51, %v15909_v61  ;;  %v15913_v48 = vld [vmem:[#allocation56_spill] sm:$0xff] }
 0x439   :  { %v3018_v41 = vpop.f32.mrb[93].mxu0  ;;  %v2813_v56 = vadd.f32 %v2749_v21, %v15910_v1  ;;  %v12038_v11 = vadd.f32 %v8283_v22, %v2814_v23  ;;  %v12045_v42 = vadd.f32 %v2769_v28, %v15912_v50  ;;  %9014 = vtanh.bf16 %v3292_v14  ;;  %v15917_v21 = vld [vmem:[#allocation62_spill] sm:$0xff] }
 0x43a   :  { %v8284_v46 = vpop.f32.mrb[94].mxu0  ;;  %v12047_v49 = vadd.f32 %v3018_v41, %v2812_v55  ;;  %v2759_v51 = vmul.f32 %v11834_v60, %v15913_v48  ;;  %9016 = vtanh.bf16 %v3260_v62  ;;  %v15916_v55 = vpack.c.bf16 %v11898_v15, %v11896_v33  ;;  %v9007_v33 = vpop.eup %9006  ;;  %v15923_v48 = vld [vmem:[#allocation71_spill] sm:$0xff]  ;;  %v15924_v50 = vld [vmem:[#allocation70_spill] sm:$0xff] }
 0x43b   :  { %v12040_v32 = vadd.f32 %v8284_v46, %v2815_v54  ;;  %v3021_v63 = vpop.f32.mrb[95].mxu0  ;;  %v15914_v54 = vpack.c.bf16 %v11878_v16, %v11876_v2  ;;  %v15915_v46 = vld [vmem:[#allocation63_spill] sm:$0xff]  ;;  %9018 = vtanh.bf16 %v3291_v30  ;;  %v2771_v62 = vmul.f32 %v11834_v60, %v15917_v21 }
 0x43c   :  { %v12049_v38 = vadd.f32 %v3021_v63, %v2813_v56  ;;  %v2770_v28 = vmul.f32 %v11834_v60, %v15915_v46  ;;  %v3262_v41 = vmul.bf16 1056980736, %v15916_v55  ;;  %v15918_v2 = vpack.c.bf16 %v11902_v8, %v11900_v34  ;;  %v15919_v56 = vld [vmem:[#allocation69_spill] sm:$0xff]  ;;  %v15921_v46 = vld [vmem:[#allocation72_spill] sm:$0xff]  ;;  %v15925_v8 = vld [vmem:[#allocation79_spill] sm:$0xff] }
 0x43d   :  { %v3259_v23 = vmul.bf16 1056980736, %v15914_v54  ;;  %v12071_v63 = vadd.f32 %v2758_v4, %v15919_v56  ;;  %v15920_v54 = vld [vmem:[#allocation68_spill] sm:$0xff]  ;;  %v2761_v15 = vmul.f32 %v11834_v60, %v15921_v46  ;;  %v15922_v55 = vld [vmem:[#allocation73_spill] sm:$0xff]  ;;  %v12084_v34 = vadd.f32 %v2771_v62, %v15924_v50  ;;  %v15926_v46 = vld [vmem:[#allocation86_spill] sm:$0xff] }
 0x43e   :  { %v3261_v16 = vmul.bf16 1056980736, %v15918_v2  ;;  %v12074_v22 = vadd.f32 %v2759_v51, %v15920_v54  ;;  %v2760_v14 = vmul.f32 %v11834_v60, %v15922_v55  ;;  %v12081_v21 = vadd.f32 %v2770_v28, %v15923_v48  ;;  %v9009_v51 = vpop.eup %9008  ;;  %v15928_v50 = vld [vmem:[#allocation91_spill] sm:$0xff] }
 0x43f   :  { %v12088_v4 = vmul.f32 %v11834_v60, %v15925_v8  ;;  %9020 = vtanh.bf16 %v3259_v23  ;;  %v3294_v2 = vmul.bf16 1056980736, %v3238_v36  ;;  %v12091_v56 = vadd.f32 %v2761_v15, %v15926_v46  ;;  %v9011_v28 = vpop.eup %9010  ;;  %v15929_v8 = vld [vmem:[#allocation87_spill] sm:$0xff] }
 0x440   :  { %v8287_v30 = vpop.f32.mrb[96].mxu0  ;;  %v12095_v55 = vmul.f32 %v11834_v60, %v15927_v7  ;;  %9022 = vtanh.bf16 %v3262_v41  ;;  %v3293_v48 = vmul.bf16 1056980736, %v3237_v13  ;;  %v2762_v1 = vmul.f32 %v11834_v60, %v15928_v50 }
 0x441   :  { %v3034_v54 = vpop.f32.mrb[97].mxu0  ;;  %v12100_v61 = vadd.f32 %v2760_v14, %v15929_v8  ;;  %9024 = vtanh.bf16 %v3261_v16  ;;  %v3195_v36 = vadd.f32 %v8287_v30, %v11990_v18  ;;  %v2763_v46 = vmul.f32 %v11834_v60, %v15808_v53 }
 0x442   :  { %v8288_v62 = vpop.f32.mrb[98].mxu0  ;;  %v3306_v7 = vmul.bf16 1056980736, %v9009_v51  ;;  %v3193_v41 = vadd.f32 %v3034_v54, %v11969_v24  ;;  %v12109_v6 = vadd.f32 %v2762_v1, %v15809_v3  ;;  %v3274_v14 = vmul.bf16 1056980736, %v9007_v33  ;;  %v15932_v33 = vld [vmem:[#allocation106_spill] sm:$0xff] }
 0x443   :  { %v3196_v23 = vadd.f32 %v8288_v62, %v11997_v47  ;;  %v3037_v15 = vpop.f32.mrb[99].mxu0  ;;  %v9013_v50 = vpop.eup %9012  ;;  %v3305_v8 = vmul.bf16 1056980736, %v9011_v28  ;;  %9026 = vtanh.bf16 %v3294_v2  ;;  %v15930_v47 = vpack.c.bf16 %v11922_v58, %v11920_v29  ;;  %v15933_v62 = vld [vmem:[#allocation105_spill] sm:$0xff] }
 0x444   :  { %v3194_v13 = vadd.f32 %v3037_v15, %v11972_v17  ;;  %9028 = vtanh.bf16 %v3293_v48  ;;  %v12115_v51 = vadd.f32 %v2763_v46, %v15813_v39  ;;  %v9015_v24 = vpop.eup %9014  ;;  %v15931_v17 = vpack.c.bf16 %v11926_v0, %v11924_v12  ;;  %v15934_v0 = vld [vmem:[#allocation115_spill] sm:$0xff] }
 0x445   :  { %v3242_v16 = vpack.c.bf16 %v3196_v23, %v3195_v36  ;;  %v3264_v18 = vmul.bf16 1056980736, %v15930_v47  ;;  %v2766_v54 = vmul.f32 %v11834_v60, %v10986_v5  ;;  %v2764_v2 = vmul.f32 %v11834_v60, %v15932_v33  ;;  %v9017_v28 = vpop.eup %9016 }
 0x446   :  { %v3241_v30 = vpack.c.bf16 %v3194_v13, %v3193_v41  ;;  %v3263_v1 = vmul.bf16 1056980736, %v15931_v17  ;;  %v3273_v29 = vmul.bf16 1056980736, %v9013_v50  ;;  %v3314_v58 = vadd.bf16 1056980736, %v3306_v7  ;;  %v9019_v36 = vpop.eup %9018 }
 0x447   :  { %9030 = vtanh.bf16 %v3242_v16  ;;  %v2765_v46 = vmul.f32 %v11834_v60, %v15933_v62  ;;  %v3282_v23 = vadd.bf16 1056980736, %v3274_v14  ;;  %v3313_v15 = vadd.bf16 1056980736, %v3305_v8  ;;  %v15935_v13 = vld [vmem:[#allocation110_spill] sm:$0xff]  ;;  %v15937_v17 = vld [vmem:[#allocation112_spill] sm:$0xff] }
 0x448   :  { %9032 = vtanh.bf16 %v3241_v30  ;;  %v8291_v48 = vpop.f32.mrb[100].mxu0  ;;  %v12127_v41 = vadd.f32 %v2766_v54, %v15934_v0  ;;  %v12130_v16 = vadd.f32 %v2764_v2, %v15935_v13  ;;  %v3308_v47 = vmul.bf16 1056980736, %v9015_v24 }
 0x449   :  { %v3050_v12 = vpop.f32.mrb[101].mxu0  ;;  %9034 = vtanh.bf16 %v3264_v18  ;;  %v15936_v7 = vpack.c.bf16 %v12040_v32, %v12038_v11  ;;  %v12137_v62 = vmul.f32 %v11834_v60, %v15937_v17  ;;  %v3276_v14 = vmul.bf16 1056980736, %v9017_v28 }
 0x44a   :  { %v8292_v30 = vpop.f32.mrb[102].mxu0  ;;  %9036 = vtanh.bf16 %v3263_v1  ;;  %v3199_v8 = vadd.f32 %v8291_v48, %v12071_v63  ;;  %v12141_v2 = vpop.eup %9020  ;;  %v3379_v18 = vunpack.c.l.bf16 %v3314_v58  ;;  %v3307_v24 = vmul.bf16 1056980736, %v9019_v36 }
 0x44b   :  { %v3296_v50 = vmul.bf16 1056980736, %v15936_v7  ;;  %v3200_v54 = vadd.f32 %v8292_v30, %v12074_v22  ;;  %v3053_v0 = vpop.f32.mrb[103].mxu0  ;;  %v3197_v13 = vadd.f32 %v3050_v12, %v12019_v35  ;;  %v12145_v11 = vpop.eup %9022  ;;  %v3380_v7 = vunpack.c.h.bf16 %v3314_v58  ;;  %v3363_v22 = vld [vmem:[#allocation3 + $0x10] sm:$0xff] }
 0x44c   :  { %v3198_v32 = vadd.f32 %v3053_v0, %v12026_v25  ;;  %v3377_v17 = vunpack.c.l.bf16 %v3313_v15  ;;  %v15938_v1 = vpack.c.bf16 %v12049_v38, %v12047_v49  ;;  %v12150_v48 = vpop.eup %9024  ;;  %v3378_v30 = vunpack.c.h.bf16 %v3313_v15  ;;  %v3364_v49 = vld [vmem:[#allocation3 + $0x18] sm:$0xff] }
 0x44d   :  { %v3244_v63 = vpack.c.bf16 %v3200_v54, %v3199_v8  ;;  %v12152_v33 = vadd.bf16 1056980736, %v3308_v47  ;;  %9038 = vtanh.bf16 %v3296_v50  ;;  %v3281_v35 = vadd.bf16 1056980736, %v3273_v29  ;;  %v15939_v54 = vld [vmem:[#allocation109_spill] sm:$0xff] }
 0x44e   :  { %v3295_v28 = vmul.bf16 1056980736, %v15938_v1  ;;  %v3243_v36 = vpack.c.bf16 %v3198_v32, %v3197_v13  ;;  %v12154_v12 = vadd.bf16 1056980736, %v3276_v14  ;;  %v3275_v25 = vmul.bf16 1056980736, %v12141_v2  ;;  %v9027_v58 = vpop.eup %9026 }
 0x44f   :  { %9040 = vtanh.bf16 %v3244_v63  ;;  %v3278_v0 = vmul.bf16 1056980736, %v12145_v11  ;;  %v12158_v38 = vadd.bf16 1056980736, %v3307_v24  ;;  %v12161_v15 = vadd.f32 %v2765_v46, %v15939_v54  ;;  %v9029_v47 = vpop.eup %9028  ;;  %v3361_v14 = vld [vmem:[#allocation3] sm:$0xff]  ;;  %v3362_v32 = vld [vmem:[#allocation3 + $0x8] sm:$0xff] }
 0x450   :  { %9042 = vtanh.bf16 %v3243_v36  ;;  %v8295_v8 = vpop.f32.mrb[104].mxu0  ;;  %v3277_v13 = vmul.bf16 1056980736, %v12150_v48  ;;  %v3395_v29 = vmul.f32 %v3379_v18, %v3363_v22  ;;  %v3396_v50 = vmul.f32 %v3380_v7, %v3364_v49 }
 0x451   :  { %9044 = vtanh.bf16 %v3295_v28  ;;  %v3066_v2 = vpop.f32.mrb[105].mxu0  ;;  %v3393_v63 = vmul.f32 %v3377_v17, %v3361_v14  ;;  %v3394_v11 = vmul.f32 %v3378_v30, %v3362_v32  ;;  %v3383_v24 = vunpack.c.l.bf16 %v12152_v33 }
 0x452   :  { %v9031_v1 = vpop.eup %9030  ;;  %v3384_v36 = vunpack.c.h.bf16 %v12152_v33  ;;  %v8296_v5 = vpop.f32.mrb[106].mxu0  ;;  %v3310_v46 = vmul.bf16 1056980736, %v9027_v58  ;;  %v3203_v3 = vadd.f32 %v8295_v8, %v12109_v6  ;;  %v3381_v48 = vunpack.c.l.bf16 %v12158_v38 }
 0x453   :  { %v9033_v39 = vpop.eup %9032  ;;  %v3410_v54 = vmul.bf16 %v9031_v1, %v3282_v23  ;;  %v3204_v18 = vadd.f32 %v8296_v5, %v12115_v51  ;;  %v3069_v7 = vpop.f32.mrb[107].mxu0  ;;  %v3201_v22 = vadd.f32 %v3066_v2, %v12100_v61  ;;  %v3382_v33 = vunpack.c.h.bf16 %v12158_v38  ;;  %v3368_v2 = vld [vmem:[#allocation3 + $0x38] sm:$0xff]  ;;  %v3365_v38 = vld [vmem:[#allocation3 + $0x20] sm:$0xff] }
 0x454   :  { %v3409_v28 = vmul.bf16 %v9033_v39, %v3281_v35  ;;  %v3202_v17 = vadd.f32 %v3069_v7, %v12091_v56  ;;  %v12171_v30 = vpop.eup %9034  ;;  %v3309_v6 = vmul.bf16 1056980736, %v9029_v47  ;;  %v12176_v32 = vadd.bf16 1056980736, %v3310_v46  ;;  %v3367_v35 = vld [vmem:[#allocation3 + $0x30] sm:$0xff]  ;;  %v3366_v7 = vld [vmem:[#allocation3 + $0x28] sm:$0xff] }
 0x455   :  { %v3419_v49 = vunpack.c.l.bf16 %v3410_v54  ;;  %v3420_v14 = vunpack.c.h.bf16 %v3410_v54  ;;  %v3246_v58 = vpack.c.bf16 %v3204_v18, %v3203_v3  ;;  %v12174_v23 = vpop.eup %9036  ;;  %v3283_v56 = vadd.bf16 1056980736, %v3275_v25 }
 0x456   :  { %v3417_v8 = vunpack.c.l.bf16 %v3409_v28  ;;  %v3418_v5 = vunpack.c.h.bf16 %v3409_v28  ;;  %v3245_v51 = vpack.c.bf16 %v3202_v17, %v3201_v22  ;;  %v12186_v18 = vadd.bf16 1056980736, %v3278_v0 }
 0x457   :  { %v12178_v39 = vadd.f32 %v3419_v49, %v3395_v29  ;;  %v12180_v61 = vadd.f32 %v3420_v14, %v3396_v50  ;;  %9046 = vtanh.bf16 %v3246_v58  ;;  %v12188_v46 = vadd.bf16 1056980736, %v3277_v13  ;;  %v15940_v50 = vld [vmem:[#allocation114_spill] sm:$0xff] }
 0x458   :  { %v12182_v1 = vadd.f32 %v3417_v8, %v3393_v63  ;;  %v12184_v3 = vadd.f32 %v3418_v5, %v3394_v11  ;;  %9048 = vtanh.bf16 %v3245_v51  ;;  %v8299_v54 = vpop.f32.mrb[108].mxu0  ;;  %v9039_v47 = vpop.eup %9038  ;;  %v3399_v29 = vmul.f32 %v3383_v24, %v3367_v35 }
 0x459   :  { %3499 = vst.msk [vmem:[#allocation3 + $0x10] sm:$0xff] %vm29_vm0, %v12178_v39  ;;  %3500 = vst.msk [vmem:[#allocation3 + $0x18] sm:$0xff] %vm29_vm0, %v12180_v61  ;;  %v3082_v25 = vpop.f32.mrb[109].mxu0  ;;  %v2831_v63 = vadd.f32 %v12137_v62, %v15940_v50  ;;  %v3400_v28 = vmul.f32 %v3384_v36, %v3368_v2  ;;  %v3397_v22 = vmul.f32 %v3381_v48, %v3365_v38  ;;  %v3317_v0 = vadd.bf16 1056980736, %v3309_v6 }
 0x45a   :  { %v9041_v11 = vpop.eup %9040  ;;  %v3398_v17 = vmul.f32 %v3382_v33, %v3366_v7  ;;  %3497 = vst.msk [vmem:[#allocation3] sm:$0xff] %vm29_vm0, %v12182_v1  ;;  %3498 = vst.msk [vmem:[#allocation3 + $0x8] sm:$0xff] %vm29_vm0, %v12184_v3  ;;  %v8300_v13 = vpop.f32.mrb[110].mxu0  ;;  %v3387_v49 = vunpack.c.l.bf16 %v12176_v32  ;;  %v3207_v58 = vadd.f32 %v8299_v54, %v12127_v41  ;;  %v3388_v48 = vunpack.c.h.bf16 %v12176_v32  ;;  %v3371_v32 = vld [vmem:[#allocation3 + $0x50] sm:$0xff] }
 0x45b   :  { %v9043_v24 = vpop.eup %9042  ;;  %v3412_v14 = vmul.bf16 %v9041_v11, %v12154_v12  ;;  %v3208_v62 = vadd.f32 %v8300_v13, %v2831_v63  ;;  %v3085_v8 = vpop.f32.mrb[111].mxu0  ;;  %v3205_v6 = vadd.f32 %v3082_v25, %v12130_v16  ;;  %v3312_v51 = vmul.bf16 1056980736, %v9039_v47  ;;  %v3369_v13 = vld [vmem:[#allocation3 + $0x40] sm:$0xff] }
 0x45c   :  { %v9045_v36 = vpop.eup %9044  ;;  %v3411_v33 = vmul.bf16 %v9043_v24, %v3283_v56  ;;  %v3206_v5 = vadd.f32 %v3085_v8, %v12161_v15  ;;  %v3385_v7 = vunpack.c.l.bf16 %v3317_v0  ;;  %v3372_v56 = vld [vmem:[#allocation3 + $0x58] sm:$0xff]  ;;  %v3386_v63 = vunpack.c.h.bf16 %v3317_v0 }
 0x45d   :  { %v3423_v35 = vunpack.c.l.bf16 %v3412_v14  ;;  %v3424_v2 = vunpack.c.h.bf16 %v3412_v14  ;;  %v3248_v38 = vpack.c.bf16 %v3208_v62, %v3207_v58  ;;  %v3311_v11 = vmul.bf16 1056980736, %v9045_v36  ;;  %v3370_v62 = vld [vmem:[#allocation3 + $0x48] sm:$0xff] }
 0x45e   :  { %v3421_v50 = vunpack.c.l.bf16 %v3411_v33  ;;  %v3422_v53 = vunpack.c.h.bf16 %v3411_v33  ;;  %v3247_v12 = vpack.c.bf16 %v3206_v5, %v3205_v6  ;;  %v3280_v25 = vmul.bf16 1056980736, %v12171_v30 }
 0x45f   :  { %v12206_v41 = vadd.f32 %v3423_v35, %v3399_v29  ;;  %v12208_v54 = vadd.f32 %v3424_v2, %v3400_v28  ;;  %9050 = vtanh.bf16 %v3248_v38  ;;  %v3320_v24 = vadd.bf16 1056980736, %v3312_v51 }
 0x460   :  { %v12210_v16 = vadd.f32 %v3421_v50, %v3397_v22  ;;  %v12212_v15 = vadd.f32 %v3422_v53, %v3398_v17  ;;  %9052 = vtanh.bf16 %v3247_v12  ;;  %v8303_v47 = vpop.f32.mrb[112].mxu0  ;;  %v2774_v28 = vmul.f32 %v11834_v60, %v15818_v43 }
 0x461   :  { %3503 = vst.msk [vmem:[#allocation3 + $0x30] sm:$0xff] %vm29_vm0, %v12206_v41  ;;  %3504 = vst.msk [vmem:[#allocation3 + $0x38] sm:$0xff] %vm29_vm0, %v12208_v54  ;;  %v3098_v29 = vpop.f32.mrb[113].mxu0  ;;  %v12223_v53 = vadd.f32 %v12088_v4, %v15819_v10  ;;  %v3279_v22 = vmul.bf16 1056980736, %v12174_v23  ;;  %v3403_v30 = vmul.f32 %v3387_v49, %v3371_v32  ;;  %v3404_v17 = vmul.f32 %v3388_v48, %v3372_v56  ;;  %v3375_v56 = vld [vmem:[#allocation3 + $0x70] sm:$0xff] }
 0x462   :  { %v9047_v50 = vpop.eup %9046  ;;  %v3401_v0 = vmul.f32 %v3385_v7, %v3369_v13  ;;  %3501 = vst.msk [vmem:[#allocation3 + $0x20] sm:$0xff] %vm29_vm0, %v12210_v16  ;;  %3502 = vst.msk [vmem:[#allocation3 + $0x28] sm:$0xff] %vm29_vm0, %v12212_v15  ;;  %v8304_v14 = vpop.f32.mrb[114].mxu0  ;;  %v3319_v8 = vadd.bf16 1056980736, %v3311_v11  ;;  %v3211_v4 = vadd.f32 %v8303_v47, %v12081_v21  ;;  %v3402_v49 = vmul.f32 %v3386_v63, %v3370_v62 }
 0x463   :  { %v9049_v58 = vpop.eup %9048  ;;  %v3414_v36 = vmul.bf16 %v9047_v50, %v12186_v18  ;;  %v3212_v33 = vadd.f32 %v8304_v14, %v12084_v34  ;;  %v3101_v23 = vpop.f32.mrb[115].mxu0  ;;  %v3209_v6 = vadd.f32 %v3098_v29, %v12034_v57  ;;  %v3391_v51 = vunpack.c.l.bf16 %v3320_v24  ;;  %v3376_v29 = vld [vmem:[#allocation3 + $0x78] sm:$0xff] }
 0x464   :  { %v3413_v48 = vmul.bf16 %v9049_v58, %v12188_v46  ;;  %v3210_v5 = vadd.f32 %v3101_v23, %v12045_v42  ;;  %v3392_v7 = vunpack.c.h.bf16 %v3320_v24  ;;  %v3389_v32 = vunpack.c.l.bf16 %v3319_v8  ;;  %v3374_v23 = vld [vmem:[#allocation3 + $0x68] sm:$0xff] }
 0x465   :  { %v3427_v35 = vunpack.c.l.bf16 %v3414_v36  ;;  %v3428_v2 = vunpack.c.h.bf16 %v3414_v36  ;;  %v3250_v38 = vpack.c.bf16 %v3212_v33, %v3211_v4  ;;  %v2775_v46 = vmul.f32 %v11834_v60, %v10729_v45  ;;  %v3373_v4 = vld [vmem:[#allocation3 + $0x60] sm:$0xff] }
 0x466   :  { %v3425_v12 = vunpack.c.l.bf16 %v3413_v48  ;;  %v3426_v11 = vunpack.c.h.bf16 %v3413_v48  ;;  %v3249_v18 = vpack.c.bf16 %v3210_v5, %v3209_v6  ;;  %v3390_v57 = vunpack.c.h.bf16 %v3319_v8 }
 0x467   :  { %v12236_v21 = vadd.f32 %v3427_v35, %v3403_v30  ;;  %v12238_v34 = vadd.f32 %v3428_v2, %v3404_v17  ;;  %v2837_v13 = vadd.f32 %v12095_v55, %v15817_v9  ;;  %v3288_v24 = vadd.bf16 1056980736, %v3280_v25 }
 0x468   :  { %v12242_v63 = vadd.f32 %v3425_v12, %v3401_v0  ;;  %v12244_v42 = vadd.f32 %v3426_v11, %v3402_v49  ;;  %v8307_v47 = vpop.f32.mrb[116].mxu0  ;;  %v3330_v50 = vmul.bf16 1056980736, %v3250_v38  ;;  %v2838_v30 = vadd.f32 %v2774_v28, %v10833_v26  ;;  %v15941_v0 = vld [vmem:[#allocation104_spill] sm:$0xff] }
 0x469   :  { %3507 = vst.msk [vmem:[#allocation3 + $0x50] sm:$0xff] %vm29_vm0, %v12236_v21  ;;  %3508 = vst.msk [vmem:[#allocation3 + $0x58] sm:$0xff] %vm29_vm0, %v12238_v34  ;;  %v3114_v17 = vpop.f32.mrb[117].mxu0  ;;  %v2839_v14 = vadd.f32 %v2775_v46, %v15941_v0  ;;  %v3287_v62 = vadd.bf16 1056980736, %v3279_v22  ;;  %v3407_v8 = vmul.f32 %v3391_v51, %v3375_v56  ;;  %v3408_v36 = vmul.f32 %v3392_v7, %v3376_v29 }
 0x46a   :  { %v9051_v58 = vpop.eup %9050  ;;  %3505 = vst.msk [vmem:[#allocation3 + $0x40] sm:$0xff] %vm29_vm0, %v12242_v63  ;;  %3506 = vst.msk [vmem:[#allocation3 + $0x48] sm:$0xff] %vm29_vm0, %v12244_v42  ;;  %v3329_v55 = vmul.bf16 1056980736, %v3249_v18  ;;  %v8308_v25 = vpop.f32.mrb[118].mxu0  ;;  %v3405_v49 = vmul.f32 %v3389_v32, %v3373_v4  ;;  %v3215_v48 = vadd.f32 %v8307_v47, %v2838_v30  ;;  %v3406_v35 = vmul.f32 %v3390_v57, %v3374_v23 }
 0x46b   :  { %v9053_v33 = vpop.eup %9052  ;;  %v3416_v28 = vmul.bf16 %v9051_v58, %v3288_v24  ;;  %v3216_v6 = vadd.f32 %v8308_v25, %v2839_v14  ;;  %v3117_v5 = vpop.f32.mrb[119].mxu0  ;;  %v3213_v51 = vadd.f32 %v3114_v17, %v12223_v53  ;;  %9054 = vtanh.bf16 %v3330_v50 }
 0x46c   :  { %v3415_v22 = vmul.bf16 %v9053_v33, %v3287_v62  ;;  %v3214_v2 = vadd.f32 %v3117_v5, %v2837_v13  ;;  %9056 = vtanh.bf16 %v3329_v55  ;;  %v2778_v47 = vmul.f32 %v11834_v60, %v11001_v20 }
 0x46d   :  { %v3431_v38 = vunpack.c.l.bf16 %v3416_v28  ;;  %v3432_v7 = vunpack.c.h.bf16 %v3416_v28  ;;  %v3252_v12 = vpack.c.bf16 %v3216_v6, %v3215_v48  ;;  %v2779_v57 = vmul.f32 %v11834_v60, %v10994_v19  ;;  %v15943_v6 = vld [vmem:[#allocation121_spill] sm:$0xff] }
 0x46e   :  { %v3429_v11 = vunpack.c.l.bf16 %v3415_v22  ;;  %v3430_v46 = vunpack.c.h.bf16 %v3415_v22  ;;  %v3251_v18 = vpack.c.bf16 %v3214_v2, %v3213_v51  ;;  %v2776_v29 = vmul.f32 %v11834_v60, %v10912_v44  ;;  %v15945_v2 = vld [vmem:[#allocation117_spill] sm:$0xff] }
 0x46f   :  { %v12259_v56 = vadd.f32 %v3431_v38, %v3407_v8  ;;  %v12261_v32 = vadd.f32 %v3432_v7, %v3408_v36  ;;  %v2777_v50 = vmul.f32 %v11834_v60, %v10906_v37  ;;  %9058 = vtanh.f32 %v12178_v39  ;;  %v15942_v36 = vld [vmem:[#allocation111_spill] sm:$0xff]  ;;  %v15946_v7 = vld [vmem:[#allocation116_spill] sm:$0xff] }
 0x470   :  { %v12267_v53 = vadd.f32 %v3429_v11, %v3405_v49  ;;  %v12269_v13 = vadd.f32 %v3430_v46, %v3406_v35  ;;  %v8311_v24 = vpop.f32.mrb[120].mxu0  ;;  %v3332_v30 = vmul.bf16 1056980736, %v3252_v12  ;;  %v2842_v17 = vadd.f32 %v2778_v47, %v11047_v31  ;;  %v15944_v35 = vld [vmem:[#allocation120_spill] sm:$0xff]  ;;  %v15947_v46 = vld [vmem:[#allocation123_spill] sm:$0xff] }
 0x471   :  { %3511 = vst.msk [vmem:[#allocation3 + $0x70] sm:$0xff] %vm29_vm0, %v12259_v56  ;;  %3512 = vst.msk [vmem:[#allocation3 + $0x78] sm:$0xff] %vm29_vm0, %v12261_v32  ;;  %v3130_v14 = vpop.f32.mrb[121].mxu0  ;;  %v2843_v58 = vadd.f32 %v2779_v57, %v11042_v27  ;;  %9060 = vtanh.f32 %v12180_v61  ;;  %v3331_v39 = vmul.bf16 1056980736, %v3251_v18  ;;  %v2840_v62 = vadd.f32 %v2776_v29, %v10962_v52  ;;  %v15948_v57 = vld [vmem:[#allocation122_spill] sm:$0xff] }
 0x472   :  { %3509 = vst.msk [vmem:[#allocation3 + $0x60] sm:$0xff] %vm29_vm0, %v12267_v53  ;;  %3510 = vst.msk [vmem:[#allocation3 + $0x68] sm:$0xff] %vm29_vm0, %v12269_v13  ;;  %v8312_v8 = vpop.f32.mrb[122].mxu0  ;;  %v2841_v4 = vadd.f32 %v2777_v50, %v15942_v36  ;;  %9062 = vtanh.f32 %v12182_v1  ;;  %v3219_v55 = vadd.f32 %v8311_v24, %v2842_v17  ;;  %v2782_v5 = vmul.f32 %v11834_v60, %v15943_v6  ;;  %v15949_v50 = vld [vmem:[#allocation119_spill] sm:$0xff]  ;;  %v15950_v17 = vld [vmem:[#allocation118_spill] sm:$0xff] }
 0x473   :  { %v3220_v25 = vadd.f32 %v8312_v8, %v2843_v58  ;;  %v3133_v33 = vpop.f32.mrb[123].mxu0  ;;  %9064 = vtanh.f32 %v12184_v3  ;;  %v3217_v61 = vadd.f32 %v3130_v14, %v2840_v62  ;;  %v2783_v1 = vmul.f32 %v11834_v60, %v15944_v35 }
 0x474   :  { %v3218_v23 = vadd.f32 %v3133_v33, %v2841_v4  ;;  %9066 = vtanh.bf16 %v3332_v30  ;;  %v2780_v38 = vmul.f32 %v11834_v60, %v15945_v2  ;;  %v2781_v12 = vmul.f32 %v11834_v60, %v15946_v7 }
 0x475   :  { %v3254_v49 = vpack.c.bf16 %v3220_v25, %v3219_v55  ;;  %9068 = vtanh.bf16 %v3331_v39  ;;  %v2846_v18 = vadd.f32 %v2782_v5, %v15947_v46  ;;  %v2847_v24 = vadd.f32 %v2783_v1, %v15948_v57  ;;  %v15999_v57 = vld [vmem:[#allocation17_spill] sm:$0xff]  ;;  %v16000_v46 = vld [vmem:[#allocation16_spill] sm:$0xff] }
 0x476   :  { %v3253_v28 = vpack.c.bf16 %v3218_v23, %v3217_v61  ;;  %9070 = vtanh.f32 %v12206_v41  ;;  %v9055_v22 = vpop.eup %9054  ;;  %v2845_v14 = vadd.f32 %v2781_v12, %v15950_v17  ;;  %v15991_v17 = vld [vmem:[#allocation37_spill] sm:$0xff] }
 0x477   :  { %v3334_v48 = vmul.bf16 1056980736, %v3254_v49  ;;  %9072 = vtanh.f32 %v12208_v54  ;;  %v9057_v11 = vpop.eup %9056  ;;  %v3346_v41 = vmul.bf16 1056980736, %v9055_v22  ;;  %v2844_v54 = vadd.f32 %v2780_v38, %v15949_v50  ;;  %v15992_v50 = vld [vmem:[#allocation36_spill] sm:$0xff] }
 0x478   :  { %v3333_v51 = vmul.bf16 1056980736, %v3253_v28  ;;  %v8315_v3 = vpop.f32.mrb[124].mxu0  ;;  %v3345_v29 = vmul.bf16 1056980736, %v9057_v11 }
 0x479   :  { %9074 = vtanh.bf16 %v3334_v48  ;;  %v3146_v47 = vpop.f32.mrb[125].mxu0  ;;  %v9059_v58 = vpop.eup %9058  ;;  %v3354_v39 = vadd.bf16 1056980736, %v3346_v41  ;;  %v3223_v60 = vadd.f32 %v8315_v3, %v2846_v18 }
 0x47a   :  { %9076 = vtanh.bf16 %v3333_v51  ;;  %v8316_v30 = vpop.f32.mrb[126].mxu0  ;;  %v3353_v55 = vadd.bf16 1056980736, %v3345_v29  ;;  %v3221_v25 = vadd.f32 %v3146_v47, %v2844_v54 }
 0x47b   :  { %9078 = vtanh.f32 %v12210_v16  ;;  %v3224_v62 = vadd.f32 %v8316_v30, %v2847_v24  ;;  %v3149_v8 = vpop.f32.mrb[127].mxu0  ;;  %v9061_v4 = vpop.eup %9060  ;;  %v3467_v23 = vunpack.c.l.bf16 %v3354_v39  ;;  %v3468_v49 = vunpack.c.h.bf16 %v3354_v39 }
 0x47c   :  { %9080 = vtanh.f32 %v12212_v15  ;;  %v3222_v33 = vadd.f32 %v3149_v8, %v2845_v14  ;;  %v9063_v61 = vpop.eup %9062  ;;  %v3465_v16 = vunpack.c.l.bf16 %v3353_v55  ;;  %v3466_v5 = vunpack.c.h.bf16 %v3353_v55 }
 0x47d   :  { %9082 = vtanh.f32 %v12236_v21  ;;  %v3256_v28 = vpack.c.bf16 %v3224_v62, %v3223_v60  ;;  %v9065_v48 = vpop.eup %9064  ;;  %v3483_v22 = vmul.f32 %v9059_v58, %v3467_v23  ;;  %v3484_v51 = vmul.f32 %v9061_v4, %v3468_v49 }
 0x47e   :  { %9084 = vtanh.f32 %v12238_v34  ;;  %v3255_v1 = vpack.c.bf16 %v3222_v33, %v3221_v25  ;;  %v3481_v38 = vmul.f32 %v9063_v61, %v3465_v16  ;;  %v3482_v12 = vmul.f32 %v9065_v48, %v3466_v5 }
 0x47f   :  { %9086 = vtanh.f32 %v12242_v63  ;;  %v3336_v15 = vmul.bf16 1056980736, %v3256_v28  ;;  %v9067_v3 = vpop.eup %9066  ;;  %3515 = vst.msk [vmem:[#allocation2 + $0x10] sm:$0xff] %vm29_vm0, %v3483_v22  ;;  %3516 = vst.msk [vmem:[#allocation2 + $0x18] sm:$0xff] %vm29_vm0, %v3484_v51 }
 0x480   :  { %9088 = vtanh.f32 %v12244_v42  ;;  %v3335_v21 = vmul.bf16 1056980736, %v3255_v1  ;;  %v9069_v11 = vpop.eup %9068  ;;  %v3348_v34 = vmul.bf16 1056980736, %v9067_v3  ;;  %3513 = vst.msk [vmem:[#allocation2] sm:$0xff] %vm29_vm0, %v3481_v38  ;;  %3514 = vst.msk [vmem:[#allocation2 + $0x8] sm:$0xff] %vm29_vm0, %v3482_v12 }
 0x481   :  { %v9071_v41 = vpop.eup %9070  ;;  %9090 = vtanh.bf16 %v3336_v15  ;;  %v3347_v63 = vmul.bf16 1056980736, %v9069_v11 }
 0x482   :  { %v9073_v18 = vpop.eup %9072  ;;  %9092 = vtanh.bf16 %v3335_v21  ;;  %v3356_v47 = vadd.bf16 1056980736, %v3348_v34 }
 0x483   :  { %v3355_v24 = vadd.bf16 1056980736, %v3347_v63  ;;  %9094 = vtanh.f32 %v12259_v56 }
 0x484   :  { %v9075_v42 = vpop.eup %9074  ;;  %v3471_v30 = vunpack.c.l.bf16 %v3356_v47  ;;  %v3472_v14 = vunpack.c.h.bf16 %v3356_v47  ;;  %9096 = vtanh.f32 %v12261_v32 }
 0x485   :  { %v9077_v29 = vpop.eup %9076  ;;  %v3350_v58 = vmul.bf16 1056980736, %v9075_v42  ;;  %v3469_v60 = vunpack.c.l.bf16 %v3355_v24  ;;  %v3470_v62 = vunpack.c.h.bf16 %v3355_v24  ;;  %9098 = vtanh.f32 %v12267_v53 }
 0x486   :  { %v9079_v54 = vpop.eup %9078  ;;  %v3349_v8 = vmul.bf16 1056980736, %v9077_v29  ;;  %v3487_v55 = vmul.f32 %v9071_v41, %v3471_v30  ;;  %v3488_v25 = vmul.f32 %v9073_v18, %v3472_v14  ;;  %v3664_v48 = vld [vmem:[#allocation2 + $0x10] sm:$0xff]  ;;  %9100 = vtanh.f32 %v12269_v13  ;;  %v3665_v22 = vld [vmem:[#allocation2 + $0x18] sm:$0xff] }
 0x487   :  { %v9081_v39 = vpop.eup %9080  ;;  %v3358_v33 = vadd.bf16 1056980736, %v3350_v58  ;;  %v3485_v23 = vmul.f32 %v9079_v54, %v3469_v60  ;;  %v3662_v32 = vld [vmem:[#allocation2] sm:$0xff]  ;;  %v3663_v1 = vld [vmem:[#allocation2 + $0x8] sm:$0xff]  ;;  %v3679_v41 = vpack.c.bf16 %v3665_v22, %v3664_v48 }
 0x488   :  { %v9083_v4 = vpop.eup %9082  ;;  %v3486_v49 = vmul.f32 %v9081_v39, %v3470_v62  ;;  %v3357_v28 = vadd.bf16 1056980736, %v3349_v8  ;;  %3519 = vst.msk [vmem:[#allocation2 + $0x30] sm:$0xff] %vm29_vm0, %v3487_v55  ;;  %3520 = vst.msk [vmem:[#allocation2 + $0x38] sm:$0xff] %vm29_vm0, %v3488_v25  ;;  %v3678_v3 = vpack.c.bf16 %v3663_v1, %v3662_v32 }
 0x489   :  { %v9085_v61 = vpop.eup %9084  ;;  %v3475_v56 = vunpack.c.l.bf16 %v3358_v33  ;;  %v3476_v5 = vunpack.c.h.bf16 %v3358_v33  ;;  %3517 = vst.msk [vmem:[#allocation2 + $0x20] sm:$0xff] %vm29_vm0, %v3485_v23 }
 0x48a   :  { %v9087_v16 = vpop.eup %9086  ;;  %3518 = vst.msk [vmem:[#allocation2 + $0x28] sm:$0xff] %vm29_vm0, %v3486_v49  ;;  %v3473_v53 = vunpack.c.l.bf16 %v3357_v28  ;;  %v3474_v15 = vunpack.c.h.bf16 %v3357_v28  ;;  %8317 = vmatprep.subr.bf16.mxu1 %v3678_v3 }
 0x48b   :  { %v9089_v51 = vpop.eup %9088  ;;  %v3491_v38 = vmul.f32 %v9083_v4, %v3475_v56  ;;  %v3492_v12 = vmul.f32 %v9085_v61, %v3476_v5  ;;  %8318 = vmatpush3.bf16.msra.mxu1 %v3678_v3 }
 0x48c   :  { %v9091_v13 = vpop.eup %9090  ;;  %v3489_v21 = vmul.f32 %v9087_v16, %v3473_v53  ;;  %v3490_v11 = vmul.f32 %v9089_v51, %v3474_v15  ;;  %8319 = vmatprep.subr.bf16.mxu1 %v3679_v41 }
 0x48d   :  { %v9093_v34 = vpop.eup %9092  ;;  %3523 = vst.msk [vmem:[#allocation2 + $0x50] sm:$0xff] %vm29_vm0, %v3491_v38  ;;  %3524 = vst.msk [vmem:[#allocation2 + $0x58] sm:$0xff] %vm29_vm0, %v3492_v12  ;;  %v3352_v18 = vmul.bf16 1056980736, %v9091_v13  ;;  %v9647_v12 = vld [vmem:[%s15323_s2 + $0x8] sm:$0xff]   ;;  %v9648_v13 = vld [vmem:[%s15323_s2 + $0x10] sm:$0xff]  }
 0x48e   :  { %3521 = vst.msk [vmem:[#allocation2 + $0x40] sm:$0xff] %vm29_vm0, %v3489_v21  ;;  %3522 = vst.msk [vmem:[#allocation2 + $0x48] sm:$0xff] %vm29_vm0, %v3490_v11  ;;  %v3351_v63 = vmul.bf16 1056980736, %v9093_v34  ;;  %v9095_v42 = vpop.eup %9094  ;;  %v9649_v21 = vld [vmem:[%s15323_s2 + $0x18] sm:$0xff]   ;;  %v9650_v11 = vld [vmem:[%s15323_s2 + $0x20] sm:$0xff]  }
 0x48f   :  { %v3360_v47 = vadd.bf16 1056980736, %v3352_v18  ;;  %v3668_v29 = vld [vmem:[#allocation2 + $0x30] sm:$0xff]  ;;  %v9097_v54 = vpop.eup %9096  ;;  %8320 = vmatpush3.bf16.msra.mxu1 %v3679_v41  ;;  %v3669_v60 = vld [vmem:[#allocation2 + $0x38] sm:$0xff]  ;;  %v9651_v41 = vld [vmem:[%s15323_s2 + $0x28] sm:$0xff]  }
 0x490   :  { %v3359_v24 = vadd.bf16 1056980736, %v3351_v63  ;;  %v3666_v58 = vld [vmem:[#allocation2 + $0x20] sm:$0xff]  ;;  %v9099_v62 = vpop.eup %9098  ;;  %v3681_v28 = vpack.c.bf16 %v3669_v60, %v3668_v29  ;;  %v9652_v34 = vld [vmem:[%s15323_s2 + $0x30] sm:$0xff]   ;;  %v9653_v18 = vld [vmem:[%s15323_s2 + $0x38] sm:$0xff]  }
 0x491   :  { %v3479_v30 = vunpack.c.l.bf16 %v3360_v47  ;;  %v3480_v14 = vunpack.c.h.bf16 %v3360_v47  ;;  %v3667_v39 = vld [vmem:[#allocation2 + $0x28] sm:$0xff]  ;;  %v9101_v25 = vpop.eup %9100  ;;  %v9654_v63 = vld [vmem:[%s15323_s2 + $0x40] sm:$0xff]   ;;  %v9664_v60 = vld [vmem:[%s15323_s2 + $0x90] sm:$0xff]  }
 0x492   :  { %v3477_v8 = vunpack.c.l.bf16 %v3359_v24  ;;  %v3478_v4 = vunpack.c.h.bf16 %v3359_v24  ;;  %v3680_v55 = vpack.c.bf16 %v3667_v39, %v3666_v58  ;;  %v9655_v47 = vld [vmem:[%s15323_s2 + $0x48] sm:$0xff]   ;;  %v9657_v24 = vld [vmem:[%s15323_s2 + $0x58] sm:$0xff]   ;;  %v9658_v29 = vld [vmem:[%s15323_s2 + $0x60] sm:$0xff]  }
 0x493   :  { %v3495_v33 = vmul.f32 %v9095_v42, %v3479_v30  ;;  %v3496_v61 = vmul.f32 %v9097_v54, %v3480_v14  ;;  %v9656_v42 = vld [vmem:[%s15323_s2 + $0x50] sm:$0xff]   ;;  %v9659_v54 = vld [vmem:[%s15323_s2 + $0x68] sm:$0xff]   ;;  %v9661_v14 = vld [vmem:[%s15323_s2 + $0x78] sm:$0xff]  }
 0x494   :  { %v3493_v23 = vmul.f32 %v9099_v62, %v3477_v8  ;;  %v3494_v49 = vmul.f32 %v9101_v25, %v3478_v4  ;;  %8321 = vmatprep.subr.bf16.mxu1 %v3680_v55  ;;  %v3672_v5 = vld [vmem:[#allocation2 + $0x50] sm:$0xff]  ;;  %v3673_v32 = vld [vmem:[#allocation2 + $0x58] sm:$0xff]  ;;  %v9662_v58 = vld [vmem:[%s15323_s2 + $0x80] sm:$0xff]  }
 0x495   :  { %3527 = vst.msk [vmem:[#allocation2 + $0x70] sm:$0xff] %vm29_vm0, %v3495_v33  ;;  %3528 = vst.msk [vmem:[#allocation2 + $0x78] sm:$0xff] %vm29_vm0, %v3496_v61  ;;  %8322 = vmatpush3.bf16.msra.mxu1 %v3680_v55  ;;  %v3670_v48 = vld [vmem:[#allocation2 + $0x40] sm:$0xff]  ;;  %v3671_v16 = vld [vmem:[#allocation2 + $0x48] sm:$0xff]  ;;  %v3683_v1 = vpack.c.bf16 %v3673_v32, %v3672_v5 }
 0x496   :  { %3525 = vst.msk [vmem:[#allocation2 + $0x60] sm:$0xff] %vm29_vm0, %v3493_v23  ;;  %3526 = vst.msk [vmem:[#allocation2 + $0x68] sm:$0xff] %vm29_vm0, %v3494_v49  ;;  %8323 = vmatprep.subr.bf16.mxu1 %v3681_v28  ;;  %v3682_v56 = vpack.c.bf16 %v3671_v16, %v3670_v48  ;;  %v9660_v30 = vld [vmem:[%s15323_s2 + $0x70] sm:$0xff]   ;;  %v9663_v39 = vld [vmem:[%s15323_s2 + $0x88] sm:$0xff]  }
 0x497   :  { %v9665_v62 = vld [vmem:[%s15323_s2 + $0x98] sm:$0xff]   ;;  %v9666_v8 = vld [vmem:[%s15323_s2 + $0xa0] sm:$0xff]   ;;  %v9667_v4 = vld [vmem:[%s15323_s2 + $0xa8] sm:$0xff]  }
 0x498   :  { %v9668_v55 = vld [vmem:[%s15323_s2 + $0xb0] sm:$0xff]   ;;  %v9669_v25 = vld [vmem:[%s15323_s2 + $0xb8] sm:$0xff]   ;;  %v9670_v33 = vld [vmem:[%s15323_s2 + $0xc0] sm:$0xff]  }
 0x499   :  { %8324 = vmatpush3.bf16.msra.mxu1 %v3681_v28  ;;  %v9671_v61 = vld [vmem:[%s15323_s2 + $0xc8] sm:$0xff]   ;;  %v9672_v23 = vld [vmem:[%s15323_s2 + $0xd0] sm:$0xff]   ;;  %v9673_v49 = vld [vmem:[%s15323_s2 + $0xd8] sm:$0xff]  }
 0x49a   :  { %8325 = vmatprep.subr.bf16.mxu1 %v3682_v56  ;;  %v9674_v28 = vld [vmem:[%s15323_s2 + $0xe0] sm:$0xff]   ;;  %v9675_v48 = vld [vmem:[%s15323_s2 + $0xe8] sm:$0xff]   ;;  %v9676_v16 = vld [vmem:[%s15323_s2 + $0xf0] sm:$0xff]  }
 0x49b   :  { %v9678_v5 = vld [vmem:[%s15323_s2] sm:$0xff]  }
 0x49c   :  { %v3676_v15 = vld [vmem:[#allocation2 + $0x70] sm:$0xff]  ;;  %v3677_v3 = vld [vmem:[#allocation2 + $0x78] sm:$0xff]  ;;  %v12430_v32 = vld [vmem:[%s15324_s0 + $0x3] ss:$0 sm:$0xff] }
 0x49d   :  { %8326 = vmatpush3.bf16.msra.mxu1 %v3682_v56  ;;  %v3674_v22 = vld [vmem:[#allocation2 + $0x60] sm:$0xff]  ;;  %v3675_v51 = vld [vmem:[#allocation2 + $0x68] sm:$0xff]  ;;  %v3685_v38 = vpack.c.bf16 %v3677_v3, %v3676_v15  ;;  %v9677_v56 = vld [vmem:[%s15323_s2 + $0xf8] sm:$0xff]  }
 0x49e   :  { %8327 = vmatprep.subr.bf16.mxu1 %v3683_v1  ;;  %v3684_v53 = vpack.c.bf16 %v3675_v51, %v3674_v22  ;;  %v15952_v51 = vld [vmem:[#allocation12_spill] sm:$0xff]  ;;  %v15953_v3 = vld [vmem:[#allocation5_spill] sm:$0xff] }
 0x4a1   :  { %8328 = vmatpush3.bf16.msra.mxu1 %v3683_v1  ;;  %v15951_v1 = vld [vmem:[#allocation13_spill] sm:$0xff] }
 0x4a2   :  { %8329 = vmatprep.subr.bf16.mxu1 %v3684_v53  ;;  %v3536_v22 = vmul.f32 %v12430_v32, %v15951_v1 }
 0x4a5   :  { %8330 = vmatpush3.bf16.msra.mxu1 %v3684_v53  ;;  %v3537_v53 = vmul.f32 %v12430_v32, %v15952_v51 }
 0x4a6   :  { %8331 = vmatprep.subr.bf16.mxu1 %v3685_v38 }
 0x4a9   :  { %8332 = vmatpush3.bf16.msra.mxu1 %v3685_v38  ;;  %v3534_v38 = vmul.f32 %v12430_v32, %v15953_v3 }
 0x4ac   :  { %8334 = vmatmul.mubr.bf16.vlgmr.msra.gmra.mrb[64].mxu1 %v9647_v12  ;;  %v15954_v12 = vld [vmem:[#allocation7_spill] sm:$0xff] }
 0x4ad   :  { %8337 = vmatprep.mubr.bf16.mxu1 %v9648_v13  ;;  %v3535_v13 = vmul.f32 %v12430_v32, %v15954_v12 }
 0x4b4   :  { %8338 = vmatmul.mubr.bf16.gmra.mrb[68].mxu1 %v9649_v21  ;;  %v15955_v21 = vld [vmem:[#allocation19_spill] sm:$0xff] }
 0x4b5   :  { %8341 = vmatprep.mubr.bf16.mxu1 %v9650_v11  ;;  %v3600_v11 = vadd.f32 %v3536_v22, %v15955_v21 }
 0x4bc   :  { %8342 = vmatmul.mubr.bf16.gmra.mrb[72].mxu1 %v9651_v41 }
 0x4bd   :  { %8345 = vmatprep.mubr.bf16.mxu1 %v9652_v34  ;;  %v15956_v34 = vld [vmem:[#allocation18_spill] sm:$0xff] }
 0x4c4   :  { %8346 = vmatmul.mubr.bf16.gmra.mrb[76].mxu1 %v9653_v18  ;;  %v3601_v18 = vadd.f32 %v3537_v53, %v15956_v34  ;;  %v15965_v53 = vld [vmem:[#allocation31_spill] sm:$0xff]  ;;  %v15990_v34 = vld [vmem:[#allocation10_spill] sm:$0xff] }
 0x4c5   :  { %8349 = vmatprep.mubr.bf16.mxu1 %v9654_v63  ;;  %v15957_v63 = vld [vmem:[#allocation9_spill] sm:$0xff] }
 0x4cc   :  { %8350 = vmatmul.mubr.bf16.gmra.mrb[80].mxu1 %v9655_v47  ;;  %v3598_v47 = vadd.f32 %v3534_v38, %v15957_v63 }
 0x4cd   :  { %8353 = vmatprep.mubr.bf16.mxu1 %v9656_v42 }
 0x4d4   :  { %8354 = vmatmul.mubr.bf16.gmra.mrb[84].mxu1 %v9657_v24  ;;  %v15958_v24 = vld [vmem:[#allocation8_spill] sm:$0xff] }
 0x4d5   :  { %8357 = vmatprep.mubr.bf16.mxu1 %v9658_v29  ;;  %v3599_v29 = vadd.f32 %v3535_v13, %v15958_v24  ;;  %v15966_v13 = vld [vmem:[#allocation30_spill] sm:$0xff] }
 0x4dc   :  { %8358 = vmatmul.mubr.bf16.gmra.mrb[88].mxu1 %v9659_v54 }
 0x4dd   :  { %8361 = vmatprep.mubr.bf16.mxu1 %v9660_v30 }
 0x4e4   :  { %8362 = vmatmul.mubr.bf16.gmra.mrb[92].mxu1 %v9661_v14 }
 0x4e5   :  { %8365 = vmatprep.mubr.bf16.mxu1 %v9662_v58 }
 0x4ec   :  { %8366 = vmatmul.mubr.bf16.gmra.mrb[96].mxu1 %v9663_v39 }
 0x4ed   :  { %8369 = vmatprep.mubr.bf16.mxu1 %v9664_v60 }
 0x4f4   :  { %8370 = vmatmul.mubr.bf16.gmra.mrb[100].mxu1 %v9665_v62  ;;  %v15968_v62 = vld [vmem:[#allocation64_spill] sm:$0xff] }
 0x4f5   :  { %8373 = vmatprep.mubr.bf16.mxu1 %v9666_v8  ;;  %v15959_v8 = vld [vmem:[#allocation35_spill] sm:$0xff] }
 0x4fc   :  { %8374 = vmatmul.mubr.bf16.gmra.mrb[104].mxu1 %v9667_v4  ;;  %v3540_v4 = vmul.f32 %v12430_v32, %v15959_v8 }
 0x4fd   :  { %8377 = vmatprep.mubr.bf16.mxu1 %v9668_v55  ;;  %v15960_v55 = vld [vmem:[#allocation34_spill] sm:$0xff] }
 0x504   :  { %8378 = vmatmul.mubr.bf16.gmra.mrb[108].mxu1 %v9669_v25  ;;  %v3541_v25 = vmul.f32 %v12430_v32, %v15960_v55  ;;  %v15982_v55 = vld [vmem:[#allocation92_spill] sm:$0xff] }
 0x505   :  { %8381 = vmatprep.mubr.bf16.mxu1 %v9670_v33 }
 0x50c   :  { %8382 = vmatmul.mubr.bf16.gmra.mrb[112].mxu1 %v9671_v61  ;;  %v15961_v61 = vld [vmem:[#allocation23_spill] sm:$0xff] }
 0x50d   :  { %8385 = vmatprep.mubr.bf16.mxu1 %v9672_v23  ;;  %v3538_v23 = vmul.f32 %v12430_v32, %v15961_v61 }
 0x514   :  { %8386 = vmatmul.mubr.bf16.gmra.mrb[116].mxu1 %v9673_v49  ;;  %v15962_v49 = vld [vmem:[#allocation22_spill] sm:$0xff] }
 0x515   :  { %8389 = vmatprep.mubr.bf16.mxu1 %v9674_v28  ;;  %v3539_v28 = vmul.f32 %v12430_v32, %v15962_v49 }
 0x51c   :  { %8390 = vmatmul.mubr.bf16.gmra.mrb[120].mxu1 %v9675_v48  ;;  %v15963_v48 = vld [vmem:[#allocation43_spill] sm:$0xff] }
 0x51d   :  { %8393 = vmatprep.mubr.bf16.mxu1 %v9676_v16  ;;  %v3604_v16 = vadd.f32 %v3540_v4, %v15963_v48 }
 0x524   :  { %8394 = vmatmul.mubr.bf16.gmra.mrb[124].mxu1 %v9677_v56 }
 0x525   :  { %8493 = vmatprep.mubr.bf16.mxu1 %v9678_v5  ;;  %v15964_v5 = vld [vmem:[#allocation42_spill] sm:$0xff] }
 0x526   :  { %v3605_v22 = vadd.f32 %v3541_v25, %v15964_v5  ;;  %v15967_v25 = vld [vmem:[#allocation65_spill] sm:$0xff]  ;;  %v15974_v5 = vld [vmem:[#allocation58_spill] sm:$0xff] }
 0x57f   :  { %v8335_v15 = vpop.f32.mrb[64].mxu1 }
 0x580   :  { %v3720_v41 = vpop.f32.mrb[65].mxu1  ;;  %v12444_v54 = vadd.f32 %v8335_v15, %v3600_v11  ;;  %v3602_v15 = vadd.f32 %v3538_v23, %v15965_v53  ;;  %v3603_v11 = vadd.f32 %v3539_v28, %v15966_v13  ;;  %v3544_v23 = vmul.f32 %v12430_v32, %v15967_v25  ;;  %v15973_v13 = vld [vmem:[#allocation59_spill] sm:$0xff] }
 0x581   :  { %v8336_v42 = vpop.f32.mrb[66].mxu1  ;;  %v12448_v58 = vadd.f32 %v3720_v41, %v3598_v47 }
 0x582   :  { %v12446_v30 = vadd.f32 %v8336_v42, %v3601_v18  ;;  %v3723_v14 = vpop.f32.mrb[67].mxu1 }
 0x583   :  { %v12450_v39 = vadd.f32 %v3723_v14, %v3599_v29  ;;  %v15972_v14 = vld [vmem:[#allocation74_spill] sm:$0xff] }
 0x587   :  { %v8339_v33 = vpop.f32.mrb[68].mxu1 }
 0x588   :  { %v3736_v56 = vpop.f32.mrb[69].mxu1  ;;  %v12468_v41 = vadd.f32 %v8339_v33, %v3604_v16  ;;  %v3545_v33 = vmul.f32 %v12430_v32, %v15968_v62  ;;  %v15969_v16 = vld [vmem:[#allocation49_spill] sm:$0xff] }
 0x589   :  { %v8340_v38 = vpop.f32.mrb[70].mxu1  ;;  %v12472_v42 = vadd.f32 %v3736_v56, %v3602_v15  ;;  %v15970_v56 = vld [vmem:[#allocation48_spill] sm:$0xff] }
 0x58a   :  { %v12470_v18 = vadd.f32 %v8340_v38, %v3605_v22  ;;  %v3739_v47 = vpop.f32.mrb[71].mxu1  ;;  %v3542_v22 = vmul.f32 %v12430_v32, %v15969_v16  ;;  %v3543_v15 = vmul.f32 %v12430_v32, %v15970_v56  ;;  %v15971_v38 = vld [vmem:[#allocation75_spill] sm:$0xff]  ;;  %v3609_v60 = vadd.f32 %v3545_v33, %v15972_v14 }
 0x58b   :  { %v12474_v29 = vadd.f32 %v3739_v47, %v3603_v11  ;;  %v3608_v11 = vadd.f32 %v3544_v23, %v15971_v38  ;;  %v15975_v14 = vld [vmem:[#allocation99_spill] sm:$0xff]  ;;  %v15981_v38 = vld [vmem:[#allocation93_spill] sm:$0xff] }
 0x58c   :  { %v3606_v4 = vadd.f32 %v3542_v22, %v15973_v13  ;;  %v3607_v25 = vadd.f32 %v3543_v15, %v15974_v5  ;;  %v3548_v22 = vmul.f32 %v12430_v32, %v15975_v14  ;;  %v15976_v13 = vld [vmem:[#allocation98_spill] sm:$0xff]  ;;  %v15980_v23 = vld [vmem:[#allocation107_spill] sm:$0xff] }
 0x58f   :  { %v8343_v28 = vpop.f32.mrb[72].mxu1 }
 0x590   :  { %v3752_v47 = vpop.f32.mrb[73].mxu1  ;;  %v12492_v48 = vadd.f32 %v8343_v28, %v3608_v11  ;;  %v3549_v28 = vmul.f32 %v12430_v32, %v15976_v13 }
 0x591   :  { %v8344_v53 = vpop.f32.mrb[74].mxu1  ;;  %v12496_v61 = vadd.f32 %v3752_v47, %v3606_v4  ;;  %v15978_v4 = vld [vmem:[#allocation82_spill] sm:$0xff] }
 0x592   :  { %v12494_v62 = vadd.f32 %v8344_v53, %v3609_v60  ;;  %v3755_v49 = vpop.f32.mrb[75].mxu1  ;;  %v15977_v60 = vld [vmem:[#allocation83_spill] sm:$0xff]  ;;  %v3613_v5 = vadd.f32 %v3549_v28, %v15980_v23 }
 0x593   :  { %v12498_v16 = vadd.f32 %v3755_v49, %v3607_v25  ;;  %v3546_v53 = vmul.f32 %v12430_v32, %v15977_v60  ;;  %v3547_v49 = vmul.f32 %v12430_v32, %v15978_v4  ;;  %v15979_v25 = vld [vmem:[#allocation108_spill] sm:$0xff]  ;;  %v15983_v23 = vld [vmem:[#allocation15_spill] sm:$0xff] }
 0x594   :  { %v3612_v11 = vadd.f32 %v3548_v22, %v15979_v25  ;;  %v15988_v22 = vld [vmem:[#allocation20_spill] sm:$0xff]  ;;  %v15989_v25 = vld [vmem:[#allocation11_spill] sm:$0xff] }
 0x595   :  { %v3610_v33 = vadd.f32 %v3546_v53, %v15981_v38  ;;  %v3611_v14 = vadd.f32 %v3547_v49, %v15982_v55  ;;  %v3552_v53 = vmul.f32 %v12430_v32, %v15983_v23  ;;  %v15984_v38 = vld [vmem:[#allocation14_spill] sm:$0xff] }
 0x597   :  { %v8347_v15 = vpop.f32.mrb[76].mxu1 }
 0x598   :  { %v3768_v47 = vpop.f32.mrb[77].mxu1  ;;  %v12516_v8 = vadd.f32 %v8347_v15, %v3612_v11  ;;  %v3553_v15 = vmul.f32 %v12430_v32, %v15984_v38 }
 0x599   :  { %v8348_v56 = vpop.f32.mrb[78].mxu1  ;;  %v12520_v63 = vadd.f32 %v3768_v47, %v3610_v33  ;;  %v15986_v33 = vld [vmem:[#allocation6_spill] sm:$0xff] }
 0x59a   :  { %v12518_v13 = vadd.f32 %v8348_v56, %v3613_v5  ;;  %v3771_v24 = vpop.f32.mrb[79].mxu1  ;;  %v15985_v5 = vld [vmem:[#allocation4_spill] sm:$0xff]  ;;  %v3617_v55 = vadd.f32 %v3553_v15, %v15988_v22  ;;  %v15993_v15 = vld [vmem:[#allocation25_spill] sm:$0xff] }
 0x59b   :  { %v12522_v60 = vadd.f32 %v3771_v24, %v3611_v14  ;;  %v3550_v56 = vmul.f32 %v12430_v32, %v15985_v5  ;;  %v3551_v24 = vmul.f32 %v12430_v32, %v15986_v33  ;;  %v15987_v14 = vld [vmem:[#allocation21_spill] sm:$0xff]  ;;  %v3556_v33 = vmul.f32 %v12430_v32, %v15991_v17 }
 0x59c   :  { %v3616_v11 = vadd.f32 %v3552_v53, %v15987_v14  ;;  %v3557_v53 = vmul.f32 %v12430_v32, %v15992_v50 }
 0x59d   :  { %v3614_v28 = vadd.f32 %v3550_v56, %v15989_v25  ;;  %v3615_v23 = vadd.f32 %v3551_v24, %v15990_v34  ;;  %v3554_v56 = vmul.f32 %v12430_v32, %v15993_v15  ;;  %v15994_v25 = vld [vmem:[#allocation24_spill] sm:$0xff] }
 0x59e   :  { %v3555_v24 = vmul.f32 %v12430_v32, %v15994_v25  ;;  %v3566_v25 = vmul.f32 %v12430_v32, %v15999_v57  ;;  %v16010_v57 = vld [vmem:[#allocation29_spill] sm:$0xff] }
 0x59f   :  { %v8351_v49 = vpop.f32.mrb[80].mxu1 }
 0x5a0   :  { %v3784_v47 = vpop.f32.mrb[81].mxu1  ;;  %v3993_v21 = vadd.f32 %v8351_v49, %v3616_v11  ;;  %v15995_v49 = vld [vmem:[#allocation45_spill] sm:$0xff] }
 0x5a1   :  { %v8352_v4 = vpop.f32.mrb[82].mxu1  ;;  %v3991_v3 = vadd.f32 %v3784_v47, %v3614_v28  ;;  %v15996_v28 = vld [vmem:[#allocation44_spill] sm:$0xff] }
 0x5a2   :  { %v3994_v12 = vadd.f32 %v8352_v4, %v3617_v55  ;;  %v3787_v38 = vpop.f32.mrb[83].mxu1  ;;  %v3620_v55 = vadd.f32 %v3556_v33, %v15995_v49  ;;  %v3567_v33 = vmul.f32 %v12430_v32, %v16000_v46  ;;  %v16001_v49 = vld [vmem:[#allocation67_spill] sm:$0xff] }
 0x5a3   :  { %v3992_v51 = vadd.f32 %v3787_v38, %v3615_v23  ;;  %v3621_v38 = vadd.f32 %v3557_v53, %v15996_v28  ;;  %v3560_v53 = vmul.f32 %v12430_v32, %v16001_v49  ;;  %v16009_v49 = vld [vmem:[#allocation76_spill] sm:$0xff] }
 0x5a4   :  { %v4048_v1 = vpack.c.bf16 %v3994_v12, %v3993_v21  ;;  %v15997_v12 = vld [vmem:[#allocation33_spill] sm:$0xff]  ;;  %v15998_v21 = vld [vmem:[#allocation32_spill] sm:$0xff] }
 0x5a5   :  { %v4047_v5 = vpack.c.bf16 %v3992_v51, %v3991_v3  ;;  %v3618_v51 = vadd.f32 %v3554_v56, %v15997_v12  ;;  %v3619_v23 = vadd.f32 %v3555_v24, %v15998_v21  ;;  %v16002_v56 = vld [vmem:[#allocation66_spill] sm:$0xff] }
 0x5a6   :  { %v3561_v12 = vmul.f32 %v12430_v32, %v16002_v56  ;;  %v4104_v21 = vmul.bf16 1056980736, %v4048_v1 }
 0x5a7   :  { %v8355_v14 = vpop.f32.mrb[84].mxu1  ;;  %v4103_v2 = vmul.bf16 1056980736, %v4047_v5 }
 0x5a8   :  { %v3800_v4 = vpop.f32.mrb[85].mxu1  ;;  %v3997_v11 = vadd.f32 %v8355_v14, %v3620_v55  ;;  %v16003_v14 = vld [vmem:[#allocation51_spill] sm:$0xff]  ;;  %v3625_v46 = vadd.f32 %v3561_v12, %v16009_v49 }
 0x5a9   :  { %v8356_v3 = vpop.f32.mrb[86].mxu1  ;;  %v3995_v17 = vadd.f32 %v3800_v4, %v3618_v51  ;;  %v3558_v55 = vmul.f32 %v12430_v32, %v16003_v14  ;;  %v16004_v4 = vld [vmem:[#allocation50_spill] sm:$0xff]  ;;  %v3568_v14 = vmul.f32 %v12430_v32, %v16010_v57 }
 0x5aa   :  { %v3998_v47 = vadd.f32 %v8356_v3, %v3621_v38  ;;  %v3803_v50 = vpop.f32.mrb[87].mxu1  ;;  %v16006_v38 = vld [vmem:[#allocation26_spill] sm:$0xff]  ;;  %v16007_v3 = vpack.c.bf16 %v12446_v30, %v12444_v54 }
 0x5ab   :  { %v3996_v34 = vadd.f32 %v3803_v50, %v3619_v23  ;;  %v3559_v50 = vmul.f32 %v12430_v32, %v16004_v4  ;;  %v12568_v51 = vadd.f32 %v3567_v33, %v16006_v38  ;;  %v16011_v4 = vld [vmem:[#allocation61_spill] sm:$0xff]  ;;  %v16013_v33 = vld [vmem:[#allocation28_spill] sm:$0xff]  ;;  %v16030_v57 = vld [vmem:[#allocation94_spill] sm:$0xff] }
 0x5ac   :  { %v4050_v22 = vpack.c.bf16 %v3998_v47, %v3997_v11  ;;  %v4072_v23 = vmul.bf16 1056980736, %v16007_v3  ;;  %v16008_v11 = vld [vmem:[#allocation77_spill] sm:$0xff]  ;;  %v3622_v28 = vadd.f32 %v3558_v55, %v16011_v4  ;;  %v3569_v38 = vmul.f32 %v12430_v32, %v16013_v33  ;;  %v16014_v3 = vld [vmem:[#allocation39_spill] sm:$0xff]  ;;  %v16015_v55 = vld [vmem:[#allocation38_spill] sm:$0xff] }
 0x5ad   :  { %v4049_v15 = vpack.c.bf16 %v3996_v34, %v3995_v17  ;;  %v16005_v17 = vld [vmem:[#allocation27_spill] sm:$0xff]  ;;  %v3624_v47 = vadd.f32 %v3560_v53, %v16008_v11  ;;  %v12586_v12 = vadd.f32 %v3568_v14, %v16014_v3 }
 0x5ae   :  { %v12565_v34 = vadd.f32 %v3566_v25, %v16005_v17  ;;  %v16012_v17 = vld [vmem:[#allocation60_spill] sm:$0xff]  ;;  %v12593_v4 = vadd.f32 %v3569_v38, %v16015_v55  ;;  %9102 = vtanh.bf16 %v4072_v23  ;;  %v16020_v38 = vld [vmem:[#allocation46_spill] sm:$0xff]  ;;  %v16029_v3 = vld [vmem:[#allocation95_spill] sm:$0xff] }
 0x5af   :  { %v8359_v24 = vpop.f32.mrb[88].mxu1  ;;  %v3623_v7 = vadd.f32 %v3559_v50, %v16012_v17  ;;  %v16016_v50 = vld [vmem:[#allocation41_spill] sm:$0xff]  ;;  %9104 = vtanh.bf16 %v4104_v21  ;;  %v3583_v23 = vmul.f32 %v12430_v32, %v16020_v38 }
 0x5b0   :  { %v3816_v56 = vpop.f32.mrb[89].mxu1  ;;  %v12581_v54 = vadd.f32 %v8359_v24, %v3624_v47  ;;  %v3570_v17 = vmul.f32 %v12430_v32, %v16016_v50  ;;  %v16018_v47 = vld [vmem:[#allocation47_spill] sm:$0xff]  ;;  %9106 = vtanh.bf16 %v4103_v2  ;;  %v4106_v50 = vmul.bf16 1056980736, %v4050_v22 }
 0x5b1   :  { %v8360_v25 = vpop.f32.mrb[90].mxu1  ;;  %v12588_v49 = vadd.f32 %v3816_v56, %v3622_v28  ;;  %v3582_v14 = vmul.f32 %v12430_v32, %v16018_v47  ;;  %v16027_v2 = vpack.c.bf16 %v12470_v18, %v12468_v41  ;;  %v16028_v22 = vld [vmem:[#allocation55_spill] sm:$0xff]  ;;  %v16031_v18 = vld [vmem:[#allocation57_spill] sm:$0xff] }
 0x5b2   :  { %v12583_v30 = vadd.f32 %v8360_v25, %v3625_v46  ;;  %v3819_v53 = vpop.f32.mrb[91].mxu1  ;;  %v16017_v46 = vld [vmem:[#allocation40_spill] sm:$0xff]  ;;  %v16021_v25 = vld [vmem:[#allocation101_spill] sm:$0xff] }
 0x5b3   :  { %v12590_v1 = vadd.f32 %v3819_v53, %v3623_v7  ;;  %v3571_v24 = vmul.f32 %v12430_v32, %v16017_v46  ;;  %v16019_v7 = vpack.c.bf16 %v12450_v39, %v12448_v58  ;;  %v16023_v46 = vld [vmem:[#allocation53_spill] sm:$0xff] }
 0x5b4   :  { %v4052_v5 = vpack.c.bf16 %v12583_v30, %v12581_v54  ;;  %v3564_v54 = vmul.f32 %v12430_v32, %v16021_v25  ;;  %v16022_v30 = vld [vmem:[#allocation100_spill] sm:$0xff]  ;;  %v12615_v47 = vadd.f32 %v3570_v17, %v16023_v46  ;;  %v16024_v39 = vld [vmem:[#allocation85_spill] sm:$0xff]  ;;  %v4074_v25 = vmul.bf16 1056980736, %v16027_v2  ;;  %v16032_v2 = vld [vmem:[#allocation54_spill] sm:$0xff] }
 0x5b5   :  { %v4071_v28 = vmul.bf16 1056980736, %v16019_v7  ;;  %v4051_v56 = vpack.c.bf16 %v12590_v1, %v12588_v49  ;;  %v3565_v53 = vmul.f32 %v12430_v32, %v16022_v30  ;;  %v3562_v21 = vmul.f32 %v12430_v32, %v16024_v39  ;;  %v16025_v7 = vld [vmem:[#allocation84_spill] sm:$0xff] }
 0x5b6   :  { %v3563_v49 = vmul.f32 %v12430_v32, %v16025_v7  ;;  %v16026_v1 = vld [vmem:[#allocation52_spill] sm:$0xff]  ;;  %v3628_v30 = vadd.f32 %v3564_v54, %v15906_v40  ;;  %v12630_v46 = vadd.f32 %v3582_v14, %v16028_v22  ;;  %v4105_v39 = vmul.bf16 1056980736, %v4049_v15 }
 0x5b7   :  { %v8363_v58 = vpop.f32.mrb[92].mxu1  ;;  %v12622_v38 = vadd.f32 %v3571_v24, %v16026_v1  ;;  %v3629_v17 = vadd.f32 %v3565_v53, %v15907_v59  ;;  %9108 = vtanh.bf16 %v4071_v28  ;;  %v3626_v33 = vadd.f32 %v3562_v21, %v16029_v3  ;;  %v16033_v28 = vld [vmem:[#allocation56_spill] sm:$0xff]  ;;  %v16051_v59 = vld [vmem:[#allocation103_spill] sm:$0xff] }
 0x5b8   :  { %v3832_v55 = vpop.f32.mrb[93].mxu1  ;;  %v3627_v24 = vadd.f32 %v3563_v49, %v16030_v57  ;;  %v12634_v1 = vadd.f32 %v8363_v58, %v3628_v30  ;;  %v3572_v54 = vmul.f32 %v12430_v32, %v16031_v18  ;;  %v12641_v53 = vadd.f32 %v3583_v23, %v16032_v2  ;;  %v16035_v49 = vld [vmem:[#allocation63_spill] sm:$0xff]  ;;  %v16044_v2 = vld [vmem:[#allocation70_spill] sm:$0xff] }
 0x5b9   :  { %v8364_v7 = vpop.f32.mrb[94].mxu1  ;;  %9110 = vtanh.bf16 %v4106_v50  ;;  %v12643_v14 = vadd.f32 %v3832_v55, %v3626_v33  ;;  %v3573_v21 = vmul.f32 %v12430_v32, %v16033_v28  ;;  %v16034_v30 = vpack.c.bf16 %v12474_v29, %v12472_v42  ;;  %v16043_v28 = vld [vmem:[#allocation71_spill] sm:$0xff]  ;;  %v16047_v18 = vld [vmem:[#allocation78_spill] sm:$0xff] }
 0x5ba   :  { %v12636_v11 = vadd.f32 %v8364_v7, %v3629_v17  ;;  %v3835_v41 = vpop.f32.mrb[95].mxu1  ;;  %9112 = vtanh.bf16 %v4074_v25  ;;  %v3584_v23 = vmul.f32 %v12430_v32, %v16035_v49  ;;  %v16036_v33 = vpack.c.bf16 %v12494_v62, %v12492_v48  ;;  %v16037_v17 = vld [vmem:[#allocation62_spill] sm:$0xff]  ;;  %v16041_v49 = vld [vmem:[#allocation73_spill] sm:$0xff]  ;;  %v9103_v48 = vpop.eup %9102 }
 0x5bb   :  { %v12645_v15 = vadd.f32 %v3835_v41, %v3627_v24  ;;  %v4073_v58 = vmul.bf16 1056980736, %v16034_v30  ;;  %9114 = vtanh.bf16 %v4105_v39  ;;  %v3585_v25 = vmul.f32 %v12430_v32, %v16037_v17  ;;  %v16039_v24 = vld [vmem:[#allocation69_spill] sm:$0xff]  ;;  %v16040_v30 = vld [vmem:[#allocation68_spill] sm:$0xff] }
 0x5bc   :  { %v4076_v55 = vmul.bf16 1056980736, %v16036_v33  ;;  %v16038_v42 = vpack.c.bf16 %v12498_v16, %v12496_v61  ;;  %v12667_v41 = vadd.f32 %v3572_v54, %v16039_v24  ;;  %v12670_v7 = vadd.f32 %v3573_v21, %v16040_v30  ;;  %v16042_v33 = vld [vmem:[#allocation72_spill] sm:$0xff]  ;;  %v16045_v16 = vld [vmem:[#allocation79_spill] sm:$0xff]  ;;  %v9105_v21 = vpop.eup %9104 }
 0x5bd   :  { %v3574_v62 = vmul.f32 %v12430_v32, %v16041_v49  ;;  %v3575_v50 = vmul.f32 %v12430_v32, %v16042_v33  ;;  %v12677_v17 = vadd.f32 %v3584_v23, %v16043_v28  ;;  %v12680_v61 = vadd.f32 %v3585_v25, %v16044_v2  ;;  %v16046_v49 = vld [vmem:[#allocation87_spill] sm:$0xff]  ;;  %v9107_v23 = vpop.eup %9106 }
 0x5be   :  { %v4075_v29 = vmul.bf16 1056980736, %v16038_v42  ;;  %v12684_v54 = vmul.f32 %v12430_v32, %v16045_v16  ;;  %9116 = vtanh.bf16 %v4073_v58  ;;  %v4108_v42 = vmul.bf16 1056980736, %v4052_v5  ;;  %v16048_v2 = vld [vmem:[#allocation91_spill] sm:$0xff]  ;;  %v16049_v16 = vld [vmem:[#allocation86_spill] sm:$0xff] }
 0x5bf   :  { %v8367_v39 = vpop.f32.mrb[96].mxu1  ;;  %v12687_v24 = vadd.f32 %v3574_v62, %v16046_v49  ;;  %v12691_v33 = vmul.f32 %v12430_v32, %v16047_v18  ;;  %9118 = vtanh.bf16 %v4076_v55  ;;  %v4107_v28 = vmul.bf16 1056980736, %v4051_v56  ;;  %v16050_v49 = vld [vmem:[#allocation90_spill] sm:$0xff] }
 0x5c0   :  { %v3848_v30 = vpop.f32.mrb[97].mxu1  ;;  %v3576_v57 = vmul.f32 %v12430_v32, %v16048_v2  ;;  %v12696_v3 = vadd.f32 %v3575_v50, %v16049_v16  ;;  %9120 = vtanh.bf16 %v4075_v29  ;;  %v4009_v5 = vadd.f32 %v8367_v39, %v12586_v12 }
 0x5c1   :  { %v8368_v25 = vpop.f32.mrb[98].mxu1  ;;  %v3577_v18 = vmul.f32 %v12430_v32, %v16050_v49  ;;  %v4120_v22 = vmul.bf16 1056980736, %v9105_v21  ;;  %v4007_v55 = vadd.f32 %v3848_v30, %v12565_v34  ;;  %v4088_v50 = vmul.bf16 1056980736, %v9103_v48  ;;  %v16055_v30 = vld [vmem:[#allocation113_spill] sm:$0xff] }
 0x5c2   :  { %v4010_v58 = vadd.f32 %v8368_v25, %v12593_v4  ;;  %v3851_v62 = vpop.f32.mrb[99].mxu1  ;;  %v12705_v40 = vadd.f32 %v3576_v57, %v16051_v59  ;;  %v9109_v2 = vpop.eup %9108  ;;  %v4119_v16 = vmul.bf16 1056980736, %v9107_v23  ;;  %9122 = vtanh.bf16 %v4108_v42  ;;  %v16053_v25 = vld [vmem:[#allocation102_spill] sm:$0xff] }
 0x5c3   :  { %v4008_v56 = vadd.f32 %v3851_v62, %v12568_v51  ;;  %v16052_v4 = vpack.c.bf16 %v12518_v13, %v12516_v8  ;;  %9124 = vtanh.bf16 %v4107_v28  ;;  %v12711_v21 = vadd.f32 %v3577_v18, %v16053_v25  ;;  %v16056_v42 = vld [vmem:[#allocation106_spill] sm:$0xff] }
 0x5c4   :  { %v4056_v29 = vpack.c.bf16 %v4010_v58, %v4009_v5  ;;  %v9111_v34 = vpop.eup %9110  ;;  %v16054_v51 = vpack.c.bf16 %v12522_v60, %v12520_v63  ;;  %v3580_v48 = vmul.f32 %v12430_v32, %v16055_v30  ;;  %v3578_v23 = vmul.f32 %v12430_v32, %v16056_v42  ;;  %v16057_v58 = vld [vmem:[#allocation112_spill] sm:$0xff]  ;;  %v16058_v60 = vld [vmem:[#allocation115_spill] sm:$0xff]  ;;  %v16061_v30 = vld [vmem:[#allocation110_spill] sm:$0xff] }
 0x5c5   :  { %v4078_v12 = vmul.bf16 1056980736, %v16052_v4  ;;  %v4055_v39 = vpack.c.bf16 %v4008_v56, %v4007_v55  ;;  %v9113_v5 = vpop.eup %9112  ;;  %v4087_v8 = vmul.bf16 1056980736, %v9109_v2  ;;  %v4128_v13 = vadd.bf16 1056980736, %v4120_v22 }
 0x5c6   :  { %v4077_v57 = vmul.bf16 1056980736, %v16054_v51  ;;  %9126 = vtanh.bf16 %v4056_v29  ;;  %v3581_v18 = vmul.f32 %v12430_v32, %v16057_v58  ;;  %v9115_v62 = vpop.eup %9114  ;;  %v4096_v55 = vadd.bf16 1056980736, %v4088_v50  ;;  %v16059_v4 = vld [vmem:[#allocation105_spill] sm:$0xff] }
 0x5c7   :  { %9128 = vtanh.bf16 %v4055_v39  ;;  %v8371_v28 = vpop.f32.mrb[100].mxu1  ;;  %v4127_v56 = vadd.bf16 1056980736, %v4119_v16  ;;  %v12723_v29 = vadd.f32 %v3580_v48, %v16058_v60  ;;  %v12727_v51 = vmul.f32 %v12430_v32, %v16059_v4 }
 0x5c8   :  { %v3864_v63 = vpop.f32.mrb[101].mxu1  ;;  %9130 = vtanh.bf16 %v4078_v12  ;;  %v4122_v42 = vmul.bf16 1056980736, %v9111_v34  ;;  %v16060_v22 = vpack.c.bf16 %v12636_v11, %v12634_v1  ;;  %v12733_v58 = vadd.f32 %v3578_v23, %v16061_v30 }
 0x5c9   :  { %v8372_v39 = vpop.f32.mrb[102].mxu1  ;;  %v4090_v50 = vmul.bf16 1056980736, %v9113_v5  ;;  %9132 = vtanh.bf16 %v4077_v57  ;;  %v4013_v16 = vadd.f32 %v8371_v28, %v12667_v41  ;;  %v12737_v25 = vpop.eup %9116  ;;  %v4193_v4 = vunpack.c.l.bf16 %v4128_v13 }
 0x5ca   :  { %v4110_v2 = vmul.bf16 1056980736, %v16060_v22  ;;  %v4014_v48 = vadd.f32 %v8372_v39, %v12670_v7  ;;  %v3867_v60 = vpop.f32.mrb[103].mxu1  ;;  %v4121_v12 = vmul.bf16 1056980736, %v9115_v62  ;;  %v4011_v34 = vadd.f32 %v3864_v63, %v12615_v47  ;;  %v12741_v1 = vpop.eup %9118  ;;  %v4177_v7 = vld [vmem:[#allocation3 + $0x10] sm:$0xff] }
 0x5cb   :  { %v4012_v11 = vadd.f32 %v3867_v60, %v12622_v38  ;;  %v4194_v22 = vunpack.c.h.bf16 %v4128_v13  ;;  %v4191_v23 = vunpack.c.l.bf16 %v4127_v56  ;;  %v16062_v57 = vpack.c.bf16 %v12645_v15, %v12643_v14  ;;  %v12746_v28 = vpop.eup %9120  ;;  %v4178_v14 = vld [vmem:[#allocation3 + $0x18] sm:$0xff] }
 0x5cc   :  { %v4058_v41 = vpack.c.bf16 %v4014_v48, %v4013_v16  ;;  %v4192_v39 = vunpack.c.h.bf16 %v4127_v56  ;;  %v12748_v30 = vadd.bf16 1056980736, %v4122_v42  ;;  %9134 = vtanh.bf16 %v4110_v2  ;;  %v16063_v48 = vld [vmem:[#allocation114_spill] sm:$0xff] }
 0x5cd   :  { %v4109_v5 = vmul.bf16 1056980736, %v16062_v57  ;;  %v4057_v62 = vpack.c.bf16 %v4012_v11, %v4011_v34  ;;  %v4095_v47 = vadd.bf16 1056980736, %v4087_v8  ;;  %v12750_v63 = vadd.bf16 1056980736, %v4090_v50  ;;  %v9123_v13 = vpop.eup %9122 }
 0x5ce   :  { %v4089_v38 = vmul.bf16 1056980736, %v12737_v25  ;;  %9136 = vtanh.bf16 %v4058_v41  ;;  %v4092_v60 = vmul.bf16 1056980736, %v12741_v1  ;;  %v12754_v15 = vadd.bf16 1056980736, %v4121_v12  ;;  %v9125_v42 = vpop.eup %9124 }
 0x5cf   :  { %9138 = vtanh.bf16 %v4057_v62  ;;  %v8375_v16 = vpop.f32.mrb[104].mxu1  ;;  %v12757_v56 = vadd.f32 %v3581_v18, %v16063_v48  ;;  %v4091_v2 = vmul.bf16 1056980736, %v12746_v28  ;;  %v4209_v8 = vmul.f32 %v4193_v4, %v4177_v7  ;;  %v4175_v34 = vld [vmem:[#allocation3] sm:$0xff]  ;;  %v4176_v11 = vld [vmem:[#allocation3 + $0x8] sm:$0xff] }
 0x5d0   :  { %v4210_v50 = vmul.f32 %v4194_v22, %v4178_v14  ;;  %9140 = vtanh.bf16 %v4109_v5  ;;  %v3880_v25 = vpop.f32.mrb[105].mxu1  ;;  %v4207_v41 = vmul.f32 %v4191_v23, %v4175_v34  ;;  %v4208_v1 = vmul.f32 %v4192_v39, %v4176_v11 }
 0x5d1   :  { %v9127_v57 = vpop.eup %9126  ;;  %v4197_v12 = vunpack.c.l.bf16 %v12748_v30  ;;  %v4198_v62 = vunpack.c.h.bf16 %v12748_v30  ;;  %v8376_v59 = vpop.f32.mrb[106].mxu1  ;;  %v4124_v18 = vmul.bf16 1056980736, %v9123_v13  ;;  %v4017_v35 = vadd.f32 %v8375_v16, %v12705_v40 }
 0x5d2   :  { %v9129_v49 = vpop.eup %9128  ;;  %v4224_v48 = vmul.bf16 %v9127_v57, %v4096_v55  ;;  %v4018_v4 = vadd.f32 %v8376_v59, %v12711_v21  ;;  %v3883_v22 = vpop.f32.mrb[107].mxu1  ;;  %v4195_v28 = vunpack.c.l.bf16 %v12754_v15  ;;  %v4015_v7 = vadd.f32 %v3880_v25, %v12687_v24  ;;  %v4182_v25 = vld [vmem:[#allocation3 + $0x38] sm:$0xff] }
 0x5d3   :  { %v4223_v5 = vmul.bf16 %v9129_v49, %v4095_v47  ;;  %v4016_v23 = vadd.f32 %v3883_v22, %v12696_v3  ;;  %v12767_v39 = vpop.eup %9130  ;;  %v4196_v30 = vunpack.c.h.bf16 %v12754_v15  ;;  %v4123_v40 = vmul.bf16 1056980736, %v9125_v42  ;;  %v4181_v47 = vld [vmem:[#allocation3 + $0x30] sm:$0xff]  ;;  %v4179_v15 = vld [vmem:[#allocation3 + $0x20] sm:$0xff]  ;;  %v4180_v22 = vld [vmem:[#allocation3 + $0x28] sm:$0xff] }
 0x5d4   :  { %v4233_v14 = vunpack.c.l.bf16 %v4224_v48  ;;  %v4234_v34 = vunpack.c.h.bf16 %v4224_v48  ;;  %v4060_v13 = vpack.c.bf16 %v4018_v4, %v4017_v35  ;;  %v12770_v55 = vpop.eup %9132  ;;  %v12772_v11 = vadd.bf16 1056980736, %v4124_v18 }
 0x5d5   :  { %v4231_v16 = vunpack.c.l.bf16 %v4223_v5  ;;  %v4232_v59 = vunpack.c.h.bf16 %v4223_v5  ;;  %v4059_v21 = vpack.c.bf16 %v4016_v23, %v4015_v7  ;;  %v4097_v3 = vadd.bf16 1056980736, %v4089_v38 }
 0x5d6   :  { %v12774_v49 = vadd.f32 %v4233_v14, %v4209_v8  ;;  %v12776_v24 = vadd.f32 %v4234_v34, %v4210_v50  ;;  %9142 = vtanh.bf16 %v4060_v13  ;;  %v12782_v4 = vadd.bf16 1056980736, %v4092_v60  ;;  %v16064_v50 = vld [vmem:[#allocation109_spill] sm:$0xff] }
 0x5d7   :  { %v12778_v57 = vadd.f32 %v4231_v16, %v4207_v41  ;;  %v12780_v35 = vadd.f32 %v4232_v59, %v4208_v1  ;;  %9144 = vtanh.bf16 %v4059_v21  ;;  %v8379_v48 = vpop.f32.mrb[108].mxu1  ;;  %v9135_v42 = vpop.eup %9134  ;;  %v12784_v18 = vadd.bf16 1056980736, %v4091_v2 }
 0x5d8   :  { %v4213_v8 = vmul.f32 %v4197_v12, %v4181_v47  ;;  %4313 = vst.msk [vmem:[#allocation3 + $0x10] sm:$0xff] %vm29_vm0, %v12774_v49  ;;  %4314 = vst.msk [vmem:[#allocation3 + $0x18] sm:$0xff] %vm29_vm0, %v12776_v24  ;;  %v3896_v38 = vpop.f32.mrb[109].mxu1  ;;  %v3643_v41 = vadd.f32 %v12727_v51, %v16064_v50  ;;  %v4214_v5 = vmul.f32 %v4198_v62, %v4182_v25  ;;  %v4131_v60 = vadd.bf16 1056980736, %v4123_v40 }
 0x5d9   :  { %v9137_v1 = vpop.eup %9136  ;;  %v4211_v7 = vmul.f32 %v4195_v28, %v4179_v15  ;;  %v4212_v23 = vmul.f32 %v4196_v30, %v4180_v22  ;;  %4311 = vst.msk [vmem:[#allocation3] sm:$0xff] %vm29_vm0, %v12778_v57  ;;  %4312 = vst.msk [vmem:[#allocation3 + $0x8] sm:$0xff] %vm29_vm0, %v12780_v35  ;;  %v8380_v2 = vpop.f32.mrb[110].mxu1  ;;  %v4201_v14 = vunpack.c.l.bf16 %v12772_v11  ;;  %v4021_v13 = vadd.f32 %v8379_v48, %v12723_v29  ;;  %v4185_v48 = vld [vmem:[#allocation3 + $0x50] sm:$0xff] }
 0x5da   :  { %v9139_v12 = vpop.eup %9138  ;;  %v4226_v34 = vmul.bf16 %v9137_v1, %v12750_v63  ;;  %v4022_v51 = vadd.f32 %v8380_v2, %v12757_v56  ;;  %v3899_v62 = vpop.f32.mrb[111].mxu1  ;;  %v4202_v30 = vunpack.c.h.bf16 %v12772_v11  ;;  %v4019_v16 = vadd.f32 %v3896_v38, %v12733_v58  ;;  %v4186_v11 = vld [vmem:[#allocation3 + $0x58] sm:$0xff] }
 0x5db   :  { %v9141_v28 = vpop.eup %9140  ;;  %v4225_v40 = vmul.bf16 %v9139_v12, %v4097_v3  ;;  %v4020_v59 = vadd.f32 %v3899_v62, %v3643_v41  ;;  %v4126_v21 = vmul.bf16 1056980736, %v9135_v42  ;;  %v4199_v22 = vunpack.c.l.bf16 %v4131_v60  ;;  %v4183_v41 = vld [vmem:[#allocation3 + $0x40] sm:$0xff] }
 0x5dc   :  { %v4237_v47 = vunpack.c.l.bf16 %v4226_v34  ;;  %v4238_v25 = vunpack.c.h.bf16 %v4226_v34  ;;  %v4062_v15 = vpack.c.bf16 %v4022_v51, %v4021_v13  ;;  %v4125_v1 = vmul.bf16 1056980736, %v9141_v28  ;;  %v4184_v51 = vld [vmem:[#allocation3 + $0x48] sm:$0xff] }
 0x5dd   :  { %v4235_v50 = vunpack.c.l.bf16 %v4225_v40  ;;  %v4236_v6 = vunpack.c.h.bf16 %v4225_v40  ;;  %v4061_v63 = vpack.c.bf16 %v4020_v59, %v4019_v16  ;;  %v4200_v3 = vunpack.c.h.bf16 %v4131_v60 }
 0x5de   :  { %v12802_v29 = vadd.f32 %v4237_v47, %v4213_v8  ;;  %v12804_v56 = vadd.f32 %v4238_v25, %v4214_v5  ;;  %9146 = vtanh.bf16 %v4062_v15  ;;  %v4094_v38 = vmul.bf16 1056980736, %v12767_v39 }
 0x5df   :  { %v12806_v2 = vadd.f32 %v4235_v50, %v4211_v7  ;;  %v12808_v58 = vadd.f32 %v4236_v6, %v4212_v23  ;;  %9148 = vtanh.bf16 %v4061_v63  ;;  %v8383_v42 = vpop.f32.mrb[112].mxu1  ;;  %v4134_v12 = vadd.bf16 1056980736, %v4126_v21 }
 0x5e0   :  { %4317 = vst.msk [vmem:[#allocation3 + $0x30] sm:$0xff] %vm29_vm0, %v12802_v29  ;;  %4318 = vst.msk [vmem:[#allocation3 + $0x38] sm:$0xff] %vm29_vm0, %v12804_v56  ;;  %v3912_v8 = vpop.f32.mrb[113].mxu1  ;;  %v3588_v5 = vmul.f32 %v12430_v32, %v15818_v43  ;;  %v12819_v6 = vadd.f32 %v12684_v54, %v15819_v10  ;;  %v4093_v7 = vmul.bf16 1056980736, %v12770_v55  ;;  %v4217_v39 = vmul.f32 %v4201_v14, %v4185_v48 }
 0x5e1   :  { %v9143_v50 = vpop.eup %9142  ;;  %v4218_v23 = vmul.f32 %v4202_v30, %v4186_v11  ;;  %v4215_v60 = vmul.f32 %v4199_v22, %v4183_v41  ;;  %4315 = vst.msk [vmem:[#allocation3 + $0x20] sm:$0xff] %vm29_vm0, %v12806_v2  ;;  %4316 = vst.msk [vmem:[#allocation3 + $0x28] sm:$0xff] %vm29_vm0, %v12808_v58  ;;  %v8384_v34 = vpop.f32.mrb[114].mxu1  ;;  %v4133_v62 = vadd.bf16 1056980736, %v4125_v1  ;;  %v4025_v54 = vadd.f32 %v8383_v42, %v12677_v17  ;;  %v4189_v11 = vld [vmem:[#allocation3 + $0x70] sm:$0xff] }
 0x5e2   :  { %v9145_v13 = vpop.eup %9144  ;;  %v4228_v28 = vmul.bf16 %v9143_v50, %v12782_v4  ;;  %v4026_v40 = vadd.f32 %v8384_v34, %v12680_v61  ;;  %v3915_v55 = vpop.f32.mrb[115].mxu1  ;;  %v4216_v14 = vmul.f32 %v4200_v3, %v4184_v51  ;;  %v4023_v16 = vadd.f32 %v3912_v8, %v12630_v46  ;;  %v4190_v8 = vld [vmem:[#allocation3 + $0x78] sm:$0xff] }
 0x5e3   :  { %v4227_v30 = vmul.bf16 %v9145_v13, %v12784_v18  ;;  %v4024_v59 = vadd.f32 %v3915_v55, %v12641_v53  ;;  %v4205_v21 = vunpack.c.l.bf16 %v4134_v12  ;;  %v4206_v22 = vunpack.c.h.bf16 %v4134_v12 }
 0x5e4   :  { %v4241_v47 = vunpack.c.l.bf16 %v4228_v28  ;;  %v4242_v25 = vunpack.c.h.bf16 %v4228_v28  ;;  %v4064_v15 = vpack.c.bf16 %v4026_v40, %v4025_v54  ;;  %v4203_v48 = vunpack.c.l.bf16 %v4133_v62  ;;  %v4187_v28 = vld [vmem:[#allocation3 + $0x60] sm:$0xff]  ;;  %v4188_v40 = vld [vmem:[#allocation3 + $0x68] sm:$0xff] }
 0x5e5   :  { %v4239_v63 = vunpack.c.l.bf16 %v4227_v30  ;;  %v4240_v1 = vunpack.c.h.bf16 %v4227_v30  ;;  %v4063_v4 = vpack.c.bf16 %v4024_v59, %v4023_v16  ;;  %v3589_v18 = vmul.f32 %v12430_v32, %v10729_v45 }
 0x5e6   :  { %v12832_v17 = vadd.f32 %v4241_v47, %v4217_v39  ;;  %v12834_v61 = vadd.f32 %v4242_v25, %v4218_v23  ;;  %v4204_v46 = vunpack.c.h.bf16 %v4133_v62  ;;  %v3651_v41 = vadd.f32 %v12691_v33, %v15817_v9 }
 0x5e7   :  { %v12838_v3 = vadd.f32 %v4239_v63, %v4215_v60  ;;  %v12840_v53 = vadd.f32 %v4240_v1, %v4216_v14  ;;  %v8387_v42 = vpop.f32.mrb[116].mxu1  ;;  %v4102_v12 = vadd.bf16 1056980736, %v4094_v38  ;;  %v4144_v50 = vmul.bf16 1056980736, %v4064_v15 }
 0x5e8   :  { %4321 = vst.msk [vmem:[#allocation3 + $0x50] sm:$0xff] %vm29_vm0, %v12832_v17  ;;  %4322 = vst.msk [vmem:[#allocation3 + $0x58] sm:$0xff] %vm29_vm0, %v12834_v61  ;;  %v3652_v39 = vadd.f32 %v3588_v5, %v10833_v26  ;;  %v3928_v23 = vpop.f32.mrb[117].mxu1  ;;  %v3653_v60 = vadd.f32 %v3589_v18, %v15941_v0  ;;  %v4101_v13 = vadd.bf16 1056980736, %v4093_v7  ;;  %v4221_v51 = vmul.f32 %v4205_v21, %v4189_v11 }
 0x5e9   :  { %v9147_v34 = vpop.eup %9146  ;;  %v4222_v62 = vmul.f32 %v4206_v22, %v4190_v8  ;;  %4319 = vst.msk [vmem:[#allocation3 + $0x40] sm:$0xff] %vm29_vm0, %v12838_v3  ;;  %4320 = vst.msk [vmem:[#allocation3 + $0x48] sm:$0xff] %vm29_vm0, %v12840_v53  ;;  %v4143_v33 = vmul.bf16 1056980736, %v4063_v4  ;;  %v8388_v38 = vpop.f32.mrb[118].mxu1  ;;  %v4219_v55 = vmul.f32 %v4203_v48, %v4187_v28  ;;  %v4220_v59 = vmul.f32 %v4204_v46, %v4188_v40 }
 0x5ea   :  { %v9149_v54 = vpop.eup %9148  ;;  %v4230_v5 = vmul.bf16 %v9147_v34, %v4102_v12  ;;  %v4029_v14 = vadd.f32 %v8387_v42, %v3652_v39  ;;  %v4030_v30 = vadd.f32 %v8388_v38, %v3653_v60  ;;  %v3931_v16 = vpop.f32.mrb[119].mxu1  ;;  %v4027_v21 = vadd.f32 %v3928_v23, %v12819_v6 }
 0x5eb   :  { %v4229_v7 = vmul.bf16 %v9149_v54, %v4101_v13  ;;  %v4028_v47 = vadd.f32 %v3931_v16, %v3651_v41  ;;  %9150 = vtanh.bf16 %v4144_v50  ;;  %v3592_v11 = vmul.f32 %v12430_v32, %v11001_v20 }
 0x5ec   :  { %v4245_v25 = vunpack.c.l.bf16 %v4230_v5  ;;  %v4246_v15 = vunpack.c.h.bf16 %v4230_v5  ;;  %v4066_v22 = vpack.c.bf16 %v4030_v30, %v4029_v14  ;;  %9152 = vtanh.bf16 %v4143_v33  ;;  %v16065_v5 = vld [vmem:[#allocation121_spill] sm:$0xff]  ;;  %v16066_v30 = vld [vmem:[#allocation120_spill] sm:$0xff] }
 0x5ed   :  { %v4243_v63 = vunpack.c.l.bf16 %v4229_v7  ;;  %v4244_v1 = vunpack.c.h.bf16 %v4229_v7  ;;  %v4065_v4 = vpack.c.bf16 %v4028_v47, %v4027_v21  ;;  %v3593_v46 = vmul.f32 %v12430_v32, %v10994_v19  ;;  %v16067_v7 = vld [vmem:[#allocation117_spill] sm:$0xff]  ;;  %v16068_v47 = vld [vmem:[#allocation116_spill] sm:$0xff] }
 0x5ee   :  { %v12855_v18 = vadd.f32 %v4245_v25, %v4221_v51  ;;  %v12857_v48 = vadd.f32 %v4246_v15, %v4222_v62  ;;  %v3590_v12 = vmul.f32 %v12430_v32, %v10912_v44  ;;  %v3591_v8 = vmul.f32 %v12430_v32, %v10906_v37 }
 0x5ef   :  { %v12863_v6 = vadd.f32 %v4243_v63, %v4219_v55  ;;  %v12865_v42 = vadd.f32 %v4244_v1, %v4220_v59  ;;  %v8391_v41 = vpop.f32.mrb[120].mxu1  ;;  %9154 = vtanh.f32 %v12774_v49  ;;  %v4146_v50 = vmul.bf16 1056980736, %v4066_v22  ;;  %v16069_v22 = vld [vmem:[#allocation123_spill] sm:$0xff] }
 0x5f0   :  { %4325 = vst.msk [vmem:[#allocation3 + $0x70] sm:$0xff] %vm29_vm0, %v12855_v18  ;;  %4326 = vst.msk [vmem:[#allocation3 + $0x78] sm:$0xff] %vm29_vm0, %v12857_v48  ;;  %v3656_v39 = vadd.f32 %v3592_v11, %v11047_v31  ;;  %v3944_v23 = vpop.f32.mrb[121].mxu1  ;;  %v3657_v60 = vadd.f32 %v3593_v46, %v11042_v27  ;;  %9156 = vtanh.f32 %v12776_v24  ;;  %v4145_v49 = vmul.bf16 1056980736, %v4065_v4  ;;  %v16070_v4 = vld [vmem:[#allocation122_spill] sm:$0xff] }
 0x5f1   :  { %4323 = vst.msk [vmem:[#allocation3 + $0x60] sm:$0xff] %vm29_vm0, %v12863_v6  ;;  %4324 = vst.msk [vmem:[#allocation3 + $0x68] sm:$0xff] %vm29_vm0, %v12865_v42  ;;  %v3654_v34 = vadd.f32 %v3590_v12, %v10962_v52  ;;  %v8392_v13 = vpop.f32.mrb[122].mxu1  ;;  %v3655_v51 = vadd.f32 %v3591_v8, %v15942_v36  ;;  %9158 = vtanh.f32 %v12778_v57  ;;  %v3596_v14 = vmul.f32 %v12430_v32, %v16065_v5  ;;  %v16072_v8 = vld [vmem:[#allocation118_spill] sm:$0xff] }
 0x5f2   :  { %v4033_v62 = vadd.f32 %v8391_v41, %v3656_v39  ;;  %v4034_v28 = vadd.f32 %v8392_v13, %v3657_v60  ;;  %v3947_v33 = vpop.f32.mrb[123].mxu1  ;;  %9160 = vtanh.f32 %v12780_v35  ;;  %v3597_v57 = vmul.f32 %v12430_v32, %v16066_v30  ;;  %v16071_v41 = vld [vmem:[#allocation119_spill] sm:$0xff] }
 0x5f3   :  { %v4031_v24 = vadd.f32 %v3944_v23, %v3654_v34  ;;  %v4032_v38 = vadd.f32 %v3947_v33, %v3655_v51  ;;  %9162 = vtanh.bf16 %v4146_v50  ;;  %v3594_v21 = vmul.f32 %v12430_v32, %v16067_v7 }
 0x5f4   :  { %v4068_v54 = vpack.c.bf16 %v4034_v28, %v4033_v62  ;;  %9164 = vtanh.bf16 %v4145_v49  ;;  %v3595_v25 = vmul.f32 %v12430_v32, %v16068_v47  ;;  %v3660_v63 = vadd.f32 %v3596_v14, %v16069_v22  ;;  %v16154_v47 = vld [vmem:[#allocation94_spill] sm:$0xff] }
 0x5f5   :  { %v4067_v40 = vpack.c.bf16 %v4032_v38, %v4031_v24  ;;  %9166 = vtanh.f32 %v12802_v29  ;;  %v3661_v11 = vadd.f32 %v3597_v57, %v16070_v4 }
 0x5f6   :  { %v4148_v55 = vmul.bf16 1056980736, %v4068_v54  ;;  %v9151_v16 = vpop.eup %9150  ;;  %9168 = vtanh.f32 %v12804_v56  ;;  %v3658_v56 = vadd.f32 %v3594_v21, %v16071_v41  ;;  %v3659_v50 = vadd.f32 %v3595_v25, %v16072_v8  ;;  %v16121_v8 = vld [vmem:[#allocation17_spill] sm:$0xff]  ;;  %v16122_v41 = vld [vmem:[#allocation16_spill] sm:$0xff] }
 0x5f7   :  { %v4147_v59 = vmul.bf16 1056980736, %v4067_v40  ;;  %v8395_v35 = vpop.f32.mrb[124].mxu1  ;;  %v9153_v15 = vpop.eup %9152  ;;  %v4160_v29 = vmul.bf16 1056980736, %v9151_v16 }
 0x5f8   :  { %9170 = vtanh.bf16 %v4148_v55  ;;  %v3960_v1 = vpop.f32.mrb[125].mxu1  ;;  %v4159_v46 = vmul.bf16 1056980736, %v9153_v15  ;;  %v4037_v32 = vadd.f32 %v8395_v35, %v3660_v63 }
 0x5f9   :  { %9172 = vtanh.bf16 %v4147_v59  ;;  %v8396_v12 = vpop.f32.mrb[126].mxu1  ;;  %v9155_v39 = vpop.eup %9154  ;;  %v4168_v23 = vadd.bf16 1056980736, %v4160_v29  ;;  %v4035_v51 = vadd.f32 %v3960_v1, %v3658_v56 }
 0x5fa   :  { %9174 = vtanh.f32 %v12806_v2  ;;  %v4038_v60 = vadd.f32 %v8396_v12, %v3661_v11  ;;  %v3963_v49 = vpop.f32.mrb[127].mxu1  ;;  %v9157_v34 = vpop.eup %9156  ;;  %v4167_v13 = vadd.bf16 1056980736, %v4159_v46 }
 0x5fb   :  { %9176 = vtanh.f32 %v12808_v58  ;;  %v4036_v62 = vadd.f32 %v3963_v49, %v3659_v50  ;;  %v9159_v28 = vpop.eup %9158  ;;  %v4281_v33 = vunpack.c.l.bf16 %v4168_v23  ;;  %v4282_v24 = vunpack.c.h.bf16 %v4168_v23 }
 0x5fc   :  { %9178 = vtanh.f32 %v12832_v17  ;;  %v4070_v38 = vpack.c.bf16 %v4038_v60, %v4037_v32  ;;  %v9161_v54 = vpop.eup %9160  ;;  %v4279_v2 = vunpack.c.l.bf16 %v4167_v13  ;;  %v4280_v40 = vunpack.c.h.bf16 %v4167_v13 }
 0x5fd   :  { %9180 = vtanh.f32 %v12834_v61  ;;  %v4069_v55 = vpack.c.bf16 %v4036_v62, %v4035_v51  ;;  %v4297_v14 = vmul.f32 %v9155_v39, %v4281_v33  ;;  %v4298_v57 = vmul.f32 %v9157_v34, %v4282_v24 }
 0x5fe   :  { %9182 = vtanh.f32 %v12838_v3  ;;  %v4150_v58 = vmul.bf16 1056980736, %v4070_v38  ;;  %v9163_v16 = vpop.eup %9162  ;;  %v4295_v59 = vmul.f32 %v9159_v28, %v4279_v2  ;;  %v4296_v35 = vmul.f32 %v9161_v54, %v4280_v40 }
 0x5ff   :  { %9184 = vtanh.f32 %v12840_v53  ;;  %v4149_v17 = vmul.bf16 1056980736, %v4069_v55  ;;  %v9165_v21 = vpop.eup %9164  ;;  %4329 = vst.msk [vmem:[#allocation2 + $0x10] sm:$0xff] %vm29_vm0, %v4297_v14  ;;  %4330 = vst.msk [vmem:[#allocation2 + $0x18] sm:$0xff] %vm29_vm0, %v4298_v57  ;;  %v4162_v61 = vmul.bf16 1056980736, %v9163_v16 }
 0x600   :  { %v9167_v25 = vpop.eup %9166  ;;  %9186 = vtanh.bf16 %v4150_v58  ;;  %4327 = vst.msk [vmem:[#allocation2] sm:$0xff] %vm29_vm0, %v4295_v59  ;;  %4328 = vst.msk [vmem:[#allocation2 + $0x8] sm:$0xff] %vm29_vm0, %v4296_v35  ;;  %v4161_v3 = vmul.bf16 1056980736, %v9165_v21 }
 0x601   :  { %v9169_v15 = vpop.eup %9168  ;;  %9188 = vtanh.bf16 %v4149_v17  ;;  %v4170_v29 = vadd.bf16 1056980736, %v4162_v61 }
 0x602   :  { %v4169_v63 = vadd.bf16 1056980736, %v4161_v3  ;;  %9190 = vtanh.f32 %v12855_v18 }
 0x603   :  { %v9171_v53 = vpop.eup %9170  ;;  %v4285_v46 = vunpack.c.l.bf16 %v4170_v29  ;;  %v4286_v56 = vunpack.c.h.bf16 %v4170_v29  ;;  %9192 = vtanh.f32 %v12857_v48 }
 0x604   :  { %v9173_v1 = vpop.eup %9172  ;;  %v4164_v12 = vmul.bf16 1056980736, %v9171_v53  ;;  %v4283_v39 = vunpack.c.l.bf16 %v4169_v63  ;;  %v4284_v23 = vunpack.c.h.bf16 %v4169_v63  ;;  %9194 = vtanh.f32 %v12863_v6 }
 0x605   :  { %v9175_v11 = vpop.eup %9174  ;;  %v4163_v32 = vmul.bf16 1056980736, %v9173_v1  ;;  %v4301_v49 = vmul.f32 %v9167_v25, %v4285_v46  ;;  %v4302_v34 = vmul.f32 %v9169_v15, %v4286_v56  ;;  %9196 = vtanh.f32 %v12865_v42 }
 0x606   :  { %v9177_v50 = vpop.eup %9176  ;;  %v4172_v13 = vadd.bf16 1056980736, %v4164_v12  ;;  %v4299_v62 = vmul.f32 %v9175_v11, %v4283_v39  ;;  %v4478_v24 = vld [vmem:[#allocation2 + $0x10] sm:$0xff]  ;;  %v4479_v40 = vld [vmem:[#allocation2 + $0x18] sm:$0xff] }
 0x607   :  { %v9179_v60 = vpop.eup %9178  ;;  %v4300_v28 = vmul.f32 %v9177_v50, %v4284_v23  ;;  %v4171_v33 = vadd.bf16 1056980736, %v4163_v32  ;;  %4333 = vst.msk [vmem:[#allocation2 + $0x30] sm:$0xff] %vm29_vm0, %v4301_v49  ;;  %4334 = vst.msk [vmem:[#allocation2 + $0x38] sm:$0xff] %vm29_vm0, %v4302_v34  ;;  %v4476_v48 = vld [vmem:[#allocation2] sm:$0xff]  ;;  %v4477_v2 = vld [vmem:[#allocation2 + $0x8] sm:$0xff]  ;;  %v4493_v17 = vpack.c.bf16 %v4479_v40, %v4478_v24 }
 0x608   :  { %v9181_v51 = vpop.eup %9180  ;;  %v4289_v18 = vunpack.c.l.bf16 %v4172_v13  ;;  %v4290_v54 = vunpack.c.h.bf16 %v4172_v13  ;;  %4331 = vst.msk [vmem:[#allocation2 + $0x20] sm:$0xff] %vm29_vm0, %v4299_v62  ;;  %v4492_v57 = vpack.c.bf16 %v4477_v2, %v4476_v48 }
 0x609   :  { %v9183_v38 = vpop.eup %9182  ;;  %4332 = vst.msk [vmem:[#allocation2 + $0x28] sm:$0xff] %vm29_vm0, %v4300_v28  ;;  %v4287_v6 = vunpack.c.l.bf16 %v4171_v33  ;;  %v4288_v14 = vunpack.c.h.bf16 %v4171_v33 }
 0x60a   :  { %v9185_v55 = vpop.eup %9184  ;;  %v4305_v58 = vmul.f32 %v9179_v60, %v4289_v18  ;;  %v4306_v16 = vmul.f32 %v9181_v51, %v4290_v54  ;;  %8397 = vmatprep.subr.bf16.mxu0 %v4492_v57 }
 0x60b   :  { %v9187_v42 = vpop.eup %9186  ;;  %v4303_v59 = vmul.f32 %v9183_v38, %v4287_v6  ;;  %v4304_v35 = vmul.f32 %v9185_v55, %v4288_v14  ;;  %8398 = vmatpush3.bf16.msra.mxu0 %v4492_v57  ;;  %v9679_v57 = vld [vmem:[%s15323_s2 + $0x8] sm:$0xff]  }
 0x60c   :  { %v9189_v21 = vpop.eup %9188  ;;  %4337 = vst.msk [vmem:[#allocation2 + $0x50] sm:$0xff] %vm29_vm0, %v4305_v58  ;;  %4338 = vst.msk [vmem:[#allocation2 + $0x58] sm:$0xff] %vm29_vm0, %v4306_v16  ;;  %v4166_v25 = vmul.bf16 1056980736, %v9187_v42  ;;  %8399 = vmatprep.subr.bf16.mxu0 %v4493_v17  ;;  %v9680_v58 = vld [vmem:[%s15323_s2 + $0x10] sm:$0xff]   ;;  %v9681_v16 = vld [vmem:[%s15323_s2 + $0x18] sm:$0xff]  }
 0x60d   :  { %4335 = vst.msk [vmem:[#allocation2 + $0x40] sm:$0xff] %vm29_vm0, %v4303_v59  ;;  %4336 = vst.msk [vmem:[#allocation2 + $0x48] sm:$0xff] %vm29_vm0, %v4304_v35  ;;  %v4165_v61 = vmul.bf16 1056980736, %v9189_v21  ;;  %v9191_v3 = vpop.eup %9190  ;;  %v9682_v42 = vld [vmem:[%s15323_s2 + $0x20] sm:$0xff]   ;;  %v9683_v59 = vld [vmem:[%s15323_s2 + $0x28] sm:$0xff]  }
 0x60e   :  { %v4174_v15 = vadd.bf16 1056980736, %v4166_v25  ;;  %v4482_v53 = vld [vmem:[#allocation2 + $0x30] sm:$0xff]  ;;  %v9193_v63 = vpop.eup %9192  ;;  %v4483_v12 = vld [vmem:[#allocation2 + $0x38] sm:$0xff]  ;;  %v9686_v21 = vld [vmem:[%s15323_s2 + $0x40] sm:$0xff]  }
 0x60f   :  { %v4173_v29 = vadd.bf16 1056980736, %v4165_v61  ;;  %8400 = vmatpush3.bf16.msra.mxu0 %v4493_v17  ;;  %v4480_v46 = vld [vmem:[#allocation2 + $0x20] sm:$0xff]  ;;  %v9195_v50 = vpop.eup %9194  ;;  %v4495_v62 = vpack.c.bf16 %v4483_v12, %v4482_v53  ;;  %v9684_v35 = vld [vmem:[%s15323_s2 + $0x30] sm:$0xff]   ;;  %v9685_v17 = vld [vmem:[%s15323_s2 + $0x38] sm:$0xff]  }
 0x610   :  { %v4293_v1 = vunpack.c.l.bf16 %v4174_v15  ;;  %v4294_v11 = vunpack.c.h.bf16 %v4174_v15  ;;  %v4481_v56 = vld [vmem:[#allocation2 + $0x28] sm:$0xff]  ;;  %v9197_v60 = vpop.eup %9196  ;;  %v9688_v61 = vld [vmem:[%s15323_s2 + $0x50] sm:$0xff]   ;;  %v9689_v15 = vld [vmem:[%s15323_s2 + $0x58] sm:$0xff]  }
 0x611   :  { %v4291_v39 = vunpack.c.l.bf16 %v4173_v29  ;;  %v4292_v23 = vunpack.c.h.bf16 %v4173_v29  ;;  %v4494_v32 = vpack.c.bf16 %v4481_v56, %v4480_v46  ;;  %v9687_v25 = vld [vmem:[%s15323_s2 + $0x48] sm:$0xff]   ;;  %v9692_v53 = vld [vmem:[%s15323_s2 + $0x70] sm:$0xff]   ;;  %v9697_v56 = vld [vmem:[%s15323_s2 + $0x98] sm:$0xff]  }
 0x612   :  { %v4309_v49 = vmul.f32 %v9191_v3, %v4293_v1  ;;  %v4310_v34 = vmul.f32 %v9193_v63, %v4294_v11  ;;  %v9690_v3 = vld [vmem:[%s15323_s2 + $0x60] sm:$0xff]   ;;  %v9691_v29 = vld [vmem:[%s15323_s2 + $0x68] sm:$0xff]   ;;  %v9693_v63 = vld [vmem:[%s15323_s2 + $0x78] sm:$0xff]  }
 0x613   :  { %v4307_v13 = vmul.f32 %v9195_v50, %v4291_v39  ;;  %v4308_v51 = vmul.f32 %v9197_v60, %v4292_v23  ;;  %8401 = vmatprep.subr.bf16.mxu0 %v4494_v32  ;;  %v4486_v38 = vld [vmem:[#allocation2 + $0x50] sm:$0xff]  ;;  %v4487_v18 = vld [vmem:[#allocation2 + $0x58] sm:$0xff]  ;;  %v9694_v1 = vld [vmem:[%s15323_s2 + $0x80] sm:$0xff]  }
 0x614   :  { %4341 = vst.msk [vmem:[#allocation2 + $0x70] sm:$0xff] %vm29_vm0, %v4309_v49  ;;  %4342 = vst.msk [vmem:[#allocation2 + $0x78] sm:$0xff] %vm29_vm0, %v4310_v34  ;;  %8402 = vmatpush3.bf16.msra.mxu0 %v4494_v32  ;;  %v4484_v28 = vld [vmem:[#allocation2 + $0x40] sm:$0xff]  ;;  %v4485_v33 = vld [vmem:[#allocation2 + $0x48] sm:$0xff]  ;;  %v4497_v54 = vpack.c.bf16 %v4487_v18, %v4486_v38 }
 0x615   :  { %4339 = vst.msk [vmem:[#allocation2 + $0x60] sm:$0xff] %vm29_vm0, %v4307_v13  ;;  %4340 = vst.msk [vmem:[#allocation2 + $0x68] sm:$0xff] %vm29_vm0, %v4308_v51  ;;  %8403 = vmatprep.subr.bf16.mxu0 %v4495_v62  ;;  %v4496_v24 = vpack.c.bf16 %v4485_v33, %v4484_v28  ;;  %v9695_v11 = vld [vmem:[%s15323_s2 + $0x88] sm:$0xff]   ;;  %v9696_v46 = vld [vmem:[%s15323_s2 + $0x90] sm:$0xff]  }
 0x616   :  { %v9698_v12 = vld [vmem:[%s15323_s2 + $0xa0] sm:$0xff]   ;;  %v9699_v50 = vld [vmem:[%s15323_s2 + $0xa8] sm:$0xff]   ;;  %v9700_v39 = vld [vmem:[%s15323_s2 + $0xb0] sm:$0xff]  }
 0x617   :  { %v9701_v23 = vld [vmem:[%s15323_s2 + $0xb8] sm:$0xff]   ;;  %v9702_v32 = vld [vmem:[%s15323_s2 + $0xc0] sm:$0xff]   ;;  %v9703_v60 = vld [vmem:[%s15323_s2 + $0xc8] sm:$0xff]  }
 0x618   :  { %8404 = vmatpush3.bf16.msra.mxu0 %v4495_v62  ;;  %v9704_v49 = vld [vmem:[%s15323_s2 + $0xd0] sm:$0xff]   ;;  %v9705_v34 = vld [vmem:[%s15323_s2 + $0xd8] sm:$0xff]   ;;  %v9706_v13 = vld [vmem:[%s15323_s2 + $0xe0] sm:$0xff]  }
 0x619   :  { %8405 = vmatprep.subr.bf16.mxu0 %v4496_v24  ;;  %v9707_v51 = vld [vmem:[%s15323_s2 + $0xe8] sm:$0xff]   ;;  %v9708_v62 = vld [vmem:[%s15323_s2 + $0xf0] sm:$0xff]   ;;  %v9709_v28 = vld [vmem:[%s15323_s2 + $0xf8] sm:$0xff]  }
 0x61a   :  { %v9710_v33 = vld [vmem:[%s15323_s2] sm:$0xff]   ;;  %v16073_v38 = vld [vmem:[#allocation13_spill] sm:$0xff] }
 0x61b   :  { %v4490_v55 = vld [vmem:[#allocation2 + $0x70] sm:$0xff]  ;;  %v4491_v6 = vld [vmem:[#allocation2 + $0x78] sm:$0xff] }
 0x61c   :  { %8406 = vmatpush3.bf16.msra.mxu0 %v4496_v24  ;;  %v4488_v48 = vld [vmem:[#allocation2 + $0x60] sm:$0xff]  ;;  %v4489_v2 = vld [vmem:[#allocation2 + $0x68] sm:$0xff]  ;;  %v4499_v14 = vpack.c.bf16 %v4491_v6, %v4490_v55  ;;  %v16076_v6 = vld [vmem:[#allocation7_spill] sm:$0xff] }
 0x61d   :  { %8407 = vmatprep.subr.bf16.mxu0 %v4497_v54  ;;  %v4498_v40 = vpack.c.bf16 %v4489_v2, %v4488_v48  ;;  %v13026_v24 = vld [vmem:[%s15324_s0 + $0x4] ss:$0 sm:$0xff] }
 0x61e   :  { %v4350_v18 = vmul.f32 %v13026_v24, %v16073_v38  ;;  %v16114_v38 = vld [vmem:[#allocation36_spill] sm:$0xff] }
 0x620   :  { %8408 = vmatpush3.bf16.msra.mxu0 %v4497_v54  ;;  %v16074_v54 = vld [vmem:[#allocation12_spill] sm:$0xff] }
 0x621   :  { %8409 = vmatprep.subr.bf16.mxu0 %v4498_v40  ;;  %v4351_v48 = vmul.f32 %v13026_v24, %v16074_v54  ;;  %v16113_v54 = vld [vmem:[#allocation37_spill] sm:$0xff] }
 0x624   :  { %8410 = vmatpush3.bf16.msra.mxu0 %v4498_v40  ;;  %v16075_v40 = vld [vmem:[#allocation5_spill] sm:$0xff] }
 0x625   :  { %8411 = vmatprep.subr.bf16.mxu0 %v4499_v14  ;;  %v4348_v55 = vmul.f32 %v13026_v24, %v16075_v40 }
 0x628   :  { %8412 = vmatpush3.bf16.msra.mxu0 %v4499_v14  ;;  %v4349_v14 = vmul.f32 %v13026_v24, %v16076_v6 }
 0x62b   :  { %8414 = vmatmul.mubr.bf16.vlgmr.msra.gmra.mrb[128].mxu0 %v9679_v57  ;;  %v16077_v57 = vld [vmem:[#allocation19_spill] sm:$0xff] }
 0x62c   :  { %8417 = vmatprep.mubr.bf16.mxu0 %v9680_v58  ;;  %v4414_v58 = vadd.f32 %v4350_v18, %v16077_v57 }
 0x633   :  { %8418 = vmatmul.mubr.bf16.gmra.mrb[132].mxu0 %v9681_v16 }
 0x634   :  { %8421 = vmatprep.mubr.bf16.mxu0 %v9682_v42  ;;  %v16078_v42 = vld [vmem:[#allocation18_spill] sm:$0xff] }
 0x63b   :  { %8422 = vmatmul.mubr.bf16.gmra.mrb[136].mxu0 %v9683_v59  ;;  %v4415_v59 = vadd.f32 %v4351_v48, %v16078_v42 }
 0x63c   :  { %8425 = vmatprep.mubr.bf16.mxu0 %v9684_v35  ;;  %v16079_v35 = vld [vmem:[#allocation9_spill] sm:$0xff] }
 0x643   :  { %8426 = vmatmul.mubr.bf16.gmra.mrb[140].mxu0 %v9685_v17  ;;  %v4412_v17 = vadd.f32 %v4348_v55, %v16079_v35 }
 0x644   :  { %8429 = vmatprep.mubr.bf16.mxu0 %v9686_v21 }
 0x64b   :  { %8430 = vmatmul.mubr.bf16.gmra.mrb[144].mxu0 %v9687_v25  ;;  %v16080_v25 = vld [vmem:[#allocation8_spill] sm:$0xff] }
 0x64c   :  { %8433 = vmatprep.mubr.bf16.mxu0 %v9688_v61  ;;  %v4413_v61 = vadd.f32 %v4349_v14, %v16080_v25  ;;  %v16112_v25 = vld [vmem:[#allocation10_spill] sm:$0xff] }
 0x653   :  { %8434 = vmatmul.mubr.bf16.gmra.mrb[148].mxu0 %v9689_v15 }
 0x654   :  { %8437 = vmatprep.mubr.bf16.mxu0 %v9690_v3 }
 0x65b   :  { %8438 = vmatmul.mubr.bf16.gmra.mrb[152].mxu0 %v9691_v29 }
 0x65c   :  { %8441 = vmatprep.mubr.bf16.mxu0 %v9692_v53 }
 0x663   :  { %8442 = vmatmul.mubr.bf16.gmra.mrb[156].mxu0 %v9693_v63 }
 0x664   :  { %8445 = vmatprep.mubr.bf16.mxu0 %v9694_v1 }
 0x66b   :  { %8446 = vmatmul.mubr.bf16.gmra.mrb[160].mxu0 %v9695_v11  ;;  %v16095_v11 = vld [vmem:[#allocation59_spill] sm:$0xff] }
 0x66c   :  { %8449 = vmatprep.mubr.bf16.mxu0 %v9696_v46  ;;  %v16081_v46 = vld [vmem:[#allocation35_spill] sm:$0xff] }
 0x673   :  { %8450 = vmatmul.mubr.bf16.gmra.mrb[164].mxu0 %v9697_v56  ;;  %v4354_v56 = vmul.f32 %v13026_v24, %v16081_v46 }
 0x674   :  { %8453 = vmatprep.mubr.bf16.mxu0 %v9698_v12  ;;  %v16082_v12 = vld [vmem:[#allocation34_spill] sm:$0xff] }
 0x67b   :  { %8454 = vmatmul.mubr.bf16.gmra.mrb[168].mxu0 %v9699_v50  ;;  %v4355_v50 = vmul.f32 %v13026_v24, %v16082_v12 }
 0x67c   :  { %8457 = vmatprep.mubr.bf16.mxu0 %v9700_v39 }
 0x683   :  { %8458 = vmatmul.mubr.bf16.gmra.mrb[172].mxu0 %v9701_v23  ;;  %v16083_v23 = vld [vmem:[#allocation23_spill] sm:$0xff] }
 0x684   :  { %8461 = vmatprep.mubr.bf16.mxu0 %v9702_v32  ;;  %v4352_v32 = vmul.f32 %v13026_v24, %v16083_v23 }
 0x68b   :  { %8462 = vmatmul.mubr.bf16.gmra.mrb[176].mxu0 %v9703_v60  ;;  %v16084_v60 = vld [vmem:[#allocation22_spill] sm:$0xff] }
 0x68c   :  { %8465 = vmatprep.mubr.bf16.mxu0 %v9704_v49  ;;  %v4353_v49 = vmul.f32 %v13026_v24, %v16084_v60  ;;  %v16104_v60 = vld [vmem:[#allocation92_spill] sm:$0xff] }
 0x693   :  { %8466 = vmatmul.mubr.bf16.gmra.mrb[180].mxu0 %v9705_v34  ;;  %v16085_v34 = vld [vmem:[#allocation43_spill] sm:$0xff] }
 0x694   :  { %8469 = vmatprep.mubr.bf16.mxu0 %v9706_v13  ;;  %v4418_v13 = vadd.f32 %v4354_v56, %v16085_v34 }
 0x69b   :  { %8470 = vmatmul.mubr.bf16.gmra.mrb[184].mxu0 %v9707_v51 }
 0x69c   :  { %8473 = vmatprep.mubr.bf16.mxu0 %v9708_v62  ;;  %v16086_v62 = vld [vmem:[#allocation42_spill] sm:$0xff] }
 0x6a3   :  { %8474 = vmatmul.mubr.bf16.gmra.mrb[188].mxu0 %v9709_v28  ;;  %v4419_v28 = vadd.f32 %v4355_v50, %v16086_v62  ;;  %v16090_v50 = vld [vmem:[#allocation64_spill] sm:$0xff] }
 0x6a4   :  { %8573 = vmatprep.mubr.bf16.mxu0 %v9710_v33  ;;  %v16087_v33 = vld [vmem:[#allocation31_spill] sm:$0xff] }
 0x6a5   :  { %v4416_v18 = vadd.f32 %v4352_v32, %v16087_v33 }
 0x6fe   :  { %v8415_v2 = vpop.f32.mrb[128].mxu0 }
 0x6ff   :  { %v4534_v16 = vpop.f32.mrb[129].mxu0  ;;  %v13040_v15 = vadd.f32 %v8415_v2, %v4414_v58  ;;  %v16088_v2 = vld [vmem:[#allocation30_spill] sm:$0xff] }
 0x700   :  { %v8416_v21 = vpop.f32.mrb[130].mxu0  ;;  %v13044_v53 = vadd.f32 %v4534_v16, %v4412_v17  ;;  %v4417_v55 = vadd.f32 %v4353_v49, %v16088_v2  ;;  %v16091_v49 = vld [vmem:[#allocation49_spill] sm:$0xff]  ;;  %v16096_v2 = vld [vmem:[#allocation58_spill] sm:$0xff] }
 0x701   :  { %v13042_v3 = vadd.f32 %v8416_v21, %v4415_v59  ;;  %v4537_v29 = vpop.f32.mrb[131].mxu0 }
 0x702   :  { %v13046_v63 = vadd.f32 %v4537_v29, %v4413_v61  ;;  %v16089_v29 = vld [vmem:[#allocation65_spill] sm:$0xff] }
 0x703   :  { %v4358_v56 = vmul.f32 %v13026_v24, %v16089_v29 }
 0x706   :  { %v8419_v39 = vpop.f32.mrb[132].mxu0 }
 0x707   :  { %v4550_v51 = vpop.f32.mrb[133].mxu0  ;;  %v13064_v14 = vadd.f32 %v8419_v39, %v4418_v13  ;;  %v4359_v39 = vmul.f32 %v13026_v24, %v16090_v50  ;;  %v4356_v13 = vmul.f32 %v13026_v24, %v16091_v49 }
 0x708   :  { %v8420_v48 = vpop.f32.mrb[134].mxu0  ;;  %v13068_v59 = vadd.f32 %v4550_v51, %v4416_v18  ;;  %v16092_v51 = vld [vmem:[#allocation48_spill] sm:$0xff]  ;;  %v16093_v18 = vld [vmem:[#allocation75_spill] sm:$0xff] }
 0x709   :  { %v13066_v58 = vadd.f32 %v8420_v48, %v4419_v28  ;;  %v4553_v16 = vpop.f32.mrb[135].mxu0  ;;  %v4357_v28 = vmul.f32 %v13026_v24, %v16092_v51  ;;  %v4422_v48 = vadd.f32 %v4358_v56, %v16093_v18  ;;  %v4420_v61 = vadd.f32 %v4356_v13, %v16095_v11  ;;  %v16098_v11 = vld [vmem:[#allocation98_spill] sm:$0xff]  ;;  %v16102_v56 = vld [vmem:[#allocation107_spill] sm:$0xff]  ;;  %v16103_v18 = vld [vmem:[#allocation93_spill] sm:$0xff] }
 0x70a   :  { %v13070_v17 = vadd.f32 %v4553_v16, %v4417_v55  ;;  %v16094_v16 = vld [vmem:[#allocation74_spill] sm:$0xff] }
 0x70b   :  { %v4423_v21 = vadd.f32 %v4359_v39, %v16094_v16  ;;  %v4421_v29 = vadd.f32 %v4357_v28, %v16096_v2  ;;  %v16097_v16 = vld [vmem:[#allocation99_spill] sm:$0xff] }
 0x70c   :  { %v4362_v13 = vmul.f32 %v13026_v24, %v16097_v16 }
 0x70e   :  { %v8423_v32 = vpop.f32.mrb[136].mxu0 }
 0x70f   :  { %v4566_v55 = vpop.f32.mrb[137].mxu0  ;;  %v13088_v33 = vadd.f32 %v8423_v32, %v4422_v48  ;;  %v4363_v32 = vmul.f32 %v13026_v24, %v16098_v11 }
 0x710   :  { %v8424_v1 = vpop.f32.mrb[138].mxu0  ;;  %v13092_v34 = vadd.f32 %v4566_v55, %v4420_v61  ;;  %v16100_v61 = vld [vmem:[#allocation82_spill] sm:$0xff] }
 0x711   :  { %v13090_v50 = vadd.f32 %v8424_v1, %v4423_v21  ;;  %v4569_v62 = vpop.f32.mrb[139].mxu0  ;;  %v16099_v1 = vld [vmem:[#allocation83_spill] sm:$0xff]  ;;  %v4427_v2 = vadd.f32 %v4363_v32, %v16102_v56 }
 0x712   :  { %v13094_v49 = vadd.f32 %v4569_v62, %v4421_v29  ;;  %v4360_v21 = vmul.f32 %v13026_v24, %v16099_v1  ;;  %v4361_v62 = vmul.f32 %v13026_v24, %v16100_v61  ;;  %v16101_v29 = vld [vmem:[#allocation108_spill] sm:$0xff]  ;;  %v16105_v56 = vld [vmem:[#allocation15_spill] sm:$0xff] }
 0x713   :  { %v4426_v48 = vadd.f32 %v4362_v13, %v16101_v29  ;;  %v16110_v13 = vld [vmem:[#allocation20_spill] sm:$0xff]  ;;  %v16111_v29 = vld [vmem:[#allocation11_spill] sm:$0xff] }
 0x714   :  { %v4424_v39 = vadd.f32 %v4360_v21, %v16103_v18  ;;  %v4425_v16 = vadd.f32 %v4361_v62, %v16104_v60  ;;  %v4366_v21 = vmul.f32 %v13026_v24, %v16105_v56  ;;  %v16106_v18 = vld [vmem:[#allocation14_spill] sm:$0xff] }
 0x716   :  { %v8427_v28 = vpop.f32.mrb[140].mxu0 }
 0x717   :  { %v4582_v55 = vpop.f32.mrb[141].mxu0  ;;  %v13112_v23 = vadd.f32 %v8427_v28, %v4426_v48  ;;  %v4367_v28 = vmul.f32 %v13026_v24, %v16106_v18 }
 0x718   :  { %v8428_v51 = vpop.f32.mrb[142].mxu0  ;;  %v13116_v46 = vadd.f32 %v4582_v55, %v4424_v39  ;;  %v16108_v39 = vld [vmem:[#allocation6_spill] sm:$0xff] }
 0x719   :  { %v13114_v11 = vadd.f32 %v8428_v51, %v4427_v2  ;;  %v4585_v12 = vpop.f32.mrb[143].mxu0  ;;  %v16107_v2 = vld [vmem:[#allocation4_spill] sm:$0xff]  ;;  %v4431_v60 = vadd.f32 %v4367_v28, %v16110_v13  ;;  %v16115_v28 = vld [vmem:[#allocation25_spill] sm:$0xff] }
 0x71a   :  { %v13118_v1 = vadd.f32 %v4585_v12, %v4425_v16  ;;  %v4364_v51 = vmul.f32 %v13026_v24, %v16107_v2  ;;  %v4365_v12 = vmul.f32 %v13026_v24, %v16108_v39  ;;  %v16109_v16 = vld [vmem:[#allocation21_spill] sm:$0xff]  ;;  %v4370_v39 = vmul.f32 %v13026_v24, %v16113_v54 }
 0x71b   :  { %v4430_v48 = vadd.f32 %v4366_v21, %v16109_v16  ;;  %v4371_v21 = vmul.f32 %v13026_v24, %v16114_v38 }
 0x71c   :  { %v4428_v32 = vadd.f32 %v4364_v51, %v16111_v29  ;;  %v4429_v56 = vadd.f32 %v4365_v12, %v16112_v25  ;;  %v4368_v51 = vmul.f32 %v13026_v24, %v16115_v28  ;;  %v16116_v29 = vld [vmem:[#allocation24_spill] sm:$0xff] }
 0x71d   :  { %v4369_v12 = vmul.f32 %v13026_v24, %v16116_v29  ;;  %v4380_v29 = vmul.f32 %v13026_v24, %v16121_v8  ;;  %v16132_v8 = vld [vmem:[#allocation29_spill] sm:$0xff] }
 0x71e   :  { %v8431_v62 = vpop.f32.mrb[144].mxu0 }
 0x71f   :  { %v4598_v55 = vpop.f32.mrb[145].mxu0  ;;  %v4807_v35 = vadd.f32 %v8431_v62, %v4430_v48  ;;  %v16117_v62 = vld [vmem:[#allocation45_spill] sm:$0xff] }
 0x720   :  { %v8432_v61 = vpop.f32.mrb[146].mxu0  ;;  %v4805_v57 = vadd.f32 %v4598_v55, %v4428_v32  ;;  %v16118_v32 = vld [vmem:[#allocation44_spill] sm:$0xff] }
 0x721   :  { %v4808_v42 = vadd.f32 %v8432_v61, %v4431_v60  ;;  %v4601_v18 = vpop.f32.mrb[147].mxu0  ;;  %v4434_v60 = vadd.f32 %v4370_v39, %v16117_v62  ;;  %v4381_v39 = vmul.f32 %v13026_v24, %v16122_v41  ;;  %v16123_v62 = vld [vmem:[#allocation67_spill] sm:$0xff] }
 0x722   :  { %v4806_v6 = vadd.f32 %v4601_v18, %v4429_v56  ;;  %v4435_v18 = vadd.f32 %v4371_v21, %v16118_v32  ;;  %v4374_v21 = vmul.f32 %v13026_v24, %v16123_v62  ;;  %v16131_v62 = vld [vmem:[#allocation76_spill] sm:$0xff] }
 0x723   :  { %v4862_v40 = vpack.c.bf16 %v4808_v42, %v4807_v35  ;;  %v16119_v42 = vld [vmem:[#allocation33_spill] sm:$0xff]  ;;  %v16120_v35 = vld [vmem:[#allocation32_spill] sm:$0xff] }
 0x724   :  { %v4861_v2 = vpack.c.bf16 %v4806_v6, %v4805_v57  ;;  %v4432_v6 = vadd.f32 %v4368_v51, %v16119_v42  ;;  %v4433_v56 = vadd.f32 %v4369_v12, %v16120_v35  ;;  %v16124_v51 = vld [vmem:[#allocation66_spill] sm:$0xff] }
 0x725   :  { %v4375_v42 = vmul.f32 %v13026_v24, %v16124_v51  ;;  %v4918_v35 = vmul.bf16 1056980736, %v4862_v40 }
 0x726   :  { %v8435_v16 = vpop.f32.mrb[148].mxu0  ;;  %v4917_v22 = vmul.bf16 1056980736, %v4861_v2 }
 0x727   :  { %v4614_v61 = vpop.f32.mrb[149].mxu0  ;;  %v4811_v48 = vadd.f32 %v8435_v16, %v4434_v60  ;;  %v16125_v16 = vld [vmem:[#allocation51_spill] sm:$0xff]  ;;  %v4439_v41 = vadd.f32 %v4375_v42, %v16131_v62 }
 0x728   :  { %v8436_v57 = vpop.f32.mrb[150].mxu0  ;;  %v4809_v54 = vadd.f32 %v4614_v61, %v4432_v6  ;;  %v4372_v60 = vmul.f32 %v13026_v24, %v16125_v16  ;;  %v16126_v61 = vld [vmem:[#allocation50_spill] sm:$0xff]  ;;  %v4382_v16 = vmul.f32 %v13026_v24, %v16132_v8  ;;  %v16153_v8 = vld [vmem:[#allocation95_spill] sm:$0xff] }
 0x729   :  { %v4812_v55 = vadd.f32 %v8436_v57, %v4435_v18  ;;  %v4617_v38 = vpop.f32.mrb[151].mxu0  ;;  %v16128_v18 = vld [vmem:[#allocation26_spill] sm:$0xff]  ;;  %v16129_v57 = vpack.c.bf16 %v13042_v3, %v13040_v15 }
 0x72a   :  { %v4810_v25 = vadd.f32 %v4617_v38, %v4433_v56  ;;  %v4373_v38 = vmul.f32 %v13026_v24, %v16126_v61  ;;  %v13164_v6 = vadd.f32 %v4381_v39, %v16128_v18  ;;  %v16133_v61 = vld [vmem:[#allocation61_spill] sm:$0xff]  ;;  %v16135_v39 = vld [vmem:[#allocation28_spill] sm:$0xff] }
 0x72b   :  { %v4864_v13 = vpack.c.bf16 %v4812_v55, %v4811_v48  ;;  %v4886_v56 = vmul.bf16 1056980736, %v16129_v57  ;;  %v16130_v48 = vld [vmem:[#allocation77_spill] sm:$0xff]  ;;  %v4436_v32 = vadd.f32 %v4372_v60, %v16133_v61  ;;  %v4383_v18 = vmul.f32 %v13026_v24, %v16135_v39  ;;  %v16136_v57 = vld [vmem:[#allocation39_spill] sm:$0xff]  ;;  %v16137_v60 = vld [vmem:[#allocation38_spill] sm:$0xff] }
 0x72c   :  { %v4863_v28 = vpack.c.bf16 %v4810_v25, %v4809_v54  ;;  %v16127_v54 = vld [vmem:[#allocation27_spill] sm:$0xff]  ;;  %v4438_v55 = vadd.f32 %v4374_v21, %v16130_v48  ;;  %v13182_v42 = vadd.f32 %v4382_v16, %v16136_v57  ;;  %v16150_v57 = vld [vmem:[#allocation80_spill] sm:$0xff] }
 0x72d   :  { %v13161_v25 = vadd.f32 %v4380_v29, %v16127_v54  ;;  %v16134_v54 = vld [vmem:[#allocation60_spill] sm:$0xff]  ;;  %v13189_v61 = vadd.f32 %v4383_v18, %v16137_v60  ;;  %9198 = vtanh.bf16 %v4886_v56  ;;  %v16142_v18 = vld [vmem:[#allocation46_spill] sm:$0xff]  ;;  %v16145_v60 = vld [vmem:[#allocation53_spill] sm:$0xff] }
 0x72e   :  { %v8439_v12 = vpop.f32.mrb[152].mxu0  ;;  %v4437_v4 = vadd.f32 %v4373_v38, %v16134_v54  ;;  %v16138_v38 = vld [vmem:[#allocation41_spill] sm:$0xff]  ;;  %9200 = vtanh.bf16 %v4918_v35  ;;  %v4397_v56 = vmul.f32 %v13026_v24, %v16142_v18 }
 0x72f   :  { %v4630_v51 = vpop.f32.mrb[153].mxu0  ;;  %v13177_v15 = vadd.f32 %v8439_v12, %v4438_v55  ;;  %v4384_v54 = vmul.f32 %v13026_v24, %v16138_v38  ;;  %v16140_v55 = vld [vmem:[#allocation47_spill] sm:$0xff]  ;;  %9202 = vtanh.bf16 %v4917_v22  ;;  %v16149_v22 = vpack.c.bf16 %v13066_v58, %v13064_v14  ;;  %v16155_v58 = vld [vmem:[#allocation57_spill] sm:$0xff] }
 0x730   :  { %v8440_v29 = vpop.f32.mrb[154].mxu0  ;;  %v13184_v62 = vadd.f32 %v4630_v51, %v4436_v32  ;;  %v4396_v16 = vmul.f32 %v13026_v24, %v16140_v55 }
 0x731   :  { %v13179_v3 = vadd.f32 %v8440_v29, %v4439_v41  ;;  %v4633_v21 = vpop.f32.mrb[155].mxu0  ;;  %v16139_v41 = vld [vmem:[#allocation40_spill] sm:$0xff]  ;;  %v16143_v29 = vld [vmem:[#allocation101_spill] sm:$0xff]  ;;  %v13211_v55 = vadd.f32 %v4384_v54, %v16145_v60 }
 0x732   :  { %v13186_v40 = vadd.f32 %v4633_v21, %v4437_v4  ;;  %v4385_v12 = vmul.f32 %v13026_v24, %v16139_v41  ;;  %v16141_v4 = vpack.c.bf16 %v13046_v63, %v13044_v53  ;;  %v4920_v41 = vmul.bf16 1056980736, %v4864_v13  ;;  %v16146_v63 = vld [vmem:[#allocation85_spill] sm:$0xff]  ;;  %v16152_v13 = vld [vmem:[#allocation55_spill] sm:$0xff] }
 0x733   :  { %v4866_v2 = vpack.c.bf16 %v13179_v3, %v13177_v15  ;;  %v4378_v15 = vmul.f32 %v13026_v24, %v16143_v29  ;;  %v16144_v3 = vld [vmem:[#allocation100_spill] sm:$0xff]  ;;  %v4376_v35 = vmul.f32 %v13026_v24, %v16146_v63  ;;  %v4888_v29 = vmul.bf16 1056980736, %v16149_v22  ;;  %v16151_v54 = vld [vmem:[#allocation81_spill] sm:$0xff]  ;;  %v16156_v22 = vld [vmem:[#allocation54_spill] sm:$0xff] }
 0x734   :  { %v4885_v32 = vmul.bf16 1056980736, %v16141_v4  ;;  %v4865_v51 = vpack.c.bf16 %v13186_v40, %v13184_v62  ;;  %v4379_v21 = vmul.f32 %v13026_v24, %v16144_v3  ;;  %v16147_v4 = vld [vmem:[#allocation84_spill] sm:$0xff]  ;;  %v13226_v39 = vadd.f32 %v4396_v16, %v16152_v13  ;;  %v16167_v13 = vld [vmem:[#allocation71_spill] sm:$0xff] }
 0x735   :  { %v4377_v62 = vmul.f32 %v13026_v24, %v16147_v4  ;;  %v16148_v40 = vld [vmem:[#allocation52_spill] sm:$0xff]  ;;  %v4442_v3 = vadd.f32 %v4378_v15, %v16150_v57  ;;  %v4919_v63 = vmul.bf16 1056980736, %v4863_v28  ;;  %v4440_v48 = vadd.f32 %v4376_v35, %v16153_v8  ;;  %v16171_v8 = vld [vmem:[#allocation78_spill] sm:$0xff] }
 0x736   :  { %v8443_v53 = vpop.f32.mrb[156].mxu0  ;;  %v13218_v18 = vadd.f32 %v4385_v12, %v16148_v40  ;;  %v4443_v60 = vadd.f32 %v4379_v21, %v16151_v54  ;;  %9204 = vtanh.bf16 %v4885_v32  ;;  %v4386_v15 = vmul.f32 %v13026_v24, %v16155_v58  ;;  %v16157_v32 = vld [vmem:[#allocation56_spill] sm:$0xff] }
 0x737   :  { %v4646_v38 = vpop.f32.mrb[157].mxu0  ;;  %v4441_v12 = vadd.f32 %v4377_v62, %v16154_v47  ;;  %v13230_v40 = vadd.f32 %v8443_v53, %v4442_v3  ;;  %v13237_v21 = vadd.f32 %v4397_v56, %v16156_v22  ;;  %9206 = vtanh.bf16 %v4920_v41  ;;  %v16161_v62 = vld [vmem:[#allocation62_spill] sm:$0xff]  ;;  %v16165_v22 = vld [vmem:[#allocation73_spill] sm:$0xff] }
 0x738   :  { %v8444_v4 = vpop.f32.mrb[158].mxu0  ;;  %v13239_v16 = vadd.f32 %v4646_v38, %v4440_v48  ;;  %v4387_v35 = vmul.f32 %v13026_v24, %v16157_v32  ;;  %9208 = vtanh.bf16 %v4888_v29  ;;  %v16160_v48 = vpack.c.bf16 %v13090_v50, %v13088_v33  ;;  %v9199_v50 = vpop.eup %9198  ;;  %v16175_v32 = vld [vmem:[#allocation103_spill] sm:$0xff] }
 0x739   :  { %v13232_v7 = vadd.f32 %v8444_v4, %v4443_v60  ;;  %v4649_v14 = vpop.f32.mrb[159].mxu0  ;;  %v16158_v60 = vpack.c.bf16 %v13070_v17, %v13068_v59  ;;  %v16159_v4 = vld [vmem:[#allocation63_spill] sm:$0xff]  ;;  %9210 = vtanh.bf16 %v4919_v63  ;;  %v4399_v29 = vmul.f32 %v13026_v24, %v16161_v62 }
 0x73a   :  { %v13241_v28 = vadd.f32 %v4649_v14, %v4441_v12  ;;  %v4398_v56 = vmul.f32 %v13026_v24, %v16159_v4  ;;  %v4890_v38 = vmul.bf16 1056980736, %v16160_v48  ;;  %v16162_v59 = vpack.c.bf16 %v13094_v49, %v13092_v34  ;;  %v16163_v12 = vld [vmem:[#allocation69_spill] sm:$0xff]  ;;  %v16166_v48 = vld [vmem:[#allocation72_spill] sm:$0xff]  ;;  %v16168_v4 = vld [vmem:[#allocation70_spill] sm:$0xff] }
 0x73b   :  { %v4887_v3 = vmul.bf16 1056980736, %v16158_v60  ;;  %v13263_v14 = vadd.f32 %v4386_v15, %v16163_v12  ;;  %v16164_v60 = vld [vmem:[#allocation68_spill] sm:$0xff]  ;;  %v4388_v33 = vmul.f32 %v13026_v24, %v16165_v22  ;;  %v4389_v41 = vmul.f32 %v13026_v24, %v16166_v48  ;;  %v16169_v49 = vld [vmem:[#allocation79_spill] sm:$0xff] }
 0x73c   :  { %v4889_v17 = vmul.bf16 1056980736, %v16162_v59  ;;  %v13266_v53 = vadd.f32 %v4387_v35, %v16164_v60  ;;  %v13273_v62 = vadd.f32 %v4398_v56, %v16167_v13  ;;  %v13276_v34 = vadd.f32 %v4399_v29, %v16168_v4  ;;  %v9201_v35 = vpop.eup %9200  ;;  %v16170_v22 = vld [vmem:[#allocation87_spill] sm:$0xff] }
 0x73d   :  { %v13280_v15 = vmul.f32 %v13026_v24, %v16169_v49  ;;  %9212 = vtanh.bf16 %v4887_v3  ;;  %v4922_v59 = vmul.bf16 1056980736, %v4866_v2  ;;  %v13283_v47 = vadd.f32 %v4388_v33, %v16170_v22  ;;  %v9203_v56 = vpop.eup %9202  ;;  %v16172_v4 = vld [vmem:[#allocation91_spill] sm:$0xff]  ;;  %v16173_v49 = vld [vmem:[#allocation86_spill] sm:$0xff] }
 0x73e   :  { %v8447_v63 = vpop.f32.mrb[160].mxu0  ;;  %v13287_v48 = vmul.f32 %v13026_v24, %v16171_v8  ;;  %9214 = vtanh.bf16 %v4890_v38  ;;  %v4921_v13 = vmul.bf16 1056980736, %v4865_v51  ;;  %v4390_v12 = vmul.f32 %v13026_v24, %v16172_v4  ;;  %v16174_v22 = vld [vmem:[#allocation90_spill] sm:$0xff] }
 0x73f   :  { %v4662_v60 = vpop.f32.mrb[161].mxu0  ;;  %v13292_v54 = vadd.f32 %v4389_v41, %v16173_v49  ;;  %9216 = vtanh.bf16 %v4889_v17  ;;  %v4823_v2 = vadd.f32 %v8447_v63, %v13182_v42  ;;  %v4391_v8 = vmul.f32 %v13026_v24, %v16174_v22 }
 0x740   :  { %v8448_v29 = vpop.f32.mrb[162].mxu0  ;;  %v4934_v57 = vmul.bf16 1056980736, %v9201_v35  ;;  %v4821_v38 = vadd.f32 %v4662_v60, %v13161_v25  ;;  %v13301_v58 = vadd.f32 %v4390_v12, %v16175_v32  ;;  %v4902_v41 = vmul.bf16 1056980736, %v9199_v50  ;;  %v16179_v60 = vld [vmem:[#allocation113_spill] sm:$0xff] }
 0x741   :  { %v4824_v3 = vadd.f32 %v8448_v29, %v13189_v61  ;;  %v4665_v33 = vpop.f32.mrb[163].mxu0  ;;  %v9205_v4 = vpop.eup %9204  ;;  %v4933_v49 = vmul.bf16 1056980736, %v9203_v56  ;;  %9218 = vtanh.bf16 %v4922_v59  ;;  %v16176_v61 = vpack.c.bf16 %v13114_v11, %v13112_v23  ;;  %v16177_v29 = vld [vmem:[#allocation102_spill] sm:$0xff] }
 0x742   :  { %v4822_v51 = vadd.f32 %v4665_v33, %v13164_v6  ;;  %9220 = vtanh.bf16 %v4921_v13  ;;  %v13307_v35 = vadd.f32 %v4391_v8, %v16177_v29  ;;  %v9207_v25 = vpop.eup %9206  ;;  %v16178_v6 = vpack.c.bf16 %v13118_v1, %v13116_v46  ;;  %v16180_v59 = vld [vmem:[#allocation106_spill] sm:$0xff]  ;;  %v16182_v1 = vld [vmem:[#allocation115_spill] sm:$0xff] }
 0x743   :  { %v4870_v17 = vpack.c.bf16 %v4824_v3, %v4823_v2  ;;  %v4892_v42 = vmul.bf16 1056980736, %v16176_v61  ;;  %v4394_v50 = vmul.f32 %v13026_v24, %v16179_v60  ;;  %v4392_v56 = vmul.f32 %v13026_v24, %v16180_v59  ;;  %v9209_v2 = vpop.eup %9208  ;;  %v16181_v3 = vld [vmem:[#allocation112_spill] sm:$0xff]  ;;  %v16183_v61 = vld [vmem:[#allocation105_spill] sm:$0xff]  ;;  %v16185_v60 = vld [vmem:[#allocation110_spill] sm:$0xff] }
 0x744   :  { %v4869_v63 = vpack.c.bf16 %v4822_v51, %v4821_v38  ;;  %v4891_v12 = vmul.bf16 1056980736, %v16178_v6  ;;  %v4901_v11 = vmul.bf16 1056980736, %v9205_v4  ;;  %v4942_v23 = vadd.bf16 1056980736, %v4934_v57  ;;  %v9211_v33 = vpop.eup %9210 }
 0x745   :  { %9222 = vtanh.bf16 %v4870_v17  ;;  %v4395_v8 = vmul.f32 %v13026_v24, %v16181_v3  ;;  %v4910_v38 = vadd.bf16 1056980736, %v4902_v41  ;;  %v4941_v51 = vadd.bf16 1056980736, %v4933_v49 }
 0x746   :  { %9224 = vtanh.bf16 %v4869_v63  ;;  %v8451_v13 = vpop.f32.mrb[164].mxu0  ;;  %v13319_v17 = vadd.f32 %v4394_v50, %v16182_v1  ;;  %v13323_v6 = vmul.f32 %v13026_v24, %v16183_v61  ;;  %v4936_v59 = vmul.bf16 1056980736, %v9207_v25 }
 0x747   :  { %v4678_v46 = vpop.f32.mrb[165].mxu0  ;;  %9226 = vtanh.bf16 %v4892_v42  ;;  %v16184_v57 = vpack.c.bf16 %v13232_v7, %v13230_v40  ;;  %v13329_v3 = vadd.f32 %v4392_v56, %v16185_v60  ;;  %v4904_v41 = vmul.bf16 1056980736, %v9209_v2 }
 0x748   :  { %v8452_v63 = vpop.f32.mrb[166].mxu0  ;;  %9228 = vtanh.bf16 %v4891_v12  ;;  %v4827_v49 = vadd.f32 %v8451_v13, %v13263_v14  ;;  %v13333_v29 = vpop.eup %9212  ;;  %v5007_v61 = vunpack.c.l.bf16 %v4942_v23  ;;  %v4935_v42 = vmul.bf16 1056980736, %v9211_v33 }
 0x749   :  { %v4924_v4 = vmul.bf16 1056980736, %v16184_v57  ;;  %v4828_v50 = vadd.f32 %v8452_v63, %v13266_v53  ;;  %v4681_v1 = vpop.f32.mrb[167].mxu0  ;;  %v4825_v25 = vadd.f32 %v4678_v46, %v13211_v55  ;;  %v13337_v40 = vpop.eup %9214  ;;  %v5008_v57 = vunpack.c.h.bf16 %v4942_v23  ;;  %v4991_v53 = vld [vmem:[#allocation3 + $0x10] sm:$0xff] }
 0x74a   :  { %v4826_v7 = vadd.f32 %v4681_v1, %v13218_v18  ;;  %v5005_v56 = vunpack.c.l.bf16 %v4941_v51  ;;  %v16186_v12 = vpack.c.bf16 %v13241_v28, %v13239_v16  ;;  %v13342_v13 = vpop.eup %9216  ;;  %v5006_v63 = vunpack.c.h.bf16 %v4941_v51  ;;  %v4992_v16 = vld [vmem:[#allocation3 + $0x18] sm:$0xff] }
 0x74b   :  { %v4872_v14 = vpack.c.bf16 %v4828_v50, %v4827_v49  ;;  %v13344_v60 = vadd.bf16 1056980736, %v4936_v59  ;;  %9230 = vtanh.bf16 %v4924_v4  ;;  %v4909_v55 = vadd.bf16 1056980736, %v4901_v11  ;;  %v16187_v50 = vld [vmem:[#allocation114_spill] sm:$0xff] }
 0x74c   :  { %v4923_v2 = vmul.bf16 1056980736, %v16186_v12  ;;  %v4871_v33 = vpack.c.bf16 %v4826_v7, %v4825_v25  ;;  %v13346_v46 = vadd.bf16 1056980736, %v4904_v41  ;;  %v4903_v18 = vmul.bf16 1056980736, %v13333_v29  ;;  %v9219_v23 = vpop.eup %9218 }
 0x74d   :  { %9232 = vtanh.bf16 %v4872_v14  ;;  %v4906_v1 = vmul.bf16 1056980736, %v13337_v40  ;;  %v13350_v28 = vadd.bf16 1056980736, %v4935_v42  ;;  %v13353_v51 = vadd.f32 %v4395_v8, %v16187_v50  ;;  %v9221_v59 = vpop.eup %9220  ;;  %v4989_v25 = vld [vmem:[#allocation3] sm:$0xff]  ;;  %v4990_v7 = vld [vmem:[#allocation3 + $0x8] sm:$0xff] }
 0x74e   :  { %9234 = vtanh.bf16 %v4871_v33  ;;  %v8455_v49 = vpop.f32.mrb[168].mxu0  ;;  %v4905_v4 = vmul.bf16 1056980736, %v13342_v13  ;;  %v5023_v11 = vmul.f32 %v5007_v61, %v4991_v53  ;;  %v5024_v41 = vmul.f32 %v5008_v57, %v4992_v16 }
 0x74f   :  { %9236 = vtanh.bf16 %v4923_v2  ;;  %v4694_v29 = vpop.f32.mrb[169].mxu0  ;;  %v5021_v14 = vmul.f32 %v5005_v56, %v4989_v25  ;;  %v5022_v40 = vmul.f32 %v5006_v63, %v4990_v7  ;;  %v5011_v42 = vunpack.c.l.bf16 %v13344_v60 }
 0x750   :  { %v9223_v12 = vpop.eup %9222  ;;  %v5012_v33 = vunpack.c.h.bf16 %v13344_v60  ;;  %v8456_v32 = vpop.f32.mrb[170].mxu0  ;;  %v4938_v8 = vmul.bf16 1056980736, %v9219_v23  ;;  %v4831_v30 = vadd.f32 %v8455_v49, %v13301_v58  ;;  %v5009_v13 = vunpack.c.l.bf16 %v13350_v28 }
 0x751   :  { %v9225_v22 = vpop.eup %9224  ;;  %v5038_v50 = vmul.bf16 %v9223_v12, %v4910_v38  ;;  %v4832_v61 = vadd.f32 %v8456_v32, %v13307_v35  ;;  %v4697_v57 = vpop.f32.mrb[171].mxu0  ;;  %v4829_v53 = vadd.f32 %v4694_v29, %v13283_v47  ;;  %v5010_v60 = vunpack.c.h.bf16 %v13350_v28  ;;  %v4996_v29 = vld [vmem:[#allocation3 + $0x38] sm:$0xff]  ;;  %v4993_v28 = vld [vmem:[#allocation3 + $0x20] sm:$0xff] }
 0x752   :  { %v5037_v2 = vmul.bf16 %v9225_v22, %v4909_v55  ;;  %v4830_v56 = vadd.f32 %v4697_v57, %v13292_v54  ;;  %v13363_v63 = vpop.eup %9226  ;;  %v4937_v58 = vmul.bf16 1056980736, %v9221_v59  ;;  %v13368_v7 = vadd.bf16 1056980736, %v4938_v8  ;;  %v4995_v55 = vld [vmem:[#allocation3 + $0x30] sm:$0xff]  ;;  %v4994_v57 = vld [vmem:[#allocation3 + $0x28] sm:$0xff] }
 0x753   :  { %v5047_v16 = vunpack.c.l.bf16 %v5038_v50  ;;  %v5048_v25 = vunpack.c.h.bf16 %v5038_v50  ;;  %v4874_v23 = vpack.c.bf16 %v4832_v61, %v4831_v30  ;;  %v13366_v38 = vpop.eup %9228  ;;  %v4911_v54 = vadd.bf16 1056980736, %v4903_v18 }
 0x754   :  { %v5045_v49 = vunpack.c.l.bf16 %v5037_v2  ;;  %v5046_v32 = vunpack.c.h.bf16 %v5037_v2  ;;  %v4873_v35 = vpack.c.bf16 %v4830_v56, %v4829_v53  ;;  %v13378_v61 = vadd.bf16 1056980736, %v4906_v1 }
 0x755   :  { %v13370_v22 = vadd.f32 %v5047_v16, %v5023_v11  ;;  %v13372_v47 = vadd.f32 %v5048_v25, %v5024_v41  ;;  %9238 = vtanh.bf16 %v4874_v23  ;;  %v13380_v8 = vadd.bf16 1056980736, %v4905_v4  ;;  %v16188_v41 = vld [vmem:[#allocation109_spill] sm:$0xff] }
 0x756   :  { %v13374_v12 = vadd.f32 %v5045_v49, %v5021_v14  ;;  %v13376_v30 = vadd.f32 %v5046_v32, %v5022_v40  ;;  %9240 = vtanh.bf16 %v4873_v35  ;;  %v8459_v50 = vpop.f32.mrb[172].mxu0  ;;  %v9231_v59 = vpop.eup %9230  ;;  %v5027_v11 = vmul.f32 %v5011_v42, %v4995_v55 }
 0x757   :  { %5127 = vst.msk [vmem:[#allocation3 + $0x10] sm:$0xff] %vm29_vm0, %v13370_v22  ;;  %5128 = vst.msk [vmem:[#allocation3 + $0x18] sm:$0xff] %vm29_vm0, %v13372_v47  ;;  %v4710_v18 = vpop.f32.mrb[173].mxu0  ;;  %v4457_v14 = vadd.f32 %v13323_v6, %v16188_v41  ;;  %v5028_v2 = vmul.f32 %v5012_v33, %v4996_v29  ;;  %v5025_v53 = vmul.f32 %v5009_v13, %v4993_v28  ;;  %v4945_v1 = vadd.bf16 1056980736, %v4937_v58 }
 0x758   :  { %v9233_v40 = vpop.eup %9232  ;;  %v5026_v56 = vmul.f32 %v5010_v60, %v4994_v57  ;;  %5125 = vst.msk [vmem:[#allocation3] sm:$0xff] %vm29_vm0, %v13374_v12  ;;  %5126 = vst.msk [vmem:[#allocation3 + $0x8] sm:$0xff] %vm29_vm0, %v13376_v30  ;;  %v8460_v4 = vpop.f32.mrb[174].mxu0  ;;  %v5015_v16 = vunpack.c.l.bf16 %v13368_v7  ;;  %v4835_v23 = vadd.f32 %v8459_v50, %v13319_v17  ;;  %v5016_v60 = vunpack.c.h.bf16 %v13368_v7  ;;  %v4999_v50 = vld [vmem:[#allocation3 + $0x50] sm:$0xff]  ;;  %v5000_v7 = vld [vmem:[#allocation3 + $0x58] sm:$0xff] }
 0x759   :  { %v9235_v42 = vpop.eup %9234  ;;  %v5040_v25 = vmul.bf16 %v9233_v40, %v13346_v46  ;;  %v4836_v6 = vadd.f32 %v8460_v4, %v13353_v51  ;;  %v4713_v33 = vpop.f32.mrb[175].mxu0  ;;  %v4833_v49 = vadd.f32 %v4710_v18, %v13329_v3  ;;  %v4940_v35 = vmul.bf16 1056980736, %v9231_v59 }
 0x75a   :  { %v9237_v13 = vpop.eup %9236  ;;  %v5039_v58 = vmul.bf16 %v9235_v42, %v4911_v54  ;;  %v4834_v32 = vadd.f32 %v4713_v33, %v4457_v14  ;;  %v5013_v57 = vunpack.c.l.bf16 %v4945_v1  ;;  %v5014_v54 = vunpack.c.h.bf16 %v4945_v1  ;;  %v4997_v14 = vld [vmem:[#allocation3 + $0x40] sm:$0xff] }
 0x75b   :  { %v5051_v55 = vunpack.c.l.bf16 %v5040_v25  ;;  %v5052_v29 = vunpack.c.h.bf16 %v5040_v25  ;;  %v4876_v28 = vpack.c.bf16 %v4836_v6, %v4835_v23  ;;  %v4939_v40 = vmul.bf16 1056980736, %v9237_v13  ;;  %v4998_v6 = vld [vmem:[#allocation3 + $0x48] sm:$0xff] }
 0x75c   :  { %v5049_v41 = vunpack.c.l.bf16 %v5039_v58  ;;  %v5050_v5 = vunpack.c.h.bf16 %v5039_v58  ;;  %v4875_v46 = vpack.c.bf16 %v4834_v32, %v4833_v49  ;;  %v4908_v18 = vmul.bf16 1056980736, %v13363_v63 }
 0x75d   :  { %v13398_v17 = vadd.f32 %v5051_v55, %v5027_v11  ;;  %v13400_v51 = vadd.f32 %v5052_v29, %v5028_v2  ;;  %9242 = vtanh.bf16 %v4876_v28  ;;  %v4948_v42 = vadd.bf16 1056980736, %v4940_v35 }
 0x75e   :  { %v13402_v4 = vadd.f32 %v5049_v41, %v5025_v53  ;;  %v13404_v3 = vadd.f32 %v5050_v5, %v5026_v56  ;;  %9244 = vtanh.bf16 %v4875_v46  ;;  %v8463_v59 = vpop.f32.mrb[176].mxu0  ;;  %v4402_v2 = vmul.f32 %v13026_v24, %v15818_v43 }
 0x75f   :  { %5131 = vst.msk [vmem:[#allocation3 + $0x30] sm:$0xff] %vm29_vm0, %v13398_v17  ;;  %5132 = vst.msk [vmem:[#allocation3 + $0x38] sm:$0xff] %vm29_vm0, %v13400_v51  ;;  %v4726_v11 = vpop.f32.mrb[177].mxu0  ;;  %v13415_v5 = vadd.f32 %v13280_v15, %v15819_v10  ;;  %v4907_v53 = vmul.bf16 1056980736, %v13366_v38  ;;  %v5031_v63 = vmul.f32 %v5015_v16, %v4999_v50  ;;  %v5032_v56 = vmul.f32 %v5016_v60, %v5000_v7  ;;  %v5003_v7 = vld [vmem:[#allocation3 + $0x70] sm:$0xff] }
 0x760   :  { %v9239_v41 = vpop.eup %9238  ;;  %v5029_v1 = vmul.f32 %v5013_v57, %v4997_v14  ;;  %5129 = vst.msk [vmem:[#allocation3 + $0x20] sm:$0xff] %vm29_vm0, %v13402_v4  ;;  %5130 = vst.msk [vmem:[#allocation3 + $0x28] sm:$0xff] %vm29_vm0, %v13404_v3  ;;  %v8464_v25 = vpop.f32.mrb[178].mxu0  ;;  %v4947_v33 = vadd.bf16 1056980736, %v4939_v40  ;;  %v4839_v15 = vadd.f32 %v8463_v59, %v13273_v62  ;;  %v5030_v16 = vmul.f32 %v5014_v54, %v4998_v6 }
 0x761   :  { %v9241_v23 = vpop.eup %9240  ;;  %v5042_v13 = vmul.bf16 %v9239_v41, %v13378_v61  ;;  %v4840_v58 = vadd.f32 %v8464_v25, %v13276_v34  ;;  %v4729_v38 = vpop.f32.mrb[179].mxu0  ;;  %v4837_v49 = vadd.f32 %v4726_v11, %v13226_v39  ;;  %v5019_v35 = vunpack.c.l.bf16 %v4948_v42  ;;  %v5004_v11 = vld [vmem:[#allocation3 + $0x78] sm:$0xff] }
 0x762   :  { %v5041_v60 = vmul.bf16 %v9241_v23, %v13380_v8  ;;  %v4838_v32 = vadd.f32 %v4729_v38, %v13237_v21  ;;  %v5020_v57 = vunpack.c.h.bf16 %v4948_v42  ;;  %v5017_v50 = vunpack.c.l.bf16 %v4947_v33 }
 0x763   :  { %v5055_v55 = vunpack.c.l.bf16 %v5042_v13  ;;  %v5056_v29 = vunpack.c.h.bf16 %v5042_v13  ;;  %v4878_v28 = vpack.c.bf16 %v4840_v58, %v4839_v15  ;;  %v4403_v8 = vmul.f32 %v13026_v24, %v10729_v45  ;;  %v5001_v13 = vld [vmem:[#allocation3 + $0x60] sm:$0xff]  ;;  %v5002_v58 = vld [vmem:[#allocation3 + $0x68] sm:$0xff] }
 0x764   :  { %v5053_v46 = vunpack.c.l.bf16 %v5041_v60  ;;  %v5054_v40 = vunpack.c.h.bf16 %v5041_v60  ;;  %v4877_v61 = vpack.c.bf16 %v4838_v32, %v4837_v49  ;;  %v5018_v39 = vunpack.c.h.bf16 %v4947_v33 }
 0x765   :  { %v13428_v62 = vadd.f32 %v5055_v55, %v5031_v63  ;;  %v13430_v34 = vadd.f32 %v5056_v29, %v5032_v56  ;;  %v4465_v14 = vadd.f32 %v13287_v48, %v15817_v9  ;;  %v4916_v42 = vadd.bf16 1056980736, %v4908_v18 }
 0x766   :  { %v13434_v54 = vadd.f32 %v5053_v46, %v5029_v1  ;;  %v13436_v21 = vadd.f32 %v5054_v40, %v5030_v16  ;;  %v8467_v59 = vpop.f32.mrb[180].mxu0  ;;  %v4958_v41 = vmul.bf16 1056980736, %v4878_v28  ;;  %v4466_v63 = vadd.f32 %v4402_v2, %v10833_v26 }
 0x767   :  { %5135 = vst.msk [vmem:[#allocation3 + $0x50] sm:$0xff] %vm29_vm0, %v13428_v62  ;;  %5136 = vst.msk [vmem:[#allocation3 + $0x58] sm:$0xff] %vm29_vm0, %v13430_v34  ;;  %v4742_v56 = vpop.f32.mrb[181].mxu0  ;;  %v4467_v1 = vadd.f32 %v4403_v8, %v15941_v0  ;;  %v4915_v23 = vadd.bf16 1056980736, %v4907_v53  ;;  %v5035_v6 = vmul.f32 %v5019_v35, %v5003_v7  ;;  %v5036_v33 = vmul.f32 %v5020_v57, %v5004_v11 }
 0x768   :  { %v9243_v25 = vpop.eup %9242  ;;  %5133 = vst.msk [vmem:[#allocation3 + $0x40] sm:$0xff] %vm29_vm0, %v13434_v54  ;;  %5134 = vst.msk [vmem:[#allocation3 + $0x48] sm:$0xff] %vm29_vm0, %v13436_v21  ;;  %v4957_v48 = vmul.bf16 1056980736, %v4877_v61  ;;  %v8468_v18 = vpop.f32.mrb[182].mxu0  ;;  %v5033_v38 = vmul.f32 %v5017_v50, %v5001_v13  ;;  %v4843_v16 = vadd.f32 %v8467_v59, %v4466_v63  ;;  %v5034_v32 = vmul.f32 %v5018_v39, %v5002_v58 }
 0x769   :  { %v9245_v15 = vpop.eup %9244  ;;  %v5044_v2 = vmul.bf16 %v9243_v25, %v4916_v42  ;;  %v4844_v60 = vadd.f32 %v8468_v18, %v4467_v1  ;;  %v4745_v49 = vpop.f32.mrb[183].mxu0  ;;  %v4841_v35 = vadd.f32 %v4742_v56, %v13415_v5  ;;  %9246 = vtanh.bf16 %v4958_v41 }
 0x76a   :  { %v5043_v53 = vmul.bf16 %v9245_v15, %v4915_v23  ;;  %v4842_v55 = vadd.f32 %v4745_v49, %v4465_v14  ;;  %9248 = vtanh.bf16 %v4957_v48  ;;  %v4406_v7 = vmul.f32 %v13026_v24, %v11001_v20 }
 0x76b   :  { %v5059_v29 = vunpack.c.l.bf16 %v5044_v2  ;;  %v5060_v28 = vunpack.c.h.bf16 %v5044_v2  ;;  %v4880_v57 = vpack.c.bf16 %v4844_v60, %v4843_v16  ;;  %v4407_v39 = vmul.f32 %v13026_v24, %v10994_v19  ;;  %v16189_v2 = vld [vmem:[#allocation121_spill] sm:$0xff]  ;;  %v16190_v60 = vld [vmem:[#allocation120_spill] sm:$0xff] }
 0x76c   :  { %v5057_v46 = vunpack.c.l.bf16 %v5043_v53  ;;  %v5058_v40 = vunpack.c.h.bf16 %v5043_v53  ;;  %v4879_v61 = vpack.c.bf16 %v4842_v55, %v4841_v35  ;;  %v4404_v42 = vmul.f32 %v13026_v24, %v10912_v44  ;;  %v16191_v53 = vld [vmem:[#allocation117_spill] sm:$0xff]  ;;  %v16192_v55 = vld [vmem:[#allocation116_spill] sm:$0xff] }
 0x76d   :  { %v13451_v8 = vadd.f32 %v5059_v29, %v5035_v6  ;;  %v13453_v50 = vadd.f32 %v5060_v28, %v5036_v33  ;;  %v4405_v11 = vmul.f32 %v13026_v24, %v10906_v37  ;;  %9250 = vtanh.f32 %v13370_v22 }
 0x76e   :  { %v13459_v5 = vadd.f32 %v5057_v46, %v5033_v38  ;;  %v13461_v59 = vadd.f32 %v5058_v40, %v5034_v32  ;;  %v8471_v14 = vpop.f32.mrb[184].mxu0  ;;  %v4960_v41 = vmul.bf16 1056980736, %v4880_v57  ;;  %v4470_v63 = vadd.f32 %v4406_v7, %v11047_v31  ;;  %v16193_v57 = vld [vmem:[#allocation123_spill] sm:$0xff] }
 0x76f   :  { %5139 = vst.msk [vmem:[#allocation3 + $0x70] sm:$0xff] %vm29_vm0, %v13451_v8  ;;  %5140 = vst.msk [vmem:[#allocation3 + $0x78] sm:$0xff] %vm29_vm0, %v13453_v50  ;;  %v4758_v56 = vpop.f32.mrb[185].mxu0  ;;  %v4471_v1 = vadd.f32 %v4407_v39, %v11042_v27  ;;  %9252 = vtanh.f32 %v13372_v47  ;;  %v4959_v22 = vmul.bf16 1056980736, %v4879_v61  ;;  %v4468_v25 = vadd.f32 %v4404_v42, %v10962_v52  ;;  %v16194_v61 = vld [vmem:[#allocation122_spill] sm:$0xff] }
 0x770   :  { %5137 = vst.msk [vmem:[#allocation3 + $0x60] sm:$0xff] %vm29_vm0, %v13459_v5  ;;  %5138 = vst.msk [vmem:[#allocation3 + $0x68] sm:$0xff] %vm29_vm0, %v13461_v59  ;;  %v8472_v23 = vpop.f32.mrb[186].mxu0  ;;  %v4469_v6 = vadd.f32 %v4405_v11, %v15942_v36  ;;  %9254 = vtanh.f32 %v13374_v12  ;;  %v4847_v33 = vadd.f32 %v8471_v14, %v4470_v63  ;;  %v4410_v16 = vmul.f32 %v13026_v24, %v16189_v2  ;;  %v16195_v14 = vld [vmem:[#allocation119_spill] sm:$0xff]  ;;  %v16196_v11 = vld [vmem:[#allocation118_spill] sm:$0xff] }
 0x771   :  { %v4848_v13 = vadd.f32 %v8472_v23, %v4471_v1  ;;  %v4761_v48 = vpop.f32.mrb[187].mxu0  ;;  %9256 = vtanh.f32 %v13376_v30  ;;  %v4845_v47 = vadd.f32 %v4758_v56, %v4468_v25  ;;  %v4411_v12 = vmul.f32 %v13026_v24, %v16190_v60 }
 0x772   :  { %v4846_v18 = vadd.f32 %v4761_v48, %v4469_v6  ;;  %9258 = vtanh.bf16 %v4960_v41  ;;  %v4408_v35 = vmul.f32 %v13026_v24, %v16191_v53  ;;  %v4409_v29 = vmul.f32 %v13026_v24, %v16192_v55 }
 0x773   :  { %v4882_v15 = vpack.c.bf16 %v4848_v13, %v4847_v33  ;;  %9260 = vtanh.bf16 %v4959_v22  ;;  %v4474_v46 = vadd.f32 %v4410_v16, %v16193_v57  ;;  %v4475_v7 = vadd.f32 %v4411_v12, %v16194_v61 }
 0x774   :  { %v4881_v58 = vpack.c.bf16 %v4846_v18, %v4845_v47  ;;  %9262 = vtanh.f32 %v13398_v17  ;;  %v9247_v49 = vpop.eup %9246  ;;  %v4473_v41 = vadd.f32 %v4409_v29, %v16196_v11  ;;  %v16245_v11 = vld [vmem:[#allocation17_spill] sm:$0xff] }
 0x775   :  { %v4962_v38 = vmul.bf16 1056980736, %v4882_v15  ;;  %9264 = vtanh.f32 %v13400_v51  ;;  %v9249_v28 = vpop.eup %9248  ;;  %v4974_v17 = vmul.bf16 1056980736, %v9247_v49  ;;  %v4472_v51 = vadd.f32 %v4408_v35, %v16195_v14  ;;  %v16246_v14 = vld [vmem:[#allocation16_spill] sm:$0xff] }
 0x776   :  { %v4961_v32 = vmul.bf16 1056980736, %v4881_v58  ;;  %v8475_v30 = vpop.f32.mrb[188].mxu0  ;;  %v4973_v39 = vmul.bf16 1056980736, %v9249_v28 }
 0x777   :  { %9266 = vtanh.bf16 %v4962_v38  ;;  %v4774_v40 = vpop.f32.mrb[189].mxu0  ;;  %v9251_v63 = vpop.eup %9250  ;;  %v4982_v56 = vadd.bf16 1056980736, %v4974_v17  ;;  %v4851_v24 = vadd.f32 %v8475_v30, %v4474_v46 }
 0x778   :  { %9268 = vtanh.bf16 %v4961_v32  ;;  %v8476_v42 = vpop.f32.mrb[190].mxu0  ;;  %v4981_v23 = vadd.bf16 1056980736, %v4973_v39  ;;  %v4849_v6 = vadd.f32 %v4774_v40, %v4472_v51 }
 0x779   :  { %9270 = vtanh.f32 %v13402_v4  ;;  %v4852_v1 = vadd.f32 %v8476_v42, %v4475_v7  ;;  %v4777_v22 = vpop.f32.mrb[191].mxu0  ;;  %v9253_v25 = vpop.eup %9252  ;;  %v5095_v48 = vunpack.c.l.bf16 %v4982_v56  ;;  %v5096_v47 = vunpack.c.h.bf16 %v4982_v56 }
 0x77a   :  { %9272 = vtanh.f32 %v13404_v3  ;;  %v4850_v33 = vadd.f32 %v4777_v22, %v4473_v41  ;;  %v9255_v13 = vpop.eup %9254  ;;  %v5093_v4 = vunpack.c.l.bf16 %v4981_v23  ;;  %v5094_v58 = vunpack.c.h.bf16 %v4981_v23 }
 0x77b   :  { %9274 = vtanh.f32 %v13428_v62  ;;  %v4884_v18 = vpack.c.bf16 %v4852_v1, %v4851_v24  ;;  %v9257_v15 = vpop.eup %9256  ;;  %v5111_v16 = vmul.f32 %v9251_v63, %v5095_v48  ;;  %v5112_v12 = vmul.f32 %v9253_v25, %v5096_v47 }
 0x77c   :  { %9276 = vtanh.f32 %v13430_v34  ;;  %v4883_v38 = vpack.c.bf16 %v4850_v33, %v4849_v6  ;;  %v5109_v32 = vmul.f32 %v9255_v13, %v5093_v4  ;;  %v5110_v30 = vmul.f32 %v9257_v15, %v5094_v58 }
 0x77d   :  { %9278 = vtanh.f32 %v13434_v54  ;;  %v4964_v3 = vmul.bf16 1056980736, %v4884_v18  ;;  %v9259_v49 = vpop.eup %9258  ;;  %5143 = vst.msk [vmem:[#allocation2 + $0x10] sm:$0xff] %vm29_vm0, %v5111_v16  ;;  %5144 = vst.msk [vmem:[#allocation2 + $0x18] sm:$0xff] %vm29_vm0, %v5112_v12 }
 0x77e   :  { %9280 = vtanh.f32 %v13436_v21  ;;  %v4963_v62 = vmul.bf16 1056980736, %v4883_v38  ;;  %v9261_v35 = vpop.eup %9260  ;;  %v4976_v34 = vmul.bf16 1056980736, %v9259_v49  ;;  %5141 = vst.msk [vmem:[#allocation2] sm:$0xff] %vm29_vm0, %v5109_v32  ;;  %5142 = vst.msk [vmem:[#allocation2 + $0x8] sm:$0xff] %vm29_vm0, %v5110_v30 }
 0x77f   :  { %v9263_v29 = vpop.eup %9262  ;;  %9282 = vtanh.bf16 %v4964_v3  ;;  %v4975_v54 = vmul.bf16 1056980736, %v9261_v35 }
 0x780   :  { %v9265_v28 = vpop.eup %9264  ;;  %9284 = vtanh.bf16 %v4963_v62  ;;  %v4984_v17 = vadd.bf16 1056980736, %v4976_v34 }
 0x781   :  { %v4983_v46 = vadd.bf16 1056980736, %v4975_v54  ;;  %9286 = vtanh.f32 %v13451_v8 }
 0x782   :  { %v9267_v21 = vpop.eup %9266  ;;  %v5099_v39 = vunpack.c.l.bf16 %v4984_v17  ;;  %v5100_v51 = vunpack.c.h.bf16 %v4984_v17  ;;  %9288 = vtanh.f32 %v13453_v50 }
 0x783   :  { %v9269_v40 = vpop.eup %9268  ;;  %v4978_v42 = vmul.bf16 1056980736, %v9267_v21  ;;  %v5097_v63 = vunpack.c.l.bf16 %v4983_v46  ;;  %v5098_v56 = vunpack.c.h.bf16 %v4983_v46  ;;  %9290 = vtanh.f32 %v13459_v5 }
 0x784   :  { %v9271_v7 = vpop.eup %9270  ;;  %v4977_v24 = vmul.bf16 1056980736, %v9269_v40  ;;  %v5115_v22 = vmul.f32 %v9263_v29, %v5099_v39  ;;  %v5116_v25 = vmul.f32 %v9265_v28, %v5100_v51  ;;  %v5292_v47 = vld [vmem:[#allocation2 + $0x10] sm:$0xff]  ;;  %9292 = vtanh.f32 %v13461_v59  ;;  %v5293_v58 = vld [vmem:[#allocation2 + $0x18] sm:$0xff] }
 0x785   :  { %v9273_v41 = vpop.eup %9272  ;;  %v4986_v23 = vadd.bf16 1056980736, %v4978_v42  ;;  %v5113_v33 = vmul.f32 %v9271_v7, %v5097_v63  ;;  %v5290_v50 = vld [vmem:[#allocation2] sm:$0xff]  ;;  %v5291_v4 = vld [vmem:[#allocation2 + $0x8] sm:$0xff]  ;;  %v5307_v62 = vpack.c.bf16 %v5293_v58, %v5292_v47 }
 0x786   :  { %v9275_v1 = vpop.eup %9274  ;;  %v5114_v13 = vmul.f32 %v9273_v41, %v5098_v56  ;;  %v4985_v48 = vadd.bf16 1056980736, %v4977_v24  ;;  %5147 = vst.msk [vmem:[#allocation2 + $0x30] sm:$0xff] %vm29_vm0, %v5115_v22  ;;  %5148 = vst.msk [vmem:[#allocation2 + $0x38] sm:$0xff] %vm29_vm0, %v5116_v25  ;;  %v5306_v12 = vpack.c.bf16 %v5291_v4, %v5290_v50 }
 0x787   :  { %v9277_v6 = vpop.eup %9276  ;;  %v5103_v8 = vunpack.c.l.bf16 %v4986_v23  ;;  %v5104_v15 = vunpack.c.h.bf16 %v4986_v23  ;;  %5145 = vst.msk [vmem:[#allocation2 + $0x20] sm:$0xff] %vm29_vm0, %v5113_v33 }
 0x788   :  { %v9279_v18 = vpop.eup %9278  ;;  %5146 = vst.msk [vmem:[#allocation2 + $0x28] sm:$0xff] %vm29_vm0, %v5114_v13  ;;  %v5101_v5 = vunpack.c.l.bf16 %v4985_v48  ;;  %v5102_v16 = vunpack.c.h.bf16 %v4985_v48  ;;  %8477 = vmatprep.subr.bf16.mxu1 %v5306_v12 }
 0x789   :  { %v9281_v38 = vpop.eup %9280  ;;  %v5119_v3 = vmul.f32 %v9275_v1, %v5103_v8  ;;  %v5120_v49 = vmul.f32 %v9277_v6, %v5104_v15  ;;  %8478 = vmatpush3.bf16.msra.mxu1 %v5306_v12  ;;  %v9711_v12 = vld [vmem:[%s15323_s2 + $0x8] sm:$0xff]  }
 0x78a   :  { %v9283_v59 = vpop.eup %9282  ;;  %v5117_v32 = vmul.f32 %v9279_v18, %v5101_v5  ;;  %v5118_v30 = vmul.f32 %v9281_v38, %v5102_v16  ;;  %8479 = vmatprep.subr.bf16.mxu1 %v5307_v62 }
 0x78b   :  { %v9285_v35 = vpop.eup %9284  ;;  %5151 = vst.msk [vmem:[#allocation2 + $0x50] sm:$0xff] %vm29_vm0, %v5119_v3  ;;  %5152 = vst.msk [vmem:[#allocation2 + $0x58] sm:$0xff] %vm29_vm0, %v5120_v49  ;;  %v4980_v29 = vmul.bf16 1056980736, %v9283_v59  ;;  %v9712_v3 = vld [vmem:[%s15323_s2 + $0x10] sm:$0xff]   ;;  %v9713_v49 = vld [vmem:[%s15323_s2 + $0x18] sm:$0xff]  }
 0x78c   :  { %5149 = vst.msk [vmem:[#allocation2 + $0x40] sm:$0xff] %vm29_vm0, %v5117_v32  ;;  %5150 = vst.msk [vmem:[#allocation2 + $0x48] sm:$0xff] %vm29_vm0, %v5118_v30  ;;  %v4979_v34 = vmul.bf16 1056980736, %v9285_v35  ;;  %v9287_v54 = vpop.eup %9286  ;;  %v9714_v59 = vld [vmem:[%s15323_s2 + $0x20] sm:$0xff]   ;;  %v9715_v32 = vld [vmem:[%s15323_s2 + $0x28] sm:$0xff]  }
 0x78d   :  { %v4988_v28 = vadd.bf16 1056980736, %v4980_v29  ;;  %v5296_v21 = vld [vmem:[#allocation2 + $0x30] sm:$0xff]  ;;  %v9289_v46 = vpop.eup %9288  ;;  %8480 = vmatpush3.bf16.msra.mxu1 %v5307_v62  ;;  %v5297_v42 = vld [vmem:[#allocation2 + $0x38] sm:$0xff]  ;;  %v9718_v35 = vld [vmem:[%s15323_s2 + $0x40] sm:$0xff]  }
 0x78e   :  { %v4987_v17 = vadd.bf16 1056980736, %v4979_v34  ;;  %v5294_v39 = vld [vmem:[#allocation2 + $0x20] sm:$0xff]  ;;  %v9291_v41 = vpop.eup %9290  ;;  %v5309_v33 = vpack.c.bf16 %v5297_v42, %v5296_v21  ;;  %v9716_v30 = vld [vmem:[%s15323_s2 + $0x30] sm:$0xff]   ;;  %v9717_v62 = vld [vmem:[%s15323_s2 + $0x38] sm:$0xff]  }
 0x78f   :  { %v5107_v40 = vunpack.c.l.bf16 %v4988_v28  ;;  %v5108_v7 = vunpack.c.h.bf16 %v4988_v28  ;;  %v5295_v51 = vld [vmem:[#allocation2 + $0x28] sm:$0xff]  ;;  %v9293_v1 = vpop.eup %9292  ;;  %v9720_v34 = vld [vmem:[%s15323_s2 + $0x50] sm:$0xff]   ;;  %v9721_v28 = vld [vmem:[%s15323_s2 + $0x58] sm:$0xff]  }
 0x790   :  { %v5105_v63 = vunpack.c.l.bf16 %v4987_v17  ;;  %v5106_v56 = vunpack.c.h.bf16 %v4987_v17  ;;  %v5308_v24 = vpack.c.bf16 %v5295_v51, %v5294_v39  ;;  %v9719_v29 = vld [vmem:[%s15323_s2 + $0x48] sm:$0xff]   ;;  %v9724_v21 = vld [vmem:[%s15323_s2 + $0x70] sm:$0xff]   ;;  %v9729_v51 = vld [vmem:[%s15323_s2 + $0x98] sm:$0xff]  }
 0x791   :  { %v5123_v22 = vmul.f32 %v9287_v54, %v5107_v40  ;;  %v5124_v25 = vmul.f32 %v9289_v46, %v5108_v7  ;;  %v9722_v54 = vld [vmem:[%s15323_s2 + $0x60] sm:$0xff]   ;;  %v9723_v17 = vld [vmem:[%s15323_s2 + $0x68] sm:$0xff]   ;;  %v9725_v46 = vld [vmem:[%s15323_s2 + $0x78] sm:$0xff]  }
 0x792   :  { %v5121_v23 = vmul.f32 %v9291_v41, %v5105_v63  ;;  %v5122_v6 = vmul.f32 %v9293_v1, %v5106_v56  ;;  %8481 = vmatprep.subr.bf16.mxu1 %v5308_v24  ;;  %v5300_v18 = vld [vmem:[#allocation2 + $0x50] sm:$0xff]  ;;  %v5301_v8 = vld [vmem:[#allocation2 + $0x58] sm:$0xff]  ;;  %v9726_v40 = vld [vmem:[%s15323_s2 + $0x80] sm:$0xff]  }
 0x793   :  { %5155 = vst.msk [vmem:[#allocation2 + $0x70] sm:$0xff] %vm29_vm0, %v5123_v22  ;;  %5156 = vst.msk [vmem:[#allocation2 + $0x78] sm:$0xff] %vm29_vm0, %v5124_v25  ;;  %8482 = vmatpush3.bf16.msra.mxu1 %v5308_v24  ;;  %v5298_v13 = vld [vmem:[#allocation2 + $0x40] sm:$0xff]  ;;  %v5299_v48 = vld [vmem:[#allocation2 + $0x48] sm:$0xff]  ;;  %v5311_v15 = vpack.c.bf16 %v5301_v8, %v5300_v18 }
 0x794   :  { %5153 = vst.msk [vmem:[#allocation2 + $0x60] sm:$0xff] %vm29_vm0, %v5121_v23  ;;  %5154 = vst.msk [vmem:[#allocation2 + $0x68] sm:$0xff] %vm29_vm0, %v5122_v6  ;;  %8483 = vmatprep.subr.bf16.mxu1 %v5309_v33  ;;  %v5310_v47 = vpack.c.bf16 %v5299_v48, %v5298_v13  ;;  %v9727_v7 = vld [vmem:[%s15323_s2 + $0x88] sm:$0xff]   ;;  %v9728_v39 = vld [vmem:[%s15323_s2 + $0x90] sm:$0xff]  }
 0x795   :  { %v9730_v42 = vld [vmem:[%s15323_s2 + $0xa0] sm:$0xff]   ;;  %v9731_v41 = vld [vmem:[%s15323_s2 + $0xa8] sm:$0xff]   ;;  %v9732_v63 = vld [vmem:[%s15323_s2 + $0xb0] sm:$0xff]  }
 0x796   :  { %v9733_v56 = vld [vmem:[%s15323_s2 + $0xb8] sm:$0xff]   ;;  %v9734_v24 = vld [vmem:[%s15323_s2 + $0xc0] sm:$0xff]   ;;  %v9735_v1 = vld [vmem:[%s15323_s2 + $0xc8] sm:$0xff]  }
 0x797   :  { %8484 = vmatpush3.bf16.msra.mxu1 %v5309_v33  ;;  %v9736_v22 = vld [vmem:[%s15323_s2 + $0xd0] sm:$0xff]   ;;  %v9737_v25 = vld [vmem:[%s15323_s2 + $0xd8] sm:$0xff]   ;;  %v9738_v23 = vld [vmem:[%s15323_s2 + $0xe0] sm:$0xff]  }
 0x798   :  { %8485 = vmatprep.subr.bf16.mxu1 %v5310_v47  ;;  %v9739_v6 = vld [vmem:[%s15323_s2 + $0xe8] sm:$0xff]   ;;  %v9740_v33 = vld [vmem:[%s15323_s2 + $0xf0] sm:$0xff]   ;;  %v9741_v13 = vld [vmem:[%s15323_s2 + $0xf8] sm:$0xff]  }
 0x799   :  { %v9742_v48 = vld [vmem:[%s15323_s2] sm:$0xff]   ;;  %v16197_v18 = vld [vmem:[#allocation13_spill] sm:$0xff] }
 0x79a   :  { %v5304_v38 = vld [vmem:[#allocation2 + $0x70] sm:$0xff]  ;;  %v5305_v5 = vld [vmem:[#allocation2 + $0x78] sm:$0xff] }
 0x79b   :  { %8486 = vmatpush3.bf16.msra.mxu1 %v5310_v47  ;;  %v5302_v50 = vld [vmem:[#allocation2 + $0x60] sm:$0xff]  ;;  %v5303_v4 = vld [vmem:[#allocation2 + $0x68] sm:$0xff]  ;;  %v5313_v16 = vpack.c.bf16 %v5305_v5, %v5304_v38  ;;  %v16200_v5 = vld [vmem:[#allocation7_spill] sm:$0xff] }
 0x79c   :  { %8487 = vmatprep.subr.bf16.mxu1 %v5311_v15  ;;  %v5312_v58 = vpack.c.bf16 %v5303_v4, %v5302_v50  ;;  %v13622_v47 = vld [vmem:[%s15324_s0 + $0x5] ss:$0 sm:$0xff] }
 0x79d   :  { %v5164_v8 = vmul.f32 %v13622_v47, %v16197_v18  ;;  %v16238_v18 = vld [vmem:[#allocation36_spill] sm:$0xff] }
 0x79f   :  { %8488 = vmatpush3.bf16.msra.mxu1 %v5311_v15  ;;  %v16198_v15 = vld [vmem:[#allocation12_spill] sm:$0xff] }
 0x7a0   :  { %8489 = vmatprep.subr.bf16.mxu1 %v5312_v58  ;;  %v5165_v50 = vmul.f32 %v13622_v47, %v16198_v15  ;;  %v16237_v15 = vld [vmem:[#allocation37_spill] sm:$0xff] }
 0x7a3   :  { %8490 = vmatpush3.bf16.msra.mxu1 %v5312_v58  ;;  %v16199_v58 = vld [vmem:[#allocation5_spill] sm:$0xff] }
 0x7a4   :  { %8491 = vmatprep.subr.bf16.mxu1 %v5313_v16  ;;  %v5162_v38 = vmul.f32 %v13622_v47, %v16199_v58 }
 0x7a7   :  { %8492 = vmatpush3.bf16.msra.mxu1 %v5313_v16  ;;  %v5163_v16 = vmul.f32 %v13622_v47, %v16200_v5 }
 0x7aa   :  { %8494 = vmatmul.mubr.bf16.vlgmr.msra.gmra.mrb[128].mxu1 %v9711_v12  ;;  %v16201_v12 = vld [vmem:[#allocation19_spill] sm:$0xff] }
 0x7ab   :  { %8497 = vmatprep.mubr.bf16.mxu1 %v9712_v3  ;;  %v5228_v3 = vadd.f32 %v5164_v8, %v16201_v12 }
 0x7b2   :  { %8498 = vmatmul.mubr.bf16.gmra.mrb[132].mxu1 %v9713_v49 }
 0x7b3   :  { %8501 = vmatprep.mubr.bf16.mxu1 %v9714_v59  ;;  %v16202_v59 = vld [vmem:[#allocation18_spill] sm:$0xff] }
 0x7ba   :  { %8502 = vmatmul.mubr.bf16.gmra.mrb[136].mxu1 %v9715_v32  ;;  %v5229_v32 = vadd.f32 %v5165_v50, %v16202_v59 }
 0x7bb   :  { %8505 = vmatprep.mubr.bf16.mxu1 %v9716_v30  ;;  %v16203_v30 = vld [vmem:[#allocation9_spill] sm:$0xff] }
 0x7c2   :  { %8506 = vmatmul.mubr.bf16.gmra.mrb[140].mxu1 %v9717_v62  ;;  %v5226_v62 = vadd.f32 %v5162_v38, %v16203_v30 }
 0x7c3   :  { %8509 = vmatprep.mubr.bf16.mxu1 %v9718_v35 }
 0x7ca   :  { %8510 = vmatmul.mubr.bf16.gmra.mrb[144].mxu1 %v9719_v29  ;;  %v16204_v29 = vld [vmem:[#allocation8_spill] sm:$0xff] }
 0x7cb   :  { %8513 = vmatprep.mubr.bf16.mxu1 %v9720_v34  ;;  %v5227_v34 = vadd.f32 %v5163_v16, %v16204_v29  ;;  %v16236_v29 = vld [vmem:[#allocation10_spill] sm:$0xff] }
 0x7d2   :  { %8514 = vmatmul.mubr.bf16.gmra.mrb[148].mxu1 %v9721_v28 }
 0x7d3   :  { %8517 = vmatprep.mubr.bf16.mxu1 %v9722_v54 }
 0x7da   :  { %8518 = vmatmul.mubr.bf16.gmra.mrb[152].mxu1 %v9723_v17 }
 0x7db   :  { %8521 = vmatprep.mubr.bf16.mxu1 %v9724_v21 }
 0x7e2   :  { %8522 = vmatmul.mubr.bf16.gmra.mrb[156].mxu1 %v9725_v46 }
 0x7e3   :  { %8525 = vmatprep.mubr.bf16.mxu1 %v9726_v40 }
 0x7ea   :  { %8526 = vmatmul.mubr.bf16.gmra.mrb[160].mxu1 %v9727_v7  ;;  %v16219_v7 = vld [vmem:[#allocation59_spill] sm:$0xff] }
 0x7eb   :  { %8529 = vmatprep.mubr.bf16.mxu1 %v9728_v39  ;;  %v16205_v39 = vld [vmem:[#allocation35_spill] sm:$0xff] }
 0x7f2   :  { %8530 = vmatmul.mubr.bf16.gmra.mrb[164].mxu1 %v9729_v51  ;;  %v5168_v51 = vmul.f32 %v13622_v47, %v16205_v39 }
 0x7f3   :  { %8533 = vmatprep.mubr.bf16.mxu1 %v9730_v42  ;;  %v16206_v42 = vld [vmem:[#allocation34_spill] sm:$0xff] }
 0x7fa   :  { %8534 = vmatmul.mubr.bf16.gmra.mrb[168].mxu1 %v9731_v41  ;;  %v5169_v41 = vmul.f32 %v13622_v47, %v16206_v42 }
 0x7fb   :  { %8537 = vmatprep.mubr.bf16.mxu1 %v9732_v63 }
 0x802   :  { %8538 = vmatmul.mubr.bf16.gmra.mrb[172].mxu1 %v9733_v56  ;;  %v16207_v56 = vld [vmem:[#allocation23_spill] sm:$0xff] }
 0x803   :  { %8541 = vmatprep.mubr.bf16.mxu1 %v9734_v24  ;;  %v5166_v24 = vmul.f32 %v13622_v47, %v16207_v56 }
 0x80a   :  { %8542 = vmatmul.mubr.bf16.gmra.mrb[176].mxu1 %v9735_v1  ;;  %v16208_v1 = vld [vmem:[#allocation22_spill] sm:$0xff] }
 0x80b   :  { %8545 = vmatprep.mubr.bf16.mxu1 %v9736_v22  ;;  %v5167_v22 = vmul.f32 %v13622_v47, %v16208_v1  ;;  %v16228_v1 = vld [vmem:[#allocation92_spill] sm:$0xff] }
 0x812   :  { %8546 = vmatmul.mubr.bf16.gmra.mrb[180].mxu1 %v9737_v25  ;;  %v16209_v25 = vld [vmem:[#allocation43_spill] sm:$0xff] }
 0x813   :  { %8549 = vmatprep.mubr.bf16.mxu1 %v9738_v23  ;;  %v5232_v23 = vadd.f32 %v5168_v51, %v16209_v25 }
 0x81a   :  { %8550 = vmatmul.mubr.bf16.gmra.mrb[184].mxu1 %v9739_v6 }
 0x81b   :  { %8553 = vmatprep.mubr.bf16.mxu1 %v9740_v33  ;;  %v16210_v33 = vld [vmem:[#allocation42_spill] sm:$0xff] }
 0x822   :  { %8554 = vmatmul.mubr.bf16.gmra.mrb[188].mxu1 %v9741_v13  ;;  %v5233_v13 = vadd.f32 %v5169_v41, %v16210_v33  ;;  %v16214_v41 = vld [vmem:[#allocation64_spill] sm:$0xff] }
 0x823   :  { %8653 = vmatprep.mubr.bf16.mxu1 %v9742_v48  ;;  %v16211_v48 = vld [vmem:[#allocation31_spill] sm:$0xff] }
 0x824   :  { %v5230_v8 = vadd.f32 %v5166_v24, %v16211_v48 }
 0x87d   :  { %v8495_v4 = vpop.f32.mrb[128].mxu1 }
 0x87e   :  { %v5348_v49 = vpop.f32.mrb[129].mxu1  ;;  %v13636_v28 = vadd.f32 %v8495_v4, %v5228_v3  ;;  %v16212_v4 = vld [vmem:[#allocation30_spill] sm:$0xff] }
 0x87f   :  { %v8496_v35 = vpop.f32.mrb[130].mxu1  ;;  %v13640_v21 = vadd.f32 %v5348_v49, %v5226_v62  ;;  %v5231_v38 = vadd.f32 %v5167_v22, %v16212_v4  ;;  %v16215_v22 = vld [vmem:[#allocation49_spill] sm:$0xff]  ;;  %v16220_v4 = vld [vmem:[#allocation58_spill] sm:$0xff] }
 0x880   :  { %v13638_v54 = vadd.f32 %v8496_v35, %v5229_v32  ;;  %v5351_v17 = vpop.f32.mrb[131].mxu1 }
 0x881   :  { %v13642_v46 = vadd.f32 %v5351_v17, %v5227_v34  ;;  %v16213_v17 = vld [vmem:[#allocation65_spill] sm:$0xff] }
 0x882   :  { %v5172_v51 = vmul.f32 %v13622_v47, %v16213_v17 }
 0x885   :  { %v8499_v63 = vpop.f32.mrb[132].mxu1 }
 0x886   :  { %v5364_v6 = vpop.f32.mrb[133].mxu1  ;;  %v13660_v16 = vadd.f32 %v8499_v63, %v5232_v23  ;;  %v5173_v63 = vmul.f32 %v13622_v47, %v16214_v41  ;;  %v5170_v23 = vmul.f32 %v13622_v47, %v16215_v22 }
 0x887   :  { %v8500_v50 = vpop.f32.mrb[134].mxu1  ;;  %v13664_v32 = vadd.f32 %v5364_v6, %v5230_v8  ;;  %v16216_v6 = vld [vmem:[#allocation48_spill] sm:$0xff]  ;;  %v16217_v8 = vld [vmem:[#allocation75_spill] sm:$0xff] }
 0x888   :  { %v13662_v3 = vadd.f32 %v8500_v50, %v5233_v13  ;;  %v5367_v49 = vpop.f32.mrb[135].mxu1  ;;  %v5171_v13 = vmul.f32 %v13622_v47, %v16216_v6  ;;  %v5236_v50 = vadd.f32 %v5172_v51, %v16217_v8  ;;  %v5234_v34 = vadd.f32 %v5170_v23, %v16219_v7  ;;  %v16222_v7 = vld [vmem:[#allocation98_spill] sm:$0xff]  ;;  %v16226_v51 = vld [vmem:[#allocation107_spill] sm:$0xff]  ;;  %v16227_v8 = vld [vmem:[#allocation93_spill] sm:$0xff] }
 0x889   :  { %v13666_v62 = vadd.f32 %v5367_v49, %v5231_v38  ;;  %v16218_v49 = vld [vmem:[#allocation74_spill] sm:$0xff] }
 0x88a   :  { %v5237_v35 = vadd.f32 %v5173_v63, %v16218_v49  ;;  %v5235_v17 = vadd.f32 %v5171_v13, %v16220_v4  ;;  %v16221_v49 = vld [vmem:[#allocation99_spill] sm:$0xff] }
 0x88b   :  { %v5176_v23 = vmul.f32 %v13622_v47, %v16221_v49 }
 0x88d   :  { %v8503_v24 = vpop.f32.mrb[136].mxu1 }
 0x88e   :  { %v5380_v38 = vpop.f32.mrb[137].mxu1  ;;  %v13684_v48 = vadd.f32 %v8503_v24, %v5236_v50  ;;  %v5177_v24 = vmul.f32 %v13622_v47, %v16222_v7 }
 0x88f   :  { %v8504_v40 = vpop.f32.mrb[138].mxu1  ;;  %v13688_v25 = vadd.f32 %v5380_v38, %v5234_v34  ;;  %v16224_v34 = vld [vmem:[#allocation82_spill] sm:$0xff] }
 0x890   :  { %v13686_v41 = vadd.f32 %v8504_v40, %v5237_v35  ;;  %v5383_v33 = vpop.f32.mrb[139].mxu1  ;;  %v16223_v40 = vld [vmem:[#allocation83_spill] sm:$0xff]  ;;  %v5241_v4 = vadd.f32 %v5177_v24, %v16226_v51 }
 0x891   :  { %v13690_v22 = vadd.f32 %v5383_v33, %v5235_v17  ;;  %v5174_v35 = vmul.f32 %v13622_v47, %v16223_v40  ;;  %v5175_v33 = vmul.f32 %v13622_v47, %v16224_v34  ;;  %v16225_v17 = vld [vmem:[#allocation108_spill] sm:$0xff]  ;;  %v16229_v51 = vld [vmem:[#allocation15_spill] sm:$0xff] }
 0x892   :  { %v5240_v50 = vadd.f32 %v5176_v23, %v16225_v17  ;;  %v16234_v23 = vld [vmem:[#allocation20_spill] sm:$0xff]  ;;  %v16235_v17 = vld [vmem:[#allocation11_spill] sm:$0xff] }
 0x893   :  { %v5238_v63 = vadd.f32 %v5174_v35, %v16227_v8  ;;  %v5239_v49 = vadd.f32 %v5175_v33, %v16228_v1  ;;  %v5180_v35 = vmul.f32 %v13622_v47, %v16229_v51  ;;  %v16230_v8 = vld [vmem:[#allocation14_spill] sm:$0xff] }
 0x895   :  { %v8507_v13 = vpop.f32.mrb[140].mxu1 }
 0x896   :  { %v5396_v38 = vpop.f32.mrb[141].mxu1  ;;  %v13708_v56 = vadd.f32 %v8507_v13, %v5240_v50  ;;  %v5181_v13 = vmul.f32 %v13622_v47, %v16230_v8 }
 0x897   :  { %v8508_v6 = vpop.f32.mrb[142].mxu1  ;;  %v13712_v39 = vadd.f32 %v5396_v38, %v5238_v63  ;;  %v16232_v63 = vld [vmem:[#allocation6_spill] sm:$0xff] }
 0x898   :  { %v13710_v7 = vadd.f32 %v8508_v6, %v5241_v4  ;;  %v5399_v42 = vpop.f32.mrb[143].mxu1  ;;  %v16231_v4 = vld [vmem:[#allocation4_spill] sm:$0xff]  ;;  %v5245_v1 = vadd.f32 %v5181_v13, %v16234_v23  ;;  %v16239_v13 = vld [vmem:[#allocation25_spill] sm:$0xff] }
 0x899   :  { %v13714_v40 = vadd.f32 %v5399_v42, %v5239_v49  ;;  %v5178_v6 = vmul.f32 %v13622_v47, %v16231_v4  ;;  %v5179_v42 = vmul.f32 %v13622_v47, %v16232_v63  ;;  %v16233_v49 = vld [vmem:[#allocation21_spill] sm:$0xff]  ;;  %v5184_v63 = vmul.f32 %v13622_v47, %v16237_v15 }
 0x89a   :  { %v5244_v50 = vadd.f32 %v5180_v35, %v16233_v49  ;;  %v5185_v35 = vmul.f32 %v13622_v47, %v16238_v18 }
 0x89b   :  { %v5242_v24 = vadd.f32 %v5178_v6, %v16235_v17  ;;  %v5243_v51 = vadd.f32 %v5179_v42, %v16236_v29  ;;  %v5182_v6 = vmul.f32 %v13622_v47, %v16239_v13  ;;  %v16240_v17 = vld [vmem:[#allocation24_spill] sm:$0xff] }
 0x89c   :  { %v5183_v42 = vmul.f32 %v13622_v47, %v16240_v17  ;;  %v5194_v17 = vmul.f32 %v13622_v47, %v16245_v11  ;;  %v16255_v11 = vld [vmem:[#allocation76_spill] sm:$0xff] }
 0x89d   :  { %v8511_v33 = vpop.f32.mrb[144].mxu1 }
 0x89e   :  { %v5412_v38 = vpop.f32.mrb[145].mxu1  ;;  %v5621_v30 = vadd.f32 %v8511_v33, %v5244_v50  ;;  %v16241_v33 = vld [vmem:[#allocation45_spill] sm:$0xff] }
 0x89f   :  { %v8512_v34 = vpop.f32.mrb[146].mxu1  ;;  %v5619_v12 = vadd.f32 %v5412_v38, %v5242_v24  ;;  %v16242_v24 = vld [vmem:[#allocation44_spill] sm:$0xff] }
 0x8a0   :  { %v5622_v59 = vadd.f32 %v8512_v34, %v5245_v1  ;;  %v5415_v8 = vpop.f32.mrb[147].mxu1  ;;  %v5248_v1 = vadd.f32 %v5184_v63, %v16241_v33  ;;  %v5195_v63 = vmul.f32 %v13622_v47, %v16246_v14  ;;  %v16247_v33 = vld [vmem:[#allocation67_spill] sm:$0xff] }
 0x8a1   :  { %v5620_v5 = vadd.f32 %v5415_v8, %v5243_v51  ;;  %v5249_v8 = vadd.f32 %v5185_v35, %v16242_v24  ;;  %v5188_v35 = vmul.f32 %v13622_v47, %v16247_v33  ;;  %v16256_v33 = vld [vmem:[#allocation29_spill] sm:$0xff] }
 0x8a2   :  { %v5676_v58 = vpack.c.bf16 %v5622_v59, %v5621_v30  ;;  %v16243_v59 = vld [vmem:[#allocation33_spill] sm:$0xff]  ;;  %v16244_v30 = vld [vmem:[#allocation32_spill] sm:$0xff] }
 0x8a3   :  { %v5675_v4 = vpack.c.bf16 %v5620_v5, %v5619_v12  ;;  %v5246_v5 = vadd.f32 %v5182_v6, %v16243_v59  ;;  %v5247_v51 = vadd.f32 %v5183_v42, %v16244_v30  ;;  %v16248_v6 = vld [vmem:[#allocation66_spill] sm:$0xff] }
 0x8a4   :  { %v5189_v59 = vmul.f32 %v13622_v47, %v16248_v6  ;;  %v5732_v30 = vmul.bf16 1056980736, %v5676_v58 }
 0x8a5   :  { %v8515_v49 = vpop.f32.mrb[148].mxu1  ;;  %v5731_v57 = vmul.bf16 1056980736, %v5675_v4 }
 0x8a6   :  { %v5428_v34 = vpop.f32.mrb[149].mxu1  ;;  %v5625_v50 = vadd.f32 %v8515_v49, %v5248_v1  ;;  %v16249_v49 = vld [vmem:[#allocation51_spill] sm:$0xff]  ;;  %v5253_v6 = vadd.f32 %v5189_v59, %v16255_v11 }
 0x8a7   :  { %v8516_v12 = vpop.f32.mrb[150].mxu1  ;;  %v5623_v15 = vadd.f32 %v5428_v34, %v5246_v5  ;;  %v5186_v1 = vmul.f32 %v13622_v47, %v16249_v49  ;;  %v16250_v34 = vld [vmem:[#allocation50_spill] sm:$0xff]  ;;  %v5196_v49 = vmul.f32 %v13622_v47, %v16256_v33 }
 0x8a8   :  { %v5626_v38 = vadd.f32 %v8516_v12, %v5249_v8  ;;  %v5431_v18 = vpop.f32.mrb[151].mxu1  ;;  %v16252_v8 = vld [vmem:[#allocation26_spill] sm:$0xff]  ;;  %v16253_v12 = vpack.c.bf16 %v13638_v54, %v13636_v28 }
 0x8a9   :  { %v5624_v29 = vadd.f32 %v5431_v18, %v5247_v51  ;;  %v5187_v18 = vmul.f32 %v13622_v47, %v16250_v34  ;;  %v13760_v5 = vadd.f32 %v5195_v63, %v16252_v8  ;;  %v16257_v34 = vld [vmem:[#allocation61_spill] sm:$0xff]  ;;  %v16259_v63 = vld [vmem:[#allocation28_spill] sm:$0xff] }
 0x8aa   :  { %v5678_v23 = vpack.c.bf16 %v5626_v38, %v5625_v50  ;;  %v5700_v51 = vmul.bf16 1056980736, %v16253_v12  ;;  %v16254_v50 = vld [vmem:[#allocation77_spill] sm:$0xff]  ;;  %v5250_v24 = vadd.f32 %v5186_v1, %v16257_v34  ;;  %v5197_v8 = vmul.f32 %v13622_v47, %v16259_v63  ;;  %v16261_v1 = vld [vmem:[#allocation39_spill] sm:$0xff]  ;;  %v16278_v34 = vld [vmem:[#allocation94_spill] sm:$0xff] }
 0x8ab   :  { %v5677_v13 = vpack.c.bf16 %v5624_v29, %v5623_v15  ;;  %v16251_v15 = vld [vmem:[#allocation27_spill] sm:$0xff]  ;;  %v5252_v38 = vadd.f32 %v5188_v35, %v16254_v50  ;;  %v16260_v12 = vld [vmem:[#allocation41_spill] sm:$0xff]  ;;  %v13784_v50 = vadd.f32 %v5196_v49, %v16261_v1  ;;  %v16266_v49 = vld [vmem:[#allocation52_spill] sm:$0xff] }
 0x8ac   :  { %v13757_v29 = vadd.f32 %v5194_v17, %v16251_v15  ;;  %v16258_v15 = vld [vmem:[#allocation60_spill] sm:$0xff]  ;;  %v5198_v59 = vmul.f32 %v13622_v47, %v16260_v12  ;;  %9294 = vtanh.bf16 %v5700_v51  ;;  %v16267_v51 = vld [vmem:[#allocation101_spill] sm:$0xff]  ;;  %v16277_v63 = vld [vmem:[#allocation95_spill] sm:$0xff] }
 0x8ad   :  { %v8519_v42 = vpop.f32.mrb[152].mxu1  ;;  %v5251_v61 = vadd.f32 %v5187_v18, %v16258_v15  ;;  %v16262_v18 = vld [vmem:[#allocation40_spill] sm:$0xff]  ;;  %9296 = vtanh.bf16 %v5732_v30  ;;  %v16275_v1 = vld [vmem:[#allocation81_spill] sm:$0xff] }
 0x8ae   :  { %v5444_v14 = vpop.f32.mrb[153].mxu1  ;;  %v13773_v28 = vadd.f32 %v8519_v42, %v5252_v38  ;;  %v5199_v15 = vmul.f32 %v13622_v47, %v16262_v18  ;;  %v16264_v38 = vld [vmem:[#allocation53_spill] sm:$0xff]  ;;  %9298 = vtanh.bf16 %v5731_v57 }
 0x8af   :  { %v8520_v17 = vpop.f32.mrb[154].mxu1  ;;  %v13779_v11 = vadd.f32 %v5444_v14, %v5250_v24 }
 0x8b0   :  { %v13775_v54 = vadd.f32 %v8520_v17, %v5253_v6  ;;  %v5447_v35 = vpop.f32.mrb[155].mxu1  ;;  %v16263_v6 = vld [vmem:[#allocation38_spill] sm:$0xff]  ;;  %v13794_v17 = vadd.f32 %v5198_v59, %v16264_v38  ;;  %v16269_v59 = vld [vmem:[#allocation57_spill] sm:$0xff]  ;;  %v5734_v38 = vmul.bf16 1056980736, %v5678_v23 }
 0x8b1   :  { %v13781_v58 = vadd.f32 %v5447_v35, %v5251_v61  ;;  %v13791_v42 = vadd.f32 %v5197_v8, %v16263_v6  ;;  %v16265_v61 = vpack.c.bf16 %v13642_v46, %v13640_v21  ;;  %v13802_v35 = vadd.f32 %v5199_v15, %v16266_v49  ;;  %v16268_v8 = vld [vmem:[#allocation100_spill] sm:$0xff]  ;;  %v16270_v46 = vld [vmem:[#allocation85_spill] sm:$0xff] }
 0x8b2   :  { %v5680_v4 = vpack.c.bf16 %v13775_v54, %v13773_v28  ;;  %v5192_v28 = vmul.f32 %v13622_v47, %v16267_v51  ;;  %v5193_v54 = vmul.f32 %v13622_v47, %v16268_v8  ;;  %v5200_v18 = vmul.f32 %v13622_v47, %v16269_v59  ;;  %v16272_v15 = vld [vmem:[#allocation56_spill] sm:$0xff]  ;;  %v16276_v23 = vld [vmem:[#allocation69_spill] sm:$0xff] }
 0x8b3   :  { %v5699_v14 = vmul.bf16 1056980736, %v16265_v61  ;;  %v5679_v24 = vpack.c.bf16 %v13781_v58, %v13779_v11  ;;  %v5190_v30 = vmul.f32 %v13622_v47, %v16270_v46  ;;  %v16271_v61 = vld [vmem:[#allocation84_spill] sm:$0xff]  ;;  %v5201_v57 = vmul.f32 %v13622_v47, %v16272_v15 }
 0x8b4   :  { %v5191_v11 = vmul.f32 %v13622_v47, %v16271_v61  ;;  %v16273_v58 = vpack.c.bf16 %v13662_v3, %v13660_v16  ;;  %v16274_v51 = vld [vmem:[#allocation80_spill] sm:$0xff]  ;;  %v5257_v12 = vadd.f32 %v5193_v54, %v16275_v1  ;;  %v13822_v59 = vadd.f32 %v5200_v18, %v16276_v23  ;;  %v16297_v1 = vld [vmem:[#allocation62_spill] sm:$0xff] }
 0x8b5   :  { %v8523_v21 = vpop.f32.mrb[156].mxu1  ;;  %v5256_v8 = vadd.f32 %v5192_v28, %v16274_v51  ;;  %9300 = vtanh.bf16 %v5699_v14  ;;  %v5733_v46 = vmul.bf16 1056980736, %v5677_v13  ;;  %v5254_v33 = vadd.f32 %v5190_v30, %v16277_v63  ;;  %v16279_v3 = vld [vmem:[#allocation68_spill] sm:$0xff]  ;;  %v16281_v14 = vld [vmem:[#allocation73_spill] sm:$0xff]  ;;  %v16299_v23 = vld [vmem:[#allocation110_spill] sm:$0xff] }
 0x8b6   :  { %v5702_v49 = vmul.bf16 1056980736, %v16273_v58  ;;  %v5460_v6 = vpop.f32.mrb[157].mxu1  ;;  %v5255_v55 = vadd.f32 %v5191_v11, %v16278_v34  ;;  %v13831_v28 = vadd.f32 %v5201_v57, %v16279_v3  ;;  %v16280_v58 = vld [vmem:[#allocation91_spill] sm:$0xff]  ;;  %9302 = vtanh.bf16 %v5734_v38 }
 0x8b7   :  { %v8524_v61 = vpop.f32.mrb[158].mxu1  ;;  %v13826_v15 = vadd.f32 %v8523_v21, %v5256_v8  ;;  %v5204_v54 = vmul.f32 %v13622_v47, %v16280_v58  ;;  %v13835_v18 = vadd.f32 %v5460_v6, %v5254_v33  ;;  %v5202_v30 = vmul.f32 %v13622_v47, %v16281_v14  ;;  %v16285_v38 = vld [vmem:[#allocation103_spill] sm:$0xff]  ;;  %v16292_v58 = vld [vmem:[#allocation112_spill] sm:$0xff] }
 0x8b8   :  { %v13828_v53 = vadd.f32 %v8524_v61, %v5257_v12  ;;  %v5463_v16 = vpop.f32.mrb[159].mxu1  ;;  %9304 = vtanh.bf16 %v5702_v49  ;;  %v16282_v12 = vpack.c.bf16 %v13666_v62, %v13664_v32  ;;  %v16283_v61 = vld [vmem:[#allocation90_spill] sm:$0xff]  ;;  %v16284_v33 = vpack.c.bf16 %v13686_v41, %v13684_v48  ;;  %v16287_v57 = vld [vmem:[#allocation87_spill] sm:$0xff]  ;;  %v9295_v41 = vpop.eup %9294 }
 0x8b9   :  { %v13837_v13 = vadd.f32 %v5463_v16, %v5255_v55  ;;  %v5205_v11 = vmul.f32 %v13622_v47, %v16283_v61  ;;  %9306 = vtanh.bf16 %v5733_v46  ;;  %v13854_v49 = vadd.f32 %v5204_v54, %v16285_v38  ;;  %v16289_v61 = vld [vmem:[#allocation72_spill] sm:$0xff]  ;;  %v16291_v54 = vld [vmem:[#allocation106_spill] sm:$0xff]  ;;  %v16296_v14 = vld [vmem:[#allocation47_spill] sm:$0xff] }
 0x8ba   :  { %v5701_v8 = vmul.bf16 1056980736, %v16282_v12  ;;  %v5704_v6 = vmul.bf16 1056980736, %v16284_v33  ;;  %v16286_v32 = vpack.c.bf16 %v13690_v22, %v13688_v25  ;;  %v13860_v16 = vadd.f32 %v5202_v30, %v16287_v57  ;;  %v16288_v12 = vld [vmem:[#allocation102_spill] sm:$0xff]  ;;  %v16290_v33 = vld [vmem:[#allocation113_spill] sm:$0xff] }
 0x8bb   :  { %v13863_v21 = vadd.f32 %v5205_v11, %v16288_v12  ;;  %v5203_v48 = vmul.f32 %v13622_v47, %v16289_v61  ;;  %v5208_v55 = vmul.f32 %v13622_v47, %v16290_v33  ;;  %v5206_v38 = vmul.f32 %v13622_v47, %v16291_v54  ;;  %v16293_v22 = vld [vmem:[#allocation105_spill] sm:$0xff]  ;;  %v16294_v57 = vld [vmem:[#allocation86_spill] sm:$0xff]  ;;  %v16295_v61 = vld [vmem:[#allocation63_spill] sm:$0xff] }
 0x8bc   :  { %v5703_v62 = vmul.bf16 1056980736, %v16286_v32  ;;  %v5209_v25 = vmul.f32 %v13622_v47, %v16292_v58  ;;  %v5207_v30 = vmul.f32 %v13622_v47, %v16293_v22  ;;  %v9297_v32 = vpop.eup %9296  ;;  %9308 = vtanh.bf16 %v5701_v8 }
 0x8bd   :  { %v8527_v46 = vpop.f32.mrb[160].mxu1  ;;  %v5736_v11 = vmul.bf16 1056980736, %v5680_v4  ;;  %v13876_v3 = vadd.f32 %v5203_v48, %v16294_v57  ;;  %v5212_v34 = vmul.f32 %v13622_v47, %v16295_v61  ;;  %v9299_v33 = vpop.eup %9298  ;;  %9310 = vtanh.bf16 %v5704_v6  ;;  %v16298_v57 = vld [vmem:[#allocation115_spill] sm:$0xff] }
 0x8be   :  { %v5476_v12 = vpop.f32.mrb[161].mxu1  ;;  %v5735_v63 = vmul.bf16 1056980736, %v5679_v24  ;;  %v5210_v58 = vmul.f32 %v13622_v47, %v16296_v14  ;;  %v5213_v22 = vmul.f32 %v13622_v47, %v16297_v1  ;;  %9312 = vtanh.bf16 %v5703_v62 }
 0x8bf   :  { %v8528_v54 = vpop.f32.mrb[162].mxu1  ;;  %v5637_v4 = vadd.f32 %v8527_v46, %v13784_v50  ;;  %v13887_v51 = vadd.f32 %v5208_v55, %v16298_v57  ;;  %v5748_v61 = vmul.bf16 1056980736, %v9297_v32  ;;  %v5635_v6 = vadd.f32 %v5476_v12, %v13757_v29  ;;  %v16301_v46 = vld [vmem:[#allocation114_spill] sm:$0xff]  ;;  %v16303_v12 = vld [vmem:[#allocation109_spill] sm:$0xff] }
 0x8c0   :  { %v5638_v8 = vadd.f32 %v8528_v54, %v13791_v42  ;;  %v5479_v48 = vpop.f32.mrb[163].mxu1  ;;  %v13892_v60 = vadd.f32 %v5206_v38, %v16299_v23  ;;  %v9301_v14 = vpop.eup %9300  ;;  %v5716_v2 = vmul.bf16 1056980736, %v9295_v41  ;;  %v5747_v1 = vmul.bf16 1056980736, %v9299_v33  ;;  %v16304_v33 = vld [vmem:[#allocation71_spill] sm:$0xff] }
 0x8c1   :  { %v5636_v24 = vadd.f32 %v5479_v48, %v13760_v5  ;;  %9314 = vtanh.bf16 %v5736_v11  ;;  %v16300_v50 = vpack.c.bf16 %v13710_v7, %v13708_v56  ;;  %v13898_v54 = vadd.f32 %v5209_v25, %v16301_v46  ;;  %v9303_v29 = vpop.eup %9302 }
 0x8c2   :  { %v5684_v62 = vpack.c.bf16 %v5638_v8, %v5637_v4  ;;  %9316 = vtanh.bf16 %v5735_v63  ;;  %v16302_v5 = vpack.c.bf16 %v13714_v40, %v13712_v39  ;;  %v13904_v41 = vadd.f32 %v5207_v30, %v16303_v12  ;;  %v16305_v4 = vld [vmem:[#allocation55_spill] sm:$0xff]  ;;  %v16306_v40 = vld [vmem:[#allocation70_spill] sm:$0xff] }
 0x8c3   :  { %v5706_v42 = vmul.bf16 1056980736, %v16300_v50  ;;  %v5683_v55 = vpack.c.bf16 %v5636_v24, %v5635_v6  ;;  %v13907_v32 = vadd.f32 %v5212_v34, %v16304_v33  ;;  %v9305_v11 = vpop.eup %9304  ;;  %v5715_v7 = vmul.bf16 1056980736, %v9301_v14  ;;  %v16307_v30 = vld [vmem:[#allocation46_spill] sm:$0xff] }
 0x8c4   :  { %v5705_v38 = vmul.bf16 1056980736, %v16302_v5  ;;  %9318 = vtanh.bf16 %v5684_v62  ;;  %v5756_v56 = vadd.bf16 1056980736, %v5748_v61  ;;  %v13910_v25 = vadd.f32 %v5210_v58, %v16305_v4  ;;  %v9307_v8 = vpop.eup %9306 }
 0x8c5   :  { %9320 = vtanh.bf16 %v5683_v55  ;;  %v8531_v63 = vpop.f32.mrb[164].mxu1  ;;  %v5724_v48 = vadd.bf16 1056980736, %v5716_v2  ;;  %v5755_v6 = vadd.bf16 1056980736, %v5747_v1  ;;  %v13913_v24 = vadd.f32 %v5213_v22, %v16306_v40 }
 0x8c6   :  { %v5492_v39 = vpop.f32.mrb[165].mxu1  ;;  %v13917_v62 = vmul.f32 %v13622_v47, %v16307_v30  ;;  %9322 = vtanh.bf16 %v5706_v42  ;;  %v5750_v34 = vmul.bf16 1056980736, %v9303_v29  ;;  %v16308_v14 = vpack.c.bf16 %v13828_v53, %v13826_v15 }
 0x8c7   :  { %v8532_v50 = vpop.f32.mrb[166].mxu1  ;;  %v13924_v58 = vmul.f32 %v13622_v47, %v15818_v43  ;;  %v5718_v2 = vmul.bf16 1056980736, %v9305_v11  ;;  %9324 = vtanh.bf16 %v5705_v38  ;;  %v5641_v1 = vadd.f32 %v8531_v63, %v13822_v59  ;;  %v13928_v5 = vpop.eup %9308 }
 0x8c8   :  { %v5738_v61 = vmul.bf16 1056980736, %v16308_v14  ;;  %v5642_v22 = vadd.f32 %v8532_v50, %v13831_v28  ;;  %v5495_v55 = vpop.f32.mrb[167].mxu1  ;;  %v5821_v42 = vunpack.c.l.bf16 %v5756_v56  ;;  %v5749_v29 = vmul.bf16 1056980736, %v9307_v8  ;;  %v13932_v15 = vpop.eup %9310  ;;  %v5805_v28 = vld [vmem:[#allocation3 + $0x10] sm:$0xff] }
 0x8c9   :  { %v5639_v46 = vadd.f32 %v5492_v39, %v13794_v17  ;;  %v5640_v53 = vadd.f32 %v5495_v55, %v13802_v35  ;;  %v5822_v14 = vunpack.c.h.bf16 %v5756_v56  ;;  %v5819_v43 = vunpack.c.l.bf16 %v5755_v6  ;;  %v13937_v63 = vpop.eup %9312 }
 0x8ca   :  { %v16309_v38 = vpack.c.bf16 %v13837_v13, %v13835_v18  ;;  %v5686_v59 = vpack.c.bf16 %v5642_v22, %v5641_v1  ;;  %v5820_v50 = vunpack.c.h.bf16 %v5755_v6  ;;  %v13939_v57 = vadd.bf16 1056980736, %v5750_v34  ;;  %v5806_v18 = vld [vmem:[#allocation3 + $0x18] sm:$0xff] }
 0x8cb   :  { %9326 = vtanh.bf16 %v5738_v61  ;;  %v5685_v8 = vpack.c.bf16 %v5640_v53, %v5639_v46  ;;  %v5723_v17 = vadd.bf16 1056980736, %v5715_v7  ;;  %v13941_v39 = vadd.bf16 1056980736, %v5718_v2  ;;  %v16310_v22 = vld [vmem:[#allocation79_spill] sm:$0xff]  ;;  %v5803_v2 = vld [vmem:[#allocation3] sm:$0xff] }
 0x8cc   :  { %v5737_v11 = vmul.bf16 1056980736, %v16309_v38  ;;  %v5717_v35 = vmul.bf16 1056980736, %v13928_v5  ;;  %9328 = vtanh.bf16 %v5686_v59  ;;  %v9315_v56 = vpop.eup %9314  ;;  %v5720_v55 = vmul.bf16 1056980736, %v13932_v15 }
 0x8cd   :  { %v13945_v13 = vadd.bf16 1056980736, %v5749_v29  ;;  %9330 = vtanh.bf16 %v5685_v8  ;;  %v8535_v1 = vpop.f32.mrb[168].mxu1  ;;  %v13949_v6 = vmul.f32 %v13622_v47, %v16310_v22  ;;  %v9317_v34 = vpop.eup %9316  ;;  %v5719_v46 = vmul.bf16 1056980736, %v13937_v63  ;;  %v5804_v5 = vld [vmem:[#allocation3 + $0x8] sm:$0xff] }
 0x8ce   :  { %v5837_v7 = vmul.f32 %v5821_v42, %v5805_v28  ;;  %v5838_v61 = vmul.f32 %v5822_v14, %v5806_v18  ;;  %9332 = vtanh.bf16 %v5737_v11  ;;  %v5508_v53 = vpop.f32.mrb[169].mxu1  ;;  %v5835_v15 = vmul.f32 %v5819_v43, %v5803_v2 }
 0x8cf   :  { %v9319_v38 = vpop.eup %9318  ;;  %v5836_v59 = vmul.f32 %v5820_v50, %v5804_v5  ;;  %v5825_v29 = vunpack.c.l.bf16 %v13939_v57  ;;  %v5826_v8 = vunpack.c.h.bf16 %v13939_v57  ;;  %v8536_v12 = vpop.f32.mrb[170].mxu1  ;;  %v5752_v22 = vmul.bf16 1056980736, %v9315_v56 }
 0x8d0   :  { %v9321_v23 = vpop.eup %9320  ;;  %v5852_v40 = vmul.bf16 %v9319_v38, %v5724_v48  ;;  %v5645_v4 = vadd.f32 %v8535_v1, %v13854_v49  ;;  %v5646_v42 = vadd.f32 %v8536_v12, %v13863_v21  ;;  %v5511_v14 = vpop.f32.mrb[171].mxu1  ;;  %v5823_v63 = vunpack.c.l.bf16 %v13945_v13 }
 0x8d1   :  { %v5851_v11 = vmul.bf16 %v9321_v23, %v5723_v17  ;;  %v5643_v28 = vadd.f32 %v5508_v53, %v13860_v16  ;;  %v5644_v43 = vadd.f32 %v5511_v14, %v13876_v3  ;;  %v13959_v50 = vpop.eup %9322  ;;  %v5824_v57 = vunpack.c.h.bf16 %v13945_v13  ;;  %v5809_v17 = vld [vmem:[#allocation3 + $0x30] sm:$0xff]  ;;  %v5810_v53 = vld [vmem:[#allocation3 + $0x38] sm:$0xff]  ;;  %v5807_v13 = vld [vmem:[#allocation3 + $0x20] sm:$0xff] }
 0x8d2   :  { %v5861_v18 = vunpack.c.l.bf16 %v5852_v40  ;;  %v5862_v2 = vunpack.c.h.bf16 %v5852_v40  ;;  %v5688_v56 = vpack.c.bf16 %v5646_v42, %v5645_v4  ;;  %v13962_v48 = vpop.eup %9324  ;;  %v5751_v49 = vmul.bf16 1056980736, %v9317_v34  ;;  %v5808_v14 = vld [vmem:[#allocation3 + $0x28] sm:$0xff] }
 0x8d3   :  { %v5859_v1 = vunpack.c.l.bf16 %v5851_v11  ;;  %v5860_v21 = vunpack.c.h.bf16 %v5851_v11  ;;  %v5687_v12 = vpack.c.bf16 %v5644_v43, %v5643_v28  ;;  %v13964_v5 = vadd.bf16 1056980736, %v5752_v22 }
 0x8d4   :  { %v13966_v23 = vadd.f32 %v5861_v18, %v5837_v7  ;;  %v13968_v16 = vadd.f32 %v5862_v2, %v5838_v61  ;;  %9334 = vtanh.bf16 %v5688_v56  ;;  %v5725_v3 = vadd.bf16 1056980736, %v5717_v35 }
 0x8d5   :  { %v13970_v38 = vadd.f32 %v5859_v1, %v5835_v15  ;;  %v13972_v4 = vadd.f32 %v5860_v21, %v5836_v59  ;;  %9336 = vtanh.bf16 %v5687_v12  ;;  %v8539_v40 = vpop.f32.mrb[172].mxu1  ;;  %v13974_v42 = vadd.bf16 1056980736, %v5720_v55 }
 0x8d6   :  { %v9327_v34 = vpop.eup %9326  ;;  %v13976_v22 = vadd.bf16 1056980736, %v5719_v46  ;;  %v5841_v7 = vmul.f32 %v5825_v29, %v5809_v17  ;;  %5941 = vst.msk [vmem:[#allocation3 + $0x10] sm:$0xff] %vm29_vm0, %v13966_v23  ;;  %5942 = vst.msk [vmem:[#allocation3 + $0x18] sm:$0xff] %vm29_vm0, %v13968_v16  ;;  %v5524_v35 = vpop.f32.mrb[173].mxu1  ;;  %v13984_v61 = vmul.f32 %v13622_v47, %v10729_v45  ;;  %v5842_v59 = vmul.f32 %v5826_v8, %v5810_v53 }
 0x8d7   :  { %v9329_v15 = vpop.eup %9328  ;;  %v5839_v11 = vmul.f32 %v5823_v63, %v5807_v13  ;;  %v5840_v55 = vmul.f32 %v5824_v57, %v5808_v14  ;;  %v5759_v28 = vadd.bf16 1056980736, %v5751_v49  ;;  %5939 = vst.msk [vmem:[#allocation3] sm:$0xff] %vm29_vm0, %v13970_v38  ;;  %5940 = vst.msk [vmem:[#allocation3 + $0x8] sm:$0xff] %vm29_vm0, %v13972_v4  ;;  %v8540_v46 = vpop.f32.mrb[174].mxu1  ;;  %v5829_v43 = vunpack.c.l.bf16 %v13964_v5 }
 0x8d8   :  { %v9331_v29 = vpop.eup %9330  ;;  %v5854_v18 = vmul.bf16 %v9329_v15, %v13941_v39  ;;  %v5649_v2 = vadd.f32 %v8539_v40, %v13887_v51  ;;  %v5650_v56 = vadd.f32 %v8540_v46, %v13898_v54  ;;  %v5527_v8 = vpop.f32.mrb[175].mxu1  ;;  %v5830_v57 = vunpack.c.h.bf16 %v13964_v5  ;;  %v5813_v5 = vld [vmem:[#allocation3 + $0x50] sm:$0xff] }
 0x8d9   :  { %v9333_v63 = vpop.eup %9332  ;;  %v5853_v49 = vmul.bf16 %v9331_v29, %v5725_v3  ;;  %v5647_v1 = vadd.f32 %v5524_v35, %v13892_v60  ;;  %v5648_v21 = vadd.f32 %v5527_v8, %v13904_v41  ;;  %v5754_v12 = vmul.bf16 1056980736, %v9327_v34  ;;  %v5814_v3 = vld [vmem:[#allocation3 + $0x58] sm:$0xff]  ;;  %v5811_v29 = vld [vmem:[#allocation3 + $0x40] sm:$0xff] }
 0x8da   :  { %v5865_v17 = vunpack.c.l.bf16 %v5854_v18  ;;  %v5866_v53 = vunpack.c.h.bf16 %v5854_v18  ;;  %v5690_v13 = vpack.c.bf16 %v5650_v56, %v5649_v2  ;;  %v5827_v14 = vunpack.c.l.bf16 %v5759_v28 }
 0x8db   :  { %v5863_v45 = vunpack.c.l.bf16 %v5853_v49  ;;  %v5864_v39 = vunpack.c.h.bf16 %v5853_v49  ;;  %v5689_v15 = vpack.c.bf16 %v5648_v21, %v5647_v1  ;;  %v5753_v51 = vmul.bf16 1056980736, %v9333_v63  ;;  %v5812_v1 = vld [vmem:[#allocation3 + $0x48] sm:$0xff] }
 0x8dc   :  { %v13997_v40 = vadd.f32 %v5865_v17, %v5841_v7  ;;  %v13999_v54 = vadd.f32 %v5866_v53, %v5842_v59  ;;  %9338 = vtanh.bf16 %v5690_v13  ;;  %v5828_v46 = vunpack.c.h.bf16 %v5759_v28  ;;  %v16311_v59 = vld [vmem:[#allocation54_spill] sm:$0xff] }
 0x8dd   :  { %v14001_v60 = vadd.f32 %v5863_v45, %v5839_v11  ;;  %v14003_v41 = vadd.f32 %v5864_v39, %v5840_v55  ;;  %9340 = vtanh.bf16 %v5689_v15  ;;  %v8543_v34 = vpop.f32.mrb[176].mxu1  ;;  %v5722_v35 = vmul.bf16 1056980736, %v13959_v50  ;;  %v16312_v45 = vld [vmem:[#allocation78_spill] sm:$0xff] }
 0x8de   :  { %v5762_v18 = vadd.bf16 1056980736, %v5754_v12  ;;  %5945 = vst.msk [vmem:[#allocation3 + $0x30] sm:$0xff] %vm29_vm0, %v13997_v40  ;;  %5946 = vst.msk [vmem:[#allocation3 + $0x38] sm:$0xff] %vm29_vm0, %v13999_v54  ;;  %v5540_v7 = vpop.f32.mrb[177].mxu1  ;;  %v5275_v28 = vadd.f32 %v13917_v62, %v16311_v59  ;;  %v5215_v11 = vmul.f32 %v13622_v47, %v16312_v45  ;;  %v5845_v56 = vmul.f32 %v5829_v43, %v5813_v5 }
 0x8df   :  { %v9335_v55 = vpop.eup %9334  ;;  %v5721_v2 = vmul.bf16 1056980736, %v13962_v48  ;;  %v5846_v50 = vmul.f32 %v5830_v57, %v5814_v3  ;;  %v5843_v8 = vmul.f32 %v5827_v14, %v5811_v29  ;;  %5943 = vst.msk [vmem:[#allocation3 + $0x20] sm:$0xff] %vm29_vm0, %v14001_v60  ;;  %5944 = vst.msk [vmem:[#allocation3 + $0x28] sm:$0xff] %vm29_vm0, %v14003_v41  ;;  %v8544_v63 = vpop.f32.mrb[178].mxu1  ;;  %v5653_v12 = vadd.f32 %v8543_v34, %v13907_v32 }
 0x8e0   :  { %v9337_v49 = vpop.eup %9336  ;;  %v5761_v21 = vadd.bf16 1056980736, %v5753_v51  ;;  %v5856_v62 = vmul.bf16 %v9335_v55, %v13974_v42  ;;  %v5654_v17 = vadd.f32 %v8544_v63, %v13913_v24  ;;  %v5543_v48 = vpop.f32.mrb[179].mxu1  ;;  %v5844_v43 = vmul.f32 %v5828_v46, %v5812_v1  ;;  %v5818_v63 = vld [vmem:[#allocation3 + $0x78] sm:$0xff] }
 0x8e1   :  { %v5855_v57 = vmul.bf16 %v9337_v49, %v13976_v22  ;;  %v5651_v53 = vadd.f32 %v5540_v7, %v13910_v25  ;;  %v5652_v13 = vadd.f32 %v5543_v48, %v5275_v28  ;;  %v5833_v14 = vunpack.c.l.bf16 %v5762_v18  ;;  %v5817_v22 = vld [vmem:[#allocation3 + $0x70] sm:$0xff]  ;;  %v5816_v48 = vld [vmem:[#allocation3 + $0x68] sm:$0xff] }
 0x8e2   :  { %v5869_v39 = vunpack.c.l.bf16 %v5856_v62  ;;  %v5870_v15 = vunpack.c.h.bf16 %v5856_v62  ;;  %v5692_v5 = vpack.c.bf16 %v5654_v17, %v5653_v12  ;;  %v5834_v3 = vunpack.c.h.bf16 %v5762_v18 }
 0x8e3   :  { %v5867_v29 = vunpack.c.l.bf16 %v5855_v57  ;;  %v5868_v51 = vunpack.c.h.bf16 %v5855_v57  ;;  %v5691_v45 = vpack.c.bf16 %v5652_v13, %v5651_v53  ;;  %v5831_v42 = vunpack.c.l.bf16 %v5761_v21 }
 0x8e4   :  { %v14024_v55 = vadd.f32 %v5869_v39, %v5845_v56  ;;  %v14026_v32 = vadd.f32 %v5870_v15, %v5846_v50  ;;  %v5280_v24 = vadd.f32 %v13924_v58, %v10833_v26  ;;  %v5832_v46 = vunpack.c.h.bf16 %v5761_v21 }
 0x8e5   :  { %v14030_v25 = vadd.f32 %v5867_v29, %v5843_v8  ;;  %v14032_v34 = vadd.f32 %v5868_v51, %v5844_v43  ;;  %v8547_v7 = vpop.f32.mrb[180].mxu1  ;;  %v5278_v18 = vadd.f32 %v13949_v6, %v15819_v10  ;;  %v5730_v28 = vadd.bf16 1056980736, %v5722_v35  ;;  %v5815_v6 = vld [vmem:[#allocation3 + $0x60] sm:$0xff] }
 0x8e6   :  { %5949 = vst.msk [vmem:[#allocation3 + $0x50] sm:$0xff] %vm29_vm0, %v14024_v55  ;;  %5950 = vst.msk [vmem:[#allocation3 + $0x58] sm:$0xff] %vm29_vm0, %v14026_v32  ;;  %v5772_v56 = vmul.bf16 1056980736, %v5692_v5  ;;  %v5556_v58 = vpop.f32.mrb[181].mxu1  ;;  %v5281_v50 = vadd.f32 %v13984_v61, %v15941_v0  ;;  %v5279_v8 = vadd.f32 %v5215_v11, %v15817_v9  ;;  %v5849_v21 = vmul.f32 %v5833_v14, %v5817_v22 }
 0x8e7   :  { %v9339_v49 = vpop.eup %9338  ;;  %v5729_v1 = vadd.bf16 1056980736, %v5721_v2  ;;  %v5850_v62 = vmul.f32 %v5834_v3, %v5818_v63  ;;  %5947 = vst.msk [vmem:[#allocation3 + $0x40] sm:$0xff] %vm29_vm0, %v14030_v25  ;;  %5948 = vst.msk [vmem:[#allocation3 + $0x48] sm:$0xff] %vm29_vm0, %v14032_v34  ;;  %v5771_v35 = vmul.bf16 1056980736, %v5691_v45  ;;  %v5847_v43 = vmul.f32 %v5831_v42, %v5815_v6 }
 0x8e8   :  { %v8548_v12 = vpop.f32.mrb[182].mxu1  ;;  %v9341_v17 = vpop.eup %9340  ;;  %v5858_v57 = vmul.bf16 %v9339_v49, %v5730_v28  ;;  %v5657_v61 = vadd.f32 %v8547_v7, %v5280_v24  ;;  %v5848_v13 = vmul.f32 %v5832_v46, %v5816_v48  ;;  %v5655_v14 = vadd.f32 %v5556_v58, %v5278_v18 }
 0x8e9   :  { %v5658_v53 = vadd.f32 %v8548_v12, %v5281_v50  ;;  %v5559_v11 = vpop.f32.mrb[183].mxu1  ;;  %v5857_v2 = vmul.bf16 %v9341_v17, %v5729_v1  ;;  %9342 = vtanh.bf16 %v5772_v56  ;;  %v5220_v42 = vmul.f32 %v13622_v47, %v11001_v20 }
 0x8ea   :  { %v5656_v39 = vadd.f32 %v5559_v11, %v5279_v8  ;;  %v5873_v15 = vunpack.c.l.bf16 %v5858_v57  ;;  %v5874_v5 = vunpack.c.h.bf16 %v5858_v57  ;;  %9344 = vtanh.bf16 %v5771_v35  ;;  %v16314_v11 = vld [vmem:[#allocation120_spill] sm:$0xff] }
 0x8eb   :  { %v5694_v3 = vpack.c.bf16 %v5658_v53, %v5657_v61  ;;  %v5871_v29 = vunpack.c.l.bf16 %v5857_v2  ;;  %v5872_v51 = vunpack.c.h.bf16 %v5857_v2  ;;  %v5221_v24 = vmul.f32 %v13622_v47, %v10994_v19  ;;  %v16313_v61 = vld [vmem:[#allocation121_spill] sm:$0xff] }
 0x8ec   :  { %v5693_v45 = vpack.c.bf16 %v5656_v39, %v5655_v14  ;;  %v14047_v22 = vadd.f32 %v5873_v15, %v5849_v21  ;;  %v14049_v63 = vadd.f32 %v5874_v5, %v5850_v62  ;;  %v5218_v28 = vmul.f32 %v13622_v47, %v10912_v44  ;;  %v16315_v14 = vld [vmem:[#allocation117_spill] sm:$0xff]  ;;  %v16316_v15 = vld [vmem:[#allocation116_spill] sm:$0xff] }
 0x8ed   :  { %v14055_v46 = vadd.f32 %v5871_v29, %v5847_v43  ;;  %v14057_v7 = vadd.f32 %v5872_v51, %v5848_v13  ;;  %v8551_v18 = vpop.f32.mrb[184].mxu1  ;;  %v5219_v56 = vmul.f32 %v13622_v47, %v10906_v37  ;;  %9346 = vtanh.f32 %v13966_v23  ;;  %v16317_v29 = vld [vmem:[#allocation123_spill] sm:$0xff] }
 0x8ee   :  { %5953 = vst.msk [vmem:[#allocation3 + $0x70] sm:$0xff] %vm29_vm0, %v14047_v22  ;;  %5954 = vst.msk [vmem:[#allocation3 + $0x78] sm:$0xff] %vm29_vm0, %v14049_v63  ;;  %v5774_v58 = vmul.bf16 1056980736, %v5694_v3  ;;  %v5284_v50 = vadd.f32 %v5220_v42, %v11047_v31  ;;  %v5572_v8 = vpop.f32.mrb[185].mxu1  ;;  %v5285_v49 = vadd.f32 %v5221_v24, %v11042_v27  ;;  %9348 = vtanh.f32 %v13968_v16  ;;  %v16318_v42 = vld [vmem:[#allocation122_spill] sm:$0xff] }
 0x8ef   :  { %5951 = vst.msk [vmem:[#allocation3 + $0x60] sm:$0xff] %vm29_vm0, %v14055_v46  ;;  %5952 = vst.msk [vmem:[#allocation3 + $0x68] sm:$0xff] %vm29_vm0, %v14057_v7  ;;  %v5773_v23 = vmul.bf16 1056980736, %v5693_v45  ;;  %v5282_v1 = vadd.f32 %v5218_v28, %v10962_v52  ;;  %v8552_v21 = vpop.f32.mrb[186].mxu1  ;;  %v5283_v62 = vadd.f32 %v5219_v56, %v15942_v36  ;;  %9350 = vtanh.f32 %v13970_v38  ;;  %v16319_v28 = vld [vmem:[#allocation119_spill] sm:$0xff] }
 0x8f0   :  { %v5661_v6 = vadd.f32 %v8551_v18, %v5284_v50  ;;  %v5662_v35 = vadd.f32 %v8552_v21, %v5285_v49  ;;  %v5575_v12 = vpop.f32.mrb[187].mxu1  ;;  %9352 = vtanh.f32 %v13972_v4  ;;  %v5224_v53 = vmul.f32 %v13622_v47, %v16313_v61 }
 0x8f1   :  { %v5659_v16 = vadd.f32 %v5572_v8, %v5282_v1  ;;  %v5660_v17 = vadd.f32 %v5575_v12, %v5283_v62  ;;  %9354 = vtanh.bf16 %v5774_v58  ;;  %v5225_v38 = vmul.f32 %v13622_v47, %v16314_v11  ;;  %v16320_v58 = vld [vmem:[#allocation118_spill] sm:$0xff] }
 0x8f2   :  { %v5696_v48 = vpack.c.bf16 %v5662_v35, %v5661_v6  ;;  %9356 = vtanh.bf16 %v5773_v23  ;;  %v5222_v39 = vmul.f32 %v13622_v47, %v16315_v14  ;;  %v5223_v5 = vmul.f32 %v13622_v47, %v16316_v15 }
 0x8f3   :  { %v5695_v43 = vpack.c.bf16 %v5660_v17, %v5659_v16  ;;  %9358 = vtanh.f32 %v13997_v40  ;;  %v5288_v51 = vadd.f32 %v5224_v53, %v16317_v29  ;;  %v5289_v24 = vadd.f32 %v5225_v38, %v16318_v42  ;;  %v16370_v42 = vld [vmem:[#allocation67_spill] sm:$0xff] }
 0x8f4   :  { %v5776_v57 = vmul.bf16 1056980736, %v5696_v48  ;;  %v9343_v13 = vpop.eup %9342  ;;  %9360 = vtanh.f32 %v13999_v54  ;;  %v5286_v54 = vadd.f32 %v5222_v39, %v16319_v28  ;;  %v5287_v50 = vadd.f32 %v5223_v5, %v16320_v58  ;;  %v16362_v58 = vld [vmem:[#allocation36_spill] sm:$0xff]  ;;  %v16369_v28 = vld [vmem:[#allocation51_spill] sm:$0xff] }
 0x8f5   :  { %v5775_v2 = vmul.bf16 1056980736, %v5695_v43  ;;  %v8555_v4 = vpop.f32.mrb[188].mxu1  ;;  %v9345_v3 = vpop.eup %9344  ;;  %v5788_v40 = vmul.bf16 1056980736, %v9343_v13 }
 0x8f6   :  { %9362 = vtanh.bf16 %v5776_v57  ;;  %v5588_v45 = vpop.f32.mrb[189].mxu1  ;;  %v5787_v18 = vmul.bf16 1056980736, %v9345_v3  ;;  %v5665_v47 = vadd.f32 %v8555_v4, %v5288_v51 }
 0x8f7   :  { %9364 = vtanh.bf16 %v5775_v2  ;;  %v8556_v56 = vpop.f32.mrb[190].mxu1  ;;  %v9347_v8 = vpop.eup %9346  ;;  %v5796_v49 = vadd.bf16 1056980736, %v5788_v40  ;;  %v5663_v6 = vadd.f32 %v5588_v45, %v5286_v54 }
 0x8f8   :  { %9366 = vtanh.f32 %v14001_v60  ;;  %v5666_v23 = vadd.f32 %v8556_v56, %v5289_v24  ;;  %v5591_v1 = vpop.f32.mrb[191].mxu1  ;;  %v9349_v21 = vpop.eup %9348  ;;  %v5795_v62 = vadd.bf16 1056980736, %v5787_v18 }
 0x8f9   :  { %9368 = vtanh.f32 %v14003_v41  ;;  %v5664_v35 = vadd.f32 %v5591_v1, %v5287_v50  ;;  %v9351_v12 = vpop.eup %9350  ;;  %v5909_v16 = vunpack.c.l.bf16 %v5796_v49  ;;  %v5910_v17 = vunpack.c.h.bf16 %v5796_v49 }
 0x8fa   :  { %9370 = vtanh.f32 %v14024_v55  ;;  %v5698_v48 = vpack.c.bf16 %v5666_v23, %v5665_v47  ;;  %v9353_v43 = vpop.eup %9352  ;;  %v5907_v60 = vunpack.c.l.bf16 %v5795_v62  ;;  %v5908_v57 = vunpack.c.h.bf16 %v5795_v62 }
 0x8fb   :  { %9372 = vtanh.f32 %v14026_v32  ;;  %v5697_v53 = vpack.c.bf16 %v5664_v35, %v5663_v6  ;;  %v5925_v38 = vmul.f32 %v9347_v8, %v5909_v16  ;;  %v5926_v13 = vmul.f32 %v9349_v21, %v5910_v17 }
 0x8fc   :  { %9374 = vtanh.f32 %v14030_v25  ;;  %v5778_v41 = vmul.bf16 1056980736, %v5698_v48  ;;  %v9355_v2 = vpop.eup %9354  ;;  %v5923_v4 = vmul.f32 %v9351_v12, %v5907_v60  ;;  %v5924_v39 = vmul.f32 %v9353_v43, %v5908_v57 }
 0x8fd   :  { %9376 = vtanh.f32 %v14032_v34  ;;  %v5777_v55 = vmul.bf16 1056980736, %v5697_v53  ;;  %v9357_v5 = vpop.eup %9356  ;;  %5957 = vst.msk [vmem:[#allocation2 + $0x10] sm:$0xff] %vm29_vm0, %v5925_v38  ;;  %5958 = vst.msk [vmem:[#allocation2 + $0x18] sm:$0xff] %vm29_vm0, %v5926_v13  ;;  %v5790_v32 = vmul.bf16 1056980736, %v9355_v2 }
 0x8fe   :  { %v9359_v3 = vpop.eup %9358  ;;  %9378 = vtanh.bf16 %v5778_v41  ;;  %5955 = vst.msk [vmem:[#allocation2] sm:$0xff] %vm29_vm0, %v5923_v4  ;;  %5956 = vst.msk [vmem:[#allocation2 + $0x8] sm:$0xff] %vm29_vm0, %v5924_v39  ;;  %v5789_v25 = vmul.bf16 1056980736, %v9357_v5 }
 0x8ff   :  { %v9361_v40 = vpop.eup %9360  ;;  %9380 = vtanh.bf16 %v5777_v55  ;;  %v5798_v51 = vadd.bf16 1056980736, %v5790_v32 }
 0x900   :  { %v5797_v45 = vadd.bf16 1056980736, %v5789_v25  ;;  %9382 = vtanh.f32 %v14047_v22 }
 0x901   :  { %v9363_v34 = vpop.eup %9362  ;;  %v5913_v54 = vunpack.c.l.bf16 %v5798_v51  ;;  %v5914_v56 = vunpack.c.h.bf16 %v5798_v51  ;;  %9384 = vtanh.f32 %v14049_v63 }
 0x902   :  { %v9365_v24 = vpop.eup %9364  ;;  %v5792_v50 = vmul.bf16 1056980736, %v9363_v34  ;;  %v5911_v49 = vunpack.c.l.bf16 %v5797_v45  ;;  %v5912_v47 = vunpack.c.h.bf16 %v5797_v45  ;;  %9386 = vtanh.f32 %v14055_v46 }
 0x903   :  { %v9367_v18 = vpop.eup %9366  ;;  %v5791_v23 = vmul.bf16 1056980736, %v9365_v24  ;;  %v5929_v21 = vmul.f32 %v9359_v3, %v5913_v54  ;;  %v5930_v62 = vmul.f32 %v9361_v40, %v5914_v56  ;;  %9388 = vtanh.f32 %v14057_v7 }
 0x904   :  { %v9369_v8 = vpop.eup %9368  ;;  %v5800_v6 = vadd.bf16 1056980736, %v5792_v50  ;;  %v5927_v12 = vmul.f32 %v9367_v18, %v5911_v49  ;;  %v6106_v48 = vld [vmem:[#allocation2 + $0x10] sm:$0xff]  ;;  %v6107_v53 = vld [vmem:[#allocation2 + $0x18] sm:$0xff] }
 0x905   :  { %v9371_v1 = vpop.eup %9370  ;;  %v5928_v16 = vmul.f32 %v9369_v8, %v5912_v47  ;;  %v5799_v17 = vadd.bf16 1056980736, %v5791_v23  ;;  %5961 = vst.msk [vmem:[#allocation2 + $0x30] sm:$0xff] %vm29_vm0, %v5929_v21  ;;  %5962 = vst.msk [vmem:[#allocation2 + $0x38] sm:$0xff] %vm29_vm0, %v5930_v62  ;;  %v6104_v63 = vld [vmem:[#allocation2] sm:$0xff]  ;;  %v6105_v57 = vld [vmem:[#allocation2 + $0x8] sm:$0xff]  ;;  %v6121_v5 = vpack.c.bf16 %v6107_v53, %v6106_v48 }
 0x906   :  { %v9373_v35 = vpop.eup %9372  ;;  %v5917_v22 = vunpack.c.l.bf16 %v5800_v6  ;;  %v5918_v60 = vunpack.c.h.bf16 %v5800_v6  ;;  %5959 = vst.msk [vmem:[#allocation2 + $0x20] sm:$0xff] %vm29_vm0, %v5927_v12  ;;  %v6120_v41 = vpack.c.bf16 %v6105_v57, %v6104_v63 }
 0x907   :  { %v9375_v43 = vpop.eup %9374  ;;  %5960 = vst.msk [vmem:[#allocation2 + $0x28] sm:$0xff] %vm29_vm0, %v5928_v16  ;;  %v5915_v46 = vunpack.c.l.bf16 %v5799_v17  ;;  %v5916_v13 = vunpack.c.h.bf16 %v5799_v17 }
 0x908   :  { %v9377_v38 = vpop.eup %9376  ;;  %v5933_v2 = vmul.f32 %v9371_v1, %v5917_v22  ;;  %v5934_v4 = vmul.f32 %v9373_v35, %v5918_v60  ;;  %8557 = vmatprep.subr.bf16.mxu0 %v6120_v41 }
 0x909   :  { %v9379_v7 = vpop.eup %9378  ;;  %v5931_v39 = vmul.f32 %v9375_v43, %v5915_v46  ;;  %v5932_v55 = vmul.f32 %v9377_v38, %v5916_v13  ;;  %8558 = vmatpush3.bf16.msra.mxu0 %v6120_v41 }
 0x90a   :  { %v9381_v3 = vpop.eup %9380  ;;  %5965 = vst.msk [vmem:[#allocation2 + $0x50] sm:$0xff] %vm29_vm0, %v5933_v2  ;;  %5966 = vst.msk [vmem:[#allocation2 + $0x58] sm:$0xff] %vm29_vm0, %v5934_v4  ;;  %v5794_v32 = vmul.bf16 1056980736, %v9379_v7  ;;  %8559 = vmatprep.subr.bf16.mxu0 %v6121_v5  ;;  %v9743_v2 = vld [vmem:[%s15323_s2 + $0x8] sm:$0xff]   ;;  %v9744_v4 = vld [vmem:[%s15323_s2 + $0x10] sm:$0xff]  }
 0x90b   :  { %5963 = vst.msk [vmem:[#allocation2 + $0x40] sm:$0xff] %vm29_vm0, %v5931_v39  ;;  %5964 = vst.msk [vmem:[#allocation2 + $0x48] sm:$0xff] %vm29_vm0, %v5932_v55  ;;  %v5793_v40 = vmul.bf16 1056980736, %v9381_v3  ;;  %v9383_v51 = vpop.eup %9382  ;;  %v9745_v7 = vld [vmem:[%s15323_s2 + $0x18] sm:$0xff]   ;;  %v9746_v39 = vld [vmem:[%s15323_s2 + $0x20] sm:$0xff]  }
 0x90c   :  { %v5802_v25 = vadd.bf16 1056980736, %v5794_v32  ;;  %v6110_v45 = vld [vmem:[#allocation2 + $0x30] sm:$0xff]  ;;  %v9385_v24 = vpop.eup %9384  ;;  %v6111_v8 = vld [vmem:[#allocation2 + $0x38] sm:$0xff]  ;;  %v9747_v55 = vld [vmem:[%s15323_s2 + $0x28] sm:$0xff]  }
 0x90d   :  { %v5801_v34 = vadd.bf16 1056980736, %v5793_v40  ;;  %8560 = vmatpush3.bf16.msra.mxu0 %v6121_v5  ;;  %v6108_v56 = vld [vmem:[#allocation2 + $0x20] sm:$0xff]  ;;  %v9387_v49 = vpop.eup %9386  ;;  %v6123_v16 = vpack.c.bf16 %v6111_v8, %v6110_v45  ;;  %v9748_v5 = vld [vmem:[%s15323_s2 + $0x30] sm:$0xff]   ;;  %v9749_v3 = vld [vmem:[%s15323_s2 + $0x38] sm:$0xff]  }
 0x90e   :  { %v5921_v18 = vunpack.c.l.bf16 %v5802_v25  ;;  %v5922_v54 = vunpack.c.h.bf16 %v5802_v25  ;;  %v6109_v50 = vld [vmem:[#allocation2 + $0x28] sm:$0xff]  ;;  %v9389_v21 = vpop.eup %9388  ;;  %v9750_v32 = vld [vmem:[%s15323_s2 + $0x40] sm:$0xff]   ;;  %v9752_v25 = vld [vmem:[%s15323_s2 + $0x50] sm:$0xff]  }
 0x90f   :  { %v5919_v47 = vunpack.c.l.bf16 %v5801_v34  ;;  %v5920_v23 = vunpack.c.h.bf16 %v5801_v34  ;;  %v6122_v1 = vpack.c.bf16 %v6109_v50, %v6108_v56  ;;  %v9751_v40 = vld [vmem:[%s15323_s2 + $0x48] sm:$0xff]   ;;  %v9754_v34 = vld [vmem:[%s15323_s2 + $0x60] sm:$0xff]   ;;  %v9760_v50 = vld [vmem:[%s15323_s2 + $0x90] sm:$0xff]  }
 0x910   :  { %v5937_v62 = vmul.f32 %v9383_v51, %v5921_v18  ;;  %v5938_v6 = vmul.f32 %v9385_v24, %v5922_v54  ;;  %v9753_v51 = vld [vmem:[%s15323_s2 + $0x58] sm:$0xff]   ;;  %v9755_v45 = vld [vmem:[%s15323_s2 + $0x68] sm:$0xff]   ;;  %v9756_v24 = vld [vmem:[%s15323_s2 + $0x70] sm:$0xff]  }
 0x911   :  { %v5935_v35 = vmul.f32 %v9387_v49, %v5919_v47  ;;  %v5936_v12 = vmul.f32 %v9389_v21, %v5920_v23  ;;  %8561 = vmatprep.subr.bf16.mxu0 %v6122_v1  ;;  %v6114_v22 = vld [vmem:[#allocation2 + $0x50] sm:$0xff]  ;;  %v6115_v60 = vld [vmem:[#allocation2 + $0x58] sm:$0xff]  ;;  %v9758_v54 = vld [vmem:[%s15323_s2 + $0x80] sm:$0xff]  }
 0x912   :  { %5969 = vst.msk [vmem:[#allocation2 + $0x70] sm:$0xff] %vm29_vm0, %v5937_v62  ;;  %5970 = vst.msk [vmem:[#allocation2 + $0x78] sm:$0xff] %vm29_vm0, %v5938_v6  ;;  %8562 = vmatpush3.bf16.msra.mxu0 %v6122_v1  ;;  %v6112_v17 = vld [vmem:[#allocation2 + $0x40] sm:$0xff]  ;;  %v6113_v48 = vld [vmem:[#allocation2 + $0x48] sm:$0xff]  ;;  %v6125_v63 = vpack.c.bf16 %v6115_v60, %v6114_v22 }
 0x913   :  { %5967 = vst.msk [vmem:[#allocation2 + $0x60] sm:$0xff] %vm29_vm0, %v5935_v35  ;;  %5968 = vst.msk [vmem:[#allocation2 + $0x68] sm:$0xff] %vm29_vm0, %v5936_v12  ;;  %8563 = vmatprep.subr.bf16.mxu0 %v6123_v16  ;;  %v6124_v43 = vpack.c.bf16 %v6113_v48, %v6112_v17  ;;  %v9757_v18 = vld [vmem:[%s15323_s2 + $0x78] sm:$0xff]   ;;  %v9759_v56 = vld [vmem:[%s15323_s2 + $0x88] sm:$0xff]  }
 0x914   :  { %v9761_v8 = vld [vmem:[%s15323_s2 + $0x98] sm:$0xff]   ;;  %v9762_v49 = vld [vmem:[%s15323_s2 + $0xa0] sm:$0xff]   ;;  %v9763_v47 = vld [vmem:[%s15323_s2 + $0xa8] sm:$0xff]  }
 0x915   :  { %v9764_v23 = vld [vmem:[%s15323_s2 + $0xb0] sm:$0xff]   ;;  %v9765_v1 = vld [vmem:[%s15323_s2 + $0xb8] sm:$0xff]   ;;  %v9766_v21 = vld [vmem:[%s15323_s2 + $0xc0] sm:$0xff]  }
 0x916   :  { %8564 = vmatpush3.bf16.msra.mxu0 %v6123_v16  ;;  %v9767_v62 = vld [vmem:[%s15323_s2 + $0xc8] sm:$0xff]   ;;  %v9768_v6 = vld [vmem:[%s15323_s2 + $0xd0] sm:$0xff]   ;;  %v9769_v35 = vld [vmem:[%s15323_s2 + $0xd8] sm:$0xff]  }
 0x917   :  { %8565 = vmatprep.subr.bf16.mxu0 %v6124_v43  ;;  %v9770_v12 = vld [vmem:[%s15323_s2 + $0xe0] sm:$0xff]   ;;  %v9771_v16 = vld [vmem:[%s15323_s2 + $0xe8] sm:$0xff]   ;;  %v9772_v17 = vld [vmem:[%s15323_s2 + $0xf0] sm:$0xff]  }
 0x918   :  { %v9773_v48 = vld [vmem:[%s15323_s2 + $0xf8] sm:$0xff]   ;;  %v16321_v22 = vld [vmem:[#allocation13_spill] sm:$0xff] }
 0x919   :  { %v6118_v46 = vld [vmem:[#allocation2 + $0x70] sm:$0xff]  ;;  %v6119_v13 = vld [vmem:[#allocation2 + $0x78] sm:$0xff] }
 0x91a   :  { %8566 = vmatpush3.bf16.msra.mxu0 %v6124_v43  ;;  %v6116_v57 = vld [vmem:[#allocation2 + $0x60] sm:$0xff]  ;;  %v6117_v53 = vld [vmem:[#allocation2 + $0x68] sm:$0xff]  ;;  %v6127_v41 = vpack.c.bf16 %v6119_v13, %v6118_v46  ;;  %v16324_v13 = vld [vmem:[#allocation7_spill] sm:$0xff] }
 0x91b   :  { %8567 = vmatprep.subr.bf16.mxu0 %v6125_v63  ;;  %v6126_v38 = vpack.c.bf16 %v6117_v53, %v6116_v57  ;;  %v14215_v43 = vld [vmem:[%s15324_s0 + $0x6] ss:$0 sm:$0xff] }
 0x91c   :  { %v5978_v60 = vmul.f32 %v14215_v43, %v16321_v22  ;;  %v16361_v22 = vld [vmem:[#allocation37_spill] sm:$0xff] }
 0x91e   :  { %8568 = vmatpush3.bf16.msra.mxu0 %v6125_v63  ;;  %v16322_v63 = vld [vmem:[#allocation12_spill] sm:$0xff] }
 0x91f   :  { %8569 = vmatprep.subr.bf16.mxu0 %v6126_v38  ;;  %v5979_v57 = vmul.f32 %v14215_v43, %v16322_v63 }
 0x922   :  { %8570 = vmatpush3.bf16.msra.mxu0 %v6126_v38  ;;  %v16323_v38 = vld [vmem:[#allocation5_spill] sm:$0xff] }
 0x923   :  { %8571 = vmatprep.subr.bf16.mxu0 %v6127_v41  ;;  %v5976_v46 = vmul.f32 %v14215_v43, %v16323_v38 }
 0x926   :  { %8572 = vmatpush3.bf16.msra.mxu0 %v6127_v41  ;;  %v5977_v41 = vmul.f32 %v14215_v43, %v16324_v13 }
 0x929   :  { %8574 = vmatmul.mubr.bf16.vlgmr.msra.gmra.mrb[192].mxu0 %v9743_v2  ;;  %v16325_v2 = vld [vmem:[#allocation19_spill] sm:$0xff] }
 0x92a   :  { %8577 = vmatprep.mubr.bf16.mxu0 %v9744_v4  ;;  %v6042_v4 = vadd.f32 %v5978_v60, %v16325_v2  ;;  %v16335_v60 = vld [vmem:[#allocation31_spill] sm:$0xff] }
 0x931   :  { %8578 = vmatmul.mubr.bf16.gmra.mrb[196].mxu0 %v9745_v7 }
 0x932   :  { %8581 = vmatprep.mubr.bf16.mxu0 %v9746_v39  ;;  %v16326_v39 = vld [vmem:[#allocation18_spill] sm:$0xff] }
 0x939   :  { %8582 = vmatmul.mubr.bf16.gmra.mrb[200].mxu0 %v9747_v55  ;;  %v6043_v55 = vadd.f32 %v5979_v57, %v16326_v39 }
 0x93a   :  { %8585 = vmatprep.mubr.bf16.mxu0 %v9748_v5  ;;  %v16327_v5 = vld [vmem:[#allocation9_spill] sm:$0xff] }
 0x941   :  { %8586 = vmatmul.mubr.bf16.gmra.mrb[204].mxu0 %v9749_v3  ;;  %v6040_v3 = vadd.f32 %v5976_v46, %v16327_v5  ;;  %v16336_v46 = vld [vmem:[#allocation30_spill] sm:$0xff] }
 0x942   :  { %8589 = vmatprep.mubr.bf16.mxu0 %v9750_v32  ;;  %v16360_v5 = vld [vmem:[#allocation10_spill] sm:$0xff] }
 0x949   :  { %8590 = vmatmul.mubr.bf16.gmra.mrb[208].mxu0 %v9751_v40  ;;  %v16328_v40 = vld [vmem:[#allocation8_spill] sm:$0xff] }
 0x94a   :  { %8593 = vmatprep.mubr.bf16.mxu0 %v9752_v25  ;;  %v6041_v25 = vadd.f32 %v5977_v41, %v16328_v40 }
 0x951   :  { %8594 = vmatmul.mubr.bf16.gmra.mrb[212].mxu0 %v9753_v51 }
 0x952   :  { %8597 = vmatprep.mubr.bf16.mxu0 %v9754_v34 }
 0x959   :  { %8598 = vmatmul.mubr.bf16.gmra.mrb[216].mxu0 %v9755_v45 }
 0x95a   :  { %8601 = vmatprep.mubr.bf16.mxu0 %v9756_v24 }
 0x961   :  { %8602 = vmatmul.mubr.bf16.gmra.mrb[220].mxu0 %v9757_v18 }
 0x962   :  { %8605 = vmatprep.mubr.bf16.mxu0 %v9758_v54  ;;  %v16343_v54 = vld [vmem:[#allocation59_spill] sm:$0xff] }
 0x969   :  { %8606 = vmatmul.mubr.bf16.gmra.mrb[224].mxu0 %v9759_v56 }
 0x96a   :  { %8609 = vmatprep.mubr.bf16.mxu0 %v9760_v50  ;;  %v16329_v50 = vld [vmem:[#allocation35_spill] sm:$0xff] }
 0x971   :  { %8610 = vmatmul.mubr.bf16.gmra.mrb[228].mxu0 %v9761_v8  ;;  %v5982_v8 = vmul.f32 %v14215_v43, %v16329_v50 }
 0x972   :  { %8613 = vmatprep.mubr.bf16.mxu0 %v9762_v49  ;;  %v16330_v49 = vld [vmem:[#allocation34_spill] sm:$0xff] }
 0x979   :  { %8614 = vmatmul.mubr.bf16.gmra.mrb[232].mxu0 %v9763_v47  ;;  %v5983_v47 = vmul.f32 %v14215_v43, %v16330_v49 }
 0x97a   :  { %8617 = vmatprep.mubr.bf16.mxu0 %v9764_v23 }
 0x981   :  { %8618 = vmatmul.mubr.bf16.gmra.mrb[236].mxu0 %v9765_v1  ;;  %v16331_v1 = vld [vmem:[#allocation23_spill] sm:$0xff] }
 0x982   :  { %8621 = vmatprep.mubr.bf16.mxu0 %v9766_v21  ;;  %v5980_v21 = vmul.f32 %v14215_v43, %v16331_v1  ;;  %v16352_v1 = vld [vmem:[#allocation92_spill] sm:$0xff] }
 0x984   :  { %v6044_v57 = vadd.f32 %v5980_v21, %v16335_v60  ;;  %v16338_v21 = vld [vmem:[#allocation64_spill] sm:$0xff]  ;;  %v16344_v60 = vld [vmem:[#allocation58_spill] sm:$0xff] }
 0x989   :  { %8622 = vmatmul.mubr.bf16.gmra.mrb[240].mxu0 %v9767_v62  ;;  %v16332_v62 = vld [vmem:[#allocation22_spill] sm:$0xff] }
 0x98a   :  { %8625 = vmatprep.mubr.bf16.mxu0 %v9768_v6  ;;  %v5981_v6 = vmul.f32 %v14215_v43, %v16332_v62 }
 0x98c   :  { %v6045_v41 = vadd.f32 %v5981_v6, %v16336_v46 }
 0x991   :  { %8626 = vmatmul.mubr.bf16.gmra.mrb[244].mxu0 %v9769_v35  ;;  %v16333_v35 = vld [vmem:[#allocation43_spill] sm:$0xff] }
 0x992   :  { %8629 = vmatprep.mubr.bf16.mxu0 %v9770_v12  ;;  %v6046_v12 = vadd.f32 %v5982_v8, %v16333_v35  ;;  %v16337_v8 = vld [vmem:[#allocation65_spill] sm:$0xff] }
 0x999   :  { %8630 = vmatmul.mubr.bf16.gmra.mrb[248].mxu0 %v9771_v16 }
 0x99a   :  { %8633 = vmatprep.mubr.bf16.mxu0 %v9772_v17  ;;  %v16334_v17 = vld [vmem:[#allocation42_spill] sm:$0xff] }
 0x9a1   :  { %8634 = vmatmul.mubr.bf16.gmra.mrb[252].mxu0 %v9773_v48  ;;  %v6047_v48 = vadd.f32 %v5983_v47, %v16334_v17  ;;  %v5986_v47 = vmul.f32 %v14215_v43, %v16337_v8 }
 0x9fc   :  { %v8575_v53 = vpop.f32.mrb[192].mxu0 }
 0x9fd   :  { %v6162_v7 = vpop.f32.mrb[193].mxu0  ;;  %v14229_v51 = vadd.f32 %v8575_v53, %v6042_v4 }
 0x9fe   :  { %v8576_v32 = vpop.f32.mrb[194].mxu0  ;;  %v14233_v24 = vadd.f32 %v6162_v7, %v6040_v3 }
 0x9ff   :  { %v14231_v34 = vadd.f32 %v8576_v32, %v6043_v55  ;;  %v6165_v45 = vpop.f32.mrb[195].mxu0 }
 0xa00   :  { %v14235_v18 = vadd.f32 %v6165_v45, %v6041_v25  ;;  %v16342_v25 = vld [vmem:[#allocation74_spill] sm:$0xff] }
 0xa04   :  { %v8579_v23 = vpop.f32.mrb[196].mxu0 }
 0xa05   :  { %v6178_v16 = vpop.f32.mrb[197].mxu0  ;;  %v14253_v4 = vadd.f32 %v8579_v23, %v6046_v12  ;;  %v5987_v23 = vmul.f32 %v14215_v43, %v16338_v21  ;;  %v16339_v12 = vld [vmem:[#allocation49_spill] sm:$0xff] }
 0xa06   :  { %v8580_v53 = vpop.f32.mrb[198].mxu0  ;;  %v14257_v3 = vadd.f32 %v6178_v16, %v6044_v57  ;;  %v16340_v16 = vld [vmem:[#allocation48_spill] sm:$0xff] }
 0xa07   :  { %v14255_v7 = vadd.f32 %v8580_v53, %v6047_v48  ;;  %v6181_v55 = vpop.f32.mrb[199].mxu0  ;;  %v5984_v48 = vmul.f32 %v14215_v43, %v16339_v12  ;;  %v5985_v57 = vmul.f32 %v14215_v43, %v16340_v16  ;;  %v16341_v53 = vld [vmem:[#allocation75_spill] sm:$0xff]  ;;  %v6051_v56 = vadd.f32 %v5987_v23, %v16342_v25 }
 0xa08   :  { %v14259_v32 = vadd.f32 %v6181_v55, %v6045_v41  ;;  %v6050_v41 = vadd.f32 %v5986_v47, %v16341_v53  ;;  %v16345_v25 = vld [vmem:[#allocation99_spill] sm:$0xff]  ;;  %v16351_v53 = vld [vmem:[#allocation93_spill] sm:$0xff] }
 0xa09   :  { %v6048_v45 = vadd.f32 %v5984_v48, %v16343_v54  ;;  %v6049_v8 = vadd.f32 %v5985_v57, %v16344_v60  ;;  %v5990_v48 = vmul.f32 %v14215_v43, %v16345_v25  ;;  %v16346_v54 = vld [vmem:[#allocation98_spill] sm:$0xff]  ;;  %v16350_v47 = vld [vmem:[#allocation107_spill] sm:$0xff] }
 0xa0c   :  { %v8583_v6 = vpop.f32.mrb[200].mxu0 }
 0xa0d   :  { %v6194_v55 = vpop.f32.mrb[201].mxu0  ;;  %v14277_v17 = vadd.f32 %v8583_v6, %v6050_v41  ;;  %v5991_v6 = vmul.f32 %v14215_v43, %v16346_v54 }
 0xa0e   :  { %v8584_v46 = vpop.f32.mrb[202].mxu0  ;;  %v14281_v62 = vadd.f32 %v6194_v55, %v6048_v45  ;;  %v16348_v45 = vld [vmem:[#allocation82_spill] sm:$0xff] }
 0xa0f   :  { %v14279_v21 = vadd.f32 %v8584_v46, %v6051_v56  ;;  %v6197_v35 = vpop.f32.mrb[203].mxu0  ;;  %v16347_v56 = vld [vmem:[#allocation83_spill] sm:$0xff]  ;;  %v6055_v60 = vadd.f32 %v5991_v6, %v16350_v47 }
 0xa10   :  { %v14283_v12 = vadd.f32 %v6197_v35, %v6049_v8  ;;  %v5988_v46 = vmul.f32 %v14215_v43, %v16347_v56  ;;  %v5989_v35 = vmul.f32 %v14215_v43, %v16348_v45  ;;  %v16349_v8 = vld [vmem:[#allocation108_spill] sm:$0xff]  ;;  %v16353_v47 = vld [vmem:[#allocation15_spill] sm:$0xff] }
 0xa11   :  { %v6054_v41 = vadd.f32 %v5990_v48, %v16349_v8  ;;  %v16358_v48 = vld [vmem:[#allocation20_spill] sm:$0xff]  ;;  %v16359_v8 = vld [vmem:[#allocation11_spill] sm:$0xff] }
 0xa12   :  { %v6052_v23 = vadd.f32 %v5988_v46, %v16351_v53  ;;  %v6053_v25 = vadd.f32 %v5989_v35, %v16352_v1  ;;  %v5994_v46 = vmul.f32 %v14215_v43, %v16353_v47  ;;  %v16354_v53 = vld [vmem:[#allocation14_spill] sm:$0xff] }
 0xa14   :  { %v8587_v57 = vpop.f32.mrb[204].mxu0 }
 0xa15   :  { %v6210_v55 = vpop.f32.mrb[205].mxu0  ;;  %v14301_v49 = vadd.f32 %v8587_v57, %v6054_v41  ;;  %v5995_v57 = vmul.f32 %v14215_v43, %v16354_v53 }
 0xa16   :  { %v8588_v16 = vpop.f32.mrb[206].mxu0  ;;  %v14305_v40 = vadd.f32 %v6210_v55, %v6052_v23  ;;  %v16356_v23 = vld [vmem:[#allocation6_spill] sm:$0xff] }
 0xa17   :  { %v14303_v54 = vadd.f32 %v8588_v16, %v6055_v60  ;;  %v6213_v50 = vpop.f32.mrb[207].mxu0  ;;  %v16355_v60 = vld [vmem:[#allocation4_spill] sm:$0xff]  ;;  %v6059_v1 = vadd.f32 %v5995_v57, %v16358_v48  ;;  %v16363_v57 = vld [vmem:[#allocation25_spill] sm:$0xff] }
 0xa18   :  { %v14307_v56 = vadd.f32 %v6213_v50, %v6053_v25  ;;  %v5992_v16 = vmul.f32 %v14215_v43, %v16355_v60  ;;  %v5993_v50 = vmul.f32 %v14215_v43, %v16356_v23  ;;  %v16357_v25 = vld [vmem:[#allocation21_spill] sm:$0xff]  ;;  %v5998_v23 = vmul.f32 %v14215_v43, %v16361_v22 }
 0xa19   :  { %v6058_v41 = vadd.f32 %v5994_v46, %v16357_v25  ;;  %v5999_v46 = vmul.f32 %v14215_v43, %v16362_v58 }
 0xa1a   :  { %v6056_v6 = vadd.f32 %v5992_v16, %v16359_v8  ;;  %v6057_v47 = vadd.f32 %v5993_v50, %v16360_v5  ;;  %v5996_v16 = vmul.f32 %v14215_v43, %v16363_v57  ;;  %v16364_v8 = vld [vmem:[#allocation24_spill] sm:$0xff] }
 0xa1b   :  { %v5997_v50 = vmul.f32 %v14215_v43, %v16364_v8  ;;  %v6000_v8 = vmul.f32 %v14215_v43, %v16369_v28  ;;  %v16380_v28 = vld [vmem:[#allocation16_spill] sm:$0xff] }
 0xa1c   :  { %v8591_v35 = vpop.f32.mrb[208].mxu0 }
 0xa1d   :  { %v6226_v55 = vpop.f32.mrb[209].mxu0  ;;  %v6435_v39 = vadd.f32 %v8591_v35, %v6058_v41  ;;  %v16365_v35 = vld [vmem:[#allocation45_spill] sm:$0xff] }
 0xa1e   :  { %v8592_v45 = vpop.f32.mrb[210].mxu0  ;;  %v6433_v13 = vadd.f32 %v6226_v55, %v6056_v6  ;;  %v16366_v6 = vld [vmem:[#allocation44_spill] sm:$0xff] }
 0xa1f   :  { %v6436_v2 = vadd.f32 %v8592_v45, %v6059_v1  ;;  %v6229_v53 = vpop.f32.mrb[211].mxu0  ;;  %v6062_v1 = vadd.f32 %v5998_v23, %v16365_v35  ;;  %v6002_v23 = vmul.f32 %v14215_v43, %v16370_v42  ;;  %v16371_v35 = vld [vmem:[#allocation66_spill] sm:$0xff] }
 0xa20   :  { %v6434_v38 = vadd.f32 %v6229_v53, %v6057_v47  ;;  %v6063_v53 = vadd.f32 %v5999_v46, %v16366_v6  ;;  %v6003_v46 = vmul.f32 %v14215_v43, %v16371_v35 }
 0xa21   :  { %v6490_v63 = vpack.c.bf16 %v6436_v2, %v6435_v39  ;;  %v16367_v2 = vld [vmem:[#allocation33_spill] sm:$0xff]  ;;  %v16368_v39 = vld [vmem:[#allocation32_spill] sm:$0xff] }
 0xa22   :  { %v6489_v60 = vpack.c.bf16 %v6434_v38, %v6433_v13  ;;  %v6060_v38 = vadd.f32 %v5996_v16, %v16367_v2  ;;  %v6061_v47 = vadd.f32 %v5997_v50, %v16368_v39  ;;  %v16372_v16 = vld [vmem:[#allocation50_spill] sm:$0xff]  ;;  %v16381_v39 = vld [vmem:[#allocation60_spill] sm:$0xff] }
 0xa23   :  { %v6001_v2 = vmul.f32 %v14215_v43, %v16372_v16  ;;  %v16379_v16 = vld [vmem:[#allocation76_spill] sm:$0xff] }
 0xa24   :  { %v8595_v25 = vpop.f32.mrb[212].mxu0  ;;  %v6067_v42 = vadd.f32 %v6003_v46, %v16379_v16  ;;  %v16384_v46 = vld [vmem:[#allocation39_spill] sm:$0xff] }
 0xa25   :  { %v6242_v45 = vpop.f32.mrb[213].mxu0  ;;  %v6439_v41 = vadd.f32 %v8595_v25, %v6062_v1  ;;  %v16373_v25 = vld [vmem:[#allocation61_spill] sm:$0xff]  ;;  %v6065_v6 = vadd.f32 %v6001_v2, %v16381_v39  ;;  %v16385_v2 = vld [vmem:[#allocation27_spill] sm:$0xff] }
 0xa26   :  { %v8596_v13 = vpop.f32.mrb[214].mxu0  ;;  %v6437_v22 = vadd.f32 %v6242_v45, %v6060_v38  ;;  %v6064_v1 = vadd.f32 %v6000_v8, %v16373_v25  ;;  %v16375_v45 = vld [vmem:[#allocation17_spill] sm:$0xff]  ;;  %v6009_v8 = vmul.f32 %v14215_v43, %v16380_v28  ;;  %v6546_v25 = vmul.bf16 1056980736, %v6490_v63 }
 0xa27   :  { %v6440_v55 = vadd.f32 %v8596_v13, %v6063_v53  ;;  %v6245_v58 = vpop.f32.mrb[215].mxu0  ;;  %v16374_v53 = vld [vmem:[#allocation29_spill] sm:$0xff]  ;;  %v16377_v13 = vpack.c.bf16 %v14231_v34, %v14229_v51  ;;  %v6545_v51 = vmul.bf16 1056980736, %v6489_v60 }
 0xa28   :  { %v6438_v5 = vadd.f32 %v6245_v58, %v6061_v47  ;;  %v6010_v58 = vmul.f32 %v14215_v43, %v16374_v53 }
 0xa29   :  { %v6492_v48 = vpack.c.bf16 %v6440_v55, %v6439_v41  ;;  %v6514_v47 = vmul.bf16 1056980736, %v16377_v13  ;;  %v16378_v41 = vld [vmem:[#allocation77_spill] sm:$0xff] }
 0xa2a   :  { %v6491_v57 = vpack.c.bf16 %v6438_v5, %v6437_v22  ;;  %v6008_v22 = vmul.f32 %v14215_v43, %v16375_v45  ;;  %v16376_v5 = vld [vmem:[#allocation28_spill] sm:$0xff]  ;;  %v6066_v55 = vadd.f32 %v6002_v23, %v16378_v41  ;;  %v16382_v45 = vld [vmem:[#allocation57_spill] sm:$0xff]  ;;  %v14369_v16 = vadd.f32 %v6010_v58, %v16384_v46  ;;  %v16402_v46 = vld [vmem:[#allocation94_spill] sm:$0xff] }
 0xa2b   :  { %v6011_v38 = vmul.f32 %v14215_v43, %v16376_v5  ;;  %v6014_v29 = vmul.f32 %v14215_v43, %v16382_v45  ;;  %v16383_v5 = vld [vmem:[#allocation41_spill] sm:$0xff]  ;;  %v16386_v45 = vld [vmem:[#allocation38_spill] sm:$0xff]  ;;  %9390 = vtanh.bf16 %v6514_v47 }
 0xa2c   :  { %v8599_v50 = vpop.f32.mrb[216].mxu0  ;;  %v6012_v15 = vmul.f32 %v14215_v43, %v16383_v5  ;;  %v14376_v39 = vadd.f32 %v6008_v22, %v16385_v2  ;;  %9392 = vtanh.bf16 %v6546_v25  ;;  %v16390_v22 = vld [vmem:[#allocation53_spill] sm:$0xff] }
 0xa2d   :  { %v6258_v35 = vpop.f32.mrb[217].mxu0  ;;  %v14364_v34 = vadd.f32 %v8599_v50, %v6066_v55  ;;  %v14379_v41 = vadd.f32 %v6011_v38, %v16386_v45  ;;  %9394 = vtanh.bf16 %v6545_v51  ;;  %v16391_v47 = vld [vmem:[#allocation101_spill] sm:$0xff]  ;;  %v16401_v45 = vld [vmem:[#allocation95_spill] sm:$0xff] }
 0xa2e   :  { %v8600_v53 = vpop.f32.mrb[218].mxu0  ;;  %v14371_v28 = vadd.f32 %v6258_v35, %v6064_v1  ;;  %v16389_v35 = vpack.c.bf16 %v14235_v18, %v14233_v24  ;;  %v14395_v38 = vadd.f32 %v6012_v15, %v16390_v22  ;;  %v6006_v55 = vmul.f32 %v14215_v43, %v16391_v47  ;;  %v16394_v18 = vld [vmem:[#allocation85_spill] sm:$0xff]  ;;  %v16396_v15 = vld [vmem:[#allocation40_spill] sm:$0xff] }
 0xa2f   :  { %v14366_v23 = vadd.f32 %v8600_v53, %v6067_v42  ;;  %v6261_v13 = vpop.f32.mrb[219].mxu0  ;;  %v16387_v42 = vld [vmem:[#allocation26_spill] sm:$0xff]  ;;  %v16388_v53 = vld [vmem:[#allocation69_spill] sm:$0xff]  ;;  %v6004_v25 = vmul.f32 %v14215_v43, %v16394_v18  ;;  %v6013_v51 = vmul.f32 %v14215_v43, %v16396_v15  ;;  %v6547_v18 = vmul.bf16 1056980736, %v6491_v57 }
 0xa30   :  { %v14373_v63 = vadd.f32 %v6261_v13, %v6065_v6  ;;  %v14384_v50 = vadd.f32 %v6009_v8, %v16387_v42  ;;  %v14387_v58 = vadd.f32 %v6014_v29, %v16388_v53  ;;  %v6513_v6 = vmul.bf16 1056980736, %v16389_v35  ;;  %v16392_v8 = vld [vmem:[#allocation100_spill] sm:$0xff]  ;;  %v16399_v42 = vld [vmem:[#allocation81_spill] sm:$0xff] }
 0xa31   :  { %v6494_v60 = vpack.c.bf16 %v14366_v23, %v14364_v34  ;;  %v6007_v34 = vmul.f32 %v14215_v43, %v16392_v8  ;;  %v16393_v29 = vld [vmem:[#allocation56_spill] sm:$0xff]  ;;  %v6548_v13 = vmul.bf16 1056980736, %v6492_v48  ;;  %v16400_v48 = vld [vmem:[#allocation73_spill] sm:$0xff]  ;;  %v6068_v2 = vadd.f32 %v6004_v25, %v16401_v45 }
 0xa32   :  { %v6493_v1 = vpack.c.bf16 %v14373_v63, %v14371_v28  ;;  %v6015_v23 = vmul.f32 %v14215_v43, %v16393_v29  ;;  %v16395_v35 = vld [vmem:[#allocation84_spill] sm:$0xff]  ;;  %v16397_v63 = vpack.c.bf16 %v14255_v7, %v14253_v4  ;;  %v6016_v5 = vmul.f32 %v14215_v43, %v16400_v48 }
 0xa33   :  { %v6005_v28 = vmul.f32 %v14215_v43, %v16395_v35  ;;  %v16398_v53 = vld [vmem:[#allocation80_spill] sm:$0xff]  ;;  %v6071_v29 = vadd.f32 %v6007_v34, %v16399_v42  ;;  %9396 = vtanh.bf16 %v6513_v6  ;;  %v16405_v6 = vld [vmem:[#allocation47_spill] sm:$0xff] }
 0xa34   :  { %v8603_v24 = vpop.f32.mrb[220].mxu0  ;;  %v6516_v22 = vmul.bf16 1056980736, %v16397_v63  ;;  %v6070_v8 = vadd.f32 %v6006_v55, %v16398_v53  ;;  %v16403_v7 = vld [vmem:[#allocation72_spill] sm:$0xff]  ;;  %v16404_v63 = vld [vmem:[#allocation63_spill] sm:$0xff]  ;;  %9398 = vtanh.bf16 %v6548_v13  ;;  %v6024_v25 = vmul.f32 %v14215_v43, %v16405_v6 }
 0xa35   :  { %v6274_v47 = vpop.f32.mrb[221].mxu0  ;;  %v6069_v14 = vadd.f32 %v6005_v28, %v16402_v46  ;;  %v6017_v55 = vmul.f32 %v14215_v43, %v16403_v7  ;;  %v6026_v34 = vmul.f32 %v14215_v43, %v16404_v63  ;;  %v16410_v13 = vld [vmem:[#allocation68_spill] sm:$0xff]  ;;  %v16413_v7 = vld [vmem:[#allocation70_spill] sm:$0xff] }
 0xa36   :  { %v8604_v35 = vpop.f32.mrb[222].mxu0  ;;  %v14418_v15 = vadd.f32 %v8603_v24, %v6070_v8  ;;  %v14426_v42 = vadd.f32 %v6274_v47, %v6068_v2  ;;  %9400 = vtanh.bf16 %v6516_v22  ;;  %v16406_v8 = vpack.c.bf16 %v14259_v32, %v14257_v3 }
 0xa37   :  { %v14420_v11 = vadd.f32 %v8604_v35, %v6071_v29  ;;  %v6277_v4 = vpop.f32.mrb[223].mxu0  ;;  %v16407_v35 = vld [vmem:[#allocation62_spill] sm:$0xff]  ;;  %v16408_v2 = vpack.c.bf16 %v14279_v21, %v14277_v17  ;;  %9402 = vtanh.bf16 %v6547_v18  ;;  %v6025_v22 = vmul.f32 %v14215_v43, %v16307_v30  ;;  %v9391_v21 = vpop.eup %9390 }
 0xa38   :  { %v14428_v57 = vadd.f32 %v6277_v4, %v6069_v14  ;;  %v6515_v29 = vmul.bf16 1056980736, %v16406_v8  ;;  %v6027_v28 = vmul.f32 %v14215_v43, %v16407_v35  ;;  %v16409_v3 = vpack.c.bf16 %v14283_v12, %v14281_v62  ;;  %v16411_v8 = vld [vmem:[#allocation52_spill] sm:$0xff]  ;;  %v16414_v12 = vld [vmem:[#allocation79_spill] sm:$0xff]  ;;  %v16416_v35 = vld [vmem:[#allocation78_spill] sm:$0xff] }
 0xa39   :  { %v6518_v47 = vmul.bf16 1056980736, %v16408_v2  ;;  %v14450_v4 = vadd.f32 %v6015_v23, %v16410_v13  ;;  %v14453_v24 = vadd.f32 %v6013_v51, %v16411_v8  ;;  %v14456_v17 = vadd.f32 %v6026_v34, %v16304_v33  ;;  %v16412_v2 = vld [vmem:[#allocation55_spill] sm:$0xff]  ;;  %v9393_v51 = vpop.eup %9392 }
 0xa3a   :  { %v6517_v32 = vmul.bf16 1056980736, %v16409_v3  ;;  %v14459_v14 = vadd.f32 %v6024_v25, %v16412_v2  ;;  %v14462_v30 = vadd.f32 %v6027_v28, %v16413_v7  ;;  %v14465_v62 = vadd.f32 %v6025_v22, %v16311_v59  ;;  %v16415_v33 = vld [vmem:[#allocation87_spill] sm:$0xff]  ;;  %v9395_v28 = vpop.eup %9394 }
 0xa3b   :  { %v14469_v23 = vmul.f32 %v14215_v43, %v16414_v12  ;;  %9404 = vtanh.bf16 %v6515_v29  ;;  %v6550_v3 = vmul.bf16 1056980736, %v6494_v60  ;;  %v14472_v8 = vadd.f32 %v6016_v5, %v16415_v33  ;;  %v16417_v59 = vld [vmem:[#allocation91_spill] sm:$0xff]  ;;  %v16418_v12 = vld [vmem:[#allocation86_spill] sm:$0xff] }
 0xa3c   :  { %v8607_v18 = vpop.f32.mrb[224].mxu0  ;;  %v14476_v25 = vmul.f32 %v14215_v43, %v16416_v35  ;;  %9406 = vtanh.bf16 %v6518_v47  ;;  %v6549_v7 = vmul.bf16 1056980736, %v6493_v1  ;;  %v6018_v2 = vmul.f32 %v14215_v43, %v16417_v59  ;;  %v16419_v33 = vld [vmem:[#allocation90_spill] sm:$0xff]  ;;  %v16420_v13 = vld [vmem:[#allocation103_spill] sm:$0xff] }
 0xa3d   :  { %v6290_v34 = vpop.f32.mrb[225].mxu0  ;;  %v14481_v6 = vadd.f32 %v6017_v55, %v16418_v12  ;;  %9408 = vtanh.bf16 %v6517_v32  ;;  %v6451_v60 = vadd.f32 %v8607_v18, %v14369_v16  ;;  %v6019_v35 = vmul.f32 %v14215_v43, %v16419_v33 }
 0xa3e   :  { %v8608_v22 = vpop.f32.mrb[226].mxu0  ;;  %v6562_v63 = vmul.bf16 1056980736, %v9393_v51  ;;  %v6449_v47 = vadd.f32 %v6290_v34, %v14376_v39  ;;  %v14490_v46 = vadd.f32 %v6018_v2, %v16420_v13  ;;  %v9397_v59 = vpop.eup %9396  ;;  %v6530_v55 = vmul.bf16 1056980736, %v9391_v21  ;;  %v16424_v34 = vld [vmem:[#allocation102_spill] sm:$0xff] }
 0xa3f   :  { %v6452_v5 = vadd.f32 %v8608_v22, %v14379_v41  ;;  %v6293_v29 = vpop.f32.mrb[227].mxu0  ;;  %v6561_v12 = vmul.bf16 1056980736, %v9395_v28  ;;  %9410 = vtanh.bf16 %v6550_v3  ;;  %v16421_v16 = vpack.c.bf16 %v14303_v54, %v14301_v49  ;;  %v16422_v22 = vld [vmem:[#allocation106_spill] sm:$0xff]  ;;  %v9399_v39 = vpop.eup %9398  ;;  %v16425_v3 = vld [vmem:[#allocation105_spill] sm:$0xff] }
 0xa40   :  { %v6450_v1 = vadd.f32 %v6293_v29, %v14384_v50  ;;  %9412 = vtanh.bf16 %v6549_v7  ;;  %v6020_v51 = vmul.f32 %v14215_v43, %v16422_v22  ;;  %v16423_v50 = vpack.c.bf16 %v14307_v56, %v14305_v40  ;;  %v16427_v56 = vld [vmem:[#allocation113_spill] sm:$0xff] }
 0xa41   :  { %v6498_v32 = vpack.c.bf16 %v6452_v5, %v6451_v60  ;;  %v6520_v41 = vmul.bf16 1056980736, %v16421_v16  ;;  %v14501_v21 = vadd.f32 %v6019_v35, %v16424_v34  ;;  %v6021_v28 = vmul.f32 %v14215_v43, %v16425_v3  ;;  %v9401_v60 = vpop.eup %9400  ;;  %v16426_v5 = vld [vmem:[#allocation110_spill] sm:$0xff]  ;;  %v16428_v35 = vld [vmem:[#allocation109_spill] sm:$0xff]  ;;  %v16430_v34 = vld [vmem:[#allocation112_spill] sm:$0xff] }
 0xa42   :  { %v6497_v18 = vpack.c.bf16 %v6450_v1, %v6449_v47  ;;  %v6519_v2 = vmul.bf16 1056980736, %v16423_v50  ;;  %v6529_v54 = vmul.bf16 1056980736, %v9397_v59  ;;  %v6570_v49 = vadd.bf16 1056980736, %v6562_v63  ;;  %v9403_v47 = vpop.eup %9402 }
 0xa43   :  { %9414 = vtanh.bf16 %v6498_v32  ;;  %v14506_v29 = vadd.f32 %v6020_v51, %v16426_v5  ;;  %v6538_v1 = vadd.bf16 1056980736, %v6530_v55  ;;  %v6569_v16 = vadd.bf16 1056980736, %v6561_v12 }
 0xa44   :  { %9416 = vtanh.bf16 %v6497_v18  ;;  %v8611_v7 = vpop.f32.mrb[228].mxu0  ;;  %v6022_v32 = vmul.f32 %v14215_v43, %v16427_v56  ;;  %v14511_v50 = vadd.f32 %v6021_v28, %v16428_v35  ;;  %v6564_v3 = vmul.bf16 1056980736, %v9399_v39 }
 0xa45   :  { %v6306_v40 = vpop.f32.mrb[229].mxu0  ;;  %9418 = vtanh.bf16 %v6520_v41  ;;  %v16429_v59 = vpack.c.bf16 %v14420_v11, %v14418_v15  ;;  %v14518_v51 = vmul.f32 %v14215_v43, %v16430_v34  ;;  %v6532_v55 = vmul.bf16 1056980736, %v9401_v60 }
 0xa46   :  { %v8612_v18 = vpop.f32.mrb[230].mxu0  ;;  %9420 = vtanh.bf16 %v6519_v2  ;;  %v6455_v12 = vadd.f32 %v8611_v7, %v14387_v58  ;;  %v14522_v28 = vpop.eup %9404  ;;  %v6635_v41 = vunpack.c.l.bf16 %v6570_v49  ;;  %v6563_v39 = vmul.bf16 1056980736, %v9403_v47 }
 0xa47   :  { %v6552_v63 = vmul.bf16 1056980736, %v16429_v59  ;;  %v6456_v56 = vadd.f32 %v8612_v18, %v14450_v4  ;;  %v6309_v5 = vpop.f32.mrb[231].mxu0  ;;  %v6453_v35 = vadd.f32 %v6306_v40, %v14395_v38  ;;  %v14526_v15 = vpop.eup %9406  ;;  %v6636_v59 = vunpack.c.h.bf16 %v6570_v49  ;;  %v6619_v4 = vld [vmem:[#allocation3 + $0x10] sm:$0xff] }
 0xa48   :  { %v6454_v11 = vadd.f32 %v6309_v5, %v14453_v24  ;;  %v6633_v34 = vunpack.c.l.bf16 %v6569_v16  ;;  %v16431_v2 = vpack.c.bf16 %v14428_v57, %v14426_v42  ;;  %v14531_v7 = vpop.eup %9408  ;;  %v6634_v18 = vunpack.c.h.bf16 %v6569_v16  ;;  %v6620_v42 = vld [vmem:[#allocation3 + $0x18] sm:$0xff] }
 0xa49   :  { %v6500_v58 = vpack.c.bf16 %v6456_v56, %v6455_v12  ;;  %v14533_v22 = vadd.bf16 1056980736, %v6564_v3  ;;  %9422 = vtanh.bf16 %v6552_v63  ;;  %v6537_v38 = vadd.bf16 1056980736, %v6529_v54  ;;  %v16432_v12 = vld [vmem:[#allocation115_spill] sm:$0xff] }
 0xa4a   :  { %v6551_v60 = vmul.bf16 1056980736, %v16431_v2  ;;  %v6499_v47 = vpack.c.bf16 %v6454_v11, %v6453_v35  ;;  %v14535_v40 = vadd.bf16 1056980736, %v6532_v55  ;;  %v6531_v24 = vmul.bf16 1056980736, %v14522_v28  ;;  %v9411_v49 = vpop.eup %9410 }
 0xa4b   :  { %9424 = vtanh.bf16 %v6500_v58  ;;  %v6534_v5 = vmul.bf16 1056980736, %v14526_v15  ;;  %v14539_v57 = vadd.bf16 1056980736, %v6563_v39  ;;  %v14542_v16 = vadd.f32 %v6022_v32, %v16432_v12  ;;  %v9413_v3 = vpop.eup %9412  ;;  %v6617_v55 = vld [vmem:[#allocation3] sm:$0xff]  ;;  %v6618_v11 = vld [vmem:[#allocation3 + $0x8] sm:$0xff] }
 0xa4c   :  { %9426 = vtanh.bf16 %v6499_v47  ;;  %v8615_v56 = vpop.f32.mrb[232].mxu0  ;;  %v6533_v35 = vmul.bf16 1056980736, %v14531_v7  ;;  %v6651_v54 = vmul.f32 %v6635_v41, %v6619_v4  ;;  %v6652_v63 = vmul.f32 %v6636_v59, %v6620_v42 }
 0xa4d   :  { %9428 = vtanh.bf16 %v6551_v60  ;;  %v6322_v28 = vpop.f32.mrb[233].mxu0  ;;  %v6649_v58 = vmul.f32 %v6633_v34, %v6617_v55  ;;  %v6650_v15 = vmul.f32 %v6634_v18, %v6618_v11  ;;  %v6639_v39 = vunpack.c.l.bf16 %v14533_v22 }
 0xa4e   :  { %v9415_v2 = vpop.eup %9414  ;;  %v6640_v47 = vunpack.c.h.bf16 %v14533_v22  ;;  %v8616_v13 = vpop.f32.mrb[234].mxu0  ;;  %v6566_v32 = vmul.bf16 1056980736, %v9411_v49  ;;  %v6459_v45 = vadd.f32 %v8615_v56, %v14490_v46  ;;  %v6637_v7 = vunpack.c.l.bf16 %v14539_v57 }
 0xa4f   :  { %v9417_v33 = vpop.eup %9416  ;;  %v6666_v12 = vmul.bf16 %v9415_v2, %v6538_v1  ;;  %v6460_v41 = vadd.f32 %v8616_v13, %v14501_v21  ;;  %v6325_v59 = vpop.f32.mrb[235].mxu0  ;;  %v6457_v4 = vadd.f32 %v6322_v28, %v14472_v8  ;;  %v6638_v22 = vunpack.c.h.bf16 %v14539_v57  ;;  %v6624_v28 = vld [vmem:[#allocation3 + $0x38] sm:$0xff]  ;;  %v6621_v57 = vld [vmem:[#allocation3 + $0x20] sm:$0xff] }
 0xa50   :  { %v6665_v60 = vmul.bf16 %v9417_v33, %v6537_v38  ;;  %v6458_v34 = vadd.f32 %v6325_v59, %v14481_v6  ;;  %v14552_v18 = vpop.eup %9418  ;;  %v6565_v46 = vmul.bf16 1056980736, %v9413_v3  ;;  %v14557_v11 = vadd.bf16 1056980736, %v6566_v32  ;;  %v6623_v38 = vld [vmem:[#allocation3 + $0x30] sm:$0xff]  ;;  %v6622_v59 = vld [vmem:[#allocation3 + $0x28] sm:$0xff] }
 0xa51   :  { %v6675_v42 = vunpack.c.l.bf16 %v6666_v12  ;;  %v6676_v55 = vunpack.c.h.bf16 %v6666_v12  ;;  %v6502_v49 = vpack.c.bf16 %v6460_v41, %v6459_v45  ;;  %v14555_v1 = vpop.eup %9420  ;;  %v6539_v6 = vadd.bf16 1056980736, %v6531_v24 }
 0xa52   :  { %v6673_v56 = vunpack.c.l.bf16 %v6665_v60  ;;  %v6674_v13 = vunpack.c.h.bf16 %v6665_v60  ;;  %v6501_v21 = vpack.c.bf16 %v6458_v34, %v6457_v4  ;;  %v14567_v41 = vadd.bf16 1056980736, %v6534_v5 }
 0xa53   :  { %v14559_v33 = vadd.f32 %v6675_v42, %v6651_v54  ;;  %v14561_v8 = vadd.f32 %v6676_v55, %v6652_v63  ;;  %9430 = vtanh.bf16 %v6502_v49  ;;  %v14569_v32 = vadd.bf16 1056980736, %v6533_v35  ;;  %v16433_v63 = vld [vmem:[#allocation114_spill] sm:$0xff] }
 0xa54   :  { %v14563_v2 = vadd.f32 %v6673_v56, %v6649_v58  ;;  %v14565_v45 = vadd.f32 %v6674_v13, %v6650_v15  ;;  %9432 = vtanh.bf16 %v6501_v21  ;;  %v8619_v12 = vpop.f32.mrb[236].mxu0  ;;  %v9423_v3 = vpop.eup %9422  ;;  %v6655_v54 = vmul.f32 %v6639_v39, %v6623_v38 }
 0xa55   :  { %6755 = vst.msk [vmem:[#allocation3 + $0x10] sm:$0xff] %vm29_vm0, %v14559_v33  ;;  %6756 = vst.msk [vmem:[#allocation3 + $0x18] sm:$0xff] %vm29_vm0, %v14561_v8  ;;  %v6338_v24 = vpop.f32.mrb[237].mxu0  ;;  %v6087_v58 = vadd.f32 %v14518_v51, %v16433_v63  ;;  %v6656_v60 = vmul.f32 %v6640_v47, %v6624_v28  ;;  %v6653_v4 = vmul.f32 %v6637_v7, %v6621_v57  ;;  %v6573_v5 = vadd.bf16 1056980736, %v6565_v46 }
 0xa56   :  { %v9425_v15 = vpop.eup %9424  ;;  %v6654_v34 = vmul.f32 %v6638_v22, %v6622_v59  ;;  %6753 = vst.msk [vmem:[#allocation3] sm:$0xff] %vm29_vm0, %v14563_v2  ;;  %6754 = vst.msk [vmem:[#allocation3 + $0x8] sm:$0xff] %vm29_vm0, %v14565_v45  ;;  %v8620_v35 = vpop.f32.mrb[238].mxu0  ;;  %v6643_v42 = vunpack.c.l.bf16 %v14557_v11  ;;  %v6463_v49 = vadd.f32 %v8619_v12, %v14542_v16  ;;  %v6644_v7 = vunpack.c.h.bf16 %v14557_v11  ;;  %v6627_v11 = vld [vmem:[#allocation3 + $0x50] sm:$0xff] }
 0xa57   :  { %v9427_v39 = vpop.eup %9426  ;;  %v6668_v55 = vmul.bf16 %v9425_v15, %v14535_v40  ;;  %v6464_v51 = vadd.f32 %v8620_v35, %v6087_v58  ;;  %v6341_v56 = vpop.f32.mrb[239].mxu0  ;;  %v6461_v46 = vadd.f32 %v6338_v24, %v14506_v29  ;;  %v6568_v21 = vmul.bf16 1056980736, %v9423_v3  ;;  %v6625_v35 = vld [vmem:[#allocation3 + $0x40] sm:$0xff] }
 0xa58   :  { %v9429_v47 = vpop.eup %9428  ;;  %v6667_v22 = vmul.bf16 %v9427_v39, %v6539_v6  ;;  %v6462_v13 = vadd.f32 %v6341_v56, %v14511_v50  ;;  %v6641_v59 = vunpack.c.l.bf16 %v6573_v5  ;;  %v6628_v6 = vld [vmem:[#allocation3 + $0x58] sm:$0xff]  ;;  %v6642_v58 = vunpack.c.h.bf16 %v6573_v5  ;;  %v6626_v56 = vld [vmem:[#allocation3 + $0x48] sm:$0xff] }
 0xa59   :  { %v6679_v38 = vunpack.c.l.bf16 %v6668_v55  ;;  %v6680_v28 = vunpack.c.h.bf16 %v6668_v55  ;;  %v6504_v57 = vpack.c.bf16 %v6464_v51, %v6463_v49  ;;  %v6567_v15 = vmul.bf16 1056980736, %v9429_v47 }
 0xa5a   :  { %v6677_v63 = vunpack.c.l.bf16 %v6667_v22  ;;  %v6678_v53 = vunpack.c.h.bf16 %v6667_v22  ;;  %v6503_v40 = vpack.c.bf16 %v6462_v13, %v6461_v46  ;;  %v6536_v24 = vmul.bf16 1056980736, %v14552_v18 }
 0xa5b   :  { %v14587_v16 = vadd.f32 %v6679_v38, %v6655_v54  ;;  %v14589_v12 = vadd.f32 %v6680_v28, %v6656_v60  ;;  %9434 = vtanh.bf16 %v6504_v57  ;;  %v6576_v39 = vadd.bf16 1056980736, %v6568_v21  ;;  %v16434_v60 = vld [vmem:[#allocation97_spill] sm:$0xff] }
 0xa5c   :  { %v14591_v29 = vadd.f32 %v6677_v63, %v6653_v4  ;;  %v14593_v50 = vadd.f32 %v6678_v53, %v6654_v34  ;;  %9436 = vtanh.bf16 %v6503_v40  ;;  %v8623_v3 = vpop.f32.mrb[240].mxu0  ;;  %v6030_v5 = vmul.f32 %v14215_v43, %v16434_v60 }
 0xa5d   :  { %6759 = vst.msk [vmem:[#allocation3 + $0x30] sm:$0xff] %vm29_vm0, %v14587_v16  ;;  %6760 = vst.msk [vmem:[#allocation3 + $0x38] sm:$0xff] %vm29_vm0, %v14589_v12  ;;  %v6354_v54 = vpop.f32.mrb[241].mxu0  ;;  %v14604_v53 = vadd.f32 %v14469_v23, %v15819_v10  ;;  %v6535_v4 = vmul.bf16 1056980736, %v14555_v1  ;;  %v6659_v18 = vmul.f32 %v6643_v42, %v6627_v11  ;;  %v6660_v34 = vmul.f32 %v6644_v7, %v6628_v6 }
 0xa5e   :  { %v9431_v63 = vpop.eup %9430  ;;  %v6657_v55 = vmul.f32 %v6641_v59, %v6625_v35  ;;  %6757 = vst.msk [vmem:[#allocation3 + $0x20] sm:$0xff] %vm29_vm0, %v14591_v29  ;;  %6758 = vst.msk [vmem:[#allocation3 + $0x28] sm:$0xff] %vm29_vm0, %v14593_v50  ;;  %v8624_v49 = vpop.f32.mrb[242].mxu0  ;;  %v6575_v47 = vadd.bf16 1056980736, %v6567_v15  ;;  %v6467_v23 = vadd.f32 %v8623_v3, %v14456_v17  ;;  %v6658_v42 = vmul.f32 %v6642_v58, %v6626_v56  ;;  %v16435_v58 = vld [vmem:[#allocation96_spill] sm:$0xff] }
 0xa5f   :  { %v9433_v51 = vpop.eup %9432  ;;  %v6670_v22 = vmul.bf16 %v9431_v63, %v14567_v41  ;;  %v6468_v46 = vadd.f32 %v8624_v49, %v14462_v30  ;;  %v6357_v1 = vpop.f32.mrb[243].mxu0  ;;  %v6465_v13 = vadd.f32 %v6354_v54, %v14459_v14  ;;  %v6647_v38 = vunpack.c.l.bf16 %v6576_v39  ;;  %v6631_v3 = vld [vmem:[#allocation3 + $0x70] sm:$0xff]  ;;  %v6632_v49 = vld [vmem:[#allocation3 + $0x78] sm:$0xff] }
 0xa60   :  { %v6669_v7 = vmul.bf16 %v9433_v51, %v14569_v32  ;;  %v6466_v21 = vadd.f32 %v6357_v1, %v14465_v62  ;;  %v6648_v40 = vunpack.c.h.bf16 %v6576_v39  ;;  %v6645_v6 = vunpack.c.l.bf16 %v6575_v47 }
 0xa61   :  { %v6683_v28 = vunpack.c.l.bf16 %v6670_v22  ;;  %v6684_v57 = vunpack.c.h.bf16 %v6670_v22  ;;  %v6506_v59 = vpack.c.bf16 %v6468_v46, %v6467_v23  ;;  %v6031_v32 = vmul.f32 %v14215_v43, %v16435_v58  ;;  %v6629_v46 = vld [vmem:[#allocation3 + $0x60] sm:$0xff] }
 0xa62   :  { %v6681_v15 = vunpack.c.l.bf16 %v6669_v7  ;;  %v6682_v11 = vunpack.c.h.bf16 %v6669_v7  ;;  %v6505_v41 = vpack.c.bf16 %v6466_v21, %v6465_v13  ;;  %v6646_v14 = vunpack.c.h.bf16 %v6575_v47 }
 0xa63   :  { %v14617_v17 = vadd.f32 %v6683_v28, %v6659_v18  ;;  %v14619_v30 = vadd.f32 %v6684_v57, %v6660_v34  ;;  %v6093_v39 = vadd.f32 %v14476_v25, %v15817_v9  ;;  %v6544_v63 = vadd.bf16 1056980736, %v6536_v24 }
 0xa64   :  { %v14623_v35 = vadd.f32 %v6681_v15, %v6657_v55  ;;  %v14625_v62 = vadd.f32 %v6682_v11, %v6658_v42  ;;  %v8627_v54 = vpop.f32.mrb[244].mxu0  ;;  %v6586_v18 = vmul.bf16 1056980736, %v6506_v59  ;;  %v6094_v34 = vadd.f32 %v6030_v5, %v10833_v26  ;;  %v6630_v42 = vld [vmem:[#allocation3 + $0x68] sm:$0xff] }
 0xa65   :  { %6763 = vst.msk [vmem:[#allocation3 + $0x50] sm:$0xff] %vm29_vm0, %v14617_v17  ;;  %6764 = vst.msk [vmem:[#allocation3 + $0x58] sm:$0xff] %vm29_vm0, %v14619_v30  ;;  %v6370_v51 = vpop.f32.mrb[245].mxu0  ;;  %v6095_v55 = vadd.f32 %v6031_v32, %v15941_v0  ;;  %v6543_v47 = vadd.bf16 1056980736, %v6535_v4  ;;  %v6663_v22 = vmul.f32 %v6647_v38, %v6631_v3  ;;  %v6664_v23 = vmul.f32 %v6648_v40, %v6632_v49 }
 0xa66   :  { %v9435_v56 = vpop.eup %9434  ;;  %6761 = vst.msk [vmem:[#allocation3 + $0x40] sm:$0xff] %vm29_vm0, %v14623_v35  ;;  %6762 = vst.msk [vmem:[#allocation3 + $0x48] sm:$0xff] %vm29_vm0, %v14625_v62  ;;  %v6585_v25 = vmul.bf16 1056980736, %v6505_v41  ;;  %v8628_v24 = vpop.f32.mrb[246].mxu0  ;;  %v6661_v7 = vmul.f32 %v6645_v6, %v6629_v46  ;;  %v6471_v13 = vadd.f32 %v8627_v54, %v6094_v34  ;;  %v6662_v57 = vmul.f32 %v6646_v14, %v6630_v42 }
 0xa67   :  { %v9437_v1 = vpop.eup %9436  ;;  %v6672_v5 = vmul.bf16 %v9435_v56, %v6544_v63  ;;  %v6472_v21 = vadd.f32 %v8628_v24, %v6095_v55  ;;  %v6373_v28 = vpop.f32.mrb[247].mxu0  ;;  %v6469_v38 = vadd.f32 %v6370_v51, %v14604_v53  ;;  %9438 = vtanh.bf16 %v6586_v18 }
 0xa68   :  { %v6671_v4 = vmul.bf16 %v9437_v1, %v6543_v47  ;;  %v6470_v59 = vadd.f32 %v6373_v28, %v6093_v39  ;;  %9440 = vtanh.bf16 %v6585_v25  ;;  %v6034_v54 = vmul.f32 %v14215_v43, %v11001_v20  ;;  %v16436_v28 = vld [vmem:[#allocation120_spill] sm:$0xff] }
 0xa69   :  { %v6687_v40 = vunpack.c.l.bf16 %v6672_v5  ;;  %v6688_v15 = vunpack.c.h.bf16 %v6672_v5  ;;  %v6508_v11 = vpack.c.bf16 %v6472_v21, %v6471_v13  ;;  %v6035_v14 = vmul.f32 %v14215_v43, %v10994_v19 }
 0xa6a   :  { %v6685_v32 = vunpack.c.l.bf16 %v6671_v4  ;;  %v6686_v3 = vunpack.c.h.bf16 %v6671_v4  ;;  %v6507_v41 = vpack.c.bf16 %v6470_v59, %v6469_v38  ;;  %v6032_v18 = vmul.f32 %v14215_v43, %v10912_v44  ;;  %v16437_v38 = vld [vmem:[#allocation117_spill] sm:$0xff] }
 0xa6b   :  { %v14640_v49 = vadd.f32 %v6687_v40, %v6663_v22  ;;  %v14642_v6 = vadd.f32 %v6688_v15, %v6664_v23  ;;  %v6033_v34 = vmul.f32 %v14215_v43, %v10906_v37  ;;  %9442 = vtanh.f32 %v14559_v33  ;;  %v16438_v40 = vld [vmem:[#allocation116_spill] sm:$0xff] }
 0xa6c   :  { %v14648_v53 = vadd.f32 %v6685_v32, %v6661_v7  ;;  %v14650_v39 = vadd.f32 %v6686_v3, %v6662_v57  ;;  %v8631_v63 = vpop.f32.mrb[248].mxu0  ;;  %v6588_v51 = vmul.bf16 1056980736, %v6508_v11  ;;  %v6098_v55 = vadd.f32 %v6034_v54, %v11047_v31  ;;  %v16439_v32 = vld [vmem:[#allocation123_spill] sm:$0xff]  ;;  %v16440_v54 = vld [vmem:[#allocation122_spill] sm:$0xff] }
 0xa6d   :  { %6767 = vst.msk [vmem:[#allocation3 + $0x70] sm:$0xff] %vm29_vm0, %v14640_v49  ;;  %6768 = vst.msk [vmem:[#allocation3 + $0x78] sm:$0xff] %vm29_vm0, %v14642_v6  ;;  %v6386_v56 = vpop.f32.mrb[249].mxu0  ;;  %v6099_v47 = vadd.f32 %v6035_v14, %v11042_v27  ;;  %9444 = vtanh.f32 %v14561_v8  ;;  %v6587_v33 = vmul.bf16 1056980736, %v6507_v41  ;;  %v6096_v22 = vadd.f32 %v6032_v18, %v10962_v52  ;;  %v16441_v18 = vld [vmem:[#allocation119_spill] sm:$0xff] }
 0xa6e   :  { %6765 = vst.msk [vmem:[#allocation3 + $0x60] sm:$0xff] %vm29_vm0, %v14648_v53  ;;  %6766 = vst.msk [vmem:[#allocation3 + $0x68] sm:$0xff] %vm29_vm0, %v14650_v39  ;;  %v8632_v23 = vpop.f32.mrb[250].mxu0  ;;  %v6097_v46 = vadd.f32 %v6033_v34, %v15942_v36  ;;  %9446 = vtanh.f32 %v14563_v2  ;;  %v6475_v25 = vadd.f32 %v8631_v63, %v6098_v55  ;;  %v6038_v21 = vmul.f32 %v14215_v43, %v16313_v61 }
 0xa6f   :  { %v6476_v24 = vadd.f32 %v8632_v23, %v6099_v47  ;;  %v6389_v1 = vpop.f32.mrb[251].mxu0  ;;  %9448 = vtanh.f32 %v14565_v45  ;;  %v6473_v8 = vadd.f32 %v6386_v56, %v6096_v22  ;;  %v6039_v2 = vmul.f32 %v14215_v43, %v16436_v28 }
 0xa70   :  { %v6474_v42 = vadd.f32 %v6389_v1, %v6097_v46  ;;  %9450 = vtanh.bf16 %v6588_v51  ;;  %v6036_v59 = vmul.f32 %v14215_v43, %v16437_v38  ;;  %v6037_v15 = vmul.f32 %v14215_v43, %v16438_v40  ;;  %v16442_v51 = vld [vmem:[#allocation118_spill] sm:$0xff] }
 0xa71   :  { %v6510_v7 = vpack.c.bf16 %v6476_v24, %v6475_v25  ;;  %9452 = vtanh.bf16 %v6587_v33  ;;  %v6102_v3 = vadd.f32 %v6038_v21, %v16439_v32  ;;  %v6103_v14 = vadd.f32 %v6039_v2, %v16440_v54  ;;  %v16524_v38 = vld [vmem:[#allocation94_spill] sm:$0xff] }
 0xa72   :  { %v6509_v5 = vpack.c.bf16 %v6474_v42, %v6473_v8  ;;  %9454 = vtanh.f32 %v14587_v16  ;;  %v9439_v57 = vpop.eup %9438  ;;  %v6101_v55 = vadd.f32 %v6037_v15, %v16442_v51  ;;  %v16484_v51 = vld [vmem:[#allocation36_spill] sm:$0xff] }
 0xa73   :  { %v6590_v13 = vmul.bf16 1056980736, %v6510_v7  ;;  %9456 = vtanh.f32 %v14589_v12  ;;  %v9441_v11 = vpop.eup %9440  ;;  %v6602_v16 = vmul.bf16 1056980736, %v9439_v57  ;;  %v6100_v12 = vadd.f32 %v6036_v59, %v16441_v18  ;;  %v16492_v18 = vld [vmem:[#allocation51_spill] sm:$0xff] }
 0xa74   :  { %v6589_v4 = vmul.bf16 1056980736, %v6509_v5  ;;  %v8635_v45 = vpop.f32.mrb[252].mxu0  ;;  %v6601_v63 = vmul.bf16 1056980736, %v9441_v11 }
 0xa75   :  { %9458 = vtanh.bf16 %v6590_v13  ;;  %v6402_v41 = vpop.f32.mrb[253].mxu0  ;;  %v9443_v56 = vpop.eup %9442  ;;  %v6610_v47 = vadd.bf16 1056980736, %v6602_v16  ;;  %v6479_v43 = vadd.f32 %v8635_v45, %v6102_v3 }
 0xa76   :  { %9460 = vtanh.bf16 %v6589_v4  ;;  %v8636_v34 = vpop.f32.mrb[254].mxu0  ;;  %v6609_v46 = vadd.bf16 1056980736, %v6601_v63  ;;  %v6477_v25 = vadd.f32 %v6402_v41, %v6100_v12 }
 0xa77   :  { %9462 = vtanh.f32 %v14591_v29  ;;  %v6480_v33 = vadd.f32 %v8636_v34, %v6103_v14  ;;  %v6405_v22 = vpop.f32.mrb[255].mxu0  ;;  %v9445_v23 = vpop.eup %9444  ;;  %v6723_v8 = vunpack.c.l.bf16 %v6610_v47  ;;  %v6724_v42 = vunpack.c.h.bf16 %v6610_v47 }
 0xa78   :  { %9464 = vtanh.f32 %v14593_v50  ;;  %v6478_v24 = vadd.f32 %v6405_v22, %v6101_v55  ;;  %v9447_v1 = vpop.eup %9446  ;;  %v6721_v29 = vunpack.c.l.bf16 %v6609_v46  ;;  %v6722_v13 = vunpack.c.h.bf16 %v6609_v46 }
 0xa79   :  { %9466 = vtanh.f32 %v14617_v17  ;;  %v6512_v7 = vpack.c.bf16 %v6480_v33, %v6479_v43  ;;  %v9449_v5 = vpop.eup %9448  ;;  %v6739_v2 = vmul.f32 %v9443_v56, %v6723_v8  ;;  %v6740_v57 = vmul.f32 %v9445_v23, %v6724_v42 }
 0xa7a   :  { %9468 = vtanh.f32 %v14619_v30  ;;  %v6511_v21 = vpack.c.bf16 %v6478_v24, %v6477_v25  ;;  %v6737_v45 = vmul.f32 %v9447_v1, %v6721_v29  ;;  %v6738_v59 = vmul.f32 %v9449_v5, %v6722_v13 }
 0xa7b   :  { %9470 = vtanh.f32 %v14623_v35  ;;  %v6592_v50 = vmul.bf16 1056980736, %v6512_v7  ;;  %v9451_v4 = vpop.eup %9450  ;;  %6771 = vst.msk [vmem:[#allocation2 + $0x10] sm:$0xff] %vm29_vm0, %v6739_v2  ;;  %6772 = vst.msk [vmem:[#allocation2 + $0x18] sm:$0xff] %vm29_vm0, %v6740_v57 }
 0xa7c   :  { %9472 = vtanh.f32 %v14625_v62  ;;  %v6591_v17 = vmul.bf16 1056980736, %v6511_v21  ;;  %v9453_v15 = vpop.eup %9452  ;;  %v6604_v30 = vmul.bf16 1056980736, %v9451_v4  ;;  %6769 = vst.msk [vmem:[#allocation2] sm:$0xff] %vm29_vm0, %v6737_v45  ;;  %6770 = vst.msk [vmem:[#allocation2 + $0x8] sm:$0xff] %vm29_vm0, %v6738_v59 }
 0xa7d   :  { %v9455_v11 = vpop.eup %9454  ;;  %9474 = vtanh.bf16 %v6592_v50  ;;  %v6603_v35 = vmul.bf16 1056980736, %v9453_v15 }
 0xa7e   :  { %v9457_v16 = vpop.eup %9456  ;;  %9476 = vtanh.bf16 %v6591_v17  ;;  %v6612_v3 = vadd.bf16 1056980736, %v6604_v30 }
 0xa7f   :  { %v6611_v41 = vadd.bf16 1056980736, %v6603_v35  ;;  %9478 = vtanh.f32 %v14640_v49 }
 0xa80   :  { %v9459_v62 = vpop.eup %9458  ;;  %v6727_v12 = vunpack.c.l.bf16 %v6612_v3  ;;  %v6728_v34 = vunpack.c.h.bf16 %v6612_v3  ;;  %9480 = vtanh.f32 %v14642_v6 }
 0xa81   :  { %v9461_v14 = vpop.eup %9460  ;;  %v6606_v55 = vmul.bf16 1056980736, %v9459_v62  ;;  %v6725_v47 = vunpack.c.l.bf16 %v6611_v41  ;;  %v6726_v43 = vunpack.c.h.bf16 %v6611_v41  ;;  %9482 = vtanh.f32 %v14648_v53 }
 0xa82   :  { %v9463_v63 = vpop.eup %9462  ;;  %v6605_v33 = vmul.bf16 1056980736, %v9461_v14  ;;  %v6743_v23 = vmul.f32 %v9455_v11, %v6727_v12  ;;  %v6744_v46 = vmul.f32 %v9457_v16, %v6728_v34  ;;  %v6920_v7 = vld [vmem:[#allocation2 + $0x10] sm:$0xff]  ;;  %9484 = vtanh.f32 %v14650_v39  ;;  %v6921_v21 = vld [vmem:[#allocation2 + $0x18] sm:$0xff] }
 0xa83   :  { %v9465_v56 = vpop.eup %9464  ;;  %v6614_v25 = vadd.bf16 1056980736, %v6606_v55  ;;  %v6741_v1 = vmul.f32 %v9463_v63, %v6725_v47  ;;  %v6918_v6 = vld [vmem:[#allocation2] sm:$0xff]  ;;  %v6919_v13 = vld [vmem:[#allocation2 + $0x8] sm:$0xff]  ;;  %v6935_v15 = vpack.c.bf16 %v6921_v21, %v6920_v7 }
 0xa84   :  { %v9467_v22 = vpop.eup %9466  ;;  %v6742_v8 = vmul.f32 %v9465_v56, %v6726_v43  ;;  %v6613_v42 = vadd.bf16 1056980736, %v6605_v33  ;;  %6775 = vst.msk [vmem:[#allocation2 + $0x30] sm:$0xff] %vm29_vm0, %v6743_v23  ;;  %6776 = vst.msk [vmem:[#allocation2 + $0x38] sm:$0xff] %vm29_vm0, %v6744_v46  ;;  %v6934_v50 = vpack.c.bf16 %v6919_v13, %v6918_v6 }
 0xa85   :  { %v9469_v24 = vpop.eup %9468  ;;  %v6731_v49 = vunpack.c.l.bf16 %v6614_v25  ;;  %v6732_v29 = vunpack.c.h.bf16 %v6614_v25  ;;  %6773 = vst.msk [vmem:[#allocation2 + $0x20] sm:$0xff] %vm29_vm0, %v6741_v1 }
 0xa86   :  { %v9471_v5 = vpop.eup %9470  ;;  %6774 = vst.msk [vmem:[#allocation2 + $0x28] sm:$0xff] %vm29_vm0, %v6742_v8  ;;  %v6729_v53 = vunpack.c.l.bf16 %v6613_v42  ;;  %v6730_v57 = vunpack.c.h.bf16 %v6613_v42  ;;  %8637 = vmatprep.subr.bf16.mxu1 %v6934_v50 }
 0xa87   :  { %v9473_v2 = vpop.eup %9472  ;;  %v6747_v4 = vmul.f32 %v9467_v22, %v6731_v49  ;;  %v6748_v45 = vmul.f32 %v9469_v24, %v6732_v29  ;;  %8638 = vmatpush3.bf16.msra.mxu1 %v6934_v50 }
 0xa88   :  { %v9475_v39 = vpop.eup %9474  ;;  %v6745_v59 = vmul.f32 %v9471_v5, %v6729_v53  ;;  %v6746_v17 = vmul.f32 %v9473_v2, %v6730_v57  ;;  %8639 = vmatprep.subr.bf16.mxu1 %v6935_v15 }
 0xa89   :  { %v9477_v11 = vpop.eup %9476  ;;  %6779 = vst.msk [vmem:[#allocation2 + $0x50] sm:$0xff] %vm29_vm0, %v6747_v4  ;;  %6780 = vst.msk [vmem:[#allocation2 + $0x58] sm:$0xff] %vm29_vm0, %v6748_v45  ;;  %v6608_v30 = vmul.bf16 1056980736, %v9475_v39  ;;  %v9774_v4 = vld [vmem:[%s15323_s2 + $0x8] sm:$0xff]   ;;  %v9775_v45 = vld [vmem:[%s15323_s2 + $0x10] sm:$0xff]  }
 0xa8a   :  { %6777 = vst.msk [vmem:[#allocation2 + $0x40] sm:$0xff] %vm29_vm0, %v6745_v59  ;;  %6778 = vst.msk [vmem:[#allocation2 + $0x48] sm:$0xff] %vm29_vm0, %v6746_v17  ;;  %v6607_v16 = vmul.bf16 1056980736, %v9477_v11  ;;  %v9479_v3 = vpop.eup %9478  ;;  %v9776_v39 = vld [vmem:[%s15323_s2 + $0x18] sm:$0xff]   ;;  %v9777_v59 = vld [vmem:[%s15323_s2 + $0x20] sm:$0xff]  }
 0xa8b   :  { %v6616_v35 = vadd.bf16 1056980736, %v6608_v30  ;;  %v6924_v41 = vld [vmem:[#allocation2 + $0x30] sm:$0xff]  ;;  %v9481_v14 = vpop.eup %9480  ;;  %8640 = vmatpush3.bf16.msra.mxu1 %v6935_v15  ;;  %v6925_v56 = vld [vmem:[#allocation2 + $0x38] sm:$0xff]  ;;  %v9778_v17 = vld [vmem:[%s15323_s2 + $0x28] sm:$0xff]  }
 0xa8c   :  { %v6615_v62 = vadd.bf16 1056980736, %v6607_v16  ;;  %v6922_v34 = vld [vmem:[#allocation2 + $0x20] sm:$0xff]  ;;  %v9483_v47 = vpop.eup %9482  ;;  %v6937_v8 = vpack.c.bf16 %v6925_v56, %v6924_v41  ;;  %v9779_v15 = vld [vmem:[%s15323_s2 + $0x30] sm:$0xff]   ;;  %v9780_v11 = vld [vmem:[%s15323_s2 + $0x38] sm:$0xff]  }
 0xa8d   :  { %v6735_v63 = vunpack.c.l.bf16 %v6616_v35  ;;  %v6736_v12 = vunpack.c.h.bf16 %v6616_v35  ;;  %v6923_v55 = vld [vmem:[#allocation2 + $0x28] sm:$0xff]  ;;  %v9485_v23 = vpop.eup %9484  ;;  %v9781_v30 = vld [vmem:[%s15323_s2 + $0x40] sm:$0xff]   ;;  %v9783_v35 = vld [vmem:[%s15323_s2 + $0x50] sm:$0xff]  }
 0xa8e   :  { %v6733_v43 = vunpack.c.l.bf16 %v6615_v62  ;;  %v6734_v33 = vunpack.c.h.bf16 %v6615_v62  ;;  %v6936_v22 = vpack.c.bf16 %v6923_v55, %v6922_v34  ;;  %v9782_v16 = vld [vmem:[%s15323_s2 + $0x48] sm:$0xff]   ;;  %v9785_v62 = vld [vmem:[%s15323_s2 + $0x60] sm:$0xff]   ;;  %v9791_v55 = vld [vmem:[%s15323_s2 + $0x90] sm:$0xff]  }
 0xa8f   :  { %v6751_v46 = vmul.f32 %v9479_v3, %v6735_v63  ;;  %v6752_v25 = vmul.f32 %v9481_v14, %v6736_v12  ;;  %v9784_v3 = vld [vmem:[%s15323_s2 + $0x58] sm:$0xff]   ;;  %v9786_v41 = vld [vmem:[%s15323_s2 + $0x68] sm:$0xff]   ;;  %v9787_v14 = vld [vmem:[%s15323_s2 + $0x70] sm:$0xff]  }
 0xa90   :  { %v6749_v24 = vmul.f32 %v9483_v47, %v6733_v43  ;;  %v6750_v1 = vmul.f32 %v9485_v23, %v6734_v33  ;;  %8641 = vmatprep.subr.bf16.mxu1 %v6936_v22  ;;  %v6928_v49 = vld [vmem:[#allocation2 + $0x50] sm:$0xff]  ;;  %v6929_v29 = vld [vmem:[#allocation2 + $0x58] sm:$0xff]  ;;  %v9789_v12 = vld [vmem:[%s15323_s2 + $0x80] sm:$0xff]  }
 0xa91   :  { %6783 = vst.msk [vmem:[#allocation2 + $0x70] sm:$0xff] %vm29_vm0, %v6751_v46  ;;  %6784 = vst.msk [vmem:[#allocation2 + $0x78] sm:$0xff] %vm29_vm0, %v6752_v25  ;;  %8642 = vmatpush3.bf16.msra.mxu1 %v6936_v22  ;;  %v6926_v42 = vld [vmem:[#allocation2 + $0x40] sm:$0xff]  ;;  %v6927_v7 = vld [vmem:[#allocation2 + $0x48] sm:$0xff]  ;;  %v6939_v6 = vpack.c.bf16 %v6929_v29, %v6928_v49 }
 0xa92   :  { %6781 = vst.msk [vmem:[#allocation2 + $0x60] sm:$0xff] %vm29_vm0, %v6749_v24  ;;  %6782 = vst.msk [vmem:[#allocation2 + $0x68] sm:$0xff] %vm29_vm0, %v6750_v1  ;;  %8643 = vmatprep.subr.bf16.mxu1 %v6937_v8  ;;  %v6938_v5 = vpack.c.bf16 %v6927_v7, %v6926_v42  ;;  %v9788_v63 = vld [vmem:[%s15323_s2 + $0x78] sm:$0xff]   ;;  %v9790_v34 = vld [vmem:[%s15323_s2 + $0x88] sm:$0xff]  }
 0xa93   :  { %v9792_v56 = vld [vmem:[%s15323_s2 + $0x98] sm:$0xff]   ;;  %v9793_v47 = vld [vmem:[%s15323_s2 + $0xa0] sm:$0xff]   ;;  %v9794_v43 = vld [vmem:[%s15323_s2 + $0xa8] sm:$0xff]  }
 0xa94   :  { %v9795_v33 = vld [vmem:[%s15323_s2 + $0xb0] sm:$0xff]   ;;  %v9796_v22 = vld [vmem:[%s15323_s2 + $0xb8] sm:$0xff]   ;;  %v9797_v23 = vld [vmem:[%s15323_s2 + $0xc0] sm:$0xff]  }
 0xa95   :  { %8644 = vmatpush3.bf16.msra.mxu1 %v6937_v8  ;;  %v9798_v46 = vld [vmem:[%s15323_s2 + $0xc8] sm:$0xff]   ;;  %v9799_v25 = vld [vmem:[%s15323_s2 + $0xd0] sm:$0xff]   ;;  %v9800_v24 = vld [vmem:[%s15323_s2 + $0xd8] sm:$0xff]  }
 0xa96   :  { %8645 = vmatprep.subr.bf16.mxu1 %v6938_v5  ;;  %v9801_v1 = vld [vmem:[%s15323_s2 + $0xe0] sm:$0xff]   ;;  %v9802_v8 = vld [vmem:[%s15323_s2 + $0xe8] sm:$0xff]   ;;  %v9803_v42 = vld [vmem:[%s15323_s2 + $0xf0] sm:$0xff]  }
 0xa97   :  { %v9804_v7 = vld [vmem:[%s15323_s2 + $0xf8] sm:$0xff]   ;;  %v16443_v49 = vld [vmem:[#allocation13_spill] sm:$0xff] }
 0xa98   :  { %v6932_v53 = vld [vmem:[#allocation2 + $0x70] sm:$0xff]  ;;  %v6933_v57 = vld [vmem:[#allocation2 + $0x78] sm:$0xff] }
 0xa99   :  { %8646 = vmatpush3.bf16.msra.mxu1 %v6938_v5  ;;  %v6930_v13 = vld [vmem:[#allocation2 + $0x60] sm:$0xff]  ;;  %v6931_v21 = vld [vmem:[#allocation2 + $0x68] sm:$0xff]  ;;  %v6941_v50 = vpack.c.bf16 %v6933_v57, %v6932_v53  ;;  %v16446_v57 = vld [vmem:[#allocation7_spill] sm:$0xff] }
 0xa9a   :  { %8647 = vmatprep.subr.bf16.mxu1 %v6939_v6  ;;  %v6940_v2 = vpack.c.bf16 %v6931_v21, %v6930_v13  ;;  %v14808_v5 = vld [vmem:[%s15324_s0 + $0x7] ss:$0 sm:$0xff] }
 0xa9b   :  { %v6792_v29 = vmul.f32 %v14808_v5, %v16443_v49  ;;  %v16457_v49 = vld [vmem:[#allocation31_spill] sm:$0xff] }
 0xa9d   :  { %8648 = vmatpush3.bf16.msra.mxu1 %v6939_v6  ;;  %v16444_v6 = vld [vmem:[#allocation12_spill] sm:$0xff] }
 0xa9e   :  { %8649 = vmatprep.subr.bf16.mxu1 %v6940_v2  ;;  %v6793_v13 = vmul.f32 %v14808_v5, %v16444_v6 }
 0xaa1   :  { %8650 = vmatpush3.bf16.msra.mxu1 %v6940_v2  ;;  %v16445_v2 = vld [vmem:[#allocation5_spill] sm:$0xff] }
 0xaa2   :  { %8651 = vmatprep.subr.bf16.mxu1 %v6941_v50  ;;  %v6790_v53 = vmul.f32 %v14808_v5, %v16445_v2 }
 0xaa5   :  { %8652 = vmatpush3.bf16.msra.mxu1 %v6941_v50  ;;  %v6791_v50 = vmul.f32 %v14808_v5, %v16446_v57 }
 0xaa8   :  { %8654 = vmatmul.mubr.bf16.vlgmr.msra.gmra.mrb[192].mxu1 %v9774_v4  ;;  %v16447_v4 = vld [vmem:[#allocation19_spill] sm:$0xff] }
 0xaa9   :  { %8657 = vmatprep.mubr.bf16.mxu1 %v9775_v45  ;;  %v6856_v45 = vadd.f32 %v6792_v29, %v16447_v4 }
 0xab0   :  { %8658 = vmatmul.mubr.bf16.gmra.mrb[196].mxu1 %v9776_v39 }
 0xab1   :  { %8661 = vmatprep.mubr.bf16.mxu1 %v9777_v59  ;;  %v16448_v59 = vld [vmem:[#allocation18_spill] sm:$0xff] }
 0xab8   :  { %8662 = vmatmul.mubr.bf16.gmra.mrb[200].mxu1 %v9778_v17  ;;  %v6857_v17 = vadd.f32 %v6793_v13, %v16448_v59  ;;  %v16458_v13 = vld [vmem:[#allocation30_spill] sm:$0xff]  ;;  %v16459_v59 = vld [vmem:[#allocation65_spill] sm:$0xff] }
 0xab9   :  { %8665 = vmatprep.mubr.bf16.mxu1 %v9779_v15  ;;  %v16449_v15 = vld [vmem:[#allocation9_spill] sm:$0xff] }
 0xac0   :  { %8666 = vmatmul.mubr.bf16.gmra.mrb[204].mxu1 %v9780_v11  ;;  %v6854_v11 = vadd.f32 %v6790_v53, %v16449_v15  ;;  %v16460_v15 = vld [vmem:[#allocation64_spill] sm:$0xff] }
 0xac1   :  { %8669 = vmatprep.mubr.bf16.mxu1 %v9781_v30 }
 0xac8   :  { %8670 = vmatmul.mubr.bf16.gmra.mrb[208].mxu1 %v9782_v16  ;;  %v16450_v16 = vld [vmem:[#allocation8_spill] sm:$0xff] }
 0xac9   :  { %8673 = vmatprep.mubr.bf16.mxu1 %v9783_v35  ;;  %v6855_v35 = vadd.f32 %v6791_v50, %v16450_v16  ;;  %v16461_v16 = vld [vmem:[#allocation49_spill] sm:$0xff] }
 0xad0   :  { %8674 = vmatmul.mubr.bf16.gmra.mrb[212].mxu1 %v9784_v3 }
 0xad1   :  { %8677 = vmatprep.mubr.bf16.mxu1 %v9785_v62 }
 0xad8   :  { %8678 = vmatmul.mubr.bf16.gmra.mrb[216].mxu1 %v9786_v41 }
 0xad9   :  { %8681 = vmatprep.mubr.bf16.mxu1 %v9787_v14 }
 0xae0   :  { %8682 = vmatmul.mubr.bf16.gmra.mrb[220].mxu1 %v9788_v63 }
 0xae1   :  { %8685 = vmatprep.mubr.bf16.mxu1 %v9789_v12  ;;  %v16483_v12 = vld [vmem:[#allocation37_spill] sm:$0xff] }
 0xae8   :  { %8686 = vmatmul.mubr.bf16.gmra.mrb[224].mxu1 %v9790_v34 }
 0xae9   :  { %8689 = vmatprep.mubr.bf16.mxu1 %v9791_v55  ;;  %v16451_v55 = vld [vmem:[#allocation35_spill] sm:$0xff] }
 0xaf0   :  { %8690 = vmatmul.mubr.bf16.gmra.mrb[228].mxu1 %v9792_v56  ;;  %v6796_v56 = vmul.f32 %v14808_v5, %v16451_v55 }
 0xaf1   :  { %8693 = vmatprep.mubr.bf16.mxu1 %v9793_v47  ;;  %v16452_v47 = vld [vmem:[#allocation34_spill] sm:$0xff] }
 0xaf8   :  { %8694 = vmatmul.mubr.bf16.gmra.mrb[232].mxu1 %v9794_v43  ;;  %v6797_v43 = vmul.f32 %v14808_v5, %v16452_v47 }
 0xaf9   :  { %8697 = vmatprep.mubr.bf16.mxu1 %v9795_v33 }
 0xb00   :  { %8698 = vmatmul.mubr.bf16.gmra.mrb[236].mxu1 %v9796_v22  ;;  %v16453_v22 = vld [vmem:[#allocation23_spill] sm:$0xff] }
 0xb01   :  { %8701 = vmatprep.mubr.bf16.mxu1 %v9797_v23  ;;  %v6794_v23 = vmul.f32 %v14808_v5, %v16453_v22 }
 0xb03   :  { %v6858_v29 = vadd.f32 %v6794_v23, %v16457_v49  ;;  %v16465_v23 = vld [vmem:[#allocation59_spill] sm:$0xff] }
 0xb08   :  { %8702 = vmatmul.mubr.bf16.gmra.mrb[240].mxu1 %v9798_v46  ;;  %v16454_v46 = vld [vmem:[#allocation22_spill] sm:$0xff] }
 0xb09   :  { %8705 = vmatprep.mubr.bf16.mxu1 %v9799_v25  ;;  %v6795_v25 = vmul.f32 %v14808_v5, %v16454_v46 }
 0xb10   :  { %8706 = vmatmul.mubr.bf16.gmra.mrb[244].mxu1 %v9800_v24  ;;  %v16455_v24 = vld [vmem:[#allocation43_spill] sm:$0xff] }
 0xb11   :  { %8709 = vmatprep.mubr.bf16.mxu1 %v9801_v1  ;;  %v6860_v1 = vadd.f32 %v6796_v56, %v16455_v24  ;;  %v16463_v56 = vld [vmem:[#allocation75_spill] sm:$0xff]  ;;  %v16466_v24 = vld [vmem:[#allocation58_spill] sm:$0xff] }
 0xb18   :  { %8710 = vmatmul.mubr.bf16.gmra.mrb[248].mxu1 %v9802_v8 }
 0xb19   :  { %8713 = vmatprep.mubr.bf16.mxu1 %v9803_v42  ;;  %v16456_v42 = vld [vmem:[#allocation42_spill] sm:$0xff] }
 0xb20   :  { %8714 = vmatmul.mubr.bf16.gmra.mrb[252].mxu1 %v9804_v7  ;;  %v6861_v7 = vadd.f32 %v6797_v43, %v16456_v42 }
 0xb7b   :  { %v8655_v21 = vpop.f32.mrb[192].mxu1 }
 0xb7c   :  { %v6976_v39 = vpop.f32.mrb[193].mxu1  ;;  %v14822_v3 = vadd.f32 %v8655_v21, %v6856_v45  ;;  %v6859_v21 = vadd.f32 %v6795_v25, %v16458_v13 }
 0xb7d   :  { %v8656_v30 = vpop.f32.mrb[194].mxu1  ;;  %v14826_v14 = vadd.f32 %v6976_v39, %v6854_v11  ;;  %v6801_v11 = vmul.f32 %v14808_v5, %v16460_v15  ;;  %v15555_v15 = vmov 0.0|0.0  }
 0xb7e   :  { %v14824_v62 = vadd.f32 %v8656_v30, %v6857_v17  ;;  %v6979_v41 = vpop.f32.mrb[195].mxu1  ;;  %v6800_v17 = vmul.f32 %v14808_v5, %v16459_v59  ;;  %v16468_v59 = vld [vmem:[#allocation98_spill] sm:$0xff]  ;;  %8752 = vmatprep.subr.bf16.mxu0 %v15555_v15 }
 0xb7f   :  { %v14828_v63 = vadd.f32 %v6979_v41, %v6855_v35  ;;  %v6798_v35 = vmul.f32 %v14808_v5, %v16461_v16  ;;  %v16462_v41 = vld [vmem:[#allocation48_spill] sm:$0xff] }
 0xb80   :  { %v6799_v55 = vmul.f32 %v14808_v5, %v16462_v41  ;;  %v6864_v47 = vadd.f32 %v6800_v17, %v16463_v56  ;;  %v6805_v17 = vmul.f32 %v14808_v5, %v16468_v59 }
 0xb81   :  { %v6862_v46 = vadd.f32 %v6798_v35, %v16465_v23  ;;  %v16470_v35 = vld [vmem:[#allocation82_spill] sm:$0xff] }
 0xb82   :  { %v6803_v41 = vmul.f32 %v14808_v5, %v16470_v35  ;;  %v16475_v35 = vld [vmem:[#allocation15_spill] sm:$0xff] }
 0xb83   :  { %v8659_v33 = vpop.f32.mrb[196].mxu1 }
 0xb84   :  { %v6992_v8 = vpop.f32.mrb[197].mxu1  ;;  %v14846_v2 = vadd.f32 %v8659_v33, %v6860_v1  ;;  %v16464_v33 = vld [vmem:[#allocation74_spill] sm:$0xff]  ;;  %v6863_v1 = vadd.f32 %v6799_v55, %v16466_v24  ;;  %v16471_v55 = vld [vmem:[#allocation108_spill] sm:$0xff] }
 0xb85   :  { %v8660_v6 = vpop.f32.mrb[198].mxu1  ;;  %v14850_v50 = vadd.f32 %v6992_v8, %v6858_v29  ;;  %v6865_v22 = vadd.f32 %v6801_v11, %v16464_v33 }
 0xb86   :  { %v14848_v53 = vadd.f32 %v8660_v6, %v6861_v7  ;;  %v6995_v57 = vpop.f32.mrb[199].mxu1 }
 0xb87   :  { %v14852_v4 = vadd.f32 %v6995_v57, %v6859_v21  ;;  %v16467_v21 = vld [vmem:[#allocation99_spill] sm:$0xff] }
 0xb88   :  { %v6804_v57 = vmul.f32 %v14808_v5, %v16467_v21 }
 0xb8a   :  { %v6868_v56 = vadd.f32 %v6804_v57, %v16471_v55  ;;  %v16476_v55 = vld [vmem:[#allocation14_spill] sm:$0xff] }
 0xb8b   :  { %v8663_v30 = vpop.f32.mrb[200].mxu1  ;;  %v16482_v57 = vld [vmem:[#allocation10_spill] sm:$0xff] }
 0xb8c   :  { %v7008_v43 = vpop.f32.mrb[201].mxu1  ;;  %v14870_v8 = vadd.f32 %v8663_v30, %v6864_v47  ;;  %v16469_v30 = vld [vmem:[#allocation83_spill] sm:$0xff] }
 0xb8d   :  { %v8664_v25 = vpop.f32.mrb[202].mxu1  ;;  %v14874_v49 = vadd.f32 %v7008_v43, %v6862_v46  ;;  %v6802_v16 = vmul.f32 %v14808_v5, %v16469_v30  ;;  %v16472_v43 = vld [vmem:[#allocation107_spill] sm:$0xff] }
 0xb8e   :  { %v14872_v42 = vadd.f32 %v8664_v25, %v6865_v22  ;;  %v7011_v7 = vpop.f32.mrb[203].mxu1  ;;  %v6869_v33 = vadd.f32 %v6805_v17, %v16472_v43  ;;  %v16473_v22 = vld [vmem:[#allocation93_spill] sm:$0xff]  ;;  %v16474_v25 = vld [vmem:[#allocation92_spill] sm:$0xff] }
 0xb8f   :  { %v14876_v29 = vadd.f32 %v7011_v7, %v6863_v1  ;;  %v6866_v23 = vadd.f32 %v6802_v16, %v16473_v22  ;;  %v6867_v24 = vadd.f32 %v6803_v41, %v16474_v25  ;;  %v6808_v16 = vmul.f32 %v14808_v5, %v16475_v35  ;;  %v16479_v22 = vld [vmem:[#allocation21_spill] sm:$0xff]  ;;  %v16480_v25 = vld [vmem:[#allocation20_spill] sm:$0xff] }
 0xb93   :  { %v8667_v11 = vpop.f32.mrb[204].mxu1 }
 0xb94   :  { %v7024_v47 = vpop.f32.mrb[205].mxu1  ;;  %v14895_v1 = vadd.f32 %v8667_v11, %v6868_v56  ;;  %v6809_v11 = vmul.f32 %v14808_v5, %v16476_v55  ;;  %v16477_v56 = vld [vmem:[#allocation4_spill] sm:$0xff] }
 0xb95   :  { %v8668_v46 = vpop.f32.mrb[206].mxu1  ;;  %v14899_v59 = vadd.f32 %v7024_v47, %v6866_v23  ;;  %v6806_v43 = vmul.f32 %v14808_v5, %v16477_v56  ;;  %v16478_v47 = vld [vmem:[#allocation6_spill] sm:$0xff]  ;;  %v6872_v23 = vadd.f32 %v6808_v16, %v16479_v22  ;;  %v6813_v16 = vmul.f32 %v14808_v5, %v16484_v51 }
 0xb96   :  { %v14897_v7 = vadd.f32 %v8668_v46, %v6869_v33  ;;  %v7027_v21 = vpop.f32.mrb[207].mxu1  ;;  %v6807_v33 = vmul.f32 %v14808_v5, %v16478_v47  ;;  %v6812_v47 = vmul.f32 %v14808_v5, %v16483_v12 }
 0xb97   :  { %v14901_v30 = vadd.f32 %v7027_v21, %v6867_v24  ;;  %v6873_v24 = vadd.f32 %v6809_v11, %v16480_v25  ;;  %v16481_v21 = vld [vmem:[#allocation11_spill] sm:$0xff]  ;;  %v16485_v11 = vld [vmem:[#allocation25_spill] sm:$0xff]  ;;  %v16486_v25 = vld [vmem:[#allocation24_spill] sm:$0xff] }
 0xb98   :  { %v6870_v15 = vadd.f32 %v6806_v43, %v16481_v21  ;;  %v6871_v35 = vadd.f32 %v6807_v33, %v16482_v57  ;;  %v6810_v43 = vmul.f32 %v14808_v5, %v16485_v11  ;;  %v6811_v57 = vmul.f32 %v14808_v5, %v16486_v25 }
 0xb9b   :  { %v8671_v41 = vpop.f32.mrb[208].mxu1 }
 0xb9c   :  { %v7040_v46 = vpop.f32.mrb[209].mxu1  ;;  %v7249_v13 = vadd.f32 %v8671_v41, %v6872_v23  ;;  %v16487_v41 = vld [vmem:[#allocation45_spill] sm:$0xff] }
 0xb9d   :  { %v8672_v17 = vpop.f32.mrb[210].mxu1  ;;  %v7247_v39 = vadd.f32 %v7040_v46, %v6870_v15  ;;  %v16488_v15 = vld [vmem:[#allocation44_spill] sm:$0xff] }
 0xb9e   :  { %v7250_v6 = vadd.f32 %v8672_v17, %v6873_v24  ;;  %v7043_v55 = vpop.f32.mrb[211].mxu1  ;;  %v6876_v17 = vadd.f32 %v6812_v47, %v16487_v41  ;;  %v6877_v23 = vadd.f32 %v6813_v16, %v16488_v15  ;;  %v6814_v47 = vmul.f32 %v14808_v5, %v16492_v18  ;;  %v16493_v41 = vld [vmem:[#allocation67_spill] sm:$0xff]  ;;  %v16494_v15 = vld [vmem:[#allocation66_spill] sm:$0xff] }
 0xb9f   :  { %v7248_v45 = vadd.f32 %v7043_v55, %v6871_v35  ;;  %v6816_v16 = vmul.f32 %v14808_v5, %v16493_v41 }
 0xba0   :  { %v7304_v34 = vpack.c.bf16 %v7250_v6, %v7249_v13  ;;  %v16491_v13 = vld [vmem:[#allocation32_spill] sm:$0xff] }
 0xba1   :  { %v7303_v56 = vpack.c.bf16 %v7248_v45, %v7247_v39  ;;  %v16489_v45 = vmov 0.0   ;;  %v16490_v39 = vld [vmem:[#allocation33_spill] sm:$0xff]  ;;  %v6875_v51 = vadd.f32 %v6811_v57, %v16491_v13  ;;  %v16499_v13 = vld [vmem:[#allocation28_spill] sm:$0xff] }
 0xba2   :  { %8749 = vmatprep.mubr.msk.f32.mxu0 %vm9808_vm1, %v16489_v45  ;;  %v6874_v12 = vadd.f32 %v6810_v43, %v16490_v39  ;;  %v6817_v45 = vmul.f32 %v14808_v5, %v16494_v15  ;;  %v16495_v43 = vld [vmem:[#allocation50_spill] sm:$0xff]  ;;  %v6825_v18 = vmul.f32 %v14808_v5, %v16499_v13  ;;  %v16503_v15 = vld [vmem:[#allocation60_spill] sm:$0xff] }
 0xba3   :  { %v8675_v22 = vpop.f32.mrb[212].mxu1  ;;  %v6815_v39 = vmul.f32 %v14808_v5, %v16495_v43  ;;  %v7360_v43 = vmul.bf16 1056980736, %v7304_v34  ;;  %v16506_v13 = vld [vmem:[#allocation38_spill] sm:$0xff] }
 0xba4   :  { %v7056_v33 = vpop.f32.mrb[213].mxu1  ;;  %v7253_v46 = vadd.f32 %v8675_v22, %v6876_v17  ;;  %v16496_v22 = vld [vmem:[#allocation61_spill] sm:$0xff]  ;;  %v14960_v40 = vadd.f32 %v6825_v18, %v16506_v13  ;;  %v16515_v13 = vld [vmem:[#allocation100_spill] sm:$0xff] }
 0xba5   :  { %v8676_v6 = vpop.f32.mrb[214].mxu1  ;;  %v7251_v35 = vadd.f32 %v7056_v33, %v6874_v12  ;;  %v6878_v17 = vadd.f32 %v6814_v47, %v16496_v22  ;;  %v16498_v12 = vld [vmem:[#allocation17_spill] sm:$0xff]  ;;  %v6879_v47 = vadd.f32 %v6815_v39, %v16503_v15 }
 0xba6   :  { %v7254_v24 = vadd.f32 %v8676_v6, %v6877_v23  ;;  %v7059_v21 = vpop.f32.mrb[215].mxu1  ;;  %v16497_v23 = vld [vmem:[#allocation29_spill] sm:$0xff]  ;;  %v6822_v6 = vmul.f32 %v14808_v5, %v16498_v12  ;;  %v16505_v12 = vld [vmem:[#allocation27_spill] sm:$0xff] }
 0xba7   :  { %v7252_v55 = vadd.f32 %v7059_v21, %v6875_v51  ;;  %v6824_v33 = vmul.f32 %v14808_v5, %v16497_v23  ;;  %v16500_v51 = vpack.c.bf16 %v14824_v62, %v14822_v3  ;;  %v16504_v23 = vld [vmem:[#allocation39_spill] sm:$0xff]  ;;  %v7359_v3 = vmul.bf16 1056980736, %v7303_v56 }
 0xba8   :  { %v7306_v11 = vpack.c.bf16 %v7254_v24, %v7253_v46  ;;  %v16501_v24 = vld [vmem:[#allocation77_spill] sm:$0xff]  ;;  %v14957_v32 = vadd.f32 %v6822_v6, %v16505_v12 }
 0xba9   :  { %v7305_v25 = vpack.c.bf16 %v7252_v55, %v7251_v35  ;;  %v7328_v46 = vmul.bf16 1056980736, %v16500_v51  ;;  %v6880_v21 = vadd.f32 %v6816_v16, %v16501_v24  ;;  %v16502_v55 = vld [vmem:[#allocation76_spill] sm:$0xff]  ;;  %v14954_v54 = vadd.f32 %v6824_v33, %v16504_v23  ;;  %v16508_v33 = vld [vmem:[#allocation57_spill] sm:$0xff] }
 0xbaa   :  { %v6881_v41 = vadd.f32 %v6817_v45, %v16502_v55  ;;  %v16507_v45 = vld [vmem:[#allocation16_spill] sm:$0xff]  ;;  %v6828_v6 = vmul.f32 %v14808_v5, %v16508_v33  ;;  %v16509_v55 = vld [vmem:[#allocation41_spill] sm:$0xff] }
 0xbab   :  { %v8679_v57 = vpop.f32.mrb[216].mxu1  ;;  %v6823_v39 = vmul.f32 %v14808_v5, %v16507_v45  ;;  %v6826_v18 = vmul.f32 %v14808_v5, %v16509_v55  ;;  %9486 = vtanh.bf16 %v7328_v46  ;;  %v16514_v46 = vld [vmem:[#allocation101_spill] sm:$0xff]  ;;  %v16517_v45 = vld [vmem:[#allocation84_spill] sm:$0xff] }
 0xbac   :  { %v7072_v35 = vpop.f32.mrb[217].mxu1  ;;  %v14962_v62 = vadd.f32 %v8679_v57, %v6880_v21  ;;  %v16510_v57 = vld [vmem:[#allocation56_spill] sm:$0xff]  ;;  %9488 = vtanh.bf16 %v7360_v43  ;;  %v6820_v12 = vmul.f32 %v14808_v5, %v16514_v46  ;;  %v7361_v46 = vmul.bf16 1056980736, %v7305_v25 }
 0xbad   :  { %v8680_v22 = vpop.f32.mrb[218].mxu1  ;;  %v14968_v34 = vadd.f32 %v7072_v35, %v6878_v17  ;;  %v6829_v21 = vmul.f32 %v14808_v5, %v16510_v57  ;;  %v16512_v17 = vpack.c.bf16 %v14828_v63, %v14826_v14  ;;  %9490 = vtanh.bf16 %v7359_v3  ;;  %v16516_v63 = vld [vmem:[#allocation85_spill] sm:$0xff]  ;;  %v16520_v55 = vld [vmem:[#allocation80_spill] sm:$0xff] }
 0xbae   :  { %v14964_v16 = vadd.f32 %v8680_v22, %v6881_v41  ;;  %v7075_v51 = vpop.f32.mrb[219].mxu1  ;;  %v16511_v41 = vld [vmem:[#allocation40_spill] sm:$0xff]  ;;  %v16513_v22 = vld [vmem:[#allocation26_spill] sm:$0xff]  ;;  %v6818_v43 = vmul.f32 %v14808_v5, %v16516_v63  ;;  %v16519_v3 = vpack.c.bf16 %v14848_v53, %v14846_v2  ;;  %v6884_v57 = vadd.f32 %v6820_v12, %v16520_v55 }
 0xbaf   :  { %v14970_v24 = vadd.f32 %v7075_v51, %v6879_v47  ;;  %v6827_v15 = vmul.f32 %v14808_v5, %v16511_v41  ;;  %v7327_v35 = vmul.bf16 1056980736, %v16512_v17  ;;  %v14988_v23 = vadd.f32 %v6823_v39, %v16513_v22  ;;  %v16518_v39 = vld [vmem:[#allocation69_spill] sm:$0xff]  ;;  %v16525_v53 = vld [vmem:[#allocation68_spill] sm:$0xff] }
 0xbb0   :  { %v7308_v56 = vpack.c.bf16 %v14964_v16, %v14962_v62  ;;  %v6821_v62 = vmul.f32 %v14808_v5, %v16515_v13  ;;  %v6830_v16 = vmul.f32 %v14808_v5, %v16400_v48  ;;  %v7362_v51 = vmul.bf16 1056980736, %v7306_v11  ;;  %v16521_v17 = vld [vmem:[#allocation81_spill] sm:$0xff]  ;;  %v16523_v13 = vld [vmem:[#allocation95_spill] sm:$0xff] }
 0xbb1   :  { %v7307_v47 = vpack.c.bf16 %v14970_v24, %v14968_v34  ;;  %v6819_v34 = vmul.f32 %v14808_v5, %v16517_v45  ;;  %v15001_v24 = vadd.f32 %v6828_v6, %v16518_v39  ;;  %v7330_v33 = vmul.bf16 1056980736, %v16519_v3  ;;  %v16522_v11 = vld [vmem:[#allocation53_spill] sm:$0xff]  ;;  %v16526_v3 = vld [vmem:[#allocation63_spill] sm:$0xff] }
 0xbb2   :  { %v6885_v48 = vadd.f32 %v6821_v62, %v16521_v17  ;;  %v15009_v22 = vadd.f32 %v6826_v18, %v16522_v11  ;;  %9492 = vtanh.bf16 %v7327_v35  ;;  %v6882_v63 = vadd.f32 %v6818_v43, %v16523_v13  ;;  %v16527_v35 = vld [vmem:[#allocation47_spill] sm:$0xff]  ;;  %v16531_v17 = vld [vmem:[#allocation46_spill] sm:$0xff]  ;;  %v16534_v13 = vld [vmem:[#allocation72_spill] sm:$0xff] }
 0xbb3   :  { %v8683_v14 = vpop.f32.mrb[220].mxu1  ;;  %v6883_v6 = vadd.f32 %v6819_v34, %v16524_v38  ;;  %v15018_v12 = vadd.f32 %v6829_v21, %v16525_v53  ;;  %v6840_v62 = vmul.f32 %v14808_v5, %v16526_v3  ;;  %9494 = vtanh.bf16 %v7362_v51  ;;  %v16529_v34 = vld [vmem:[#allocation62_spill] sm:$0xff] }
 0xbb4   :  { %v7088_v41 = vpop.f32.mrb[221].mxu1  ;;  %v15013_v39 = vadd.f32 %v8683_v14, %v6884_v57  ;;  %v6838_v43 = vmul.f32 %v14808_v5, %v16527_v35  ;;  %9496 = vtanh.bf16 %v7330_v33  ;;  %v16528_v38 = vpack.c.bf16 %v14852_v4, %v14850_v50  ;;  %v16537_v53 = vld [vmem:[#allocation70_spill] sm:$0xff] }
 0xbb5   :  { %v8684_v45 = vpop.f32.mrb[222].mxu1  ;;  %v15022_v18 = vadd.f32 %v7088_v41, %v6882_v63  ;;  %v6841_v55 = vmul.f32 %v14808_v5, %v16529_v34  ;;  %v16530_v51 = vpack.c.bf16 %v14872_v42, %v14870_v8  ;;  %9498 = vtanh.bf16 %v7361_v46  ;;  %v16538_v35 = vld [vmem:[#allocation54_spill] sm:$0xff] }
 0xbb6   :  { %v15015_v28 = vadd.f32 %v8684_v45, %v6885_v48  ;;  %v7091_v2 = vpop.f32.mrb[223].mxu1  ;;  %v7329_v14 = vmul.bf16 1056980736, %v16528_v38  ;;  %v6839_v33 = vmul.f32 %v14808_v5, %v16531_v17  ;;  %v16532_v50 = vpack.c.bf16 %v14876_v29, %v14874_v49  ;;  %v16533_v48 = vld [vmem:[#allocation52_spill] sm:$0xff]  ;;  %v16535_v45 = vld [vmem:[#allocation71_spill] sm:$0xff]  ;;  %v9487_v42 = vpop.eup %9486 }
 0xbb7   :  { %v15024_v25 = vadd.f32 %v7091_v2, %v6883_v6  ;;  %v7332_v57 = vmul.bf16 1056980736, %v16530_v51  ;;  %v15046_v11 = vadd.f32 %v6827_v15, %v16533_v48  ;;  %v6831_v63 = vmul.f32 %v14808_v5, %v16534_v13  ;;  %v16536_v6 = vld [vmem:[#allocation55_spill] sm:$0xff]  ;;  %v9489_v38 = vpop.eup %9488 }
 0xbb8   :  { %v7310_v21 = vpack.c.bf16 %v15015_v28, %v15013_v39  ;;  %v7331_v4 = vmul.bf16 1056980736, %v16532_v50  ;;  %v15051_v8 = vadd.f32 %v6840_v62, %v16535_v45  ;;  %v15054_v2 = vadd.f32 %v6838_v43, %v16536_v6  ;;  %v16539_v29 = vld [vmem:[#allocation79_spill] sm:$0xff]  ;;  %v16541_v50 = vld [vmem:[#allocation78_spill] sm:$0xff] }
 0xbb9   :  { %v15057_v3 = vadd.f32 %v6841_v55, %v16537_v53  ;;  %v15060_v49 = vadd.f32 %v6839_v33, %v16538_v35  ;;  %v15064_v15 = vmul.f32 %v14808_v5, %v16539_v29  ;;  %9500 = vtanh.bf16 %v7329_v14  ;;  %v16540_v51 = vld [vmem:[#allocation87_spill] sm:$0xff]  ;;  %v9491_v55 = vpop.eup %9490  ;;  %v16543_v6 = vld [vmem:[#allocation86_spill] sm:$0xff] }
 0xbba   :  { %v7364_v34 = vmul.bf16 1056980736, %v7308_v56  ;;  %v15067_v17 = vadd.f32 %v6830_v16, %v16540_v51  ;;  %v15071_v43 = vmul.f32 %v14808_v5, %v16541_v50  ;;  %9502 = vtanh.bf16 %v7332_v57  ;;  %v16542_v13 = vld [vmem:[#allocation91_spill] sm:$0xff]  ;;  %v16544_v35 = vld [vmem:[#allocation90_spill] sm:$0xff] }
 0xbbb   :  { %v8687_v46 = vpop.f32.mrb[224].mxu1  ;;  %v7363_v48 = vmul.bf16 1056980736, %v7307_v47  ;;  %v6832_v45 = vmul.f32 %v14808_v5, %v16542_v13  ;;  %v15076_v53 = vadd.f32 %v6831_v63, %v16543_v6  ;;  %9504 = vtanh.bf16 %v7331_v4  ;;  %v16545_v50 = vld [vmem:[#allocation103_spill] sm:$0xff] }
 0xbbc   :  { %v7104_v62 = vpop.f32.mrb[225].mxu1  ;;  %v7265_v56 = vadd.f32 %v8687_v46, %v14954_v54  ;;  %v6833_v29 = vmul.f32 %v14808_v5, %v16544_v35  ;;  %v7376_v51 = vmul.bf16 1056980736, %v9489_v38  ;;  %v7344_v63 = vmul.bf16 1056980736, %v9487_v42 }
 0xbbd   :  { %v8688_v33 = vpop.f32.mrb[226].mxu1  ;;  %v7263_v57 = vadd.f32 %v7104_v62, %v14957_v32  ;;  %v15085_v41 = vadd.f32 %v6832_v45, %v16545_v50  ;;  %v9493_v13 = vpop.eup %9492  ;;  %v7375_v6 = vmul.bf16 1056980736, %v9491_v55  ;;  %9506 = vtanh.bf16 %v7364_v34  ;;  %v16549_v45 = vld [vmem:[#allocation102_spill] sm:$0xff]  ;;  %v16550_v34 = vld [vmem:[#allocation105_spill] sm:$0xff] }
 0xbbe   :  { %v7266_v16 = vadd.f32 %v8688_v33, %v14960_v40  ;;  %v7107_v14 = vpop.f32.mrb[227].mxu1  ;;  %v16546_v40 = vpack.c.bf16 %v14897_v7, %v14895_v1  ;;  %9508 = vtanh.bf16 %v7363_v48  ;;  %v16547_v33 = vld [vmem:[#allocation106_spill] sm:$0xff]  ;;  %v9495_v32 = vpop.eup %9494  ;;  %v15096_v42 = vadd.f32 %v6833_v29, %v16549_v45  ;;  %v16553_v29 = vld [vmem:[#allocation109_spill] sm:$0xff] }
 0xbbf   :  { %v7264_v47 = vadd.f32 %v7107_v14, %v14988_v23  ;;  %v6834_v38 = vmul.f32 %v14808_v5, %v16547_v33  ;;  %v16548_v23 = vpack.c.bf16 %v14901_v30, %v14899_v59  ;;  %v6835_v55 = vmul.f32 %v14808_v5, %v16550_v34  ;;  %v16552_v30 = vld [vmem:[#allocation113_spill] sm:$0xff] }
 0xbc0   :  { %v7312_v4 = vpack.c.bf16 %v7266_v16, %v7265_v56  ;;  %v7334_v54 = vmul.bf16 1056980736, %v16546_v40  ;;  %v9497_v56 = vpop.eup %9496  ;;  %v7343_v1 = vmul.bf16 1056980736, %v9493_v13  ;;  %v7384_v7 = vadd.bf16 1056980736, %v7376_v51 }
 0xbc1   :  { %v7311_v46 = vpack.c.bf16 %v7264_v47, %v7263_v57  ;;  %v7333_v62 = vmul.bf16 1056980736, %v16548_v23  ;;  %v16551_v16 = vld [vmem:[#allocation110_spill] sm:$0xff]  ;;  %v9499_v35 = vpop.eup %9498  ;;  %v7352_v57 = vadd.bf16 1056980736, %v7344_v63  ;;  %v6836_v50 = vmul.f32 %v14808_v5, %v16552_v30 }
 0xbc2   :  { %9510 = vtanh.bf16 %v7312_v4  ;;  %v15101_v14 = vadd.f32 %v6834_v38, %v16551_v16  ;;  %v7383_v47 = vadd.bf16 1056980736, %v7375_v6  ;;  %v15106_v4 = vadd.f32 %v6835_v55, %v16553_v29 }
 0xbc3   :  { %9512 = vtanh.bf16 %v7311_v46  ;;  %v8691_v48 = vpop.f32.mrb[228].mxu1  ;;  %v7378_v40 = vmul.bf16 1056980736, %v9495_v32  ;;  %v7366_v51 = vmul.bf16 1056980736, %v7310_v21  ;;  %v16554_v46 = vld [vmem:[#allocation112_spill] sm:$0xff]  ;;  %v7450_v21 = vunpack.c.h.bf16 %v7384_v7 }
 0xbc4   :  { %v7120_v59 = vpop.f32.mrb[229].mxu1  ;;  %9514 = vtanh.bf16 %v7334_v54  ;;  %v15113_v33 = vmul.f32 %v14808_v5, %v16554_v46  ;;  %v7346_v63 = vmul.bf16 1056980736, %v9497_v56  ;;  %v7269_v6 = vadd.f32 %v8691_v48, %v15001_v24  ;;  %v15117_v45 = vpop.eup %9500  ;;  %v16556_v46 = vld [vmem:[#allocation115_spill] sm:$0xff] }
 0xbc5   :  { %v8692_v13 = vpop.f32.mrb[230].mxu1  ;;  %9516 = vtanh.bf16 %v7333_v62  ;;  %v7449_v54 = vunpack.c.l.bf16 %v7384_v7  ;;  %v7377_v32 = vmul.bf16 1056980736, %v9499_v35  ;;  %v7267_v34 = vadd.f32 %v7120_v59, %v15009_v22  ;;  %v15121_v39 = vpop.eup %9502 }
 0xbc6   :  { %v7270_v38 = vadd.f32 %v8692_v13, %v15018_v12  ;;  %v7123_v23 = vpop.f32.mrb[231].mxu1  ;;  %v7447_v55 = vunpack.c.l.bf16 %v7383_v47  ;;  %v16555_v62 = vpack.c.bf16 %v15024_v25, %v15022_v18  ;;  %v15126_v48 = vpop.eup %9504  ;;  %v7433_v12 = vld [vmem:[#allocation3 + $0x10] sm:$0xff]  ;;  %v7448_v16 = vunpack.c.h.bf16 %v7383_v47  ;;  %v7434_v18 = vld [vmem:[#allocation3 + $0x18] sm:$0xff] }
 0xbc7   :  { %v7268_v28 = vadd.f32 %v7123_v23, %v15046_v11  ;;  %v15128_v30 = vadd.bf16 1056980736, %v7378_v40  ;;  %9518 = vtanh.bf16 %v7366_v51  ;;  %v7351_v22 = vadd.bf16 1056980736, %v7343_v1 }
 0xbc8   :  { %v7365_v56 = vmul.bf16 1056980736, %v16555_v62  ;;  %v7314_v24 = vpack.c.bf16 %v7270_v38, %v7269_v6  ;;  %v15130_v59 = vadd.bf16 1056980736, %v7346_v63  ;;  %v7345_v11 = vmul.bf16 1056980736, %v15117_v45  ;;  %v9507_v7 = vpop.eup %9506 }
 0xbc9   :  { %v7313_v35 = vpack.c.bf16 %v7268_v28, %v7267_v34  ;;  %v7348_v29 = vmul.bf16 1056980736, %v15121_v39  ;;  %v15134_v25 = vadd.bf16 1056980736, %v7377_v32  ;;  %v15137_v47 = vadd.f32 %v6836_v50, %v16556_v46  ;;  %v9509_v40 = vpop.eup %9508  ;;  %v7431_v6 = vld [vmem:[#allocation3] sm:$0xff]  ;;  %v7432_v38 = vld [vmem:[#allocation3 + $0x8] sm:$0xff] }
 0xbca   :  { %9520 = vtanh.bf16 %v7314_v24  ;;  %v7347_v51 = vmul.bf16 1056980736, %v15126_v48  ;;  %v7465_v1 = vmul.f32 %v7449_v54, %v7433_v12  ;;  %v7466_v63 = vmul.f32 %v7450_v21, %v7434_v18 }
 0xbcb   :  { %9522 = vtanh.bf16 %v7313_v35  ;;  %v8695_v13 = vpop.f32.mrb[232].mxu1  ;;  %v7463_v34 = vmul.f32 %v7447_v55, %v7431_v6  ;;  %v7464_v28 = vmul.f32 %v7448_v16, %v7432_v38  ;;  %v7453_v32 = vunpack.c.l.bf16 %v15128_v30 }
 0xbcc   :  { %9524 = vtanh.bf16 %v7365_v56  ;;  %v7136_v23 = vpop.f32.mrb[233].mxu1  ;;  %v7454_v39 = vunpack.c.h.bf16 %v15128_v30  ;;  %v7380_v50 = vmul.bf16 1056980736, %v9507_v7  ;;  %v7273_v46 = vadd.f32 %v8695_v13, %v15085_v41 }
 0xbcd   :  { %v9511_v45 = vpop.eup %9510  ;;  %v8696_v62 = vpop.f32.mrb[234].mxu1  ;;  %v7451_v48 = vunpack.c.l.bf16 %v15134_v25  ;;  %v7271_v12 = vadd.f32 %v7136_v23, %v15067_v17  ;;  %v7452_v30 = vunpack.c.h.bf16 %v15134_v25  ;;  %v7379_v41 = vmul.bf16 1056980736, %v9509_v40  ;;  %v7437_v23 = vld [vmem:[#allocation3 + $0x30] sm:$0xff]  ;;  %v7435_v25 = vld [vmem:[#allocation3 + $0x20] sm:$0xff] }
 0xbce   :  { %v9513_v24 = vpop.eup %9512  ;;  %v7480_v35 = vmul.bf16 %v9511_v45, %v7352_v57  ;;  %v7274_v54 = vadd.f32 %v8696_v62, %v15096_v42  ;;  %v7139_v21 = vpop.f32.mrb[235].mxu1  ;;  %v15152_v45 = vadd.bf16 1056980736, %v7380_v50  ;;  %v7438_v62 = vld [vmem:[#allocation3 + $0x38] sm:$0xff]  ;;  %v15164_v50 = vadd.bf16 1056980736, %v7347_v51 }
 0xbcf   :  { %v7479_v56 = vmul.bf16 %v9513_v24, %v7351_v22  ;;  %v7272_v55 = vadd.f32 %v7139_v21, %v15076_v53  ;;  %v15147_v16 = vpop.eup %9514  ;;  %v7353_v53 = vadd.bf16 1056980736, %v7345_v11  ;;  %v7436_v21 = vld [vmem:[#allocation3 + $0x28] sm:$0xff] }
 0xbd0   :  { %v7489_v18 = vunpack.c.l.bf16 %v7480_v35  ;;  %v7490_v6 = vunpack.c.h.bf16 %v7480_v35  ;;  %v7316_v7 = vpack.c.bf16 %v7274_v54, %v7273_v46  ;;  %v15150_v57 = vpop.eup %9516  ;;  %v15162_v54 = vadd.bf16 1056980736, %v7348_v29 }
 0xbd1   :  { %v7487_v13 = vunpack.c.l.bf16 %v7479_v56  ;;  %v7488_v42 = vunpack.c.h.bf16 %v7479_v56  ;;  %v7315_v38 = vpack.c.bf16 %v7272_v55, %v7271_v12  ;;  %v7470_v56 = vmul.f32 %v7454_v39, %v7438_v62 }
 0xbd2   :  { %v15154_v22 = vadd.f32 %v7489_v18, %v7465_v1  ;;  %v15156_v17 = vadd.f32 %v7490_v6, %v7466_v63  ;;  %9526 = vtanh.bf16 %v7316_v7  ;;  %v9519_v46 = vpop.eup %9518  ;;  %v7469_v1 = vmul.f32 %v7453_v32, %v7437_v23  ;;  %v16557_v63 = vld [vmem:[#allocation114_spill] sm:$0xff] }
 0xbd3   :  { %v15158_v24 = vadd.f32 %v7487_v13, %v7463_v34  ;;  %v15160_v35 = vadd.f32 %v7488_v42, %v7464_v28  ;;  %9528 = vtanh.bf16 %v7315_v38  ;;  %v8699_v40 = vpop.f32.mrb[236].mxu1  ;;  %v6901_v34 = vadd.f32 %v15113_v33, %v16557_v63 }
 0xbd4   :  { %7569 = vst.msk [vmem:[#allocation3 + $0x10] sm:$0xff] %vm29_vm0, %v15154_v22  ;;  %7570 = vst.msk [vmem:[#allocation3 + $0x18] sm:$0xff] %vm29_vm0, %v15156_v17  ;;  %v7152_v11 = vpop.f32.mrb[237].mxu1  ;;  %v7467_v12 = vmul.f32 %v7451_v48, %v7435_v25  ;;  %v7468_v55 = vmul.f32 %v7452_v30, %v7436_v21  ;;  %v7387_v29 = vadd.bf16 1056980736, %v7379_v41  ;;  %v7457_v18 = vunpack.c.l.bf16 %v15152_v45 }
 0xbd5   :  { %v9521_v28 = vpop.eup %9520  ;;  %7567 = vst.msk [vmem:[#allocation3] sm:$0xff] %vm29_vm0, %v15158_v24  ;;  %7568 = vst.msk [vmem:[#allocation3 + $0x8] sm:$0xff] %vm29_vm0, %v15160_v35  ;;  %v8700_v51 = vpop.f32.mrb[238].mxu1  ;;  %v7277_v7 = vadd.f32 %v8699_v40, %v15137_v47  ;;  %v7458_v48 = vunpack.c.h.bf16 %v15152_v45  ;;  %v7275_v41 = vadd.f32 %v7152_v11, %v15101_v14  ;;  %v7382_v38 = vmul.bf16 1056980736, %v9519_v46  ;;  %v7441_v45 = vld [vmem:[#allocation3 + $0x50] sm:$0xff] }
 0xbd6   :  { %v9523_v32 = vpop.eup %9522  ;;  %v7482_v6 = vmul.bf16 %v9521_v28, %v15130_v59  ;;  %v7278_v33 = vadd.f32 %v8700_v51, %v6901_v34  ;;  %v7155_v13 = vpop.f32.mrb[239].mxu1  ;;  %v7455_v21 = vunpack.c.l.bf16 %v7387_v29  ;;  %v7456_v34 = vunpack.c.h.bf16 %v7387_v29  ;;  %v7439_v51 = vld [vmem:[#allocation3 + $0x40] sm:$0xff] }
 0xbd7   :  { %v9525_v39 = vpop.eup %9524  ;;  %v7481_v30 = vmul.bf16 %v9523_v32, %v7353_v53  ;;  %v7276_v42 = vadd.f32 %v7155_v13, %v15106_v4  ;;  %v7442_v53 = vld [vmem:[#allocation3 + $0x58] sm:$0xff]  ;;  %v7350_v11 = vmul.bf16 1056980736, %v15147_v16  ;;  %v7390_v32 = vadd.bf16 1056980736, %v7382_v38  ;;  %v7440_v13 = vld [vmem:[#allocation3 + $0x48] sm:$0xff] }
 0xbd8   :  { %v7493_v23 = vunpack.c.l.bf16 %v7482_v6  ;;  %v7494_v62 = vunpack.c.h.bf16 %v7482_v6  ;;  %v7318_v25 = vpack.c.bf16 %v7278_v33, %v7277_v7  ;;  %v7381_v28 = vmul.bf16 1056980736, %v9525_v39 }
 0xbd9   :  { %v7491_v63 = vunpack.c.l.bf16 %v7481_v30  ;;  %v7492_v61 = vunpack.c.h.bf16 %v7481_v30  ;;  %v7317_v59 = vpack.c.bf16 %v7276_v42, %v7275_v41  ;;  %v7473_v16 = vmul.f32 %v7457_v18, %v7441_v45 }
 0xbda   :  { %v15182_v47 = vadd.f32 %v7493_v23, %v7469_v1  ;;  %v15184_v40 = vadd.f32 %v7494_v62, %v7470_v56  ;;  %9530 = vtanh.bf16 %v7318_v25  ;;  %v6844_v56 = vmul.f32 %v14808_v5, %v16434_v60 }
 0xbdb   :  { %v15186_v14 = vadd.f32 %v7491_v63, %v7467_v12  ;;  %v15188_v4 = vadd.f32 %v7492_v61, %v7468_v55  ;;  %9532 = vtanh.bf16 %v7317_v59  ;;  %v8703_v46 = vpop.f32.mrb[240].mxu1  ;;  %v15199_v61 = vadd.f32 %v15064_v15, %v15819_v10 }
 0xbdc   :  { %7573 = vst.msk [vmem:[#allocation3 + $0x30] sm:$0xff] %vm29_vm0, %v15182_v47  ;;  %7574 = vst.msk [vmem:[#allocation3 + $0x38] sm:$0xff] %vm29_vm0, %v15184_v40  ;;  %v7168_v1 = vpop.f32.mrb[241].mxu1  ;;  %v7349_v55 = vmul.bf16 1056980736, %v15150_v57  ;;  %v7474_v29 = vmul.f32 %v7458_v48, %v7442_v53  ;;  %v7471_v6 = vmul.f32 %v7455_v21, %v7439_v51  ;;  %v7281_v10 = vadd.f32 %v8703_v46, %v15051_v8  ;;  %v7446_v51 = vld [vmem:[#allocation3 + $0x78] sm:$0xff] }
 0xbdd   :  { %v9527_v12 = vpop.eup %9526  ;;  %7571 = vst.msk [vmem:[#allocation3 + $0x20] sm:$0xff] %vm29_vm0, %v15186_v14  ;;  %7572 = vst.msk [vmem:[#allocation3 + $0x28] sm:$0xff] %vm29_vm0, %v15188_v4  ;;  %v8704_v7 = vpop.f32.mrb[242].mxu1  ;;  %v7389_v60 = vadd.bf16 1056980736, %v7381_v28  ;;  %v7472_v18 = vmul.f32 %v7456_v34, %v7440_v13  ;;  %v7279_v30 = vadd.f32 %v7168_v1, %v15054_v2  ;;  %v7461_v42 = vunpack.c.l.bf16 %v7390_v32  ;;  %v7445_v28 = vld [vmem:[#allocation3 + $0x70] sm:$0xff] }
 0xbde   :  { %v9529_v33 = vpop.eup %9528  ;;  %v7484_v39 = vmul.bf16 %v9527_v12, %v15162_v54  ;;  %v7282_v15 = vadd.f32 %v8704_v7, %v15057_v3  ;;  %v7171_v57 = vpop.f32.mrb[243].mxu1  ;;  %v7462_v25 = vunpack.c.h.bf16 %v7390_v32  ;;  %v6907_v34 = vadd.f32 %v15071_v43, %v15817_v9  ;;  %v7444_v13 = vld [vmem:[#allocation3 + $0x68] sm:$0xff] }
 0xbdf   :  { %v7483_v48 = vmul.bf16 %v9529_v33, %v15164_v50  ;;  %v7280_v41 = vadd.f32 %v7171_v57, %v15060_v49  ;;  %v7459_v59 = vunpack.c.l.bf16 %v7389_v60  ;;  %v6845_v50 = vmul.f32 %v14808_v5, %v16435_v58  ;;  %v7443_v33 = vld [vmem:[#allocation3 + $0x60] sm:$0xff] }
 0xbe0   :  { %v7497_v38 = vunpack.c.l.bf16 %v7484_v39  ;;  %v7498_v23 = vunpack.c.h.bf16 %v7484_v39  ;;  %v7320_v62 = vpack.c.bf16 %v7282_v15, %v7281_v10  ;;  %v7460_v2 = vunpack.c.h.bf16 %v7389_v60 }
 0xbe1   :  { %v7495_v21 = vunpack.c.l.bf16 %v7483_v48  ;;  %v7496_v63 = vunpack.c.h.bf16 %v7483_v48  ;;  %v7319_v54 = vpack.c.bf16 %v7280_v41, %v7279_v30  ;;  %v7358_v46 = vadd.bf16 1056980736, %v7350_v11 }
 0xbe2   :  { %v15212_v8 = vadd.f32 %v7497_v38, %v7473_v16  ;;  %v15214_v3 = vadd.f32 %v7498_v23, %v7474_v29  ;;  %v7400_v32 = vmul.bf16 1056980736, %v7320_v62  ;;  %v6908_v58 = vadd.f32 %v6844_v56, %v10833_v26 }
 0xbe3   :  { %v15218_v45 = vadd.f32 %v7495_v21, %v7471_v6  ;;  %v15220_v49 = vadd.f32 %v7496_v63, %v7472_v18  ;;  %v8707_v53 = vpop.f32.mrb[244].mxu1  ;;  %v6909_v12 = vadd.f32 %v6845_v50, %v15941_v0  ;;  %v7357_v29 = vadd.bf16 1056980736, %v7349_v55 }
 0xbe4   :  { %7577 = vst.msk [vmem:[#allocation3 + $0x50] sm:$0xff] %vm29_vm0, %v15212_v8  ;;  %7578 = vst.msk [vmem:[#allocation3 + $0x58] sm:$0xff] %vm29_vm0, %v15214_v3  ;;  %v7184_v1 = vpop.f32.mrb[245].mxu1  ;;  %v7477_v6 = vmul.f32 %v7461_v42, %v7445_v28  ;;  %v7478_v7 = vmul.f32 %v7462_v25, %v7446_v51  ;;  %v7399_v9 = vmul.bf16 1056980736, %v7319_v54  ;;  %v7475_v60 = vmul.f32 %v7459_v59, %v7443_v33 }
 0xbe5   :  { %v9531_v16 = vpop.eup %9530  ;;  %7575 = vst.msk [vmem:[#allocation3 + $0x40] sm:$0xff] %vm29_vm0, %v15218_v45  ;;  %7576 = vst.msk [vmem:[#allocation3 + $0x48] sm:$0xff] %vm29_vm0, %v15220_v49  ;;  %v8708_v43 = vpop.f32.mrb[246].mxu1  ;;  %v7285_v56 = vadd.f32 %v8707_v53, %v6908_v58  ;;  %v7476_v10 = vmul.f32 %v7460_v2, %v7444_v13  ;;  %v7283_v15 = vadd.f32 %v7184_v1, %v15199_v61  ;;  %9534 = vtanh.bf16 %v7400_v32 }
 0xbe6   :  { %v9533_v11 = vpop.eup %9532  ;;  %v7486_v26 = vmul.bf16 %v9531_v16, %v7358_v46  ;;  %v7286_v39 = vadd.f32 %v8708_v43, %v6909_v12  ;;  %v7187_v0 = vpop.f32.mrb[247].mxu1  ;;  %9536 = vtanh.bf16 %v7399_v9  ;;  %v6848_v25 = vmul.f32 %v14808_v5, %v11001_v20  ;;  %v16562_v43 = vld [vmem:[#allocation123_spill] sm:$0xff] }
 0xbe7   :  { %v7485_v55 = vmul.bf16 %v9533_v11, %v7357_v29  ;;  %v7284_v57 = vadd.f32 %v7187_v0, %v6907_v34  ;;  %v6849_v21 = vmul.f32 %v14808_v5, %v10994_v19  ;;  %v6846_v59 = vmul.f32 %v14808_v5, %v10912_v44  ;;  %v16560_v29 = vld [vmem:[#allocation117_spill] sm:$0xff] }
 0xbe8   :  { %v7501_v18 = vunpack.c.l.bf16 %v7486_v26  ;;  %v7502_v48 = vunpack.c.h.bf16 %v7486_v26  ;;  %v7322_v30 = vpack.c.bf16 %v7286_v39, %v7285_v56  ;;  %v6847_v50 = vmul.f32 %v14808_v5, %v10906_v37  ;;  %v16564_v39 = vld [vmem:[#allocation119_spill] sm:$0xff] }
 0xbe9   :  { %v7499_v41 = vunpack.c.l.bf16 %v7485_v55  ;;  %v7500_v42 = vunpack.c.h.bf16 %v7485_v55  ;;  %v7321_v38 = vpack.c.bf16 %v7284_v57, %v7283_v15  ;;  %9538 = vtanh.f32 %v15154_v22 }
 0xbea   :  { %v15235_v23 = vadd.f32 %v7501_v18, %v7477_v6  ;;  %v15237_v62 = vadd.f32 %v7502_v48, %v7478_v7  ;;  %v7402_v19 = vmul.bf16 1056980736, %v7322_v30  ;;  %v6912_v20 = vadd.f32 %v6848_v25, %v11047_v31  ;;  %v16561_v7 = vld [vmem:[#allocation116_spill] sm:$0xff] }
 0xbeb   :  { %v15243_v61 = vadd.f32 %v7499_v41, %v7475_v60  ;;  %v15245_v63 = vadd.f32 %v7500_v42, %v7476_v10  ;;  %v8711_v54 = vpop.f32.mrb[248].mxu1  ;;  %v6913_v2 = vadd.f32 %v6849_v21, %v11042_v27  ;;  %9540 = vtanh.f32 %v15156_v17  ;;  %v16563_v60 = vld [vmem:[#allocation122_spill] sm:$0xff] }
 0xbec   :  { %7581 = vst.msk [vmem:[#allocation3 + $0x70] sm:$0xff] %vm29_vm0, %v15235_v23  ;;  %7582 = vst.msk [vmem:[#allocation3 + $0x78] sm:$0xff] %vm29_vm0, %v15237_v62  ;;  %v7200_v28 = vpop.f32.mrb[249].mxu1  ;;  %v7401_v37 = vmul.bf16 1056980736, %v7321_v38  ;;  %v6910_v44 = vadd.f32 %v6846_v59, %v10962_v52  ;;  %v6911_v53 = vadd.f32 %v6847_v50, %v15942_v36  ;;  %9542 = vtanh.f32 %v15158_v24  ;;  %v16558_v52 = vld [vmem:[#allocation121_spill] sm:$0xff] }
 0xbed   :  { %7579 = vst.msk [vmem:[#allocation3 + $0x60] sm:$0xff] %vm29_vm0, %v15243_v61  ;;  %7580 = vst.msk [vmem:[#allocation3 + $0x68] sm:$0xff] %vm29_vm0, %v15245_v63  ;;  %v8712_v22 = vpop.f32.mrb[250].mxu1  ;;  %v7289_v31 = vadd.f32 %v8711_v54, %v6912_v20  ;;  %9544 = vtanh.f32 %v15160_v35  ;;  %v6852_v1 = vmul.f32 %v14808_v5, %v16558_v52  ;;  %v16559_v36 = vld [vmem:[#allocation120_spill] sm:$0xff]  ;;  %v6850_v6 = vmul.f32 %v14808_v5, %v16560_v29  ;;  %v16565_v10 = vld [vmem:[#allocation118_spill] sm:$0xff] }
 0xbee   :  { %v7290_v34 = vadd.f32 %v8712_v22, %v6913_v2  ;;  %v7203_v46 = vpop.f32.mrb[251].mxu1  ;;  %v7287_v27 = vadd.f32 %v7200_v28, %v6910_v44  ;;  %9546 = vtanh.bf16 %v7402_v19  ;;  %v6853_v24 = vmul.f32 %v14808_v5, %v16559_v36 }
 0xbef   :  { %v7288_v17 = vadd.f32 %v7203_v46, %v6911_v53  ;;  %9548 = vtanh.bf16 %v7401_v37  ;;  %v6851_v33 = vmul.f32 %v14808_v5, %v16561_v7  ;;  %v6916_v11 = vadd.f32 %v6852_v1, %v16562_v43 }
 0xbf0   :  { %v7324_v51 = vpack.c.bf16 %v7290_v34, %v7289_v31  ;;  %9550 = vtanh.f32 %v15182_v47  ;;  %v9535_v12 = vpop.eup %9534  ;;  %v6917_v26 = vadd.f32 %v6853_v24, %v16563_v60 }
 0xbf1   :  { %v7323_v32 = vpack.c.bf16 %v7288_v17, %v7287_v27  ;;  %9552 = vtanh.f32 %v15184_v40  ;;  %v9537_v9 = vpop.eup %9536  ;;  %v7416_v47 = vmul.bf16 1056980736, %v9535_v12  ;;  %v6914_v40 = vadd.f32 %v6850_v6, %v16564_v39 }
 0xbf2   :  { %v7404_v58 = vmul.bf16 1056980736, %v7324_v51  ;;  %v7415_v56 = vmul.bf16 1056980736, %v9537_v9  ;;  %v6915_v55 = vadd.f32 %v6851_v33, %v16565_v10 }
 0xbf3   :  { %v7403_v16 = vmul.bf16 1056980736, %v7323_v32  ;;  %v8715_v35 = vpop.f32.mrb[252].mxu1  ;;  %v9539_v15 = vpop.eup %9538  ;;  %v7424_v57 = vadd.bf16 1056980736, %v7416_v47 }
 0xbf4   :  { %9554 = vtanh.bf16 %v7404_v58  ;;  %v7216_v13 = vpop.f32.mrb[253].mxu1  ;;  %v7293_v5 = vadd.f32 %v8715_v35, %v6916_v11  ;;  %v7423_v41 = vadd.bf16 1056980736, %v7415_v56 }
 0xbf5   :  { %9556 = vtanh.bf16 %v7403_v16  ;;  %v8716_v0 = vpop.f32.mrb[254].mxu1  ;;  %v9541_v30 = vpop.eup %9540  ;;  %v7291_v42 = vadd.f32 %v7216_v13, %v6914_v40  ;;  %v7537_v21 = vunpack.c.l.bf16 %v7424_v57  ;;  %v7538_v54 = vunpack.c.h.bf16 %v7424_v57 }
 0xbf6   :  { %9558 = vtanh.f32 %v15186_v14  ;;  %v7294_v18 = vadd.f32 %v8716_v0, %v6917_v26  ;;  %v7219_v48 = vpop.f32.mrb[255].mxu1  ;;  %v9543_v25 = vpop.eup %9542  ;;  %v7535_v14 = vunpack.c.l.bf16 %v7423_v41  ;;  %v7536_v19 = vunpack.c.h.bf16 %v7423_v41 }
 0xbf7   :  { %9560 = vtanh.f32 %v15188_v4  ;;  %v7292_v38 = vadd.f32 %v7219_v48, %v6915_v55  ;;  %v9545_v50 = vpop.eup %9544  ;;  %v7553_v28 = vmul.f32 %v9539_v15, %v7537_v21  ;;  %v7554_v2 = vmul.f32 %v9541_v30, %v7538_v54 }
 0xbf8   :  { %9562 = vtanh.f32 %v15212_v8  ;;  %v7326_v59 = vpack.c.bf16 %v7294_v18, %v7293_v5  ;;  %v7551_v44 = vmul.f32 %v9543_v25, %v7535_v14  ;;  %v7552_v22 = vmul.f32 %v9545_v50, %v7536_v19 }
 0xbf9   :  { %9564 = vtanh.f32 %v15214_v3  ;;  %v7325_v20 = vpack.c.bf16 %v7292_v38, %v7291_v42  ;;  %v9547_v37 = vpop.eup %9546  ;;  %7585 = vst.msk [vmem:[#allocation2 + $0x10] sm:$0xff] %vm29_vm0, %v7553_v28  ;;  %7586 = vst.msk [vmem:[#allocation2 + $0x18] sm:$0xff] %vm29_vm0, %v7554_v2  ;;  %v16566_v18 = vmov 0.0|0.0  }
 0xbfa   :  { %9566 = vtanh.f32 %v15218_v45  ;;  %v7406_v4 = vmul.bf16 1056980736, %v7326_v59  ;;  %v9549_v53 = vpop.eup %9548  ;;  %v7418_v3 = vmul.bf16 1056980736, %v9547_v37  ;;  %7583 = vst.msk [vmem:[#allocation2] sm:$0xff] %vm29_vm0, %v7551_v44  ;;  %7584 = vst.msk [vmem:[#allocation2 + $0x8] sm:$0xff] %vm29_vm0, %v7552_v22 }
 0xbfb   :  { %9568 = vtanh.f32 %v15220_v49  ;;  %v7405_v8 = vmul.bf16 1056980736, %v7325_v20  ;;  %v9551_v31 = vpop.eup %9550  ;;  %v7417_v45 = vmul.bf16 1056980736, %v9549_v53 }
 0xbfc   :  { %9570 = vtanh.bf16 %v7406_v4  ;;  %v9553_v34 = vpop.eup %9552  ;;  %v7426_v46 = vadd.bf16 1056980736, %v7418_v3 }
 0xbfd   :  { %9572 = vtanh.bf16 %v7405_v8  ;;  %v7425_v27 = vadd.bf16 1056980736, %v7417_v45 }
 0xbfe   :  { %v7541_v32 = vunpack.c.l.bf16 %v7426_v46  ;;  %v7542_v58 = vunpack.c.h.bf16 %v7426_v46  ;;  %9574 = vtanh.f32 %v15235_v23 }
 0xbff   :  { %v9555_v49 = vpop.eup %9554  ;;  %v7539_v36 = vunpack.c.l.bf16 %v7425_v27  ;;  %v7540_v24 = vunpack.c.h.bf16 %v7425_v27  ;;  %9576 = vtanh.f32 %v15237_v62 }
 0xc00   :  { %v9557_v17 = vpop.eup %9556  ;;  %v7420_v52 = vmul.bf16 1056980736, %v9555_v49  ;;  %v7557_v35 = vmul.f32 %v9551_v31, %v7541_v32  ;;  %v7558_v29 = vmul.f32 %v9553_v34, %v7542_v58  ;;  %9578 = vtanh.f32 %v15243_v61  ;;  %v7605_v0 = vld [vmem:[#allocation2 + $0x10] sm:$0xff] }
 0xc01   :  { %v9559_v51 = vpop.eup %9558  ;;  %v7419_v12 = vmul.bf16 1056980736, %v9557_v17  ;;  %9580 = vtanh.f32 %v15245_v63  ;;  %v7603_v13 = vld [vmem:[#allocation2] sm:$0xff]  ;;  %v7604_v62 = vld [vmem:[#allocation2 + $0x8] sm:$0xff]  ;;  %v7606_v63 = vld [vmem:[#allocation2 + $0x18] sm:$0xff] }
 0xc02   :  { %v9561_v1 = vpop.eup %9560  ;;  %v7428_v6 = vadd.bf16 1056980736, %v7420_v52  ;;  %v7555_v33 = vmul.f32 %v9559_v51, %v7539_v36  ;;  %7589 = vst.msk [vmem:[#allocation2 + $0x30] sm:$0xff] %vm29_vm0, %v7557_v35  ;;  %7590 = vst.msk [vmem:[#allocation2 + $0x38] sm:$0xff] %vm29_vm0, %v7558_v29  ;;  %v8753_v56 = vpack.c.bf16 %v7604_v62, %v7603_v13  ;;  %v8756_v30 = vpack.c.bf16 %v7606_v63, %v7605_v0  ;;  %v7602_v36 = vld [vmem:[%s15326_s4] sm:$0xff] }
 0xc03   :  { %v9563_v16 = vpop.eup %9562  ;;  %v7556_v9 = vmul.f32 %v9561_v1, %v7540_v24  ;;  %v7427_v47 = vadd.bf16 1056980736, %v7419_v12  ;;  %v7623_v24 = vpop.permute.xlu0 %7622 }
 0xc04   :  { %v9565_v7 = vpop.eup %9564  ;;  %v7545_v23 = vunpack.c.l.bf16 %v7428_v6  ;;  %v7546_v11 = vunpack.c.h.bf16 %v7428_v6  ;;  %7587 = vst.msk [vmem:[#allocation2 + $0x20] sm:$0xff] %vm29_vm0, %v7555_v33  ;;  %8754 = vmatpush3.bf16.msra.mxu0 %v8753_v56 }
 0xc05   :  { %v9567_v43 = vpop.eup %9566  ;;  %7588 = vst.msk [vmem:[#allocation2 + $0x28] sm:$0xff] %vm29_vm0, %v7556_v9  ;;  %v7543_v61 = vunpack.c.l.bf16 %v7427_v47  ;;  %v7544_v26 = vunpack.c.h.bf16 %v7427_v47  ;;  %8755 = vmatprep.subr.bf16.mxu0 %v16566_v18 }
 0xc06   :  { %v9569_v60 = vpop.eup %9568  ;;  %v7561_v39 = vmul.f32 %v9563_v16, %v7545_v23  ;;  %v7562_v40 = vmul.f32 %v9565_v7, %v7546_v11 }
 0xc07   :  { %v9571_v10 = vpop.eup %9570  ;;  %v7559_v55 = vmul.f32 %v9567_v43, %v7543_v61  ;;  %v7560_v15 = vmul.f32 %v9569_v60, %v7544_v26 }
 0xc08   :  { %v9573_v57 = vpop.eup %9572  ;;  %7593 = vst.msk [vmem:[#allocation2 + $0x50] sm:$0xff] %vm29_vm0, %v7561_v39  ;;  %7594 = vst.msk [vmem:[#allocation2 + $0x58] sm:$0xff] %vm29_vm0, %v7562_v40  ;;  %v7422_v5 = vmul.bf16 1056980736, %v9571_v10  ;;  %8757 = vmatpush3.bf16.msra.mxu0 %v8756_v30 }
 0xc09   :  { %7591 = vst.msk [vmem:[#allocation2 + $0x40] sm:$0xff] %vm29_vm0, %v7559_v55  ;;  %7592 = vst.msk [vmem:[#allocation2 + $0x48] sm:$0xff] %vm29_vm0, %v7560_v15  ;;  %v7421_v48 = vmul.bf16 1056980736, %v9573_v57  ;;  %v9575_v42 = vpop.eup %9574  ;;  %8758 = vmatprep.subr.bf16.mxu0 %v16566_v18  ;;  %v7609_v44 = vld [vmem:[#allocation2 + $0x30] sm:$0xff]  ;;  %v7610_v22 = vld [vmem:[#allocation2 + $0x38] sm:$0xff] }
 0xc0a   :  { %v7430_v41 = vadd.bf16 1056980736, %v7422_v5  ;;  %v9577_v25 = vpop.eup %9576  ;;  %v8762_v34 = vpack.c.bf16 %v7610_v22, %v7609_v44 }
 0xc0b   :  { %v7429_v38 = vadd.bf16 1056980736, %v7421_v48  ;;  %v7607_v59 = vld [vmem:[#allocation2 + $0x20] sm:$0xff]  ;;  %v9579_v14 = vpop.eup %9578 }
 0xc0c   :  { %v7549_v21 = vunpack.c.l.bf16 %v7430_v41  ;;  %v7550_v54 = vunpack.c.h.bf16 %v7430_v41  ;;  %v7608_v50 = vld [vmem:[#allocation2 + $0x28] sm:$0xff]  ;;  %v9581_v2 = vpop.eup %9580 }
 0xc0d   :  { %v7547_v19 = vunpack.c.l.bf16 %v7429_v38  ;;  %v7548_v20 = vunpack.c.h.bf16 %v7429_v38  ;;  %v8759_v28 = vpack.c.bf16 %v7608_v50, %v7607_v59 }
 0xc0e   :  { %v7565_v4 = vmul.f32 %v9575_v42, %v7549_v21  ;;  %v7566_v37 = vmul.f32 %v9577_v25, %v7550_v54 }
 0xc0f   :  { %v7563_v8 = vmul.f32 %v9579_v14, %v7547_v19  ;;  %v7564_v53 = vmul.f32 %v9581_v2, %v7548_v20  ;;  %8760 = vmatpush3.bf16.msra.mxu0 %v8759_v28  ;;  %v7613_v46 = vld [vmem:[#allocation2 + $0x50] sm:$0xff]  ;;  %v7614_v49 = vld [vmem:[#allocation2 + $0x58] sm:$0xff] }
 0xc10   :  { %7597 = vst.msk [vmem:[#allocation2 + $0x70] sm:$0xff] %vm29_vm0, %v7565_v4  ;;  %7598 = vst.msk [vmem:[#allocation2 + $0x78] sm:$0xff] %vm29_vm0, %v7566_v37  ;;  %8761 = vmatprep.subr.bf16.mxu0 %v16566_v18  ;;  %v7611_v31 = vld [vmem:[#allocation2 + $0x40] sm:$0xff]  ;;  %v7612_v3 = vld [vmem:[#allocation2 + $0x48] sm:$0xff]  ;;  %v8768_v51 = vpack.c.bf16 %v7614_v49, %v7613_v46 }
 0xc11   :  { %7595 = vst.msk [vmem:[#allocation2 + $0x60] sm:$0xff] %vm29_vm0, %v7563_v8  ;;  %7596 = vst.msk [vmem:[#allocation2 + $0x68] sm:$0xff] %vm29_vm0, %v7564_v53  ;;  %v8765_v45 = vpack.c.bf16 %v7612_v3, %v7611_v31 }
 0xc13   :  { %8763 = vmatpush3.bf16.msra.mxu0 %v8762_v34 }
 0xc14   :  { %8764 = vmatprep.subr.bf16.mxu0 %v16566_v18 }
 0xc17   :  { %8766 = vmatpush3.bf16.msra.mxu0 %v8765_v45  ;;  %v7617_v58 = vld [vmem:[#allocation2 + $0x70] sm:$0xff]  ;;  %v7618_v52 = vld [vmem:[#allocation2 + $0x78] sm:$0xff] }
 0xc18   :  { %8767 = vmatprep.subr.bf16.mxu0 %v16566_v18  ;;  %v7615_v27 = vld [vmem:[#allocation2 + $0x60] sm:$0xff]  ;;  %v7616_v17 = vld [vmem:[#allocation2 + $0x68] sm:$0xff]  ;;  %v8774_v1 = vpack.c.bf16 %v7618_v52, %v7617_v58 }
 0xc19   :  { %v8771_v32 = vpack.c.bf16 %v7616_v17, %v7615_v27 }
 0xc1b   :  { %8769 = vmatpush3.bf16.msra.mxu0 %v8768_v51 }
 0xc1c   :  { %8770 = vmatprep.subr.bf16.mxu0 %v16566_v18 }
 0xc1f   :  { %8772 = vmatpush3.bf16.msra.mxu0 %v8771_v32 }
 0xc20   :  { %8773 = vmatprep.subr.bf16.mxu0 %v16566_v18 }
 0xc23   :  { %8775 = vmatpush3.bf16.msra.mxu0 %v8774_v1 }
 0xc26   :  { %8750 = vmatmul.mubr.f32.vlgmr.msra.gmra.mrb[0].mxu0 %v7602_v36 }
 0xcf9   :  { %v7691_v12 = vpop.f32.mrb[0].mxu0 }
 0xcfa   :  { %v7692_v16 = vadd.f32 %v7691_v12, %v7623_v24  ;;  %v8751_v35 = vpop.f32.mrb[1].mxu0 }
 0xcfc   :  { %7695 = vst.msk [vmem:[%s15327_s6] sm:$0xff] %vm29_vm0, %v7692_v16 }

</bundles_post_ra>
